<compile_context>
chip_gen: v5e
topology: v5e:2x2
jax: 0.10.0
libtpu: 0.0.40
codegen_flags: <defaults>
</compile_context>

<pallas_src>
import functools

import jax
import jax.numpy as jnp
from jax import lax
from jax.experimental import pallas as pl
from jax.experimental.pallas import tpu as pltpu

_BN_EPS = 1e-5
_LN_EPS = 1e-5
_VMEM_LIMIT = 32 * 1024 * 1024     # safe on v5e/v6e/v7x, plenty for our tiles


def _round_up(x, m):
    return (x + m - 1) // m * m


def _pick_tile(n, candidates):
    """Largest candidate tile that divides n (n itself as a last resort)."""
    for c in candidates:
        if n % c == 0:
            return c
    return n


def _elu(y):
    return jnp.where(y > 0, y, jnp.exp(jnp.minimum(y, 0.0)) - 1.0)


def _gelu(y):  # tanh approximation
    return 0.5 * y * (1.0 + jnp.tanh(0.7978845608028654 * (y + 0.044715 * y * y * y)))


def _sigmoid(y):
    return 1.0 / (1.0 + jnp.exp(-y))


# --------------------------------------------------------------------------------
# fused matmul: (optional LN(x)) @ w -> f32 acc -> *scale + shift (+act) (+residual)
# --------------------------------------------------------------------------------
def _matmul_kernel(*refs, multi_k, fuse_ln, has_scale, has_shift, has_residual,
                   activation, ln_eps):
    it = iter(refs)
    x_ref = next(it)
    w_ref = next(it)
    scale_ref = next(it) if has_scale else None
    shift_ref = next(it) if has_shift else None
    g_ref = next(it) if fuse_ln else None
    b_ref = next(it) if fuse_ln else None
    res_ref = next(it) if has_residual else None
    o_ref = next(it)
    acc_ref = next(it) if multi_k else None

    x = x_ref[...]
    if fuse_ln:                                   # LayerNorm fused into the prologue
        xf = x.astype(jnp.float32)
        mu = jnp.mean(xf, axis=-1, keepdims=True)
        xc = xf - mu
        var = jnp.mean(xc * xc, axis=-1, keepdims=True)
        xf = xc * lax.rsqrt(var + ln_eps) * g_ref[...] + b_ref[...]
        x = xf.astype(jnp.bfloat16)

    part = jnp.dot(x, w_ref[...], preferred_element_type=jnp.float32)

    def epilogue(acc):
        y = acc
        if has_scale:
            y = y * scale_ref[...]
        if has_shift:
            y = y + shift_ref[...]
        if activation == "elu":
            y = _elu(y)
        elif activation == "relu":
            y = jnp.maximum(y, 0.0)
        elif activation == "gelu":
            y = _gelu(y)
        if has_residual:
            y = y + res_ref[...].astype(jnp.float32)
        o_ref[...] = y.astype(o_ref.dtype)

    if multi_k:
        @pl.when(pl.program_id(2) == 0)
        def _():
            acc_ref[...] = jnp.zeros_like(acc_ref)

        acc_ref[...] += part

        @pl.when(pl.program_id(2) == pl.num_programs(2) - 1)
        def _():
            epilogue(acc_ref[...])
    else:
        epilogue(part)


def fused_matmul(x, w, *, bias=None, scale=None, ln=None, activation="none",
                 residual=None, out_dtype=jnp.bfloat16):
    """act((LN?(x)) @ w * scale + bias) (+ residual); bf16 operands, f32 accumulation.

    `w` (K, N) bf16, `bias`/`scale` (1, N) f32 and `ln` = (gamma (1, K), beta (1, K))
    come pre-padded / pre-laid-out from prepare_params(); x feature dim must equal K.
    """
    M, K = x.shape
    Kw, N = w.shape
    assert K == Kw, (x.shape, w.shape)

    xb = x.astype(jnp.bfloat16)
    Mp = _round_up(M, 8)                 # only the tiny batch-sized slabs ever pad
    if Mp != M:
        xb = jnp.pad(xb, ((0, Mp - M), (0, 0)))
    tm = _pick_tile(Mp, (256, 128, 64, 32, 16, 8))

    if ln is not None:
        tk = K                           # LN fusion needs the whole row in one block
    elif K % 128 != 0:
        tk = K                           # e.g. conv1_L im2col K=27: never pad K
    elif Mp <= 64:
        tk = _pick_tile(K, (2048, 1024, 512, 256, 128))
    else:
        tk = _pick_tile(K, (512, 256, 128))
    tn = _pick_tile(N, (512, 256, 128)) if N % 128 == 0 else N
    nk = K // tk
    multi_k = nk > 1

    inputs = [xb, w]
    in_specs = [
        pl.BlockSpec((tm, tk), lambda i, j, k: (i, k)),
        pl.BlockSpec((tk, tn), lambda i, j, k: (k, j)),
    ]
    if scale is not None:
        inputs.append(scale)
        in_specs.append(pl.BlockSpec((1, tn), lambda i, j, k: (0, j)))
    if bias is not None:
        inputs.append(bias)
        in_specs.append(pl.BlockSpec((1, tn), lambda i, j, k: (0, j)))
    if ln is not None:
        inputs.extend([ln[0], ln[1]])
        in_specs.extend([pl.BlockSpec((1, tk), lambda i, j, k: (0, k))] * 2)
    if residual is not None:
        rb = residual
        if Mp != M:
            rb = jnp.pad(rb, ((0, Mp - M), (0, 0)))
        inputs.append(rb)
        in_specs.append(pl.BlockSpec((tm, tn), lambda i, j, k: (i, j)))

    out = pl.pallas_call(
        functools.partial(
            _matmul_kernel, multi_k=multi_k, fuse_ln=ln is not None,
            has_scale=scale is not None, has_shift=bias is not None,
            has_residual=residual is not None, activation=activation,
            ln_eps=_LN_EPS),
        out_shape=jax.ShapeDtypeStruct((Mp, N), out_dtype),
        grid_spec=pltpu.PrefetchScalarGridSpec(
            num_scalar_prefetch=0,
            grid=(Mp // tm, N // tn, nk),
            in_specs=in_specs,
            out_specs=pl.BlockSpec((tm, tn), lambda i, j, k: (i, j)),
            scratch_shapes=([pltpu.VMEM((tm, tn), jnp.float32)] if multi_k else []),
        ),
        compiler_params=pltpu.CompilerParams(
            dimension_semantics=("parallel", "parallel", "arbitrary"),
            vmem_limit_bytes=_VMEM_LIMIT),
    )(*inputs)
    return out[:M] if Mp != M else out


# --------------------------------------------------------------------------------
# standalone LayerNorm (only needed where the consumer is not a matmul: pe_ln2)
# --------------------------------------------------------------------------------
def _layernorm_kernel(x_ref, g_ref, b_ref, o_ref, *, eps):
    x = x_ref[...].astype(jnp.float32)
    mu = jnp.mean(x, axis=-1, keepdims=True)
    xc = x - mu
    var = jnp.mean(xc * xc, axis=-1, keepdims=True)
    o_ref[...] = (xc * lax.rsqrt(var + eps) * g_ref[...] + b_ref[...]).astype(o_ref.dtype)


def layernorm(x, gamma_row, beta_row, out_dtype=jnp.bfloat16):
    M, D = x.shape
    Mp = _round_up(M, 8)
    xp = jnp.pad(x, ((0, Mp - M), (0, 0))) if Mp != M else x
    tm = _pick_tile(Mp, (256, 128, 64, 32, 16, 8))
    out = pl.pallas_call(
        functools.partial(_layernorm_kernel, eps=_LN_EPS),
        out_shape=jax.ShapeDtypeStruct((Mp, D), out_dtype),
        grid=(Mp // tm,),
        in_specs=[pl.BlockSpec((tm, D), lambda i: (i, 0)),
                  pl.BlockSpec((1, D), lambda i: (0, 0)),
                  pl.BlockSpec((1, D), lambda i: (0, 0))],
        out_specs=pl.BlockSpec((tm, D), lambda i: (i, 0)),
        compiler_params=pltpu.CompilerParams(dimension_semantics=("parallel",)),
    )(xp, gamma_row, beta_row)
    return out[:M] if Mp != M else out


# --------------------------------------------------------------------------------
# multi-head attention straight off the (B*Sp, 3*inner) QKV slab
#   grid (batch, query-tile); q/k/v sliced via index_map block offsets (0/1/2);
#   heads sliced in VMEM; output written directly in (B*Sp, inner) layout.
# --------------------------------------------------------------------------------
def _attention_kernel(q_ref, k_ref, v_ref, o_ref, *, heads, dim_head, seq_len):
    q = q_ref[0]                                  # (tq, inner), q already * dh^-0.5
    k = k_ref[0]                                  # (Sp, inner)
    v = v_ref[0]
    kidx = lax.broadcasted_iota(jnp.int32, (q.shape[0], k.shape[0]), 1)
    outs = []
    for h in range(heads):                        # static unroll over heads
        sl = slice(h * dim_head, (h + 1) * dim_head)
        qh, kh, vh = q[:, sl], k[:, sl], v[:, sl]
        s = lax.dot_general(qh, kh, (((1,), (1,)), ((), ())),
                            preferred_element_type=jnp.float32)
        s = jnp.where(kidx < seq_len, s, -1e30)   # mask padded key tokens
        m = jnp.max(s, axis=-1, keepdims=True)
        p = jnp.exp(s - m)
        l = jnp.sum(p, axis=-1, keepdims=True)
        o = jnp.dot((p / l).astype(vh.dtype), vh, preferred_element_type=jnp.float32)
        outs.append(o)
    o_ref[0] = jnp.concatenate(outs, axis=-1).astype(o_ref.dtype)


def attention(qkv, *, batch, seq_pad, seq_len, heads, dim_head):
    inner = heads * dim_head
    qkv3 = qkv.reshape(batch, seq_pad, 3 * inner)       # free (contiguous) reshape
    tq = _pick_tile(seq_pad, (256, 128, 64, 32, 16, 8))
    out = pl.pallas_call(
        functools.partial(_attention_kernel, heads=heads, dim_head=dim_head,
                          seq_len=seq_len),
        out_shape=jax.ShapeDtypeStruct((batch, seq_pad, inner), jnp.bfloat16),
        grid=(batch, seq_pad // tq),
        in_specs=[
            pl.BlockSpec((1, tq, inner), lambda b, qi: (b, qi, 0)),       # q rows
            pl.BlockSpec((1, seq_pad, inner), lambda b, qi: (b, 0, 1)),   # all k
            pl.BlockSpec((1, seq_pad, inner), lambda b, qi: (b, 0, 2)),   # all v
        ],
        out_specs=pl.BlockSpec((1, tq, inner), lambda b, qi: (b, qi, 0)),
        compiler_params=pltpu.CompilerParams(
            dimension_semantics=("parallel", "parallel"),
            vmem_limit_bytes=_VMEM_LIMIT),
    )(qkv3, qkv3, qkv3)
    return out.reshape(batch * seq_pad, inner)


# --------------------------------------------------------------------------------
# LSTM layer: input projection hoisted out as one matmul, only the recurrence is
# serial (gates packed i|f|g|o along a lane-dense 4H axis, h/c in VMEM scratch).
# --------------------------------------------------------------------------------
def _lstm_rec_kernel(xg_ref, whh_ref, y_ref, h_sc, c_sc, *, seq_len, hidden):
    H = hidden
    h_sc[...] = jnp.zeros_like(h_sc)
    c_sc[...] = jnp.zeros_like(c_sc)
    for t in range(seq_len):                      # static unroll; seq_len = batch
        g = xg_ref[pl.ds(t, 1), :] + jnp.dot(
            h_sc[...].astype(jnp.bfloat16), whh_ref[...],
            preferred_element_type=jnp.float32)
        i_g = _sigmoid(g[:, 0:H])
        f_g = _sigmoid(g[:, H:2 * H])
        g_g = jnp.tanh(g[:, 2 * H:3 * H])
        o_g = _sigmoid(g[:, 3 * H:4 * H])
        c = f_g * c_sc[...] + i_g * g_g
        h = o_g * jnp.tanh(c)
        c_sc[...] = c
        h_sc[...] = h
        y_ref[pl.ds(t, 1), :] = h


def lstm_layer(x_seq, lp):
    """x_seq: (T, In_padded) -> (T, H) f32, PyTorch gate order (i, f, g, o)."""
    T = x_seq.shape[0]
    H = lp["w_hh"].shape[0]
    # gate pre-activations for every timestep in one MXU pass (b_ih + b_hh folded in)
    xg = fused_matmul(x_seq, lp["w_ih"], bias=lp["b"], out_dtype=jnp.float32)
    return pl.pallas_call(
        functools.partial(_lstm_rec_kernel, seq_len=T, hidden=H),
        out_shape=jax.ShapeDtypeStruct((T, H), jnp.float32),
        grid=(1,),
        in_specs=[pl.BlockSpec((T, 4 * H), lambda i: (0, 0)),
                  pl.BlockSpec((H, 4 * H), lambda i: (0, 0))],
        out_specs=pl.BlockSpec((T, H), lambda i: (0, 0)),
        scratch_shapes=[pltpu.VMEM((1, H), jnp.float32),
                        pltpu.VMEM((1, H), jnp.float32)],
    )(xg, lp["w_hh"])


# --------------------------------------------------------------------------------
# conv glue: im2col feeding the fused matmul (conv1_L: Cin=3, K=27 left un-padded)
# --------------------------------------------------------------------------------
def _im2col(x, kh, kw, stride, pad):
    N, H, W, C = x.shape
    Ho = (H + 2 * pad - kh) // stride + 1
    Wo = (W + 2 * pad - kw) // stride + 1
    xp = jnp.pad(x, ((0, 0), (pad, pad), (pad, pad), (0, 0)))
    cols = [xp[:, i:i + stride * (Ho - 1) + 1:stride,
               j:j + stride * (Wo - 1) + 1:stride, :]
            for i in range(kh) for j in range(kw)]
    cols = jnp.stack(cols, axis=3)                # (N, Ho, Wo, kh*kw, C)
    return cols.reshape(N * Ho * Wo, kh * kw * C), (N, Ho, Wo)


# --------------------------------------------------------------------------------
# forward pass (structure of stereo_vit_lstm.forward)
# --------------------------------------------------------------------------------
def forward(params, images, points, cfg):
    B = images.shape[0]
    ps, dim = cfg["patch_size"], cfg["dim"]
    heads, dh = cfg["heads"], cfg["dim_head"]

    # conv1_L: Conv2d(k=3,s=2,p=1) + eval BatchNorm2d + ELU, one fused MXU kernel.
    x = jnp.transpose(images, (0, 2, 3, 1)).astype(jnp.bfloat16)       # NCHW -> NHWC
    c = params["conv1_L"]
    cols, (_, Ho, Wo) = _im2col(x, 3, 3, 2, 1)
    x = fused_matmul(cols, c["wmat"], scale=c["scale"], bias=c["shift"],
                     activation="elu").reshape(B, Ho, Wo, 3)

    # --- ViT -----------------------------------------------------------------
    v = params["vit"]
    hn, wn = Ho // ps, Wo // ps
    n_patch = hn * wn
    # 'b c (h p1) (w p2) -> b (h w) (p1 p2 c)'   (NHWC keeps c innermost)
    patches = x.reshape(B, hn, ps, wn, ps, 3).transpose(0, 1, 3, 2, 4, 5)
    patches = patches.reshape(B * n_patch, ps * ps * 3)

    # patch embedding: LN(patch_dim) fused into the Linear, then LN(dim).
    e = fused_matmul(patches, v["pe_w"], bias=v["pe_b"], ln=v["pe_ln1"])
    e = layernorm(e, v["pe_ln2_g"], v["pe_ln2_b"]).reshape(B, n_patch, dim)

    S = n_patch + 1
    Sp = _round_up(S, 8) if S <= 128 else _round_up(S, 128)    # pad tokens ONCE
    cls = jnp.broadcast_to(v["cls"], (B, 1, dim))
    z = jnp.concatenate([cls, e], axis=1) + v["pos"][:, :S]    # (+ emb dropout = id)
    if Sp != S:
        z = jnp.pad(z, ((0, 0), (0, Sp - S), (0, 0)))
    zs = z.reshape(B * Sp, dim).astype(jnp.bfloat16)

    for layer in v["layers"]:
        # LN1 fused into QKV projection; 1/sqrt(dh) already folded into q columns.
        qkv = fused_matmul(zs, layer["w_qkv"], ln=layer["ln1"])
        o = attention(qkv, batch=B, seq_pad=Sp, seq_len=S, heads=heads, dim_head=dh)
        zs = fused_matmul(o, layer["w_out"], bias=layer["b_out"], residual=zs)
        hmid = fused_matmul(zs, layer["w_ff1"], bias=layer["b_ff1"],
                            ln=layer["ln2"], activation="gelu")
        zs = fused_matmul(hmid, layer["w_ff2"], bias=layer["b_ff2"], residual=zs)

    cls_tok = zs.reshape(B, Sp, dim)[:, 0, :]                  # 'cls' pooling
    img_f = fused_matmul(cls_tok, v["head_w"], bias=v["head_b"], ln=v["final_ln"])

    # --- LSTM over points ------------------------------------------------------
    # points is 2-D (B, 100): nn.LSTM treats it as an UNBATCHED length-B sequence,
    # so pt_feature row t is the step-t LSTM output fused with image-feature row t.
    in_p = params["lstm"][0]["w_ih"].shape[0]
    h_seq = points.astype(jnp.float32)
    h_seq = jnp.pad(h_seq, ((0, 0), (0, in_p - h_seq.shape[1])))
    for lp in params["lstm"]:
        h_seq = lstm_layer(h_seq, lp)

    # --- decoder: Flatten (no-op) -> Linear/ReLU -> Linear/ReLU -> Linear -------
    fuse = jnp.concatenate([img_f, h_seq.astype(jnp.bfloat16)], axis=1)
    d = fused_matmul(fuse, params["dec"][0]["w"], bias=params["dec"][0]["b"],
                     activation="relu")
    d = fused_matmul(d, params["dec"][1]["w"], bias=params["dec"][1]["b"],
                     activation="relu")
    d = fused_matmul(d, params["dec"][2]["w"], bias=params["dec"][2]["b"],
                     out_dtype=jnp.float32)
    return d[:, :cfg["out_dim"]]


# --------------------------------------------------------------------------------
# deterministic parameter init (PyTorch layouts) + one-time kernel-layout prep
# --------------------------------------------------------------------------------
class _Keys:
    def __init__(self, key):
        self._key = key

    def __call__(self):
        self._key, k = jax.random.split(self._key)
        return k


def init_params(key, cfg):
    ks = _Keys(key)
    c_in = cfg["num_in_layers"]
    ps, dim = cfg["patch_size"], cfg["dim"]
    n_patch = (cfg["image_size"] // ps) ** 2
    patch_dim = ps * ps * 3
    H = cfg["lstm_hidden"]

    def lin(fin, fout, bias=True):
        lim = fin ** -0.5
        return {"w": jax.random.uniform(ks(), (fout, fin), jnp.float32, -lim, lim),
                "b": (jax.random.uniform(ks(), (fout,), jnp.float32, -lim, lim)
                      if bias else None)}

    def ln(d):
        return {"g": jnp.ones((d,), jnp.float32), "b": jnp.zeros((d,), jnp.float32)}

    lim = (6.0 / (c_in * 9 + 3 * 9)) ** 0.5        # xavier_uniform_ as in the module
    blim = (c_in * 9) ** -0.5
    conv1 = {"w": jax.random.uniform(ks(), (3, c_in, 3, 3), jnp.float32, -lim, lim),
             "b": jax.random.uniform(ks(), (3,), jnp.float32, -blim, blim),
             "bn": {"gamma": jnp.ones((3,), jnp.float32),
                    "beta": jnp.zeros((3,), jnp.float32),
                    "mean": jnp.zeros((3,), jnp.float32),
                    "var": jnp.ones((3,), jnp.float32)}}

    inner = cfg["heads"] * cfg["dim_head"]
    layers = [{"ln1": ln(dim),
               "qkv": lin(dim, 3 * inner, bias=False),
               "out": lin(inner, dim),
               "ln2": ln(dim),
               "ff1": lin(dim, cfg["mlp_dim"]),
               "ff2": lin(cfg["mlp_dim"], dim)} for _ in range(cfg["depth"])]
    vit = {"pe_ln1": ln(patch_dim), "pe": lin(patch_dim, dim), "pe_ln2": ln(dim),
           "cls": 0.02 * jax.random.normal(ks(), (1, 1, dim), jnp.float32),
           "pos": 0.02 * jax.random.normal(ks(), (1, n_patch + 1, dim), jnp.float32),
           "layers": layers, "final_ln": ln(dim),
           "head": lin(dim, cfg["num_classes"])}

    lstm, in_dim, lim = [], cfg["lstm_in"], H ** -0.5
    for _ in range(cfg["lstm_layers"]):
        lstm.append({"w_ih": jax.random.uniform(ks(), (4 * H, in_dim), jnp.float32, -lim, lim),
                     "w_hh": jax.random.uniform(ks(), (4 * H, H), jnp.float32, -lim, lim),
                     "b_ih": jax.random.uniform(ks(), (4 * H,), jnp.float32, -lim, lim),
                     "b_hh": jax.random.uniform(ks(), (4 * H,), jnp.float32, -lim, lim)})
        in_dim = H

    dims = (cfg["num_classes"] + H,) + tuple(cfg["dec_hidden"]) + (cfg["out_dim"],)
    dec = [lin(dims[i], dims[i + 1]) for i in range(len(dims) - 1)]
    return {"conv1_L": conv1, "vit": vit, "lstm": lstm, "dec": dec}


def prepare_params(raw, cfg):
    """One-time, outside-jit conversion: PyTorch layouts -> kernel-ready layouts.

    Weights become lane-aligned (K, N) bf16 (pre-padded where needed), biases/scales
    become (1, N) f32 rows, conv bias + eval BN fold to scale/shift, LSTM gates pack
    into (In, 4H)/(H, 4H) with b_ih + b_hh pre-summed, and the attention 1/sqrt(dh)
    scale folds into the q columns of w_qkv — so the per-call path never pads/copies
    weight-side tensors.
    """
    bf, f32 = jnp.bfloat16, jnp.float32

    def row(v):
        return None if v is None else jnp.asarray(v, f32).reshape(1, -1)

    def lin(p, pad128=False):
        w = jnp.asarray(p["w"]).T                       # (fin, fout)
        fin, fout = w.shape
        kp = _round_up(fin, 128) if pad128 else fin
        np_ = _round_up(fout, 128) if pad128 else fout
        w = jnp.pad(w, ((0, kp - fin), (0, np_ - fout))).astype(bf)
        b = p["b"]
        if b is not None:
            b = jnp.pad(jnp.asarray(b, f32), (0, np_ - fout)).reshape(1, -1)
        return {"w": w, "b": b}

    # conv1_L: fold eval-BN + conv bias into per-channel scale/shift
    c, bn = raw["conv1_L"], raw["conv1_L"]["bn"]
    scale = bn["gamma"] / jnp.sqrt(bn["var"] + _BN_EPS)
    shift = bn["beta"] + (c["b"] - bn["mean"]) * scale
    wmat = jnp.transpose(c["w"], (2, 3, 1, 0)).reshape(-1, c["w"].shape[0]).astype(bf)
    conv1 = {"wmat": wmat, "scale": row(scale), "shift": row(shift)}

    v = raw["vit"]
    inner = cfg["heads"] * cfg["dim_head"]
    dh_scale = float(cfg["dim_head"]) ** -0.5
    layers = []
    for l in v["layers"]:
        w_qkv = jnp.asarray(l["qkv"]["w"]).T.astype(f32)          # (dim, 3*inner)
        w_qkv = w_qkv.at[:, :inner].multiply(dh_scale)            # fold attn scale
        layers.append({
            "ln1": (row(l["ln1"]["g"]), row(l["ln1"]["b"])),
            "w_qkv": w_qkv.astype(bf),
            "w_out": jnp.asarray(l["out"]["w"]).T.astype(bf), "b_out": row(l["out"]["b"]),
            "ln2": (row(l["ln2"]["g"]), row(l["ln2"]["b"])),
            "w_ff1": jnp.asarray(l["ff1"]["w"]).T.astype(bf), "b_ff1": row(l["ff1"]["b"]),
            "w_ff2": jnp.asarray(l["ff2"]["w"]).T.astype(bf), "b_ff2": row(l["ff2"]["b"]),
        })
    vit = {"pe_ln1": (row(v["pe_ln1"]["g"]), row(v["pe_ln1"]["b"])),
           "pe_w": jnp.asarray(v["pe"]["w"]).T.astype(bf), "pe_b": row(v["pe"]["b"]),
           "pe_ln2_g": row(v["pe_ln2"]["g"]), "pe_ln2_b": row(v["pe_ln2"]["b"]),
           "cls": v["cls"].astype(bf), "pos": v["pos"].astype(bf),
           "layers": layers,
           "final_ln": (row(v["final_ln"]["g"]), row(v["final_ln"]["b"])),
           "head_w": jnp.asarray(v["head"]["w"]).T.astype(bf), "head_b": row(v["head"]["b"])}

    H = cfg["lstm_hidden"]
    lstm = []
    for l in raw["lstm"]:
        in_dim = l["w_ih"].shape[1]
        in_p = _round_up(in_dim, 128)
        # PyTorch (4H, In) gate order (i,f,g,o) -> packed (In_p, 4H) bf16
        w_ih = jnp.pad(jnp.asarray(l["w_ih"]).T, ((0, in_p - in_dim), (0, 0))).astype(bf)
        w_hh = jnp.asarray(l["w_hh"]).T.astype(bf)                 # (H, 4H)
        b = (l["b_ih"] + l["b_hh"]).reshape(1, 4 * H).astype(f32)
        lstm.append({"w_ih": w_ih, "w_hh": w_hh, "b": b})

    dec = [lin(p, pad128=True) for p in raw["dec"]]
    return {"conv1_L": conv1, "vit": vit, "lstm": lstm, "dec": dec}


if __name__ == "__main__":
    # Scaled-down stereo_vit_lstm (full model: image_size=896, dim=1024, depth=6,
    # heads=16, dim_head=64, mlp_dim=2048, num_classes=512, LSTM 100->512 x4,
    # decoder 1024->256->64->2).  Input images are 2x image_size (conv1_L stride 2).
    cfg = dict(num_in_layers=3, image_size=64, patch_size=32,
               dim=128, depth=2, heads=4, dim_head=32, mlp_dim=256, num_classes=128,
               lstm_in=100, lstm_hidden=128, lstm_layers=4,
               dec_hidden=(64, 32), out_dim=2)

    raw = init_params(jax.random.PRNGKey(0), cfg)
    params = prepare_params(raw, cfg)          # one-time weight prep, outside jit

    k_img, k_pts = jax.random.split(jax.random.PRNGKey(0))
    B = 2
    images = jax.random.normal(
        k_img, (B, cfg["num_in_layers"], 2 * cfg["image_size"], 2 * cfg["image_size"]),
        jnp.float32)
    points = jax.random.normal(k_pts, (B, cfg["lstm_in"]), jnp.float32)

    fwd = jax.jit(functools.partial(forward, cfg=cfg))
    out = jax.block_until_ready(fwd(params, images, points))
    assert out.shape == (B, cfg["out_dim"]), out.shape
    assert bool(jnp.all(jnp.isfinite(out)))
    print("KERNEL_OK")
</pallas_src>

<mosaic_0001>
module attributes {stable_mosaic.version = 11 : i64} {
  func.func @_matmul_kernel(%arg0: i32, %arg1: i32, %arg2: i32, %arg3: memref<256x27xbf16, #tpu.memory_space<vmem>>, %arg4: memref<27x3xbf16, #tpu.memory_space<vmem>>, %arg5: memref<1x3xf32, #tpu.memory_space<vmem>>, %arg6: memref<1x3xf32, #tpu.memory_space<vmem>>, %arg7: memref<256x3xbf16, #tpu.memory_space<vmem>>) attributes {dimension_semantics = [#tpu.dimension_semantics<parallel>, #tpu.dimension_semantics<parallel>, #tpu.dimension_semantics<arbitrary>], iteration_bounds = array<i64: 32, 1, 1>, scalar_prefetch = 0 : i64, scratch_operands = 0 : i64, tpu.core_type = #tpu.core_type<tc>, window_params = [{transform_indices = @transform_0, window_bounds = array<i64: 256, 27>}, {transform_indices = @transform_1, window_bounds = array<i64: 27, 3>}, {transform_indices = @transform_2, window_bounds = array<i64: 1, 3>}, {transform_indices = @transform_3, window_bounds = array<i64: 1, 3>}, {transform_indices = @transform_4, window_bounds = array<i64: 256, 3>}]} {
    %c0 = arith.constant 0 : index
    %c0_0 = arith.constant 0 : index
    %0 = vector.load %arg3[%c0, %c0_0] : memref<256x27xbf16, #tpu.memory_space<vmem>>, vector<256x27xbf16>
    %c0_1 = arith.constant 0 : index
    %c0_2 = arith.constant 0 : index
    %1 = vector.load %arg4[%c0_1, %c0_2] : memref<27x3xbf16, #tpu.memory_space<vmem>>, vector<27x3xbf16>
    %cst = arith.constant dense<0.000000e+00> : vector<256x3xf32>
    %2 = tpu.matmul %0, %1, %cst {dimension_numbers = #tpu.dot_dimension_numbers<[1], [0], [0], [1], [0, 0, 1, 1], [], []>} : vector<256x27xbf16>, vector<27x3xbf16>, vector<256x3xf32> -> vector<256x3xf32>
    %c0_3 = arith.constant 0 : index
    %c0_4 = arith.constant 0 : index
    %3 = vector.load %arg5[%c0_3, %c0_4] : memref<1x3xf32, #tpu.memory_space<vmem>>, vector<1x3xf32>
    %4 = vector.broadcast %3 : vector<1x3xf32> to vector<256x3xf32>
    %5 = arith.mulf %2, %4 : vector<256x3xf32>
    %c0_5 = arith.constant 0 : index
    %c0_6 = arith.constant 0 : index
    %6 = vector.load %arg6[%c0_5, %c0_6] : memref<1x3xf32, #tpu.memory_space<vmem>>, vector<1x3xf32>
    %7 = vector.broadcast %6 : vector<1x3xf32> to vector<256x3xf32>
    %8 = arith.addf %5, %7 : vector<256x3xf32>
    %cst_7 = arith.constant 0.000000e+00 : f32
    %9 = vector.broadcast %cst_7 : f32 to vector<256x3xf32>
    %10 = arith.cmpf ogt, %8, %9 : vector<256x3xf32>
    %cst_8 = arith.constant 0.000000e+00 : f32
    %11 = vector.broadcast %cst_8 : f32 to vector<256x3xf32>
    %12 = arith.minimumf %8, %11 : vector<256x3xf32>
    %13 = math.exp %12 : vector<256x3xf32>
    %cst_9 = arith.constant 1.000000e+00 : f32
    %14 = vector.broadcast %cst_9 : f32 to vector<256x3xf32>
    %15 = arith.subf %13, %14 : vector<256x3xf32>
    %16 = arith.select %10, %8, %15 : vector<256x3xi1>, vector<256x3xf32>
    %17 = arith.truncf %16 : vector<256x3xf32> to vector<256x3xbf16>
    %c0_10 = arith.constant 0 : index
    %c0_11 = arith.constant 0 : index
    %18 = vector.load %arg7[%c0_10, %c0_11] : memref<256x3xbf16, #tpu.memory_space<vmem>>, vector<256x3xbf16>
    tpu.vector_store %arg7[%c0_10, %c0_11], %17 {strides = array<i32>} : memref<256x3xbf16, #tpu.memory_space<vmem>>, vector<256x3xbf16>,
    return
  }
  func.func @transform_0(%arg0: i32, %arg1: i32, %arg2: i32) -> (i32, i32) {
    %c0_i32 = arith.constant 0 : i32
    return %arg0, %arg2 : i32, i32
  }
  func.func @transform_1(%arg0: i32, %arg1: i32, %arg2: i32) -> (i32, i32) {
    %c0_i32 = arith.constant 0 : i32
    return %arg2, %arg1 : i32, i32
  }
  func.func @transform_2(%arg0: i32, %arg1: i32, %arg2: i32) -> (i32, i32) {
    %c0_i32 = arith.constant 0 : i32
    %c0_i32_0 = arith.constant 0 : i32
    return %c0_i32, %arg1 : i32, i32
  }
  func.func @transform_3(%arg0: i32, %arg1: i32, %arg2: i32) -> (i32, i32) {
    %c0_i32 = arith.constant 0 : i32
    %c0_i32_0 = arith.constant 0 : i32
    return %c0_i32, %arg1 : i32, i32
  }
  func.func @transform_4(%arg0: i32, %arg1: i32, %arg2: i32) -> (i32, i32) {
    %c0_i32 = arith.constant 0 : i32
    return %arg0, %arg1 : i32, i32
  }
}

module attributes {stable_mosaic.version = 11 : i64} {
  func.func @_matmul_kernel(%arg0: i32, %arg1: i32, %arg2: i32, %arg3: memref<8x3072xbf16, #tpu.memory_space<vmem>>, %arg4: memref<3072x128xbf16, #tpu.memory_space<vmem>>, %arg5: memref<1x128xf32, #tpu.memory_space<vmem>>, %arg6: memref<1x3072xf32, #tpu.memory_space<vmem>>, %arg7: memref<1x3072xf32, #tpu.memory_space<vmem>>, %arg8: memref<8x128xbf16, #tpu.memory_space<vmem>>) attributes {dimension_semantics = [#tpu.dimension_semantics<parallel>, #tpu.dimension_semantics<parallel>, #tpu.dimension_semantics<arbitrary>], iteration_bounds = array<i64: 1, 1, 1>, scalar_prefetch = 0 : i64, scratch_operands = 0 : i64, tpu.core_type = #tpu.core_type<tc>, window_params = [{transform_indices = @transform_0, window_bounds = array<i64: 8, 3072>}, {transform_indices = @transform_1, window_bounds = array<i64: 3072, 128>}, {transform_indices = @transform_2, window_bounds = array<i64: 1, 128>}, {transform_indices = @transform_3, window_bounds = array<i64: 1, 3072>}, {transform_indices = @transform_4, window_bounds = array<i64: 1, 3072>}, {transform_indices = @transform_5, window_bounds = array<i64: 8, 128>}]} {
    %c0 = arith.constant 0 : index
    %c0_0 = arith.constant 0 : index
    %0 = vector.load %arg3[%c0, %c0_0] : memref<8x3072xbf16, #tpu.memory_space<vmem>>, vector<8x3072xbf16>
    %1 = arith.extf %0 : vector<8x3072xbf16> to vector<8x3072xf32>
    %cst = arith.constant dense<0.000000e+00> : vector<8xf32>
    %2 = vector.multi_reduction <add>, %1, %cst [1] : vector<8x3072xf32> to vector<8xf32>
    %3 = vector.shape_cast %2 : vector<8xf32> to vector<8x1xf32>
    %cst_1 = arith.constant 3.072000e+03 : f32
    %4 = vector.broadcast %cst_1 : f32 to vector<8x1xf32>
    %5 = arith.divf %3, %4 : vector<8x1xf32>
    %6 = vector.broadcast %5 : vector<8x1xf32> to vector<8x3072xf32>
    %7 = arith.subf %1, %6 : vector<8x3072xf32>
    %8 = arith.mulf %7, %7 : vector<8x3072xf32>
    %cst_2 = arith.constant dense<0.000000e+00> : vector<8xf32>
    %9 = vector.multi_reduction <add>, %8, %cst_2 [1] : vector<8x3072xf32> to vector<8xf32>
    %10 = vector.shape_cast %9 : vector<8xf32> to vector<8x1xf32>
    %cst_3 = arith.constant 3.072000e+03 : f32
    %11 = vector.broadcast %cst_3 : f32 to vector<8x1xf32>
    %12 = arith.divf %10, %11 : vector<8x1xf32>
    %cst_4 = arith.constant 9.99999974E-6 : f32
    %13 = vector.broadcast %cst_4 : f32 to vector<8x1xf32>
    %14 = arith.addf %12, %13 : vector<8x1xf32>
    %15 = math.rsqrt %14 : vector<8x1xf32>
    %16 = vector.broadcast %15 : vector<8x1xf32> to vector<8x3072xf32>
    %17 = arith.mulf %7, %16 : vector<8x3072xf32>
    %c0_5 = arith.constant 0 : index
    %c0_6 = arith.constant 0 : index
    %18 = vector.load %arg6[%c0_5, %c0_6] : memref<1x3072xf32, #tpu.memory_space<vmem>>, vector<1x3072xf32>
    %19 = vector.broadcast %18 : vector<1x3072xf32> to vector<8x3072xf32>
    %20 = arith.mulf %17, %19 : vector<8x3072xf32>
    %c0_7 = arith.constant 0 : index
    %c0_8 = arith.constant 0 : index
    %21 = vector.load %arg7[%c0_7, %c0_8] : memref<1x3072xf32, #tpu.memory_space<vmem>>, vector<1x3072xf32>
    %22 = vector.broadcast %21 : vector<1x3072xf32> to vector<8x3072xf32>
    %23 = arith.addf %20, %22 : vector<8x3072xf32>
    %24 = arith.truncf %23 : vector<8x3072xf32> to vector<8x3072xbf16>
    %c0_9 = arith.constant 0 : index
    %c0_10 = arith.constant 0 : index
    %25 = vector.load %arg4[%c0_9, %c0_10] : memref<3072x128xbf16, #tpu.memory_space<vmem>>, vector<3072x128xbf16>
    %cst_11 = arith.constant dense<0.000000e+00> : vector<8x128xf32>
    %26 = tpu.matmul %24, %25, %cst_11 {dimension_numbers = #tpu.dot_dimension_numbers<[1], [0], [0], [1], [0, 0, 1, 1], [], []>} : vector<8x3072xbf16>, vector<3072x128xbf16>, vector<8x128xf32> -> vector<8x128xf32>
    %c0_12 = arith.constant 0 : index
    %c0_13 = arith.constant 0 : index
    %27 = vector.load %arg5[%c0_12, %c0_13] : memref<1x128xf32, #tpu.memory_space<vmem>>, vector<1x128xf32>
    %28 = vector.broadcast %27 : vector<1x128xf32> to vector<8x128xf32>
    %29 = arith.addf %26, %28 : vector<8x128xf32>
    %30 = arith.truncf %29 : vector<8x128xf32> to vector<8x128xbf16>
    %c0_14 = arith.constant 0 : index
    %c0_15 = arith.constant 0 : index
    %31 = vector.load %arg8[%c0_14, %c0_15] : memref<8x128xbf16, #tpu.memory_space<vmem>>, vector<8x128xbf16>
    tpu.vector_store %arg8[%c0_14, %c0_15], %30 {strides = array<i32>} : memref<8x128xbf16, #tpu.memory_space<vmem>>, vector<8x128xbf16>,
    return
  }
  func.func @transform_0(%arg0: i32, %arg1: i32, %arg2: i32) -> (i32, i32) {
    %c0_i32 = arith.constant 0 : i32
    return %arg0, %arg2 : i32, i32
  }
  func.func @transform_1(%arg0: i32, %arg1: i32, %arg2: i32) -> (i32, i32) {
    %c0_i32 = arith.constant 0 : i32
    return %arg2, %arg1 : i32, i32
  }
  func.func @transform_2(%arg0: i32, %arg1: i32, %arg2: i32) -> (i32, i32) {
    %c0_i32 = arith.constant 0 : i32
    %c0_i32_0 = arith.constant 0 : i32
    return %c0_i32, %arg1 : i32, i32
  }
  func.func @transform_3(%arg0: i32, %arg1: i32, %arg2: i32) -> (i32, i32) {
    %c0_i32 = arith.constant 0 : i32
    %c0_i32_0 = arith.constant 0 : i32
    return %c0_i32, %arg2 : i32, i32
  }
  func.func @transform_4(%arg0: i32, %arg1: i32, %arg2: i32) -> (i32, i32) {
    %c0_i32 = arith.constant 0 : i32
    %c0_i32_0 = arith.constant 0 : i32
    return %c0_i32, %arg2 : i32, i32
  }
  func.func @transform_5(%arg0: i32, %arg1: i32, %arg2: i32) -> (i32, i32) {
    %c0_i32 = arith.constant 0 : i32
    return %arg0, %arg1 : i32, i32
  }
}

module attributes {stable_mosaic.version = 11 : i64} {
  func.func @_layernorm_kernel(%arg0: i32, %arg1: memref<8x128xbf16, #tpu.memory_space<vmem>>, %arg2: memref<1x128xf32, #tpu.memory_space<vmem>>, %arg3: memref<1x128xf32, #tpu.memory_space<vmem>>, %arg4: memref<8x128xbf16, #tpu.memory_space<vmem>>) attributes {dimension_semantics = [#tpu.dimension_semantics<parallel>], iteration_bounds = array<i64: 1>, scalar_prefetch = 0 : i64, scratch_operands = 0 : i64, tpu.core_type = #tpu.core_type<tc>, window_params = [{transform_indices = @transform_0, window_bounds = array<i64: 8, 128>}, {pipeline_mode = #tpu.pipeline_mode<synchronous>, transform_indices = @transform_1, window_bounds = array<i64: 1, 128>}, {pipeline_mode = #tpu.pipeline_mode<synchronous>, transform_indices = @transform_2, window_bounds = array<i64: 1, 128>}, {transform_indices = @transform_3, window_bounds = array<i64: 8, 128>}]} {
    %c0 = arith.constant 0 : index
    %c0_0 = arith.constant 0 : index
    %0 = vector.load %arg1[%c0, %c0_0] : memref<8x128xbf16, #tpu.memory_space<vmem>>, vector<8x128xbf16>
    %1 = arith.extf %0 : vector<8x128xbf16> to vector<8x128xf32>
    %cst = arith.constant dense<0.000000e+00> : vector<8xf32>
    %2 = vector.multi_reduction <add>, %1, %cst [1] : vector<8x128xf32> to vector<8xf32>
    %3 = vector.shape_cast %2 : vector<8xf32> to vector<8x1xf32>
    %cst_1 = arith.constant 1.280000e+02 : f32
    %4 = vector.broadcast %cst_1 : f32 to vector<8x1xf32>
    %5 = arith.divf %3, %4 : vector<8x1xf32>
    %6 = vector.broadcast %5 : vector<8x1xf32> to vector<8x128xf32>
    %7 = arith.subf %1, %6 : vector<8x128xf32>
    %8 = arith.mulf %7, %7 : vector<8x128xf32>
    %cst_2 = arith.constant dense<0.000000e+00> : vector<8xf32>
    %9 = vector.multi_reduction <add>, %8, %cst_2 [1] : vector<8x128xf32> to vector<8xf32>
    %10 = vector.shape_cast %9 : vector<8xf32> to vector<8x1xf32>
    %cst_3 = arith.constant 1.280000e+02 : f32
    %11 = vector.broadcast %cst_3 : f32 to vector<8x1xf32>
    %12 = arith.divf %10, %11 : vector<8x1xf32>
    %cst_4 = arith.constant 9.99999974E-6 : f32
    %13 = vector.broadcast %cst_4 : f32 to vector<8x1xf32>
    %14 = arith.addf %12, %13 : vector<8x1xf32>
    %15 = math.rsqrt %14 : vector<8x1xf32>
    %16 = vector.broadcast %15 : vector<8x1xf32> to vector<8x128xf32>
    %17 = arith.mulf %7, %16 : vector<8x128xf32>
    %c0_5 = arith.constant 0 : index
    %c0_6 = arith.constant 0 : index
    %18 = vector.load %arg2[%c0_5, %c0_6] : memref<1x128xf32, #tpu.memory_space<vmem>>, vector<1x128xf32>
    %19 = vector.broadcast %18 : vector<1x128xf32> to vector<8x128xf32>
    %20 = arith.mulf %17, %19 : vector<8x128xf32>
    %c0_7 = arith.constant 0 : index
    %c0_8 = arith.constant 0 : index
    %21 = vector.load %arg3[%c0_7, %c0_8] : memref<1x128xf32, #tpu.memory_space<vmem>>, vector<1x128xf32>
    %22 = vector.broadcast %21 : vector<1x128xf32> to vector<8x128xf32>
    %23 = arith.addf %20, %22 : vector<8x128xf32>
    %24 = arith.truncf %23 : vector<8x128xf32> to vector<8x128xbf16>
    %c0_9 = arith.constant 0 : index
    %c0_10 = arith.constant 0 : index
    %25 = vector.load %arg4[%c0_9, %c0_10] : memref<8x128xbf16, #tpu.memory_space<vmem>>, vector<8x128xbf16>
    tpu.vector_store %arg4[%c0_9, %c0_10], %24 {strides = array<i32>} : memref<8x128xbf16, #tpu.memory_space<vmem>>, vector<8x128xbf16>,
    return
  }
  func.func @transform_0(%arg0: i32) -> (i32, i32) {
    %c0_i32 = arith.constant 0 : i32
    %c0_i32_0 = arith.constant 0 : i32
    return %arg0, %c0_i32 : i32, i32
  }
  func.func @transform_1(%arg0: i32) -> (i32, i32) {
    %c0_i32 = arith.constant 0 : i32
    %c0_i32_0 = arith.constant 0 : i32
    %c0_i32_1 = arith.constant 0 : i32
    return %c0_i32, %c0_i32_0 : i32, i32
  }
  func.func @transform_2(%arg0: i32) -> (i32, i32) {
    %c0_i32 = arith.constant 0 : i32
    %c0_i32_0 = arith.constant 0 : i32
    %c0_i32_1 = arith.constant 0 : i32
    return %c0_i32, %c0_i32_0 : i32, i32
  }
  func.func @transform_3(%arg0: i32) -> (i32, i32) {
    %c0_i32 = arith.constant 0 : i32
    %c0_i32_0 = arith.constant 0 : i32
    return %arg0, %c0_i32 : i32, i32
  }
}

module attributes {stable_mosaic.version = 11 : i64} {
  func.func @_matmul_kernel(%arg0: i32, %arg1: i32, %arg2: i32, %arg3: memref<16x128xbf16, #tpu.memory_space<vmem>>, %arg4: memref<128x128xbf16, #tpu.memory_space<vmem>>, %arg5: memref<1x128xf32, #tpu.memory_space<vmem>>, %arg6: memref<1x128xf32, #tpu.memory_space<vmem>>, %arg7: memref<16x128xbf16, #tpu.memory_space<vmem>>) attributes {dimension_semantics = [#tpu.dimension_semantics<parallel>, #tpu.dimension_semantics<parallel>, #tpu.dimension_semantics<arbitrary>], iteration_bounds = array<i64: 1, 3, 1>, scalar_prefetch = 0 : i64, scratch_operands = 0 : i64, tpu.core_type = #tpu.core_type<tc>, window_params = [{transform_indices = @transform_0, window_bounds = array<i64: 16, 128>}, {transform_indices = @transform_1, window_bounds = array<i64: 128, 128>}, {transform_indices = @transform_2, window_bounds = array<i64: 1, 128>}, {transform_indices = @transform_3, window_bounds = array<i64: 1, 128>}, {transform_indices = @transform_4, window_bounds = array<i64: 16, 128>}]} {
    %c0 = arith.constant 0 : index
    %c0_0 = arith.constant 0 : index
    %0 = vector.load %arg3[%c0, %c0_0] : memref<16x128xbf16, #tpu.memory_space<vmem>>, vector<16x128xbf16>
    %1 = arith.extf %0 : vector<16x128xbf16> to vector<16x128xf32>
    %cst = arith.constant dense<0.000000e+00> : vector<16xf32>
    %2 = vector.multi_reduction <add>, %1, %cst [1] : vector<16x128xf32> to vector<16xf32>
    %3 = vector.shape_cast %2 : vector<16xf32> to vector<16x1xf32>
    %cst_1 = arith.constant 1.280000e+02 : f32
    %4 = vector.broadcast %cst_1 : f32 to vector<16x1xf32>
    %5 = arith.divf %3, %4 : vector<16x1xf32>
    %6 = vector.broadcast %5 : vector<16x1xf32> to vector<16x128xf32>
    %7 = arith.subf %1, %6 : vector<16x128xf32>
    %8 = arith.mulf %7, %7 : vector<16x128xf32>
    %cst_2 = arith.constant dense<0.000000e+00> : vector<16xf32>
    %9 = vector.multi_reduction <add>, %8, %cst_2 [1] : vector<16x128xf32> to vector<16xf32>
    %10 = vector.shape_cast %9 : vector<16xf32> to vector<16x1xf32>
    %cst_3 = arith.constant 1.280000e+02 : f32
    %11 = vector.broadcast %cst_3 : f32 to vector<16x1xf32>
    %12 = arith.divf %10, %11 : vector<16x1xf32>
    %cst_4 = arith.constant 9.99999974E-6 : f32
    %13 = vector.broadcast %cst_4 : f32 to vector<16x1xf32>
    %14 = arith.addf %12, %13 : vector<16x1xf32>
    %15 = math.rsqrt %14 : vector<16x1xf32>
    %16 = vector.broadcast %15 : vector<16x1xf32> to vector<16x128xf32>
    %17 = arith.mulf %7, %16 : vector<16x128xf32>
    %c0_5 = arith.constant 0 : index
    %c0_6 = arith.constant 0 : index
    %18 = vector.load %arg5[%c0_5, %c0_6] : memref<1x128xf32, #tpu.memory_space<vmem>>, vector<1x128xf32>
    %19 = vector.broadcast %18 : vector<1x128xf32> to vector<16x128xf32>
    %20 = arith.mulf %17, %19 : vector<16x128xf32>
    %c0_7 = arith.constant 0 : index
    %c0_8 = arith.constant 0 : index
    %21 = vector.load %arg6[%c0_7, %c0_8] : memref<1x128xf32, #tpu.memory_space<vmem>>, vector<1x128xf32>
    %22 = vector.broadcast %21 : vector<1x128xf32> to vector<16x128xf32>
    %23 = arith.addf %20, %22 : vector<16x128xf32>
    %24 = arith.truncf %23 : vector<16x128xf32> to vector<16x128xbf16>
    %c0_9 = arith.constant 0 : index
    %c0_10 = arith.constant 0 : index
    %25 = vector.load %arg4[%c0_9, %c0_10] : memref<128x128xbf16, #tpu.memory_space<vmem>>, vector<128x128xbf16>
    %cst_11 = arith.constant dense<0.000000e+00> : vector<16x128xf32>
    %26 = tpu.matmul %24, %25, %cst_11 {dimension_numbers = #tpu.dot_dimension_numbers<[1], [0], [0], [1], [0, 0, 1, 1], [], []>} : vector<16x128xbf16>, vector<128x128xbf16>, vector<16x128xf32> -> vector<16x128xf32>
    %27 = arith.truncf %26 : vector<16x128xf32> to vector<16x128xbf16>
    %c0_12 = arith.constant 0 : index
    %c0_13 = arith.constant 0 : index
    %28 = vector.load %arg7[%c0_12, %c0_13] : memref<16x128xbf16, #tpu.memory_space<vmem>>, vector<16x128xbf16>
    tpu.vector_store %arg7[%c0_12, %c0_13], %27 {strides = array<i32>} : memref<16x128xbf16, #tpu.memory_space<vmem>>, vector<16x128xbf16>,
    return
  }
  func.func @transform_0(%arg0: i32, %arg1: i32, %arg2: i32) -> (i32, i32) {
    %c0_i32 = arith.constant 0 : i32
    return %arg0, %arg2 : i32, i32
  }
  func.func @transform_1(%arg0: i32, %arg1: i32, %arg2: i32) -> (i32, i32) {
    %c0_i32 = arith.constant 0 : i32
    return %arg2, %arg1 : i32, i32
  }
  func.func @transform_2(%arg0: i32, %arg1: i32, %arg2: i32) -> (i32, i32) {
    %c0_i32 = arith.constant 0 : i32
    %c0_i32_0 = arith.constant 0 : i32
    return %c0_i32, %arg2 : i32, i32
  }
  func.func @transform_3(%arg0: i32, %arg1: i32, %arg2: i32) -> (i32, i32) {
    %c0_i32 = arith.constant 0 : i32
    %c0_i32_0 = arith.constant 0 : i32
    return %c0_i32, %arg2 : i32, i32
  }
  func.func @transform_4(%arg0: i32, %arg1: i32, %arg2: i32) -> (i32, i32) {
    %c0_i32 = arith.constant 0 : i32
    return %arg0, %arg1 : i32, i32
  }
}

module attributes {stable_mosaic.version = 11 : i64} {
  func.func @_attention_kernel(%arg0: i32, %arg1: i32, %arg2: memref<1x8x128xbf16, #tpu.memory_space<vmem>>, %arg3: memref<1x8x128xbf16, #tpu.memory_space<vmem>>, %arg4: memref<1x8x128xbf16, #tpu.memory_space<vmem>>, %arg5: memref<1x8x128xbf16, #tpu.memory_space<vmem>>) attributes {dimension_semantics = [#tpu.dimension_semantics<parallel>, #tpu.dimension_semantics<parallel>], iteration_bounds = array<i64: 2, 1>, scalar_prefetch = 0 : i64, scratch_operands = 0 : i64, tpu.core_type = #tpu.core_type<tc>, window_params = [{transform_indices = @transform_0, window_bounds = array<i64: 1, 8, 128>}, {transform_indices = @transform_1, window_bounds = array<i64: 1, 8, 128>}, {transform_indices = @transform_2, window_bounds = array<i64: 1, 8, 128>}, {transform_indices = @transform_3, window_bounds = array<i64: 1, 8, 128>}]} {
    %c0 = arith.constant 0 : index
    %c0_0 = arith.constant 0 : index
    %c0_1 = arith.constant 0 : index
    %0 = vector.load %arg2[%c0, %c0_0, %c0_1] : memref<1x8x128xbf16, #tpu.memory_space<vmem>>, vector<1x8x128xbf16>
    %1 = vector.shape_cast %0 : vector<1x8x128xbf16> to vector<8x128xbf16>
    %c0_2 = arith.constant 0 : index
    %c0_3 = arith.constant 0 : index
    %c0_4 = arith.constant 0 : index
    %2 = vector.load %arg3[%c0_2, %c0_3, %c0_4] : memref<1x8x128xbf16, #tpu.memory_space<vmem>>, vector<1x8x128xbf16>
    %3 = vector.shape_cast %2 : vector<1x8x128xbf16> to vector<8x128xbf16>
    %c0_5 = arith.constant 0 : index
    %c0_6 = arith.constant 0 : index
    %c0_7 = arith.constant 0 : index
    %4 = vector.load %arg4[%c0_5, %c0_6, %c0_7] : memref<1x8x128xbf16, #tpu.memory_space<vmem>>, vector<1x8x128xbf16>
    %5 = vector.shape_cast %4 : vector<1x8x128xbf16> to vector<8x128xbf16>
    %6 = tpu.iota {dimensions = array<i32: 1>} : vector<8x8xi32>
    %7 = vector.extract_strided_slice %1 {offsets = [0, 0], sizes = [8, 32], strides = [1, 1]} : vector<8x128xbf16> to vector<8x32xbf16>
    %8 = vector.extract_strided_slice %3 {offsets = [0, 0], sizes = [8, 32], strides = [1, 1]} : vector<8x128xbf16> to vector<8x32xbf16>
    %9 = vector.extract_strided_slice %5 {offsets = [0, 0], sizes = [8, 32], strides = [1, 1]} : vector<8x128xbf16> to vector<8x32xbf16>
    %cst = arith.constant dense<0.000000e+00> : vector<8x8xf32>
    %10 = tpu.matmul %7, %8, %cst {dimension_numbers = #tpu.dot_dimension_numbers<[1], [1], [0], [0], [0, 0, 1, 0], [], []>} : vector<8x32xbf16>, vector<8x32xbf16>, vector<8x8xf32> -> vector<8x8xf32>
    %c5_i32 = arith.constant 5 : i32
    %11 = vector.broadcast %c5_i32 : i32 to vector<8x8xi32>
    %12 = arith.cmpi slt, %6, %11 : vector<8x8xi32>
    %cst_8 = arith.constant -1.000000e+30 : f32
    %13 = vector.broadcast %cst_8 : f32 to vector<8x8xf32>
    %14 = arith.select %12, %10, %13 : vector<8x8xi1>, vector<8x8xf32>
    %cst_9 = arith.constant dense<0xFF800000> : vector<8xf32>
    %15 = vector.multi_reduction <maximumf>, %14, %cst_9 [1] : vector<8x8xf32> to vector<8xf32>
    %16 = vector.shape_cast %15 : vector<8xf32> to vector<8x1xf32>
    %17 = vector.broadcast %16 : vector<8x1xf32> to vector<8x8xf32>
    %18 = arith.subf %14, %17 : vector<8x8xf32>
    %19 = math.exp %18 : vector<8x8xf32>
    %cst_10 = arith.constant dense<0.000000e+00> : vector<8xf32>
    %20 = vector.multi_reduction <add>, %19, %cst_10 [1] : vector<8x8xf32> to vector<8xf32>
    %21 = vector.shape_cast %20 : vector<8xf32> to vector<8x1xf32>
    %22 = vector.broadcast %21 : vector<8x1xf32> to vector<8x8xf32>
    %23 = arith.divf %19, %22 : vector<8x8xf32>
    %24 = arith.truncf %23 : vector<8x8xf32> to vector<8x8xbf16>
    %cst_11 = arith.constant dense<0.000000e+00> : vector<8x32xf32>
    %25 = tpu.matmul %24, %9, %cst_11 {dimension_numbers = #tpu.dot_dimension_numbers<[1], [0], [0], [1], [0, 0, 1, 1], [], []>} : vector<8x8xbf16>, vector<8x32xbf16>, vector<8x32xf32> -> vector<8x32xf32>
    %26 = vector.extract_strided_slice %1 {offsets = [0, 32], sizes = [8, 32], strides = [1, 1]} : vector<8x128xbf16> to vector<8x32xbf16>
    %27 = vector.extract_strided_slice %3 {offsets = [0, 32], sizes = [8, 32], strides = [1, 1]} : vector<8x128xbf16> to vector<8x32xbf16>
    %28 = vector.extract_strided_slice %5 {offsets = [0, 32], sizes = [8, 32], strides = [1, 1]} : vector<8x128xbf16> to vector<8x32xbf16>
    %cst_12 = arith.constant dense<0.000000e+00> : vector<8x8xf32>
    %29 = tpu.matmul %26, %27, %cst_12 {dimension_numbers = #tpu.dot_dimension_numbers<[1], [1], [0], [0], [0, 0, 1, 0], [], []>} : vector<8x32xbf16>, vector<8x32xbf16>, vector<8x8xf32> -> vector<8x8xf32>
    %c5_i32_13 = arith.constant 5 : i32
    %30 = vector.broadcast %c5_i32_13 : i32 to vector<8x8xi32>
    %31 = arith.cmpi slt, %6, %30 : vector<8x8xi32>
    %cst_14 = arith.constant -1.000000e+30 : f32
    %32 = vector.broadcast %cst_14 : f32 to vector<8x8xf32>
    %33 = arith.select %31, %29, %32 : vector<8x8xi1>, vector<8x8xf32>
    %cst_15 = arith.constant dense<0xFF800000> : vector<8xf32>
    %34 = vector.multi_reduction <maximumf>, %33, %cst_15 [1] : vector<8x8xf32> to vector<8xf32>
    %35 = vector.shape_cast %34 : vector<8xf32> to vector<8x1xf32>
    %36 = vector.broadcast %35 : vector<8x1xf32> to vector<8x8xf32>
    %37 = arith.subf %33, %36 : vector<8x8xf32>
    %38 = math.exp %37 : vector<8x8xf32>
    %cst_16 = arith.constant dense<0.000000e+00> : vector<8xf32>
    %39 = vector.multi_reduction <add>, %38, %cst_16 [1] : vector<8x8xf32> to vector<8xf32>
    %40 = vector.shape_cast %39 : vector<8xf32> to vector<8x1xf32>
    %41 = vector.broadcast %40 : vector<8x1xf32> to vector<8x8xf32>
    %42 = arith.divf %38, %41 : vector<8x8xf32>
    %43 = arith.truncf %42 : vector<8x8xf32> to vector<8x8xbf16>
    %cst_17 = arith.constant dense<0.000000e+00> : vector<8x32xf32>
    %44 = tpu.matmul %43, %28, %cst_17 {dimension_numbers = #tpu.dot_dimension_numbers<[1], [0], [0], [1], [0, 0, 1, 1], [], []>} : vector<8x8xbf16>, vector<8x32xbf16>, vector<8x32xf32> -> vector<8x32xf32>
    %45 = vector.extract_strided_slice %1 {offsets = [0, 64], sizes = [8, 32], strides = [1, 1]} : vector<8x128xbf16> to vector<8x32xbf16>
    %46 = vector.extract_strided_slice %3 {offsets = [0, 64], sizes = [8, 32], strides = [1, 1]} : vector<8x128xbf16> to vector<8x32xbf16>
    %47 = vector.extract_strided_slice %5 {offsets = [0, 64], sizes = [8, 32], strides = [1, 1]} : vector<8x128xbf16> to vector<8x32xbf16>
    %cst_18 = arith.constant dense<0.000000e+00> : vector<8x8xf32>
    %48 = tpu.matmul %45, %46, %cst_18 {dimension_numbers = #tpu.dot_dimension_numbers<[1], [1], [0], [0], [0, 0, 1, 0], [], []>} : vector<8x32xbf16>, vector<8x32xbf16>, vector<8x8xf32> -> vector<8x8xf32>
    %c5_i32_19 = arith.constant 5 : i32
    %49 = vector.broadcast %c5_i32_19 : i32 to vector<8x8xi32>
    %50 = arith.cmpi slt, %6, %49 : vector<8x8xi32>
    %cst_20 = arith.constant -1.000000e+30 : f32
    %51 = vector.broadcast %cst_20 : f32 to vector<8x8xf32>
    %52 = arith.select %50, %48, %51 : vector<8x8xi1>, vector<8x8xf32>
    %cst_21 = arith.constant dense<0xFF800000> : vector<8xf32>
    %53 = vector.multi_reduction <maximumf>, %52, %cst_21 [1] : vector<8x8xf32> to vector<8xf32>
    %54 = vector.shape_cast %53 : vector<8xf32> to vector<8x1xf32>
    %55 = vector.broadcast %54 : vector<8x1xf32> to vector<8x8xf32>
    %56 = arith.subf %52, %55 : vector<8x8xf32>
    %57 = math.exp %56 : vector<8x8xf32>
    %cst_22 = arith.constant dense<0.000000e+00> : vector<8xf32>
    %58 = vector.multi_reduction <add>, %57, %cst_22 [1] : vector<8x8xf32> to vector<8xf32>
    %59 = vector.shape_cast %58 : vector<8xf32> to vector<8x1xf32>
    %60 = vector.broadcast %59 : vector<8x1xf32> to vector<8x8xf32>
    %61 = arith.divf %57, %60 : vector<8x8xf32>
    %62 = arith.truncf %61 : vector<8x8xf32> to vector<8x8xbf16>
    %cst_23 = arith.constant dense<0.000000e+00> : vector<8x32xf32>
    %63 = tpu.matmul %62, %47, %cst_23 {dimension_numbers = #tpu.dot_dimension_numbers<[1], [0], [0], [1], [0, 0, 1, 1], [], []>} : vector<8x8xbf16>, vector<8x32xbf16>, vector<8x32xf32> -> vector<8x32xf32>
    %64 = vector.extract_strided_slice %1 {offsets = [0, 96], sizes = [8, 32], strides = [1, 1]} : vector<8x128xbf16> to vector<8x32xbf16>
    %65 = vector.extract_strided_slice %3 {offsets = [0, 96], sizes = [8, 32], strides = [1, 1]} : vector<8x128xbf16> to vector<8x32xbf16>
    %66 = vector.extract_strided_slice %5 {offsets = [0, 96], sizes = [8, 32], strides = [1, 1]} : vector<8x128xbf16> to vector<8x32xbf16>
    %cst_24 = arith.constant dense<0.000000e+00> : vector<8x8xf32>
    %67 = tpu.matmul %64, %65, %cst_24 {dimension_numbers = #tpu.dot_dimension_numbers<[1], [1], [0], [0], [0, 0, 1, 0], [], []>} : vector<8x32xbf16>, vector<8x32xbf16>, vector<8x8xf32> -> vector<8x8xf32>
    %c5_i32_25 = arith.constant 5 : i32
    %68 = vector.broadcast %c5_i32_25 : i32 to vector<8x8xi32>
    %69 = arith.cmpi slt, %6, %68 : vector<8x8xi32>
    %cst_26 = arith.constant -1.000000e+30 : f32
    %70 = vector.broadcast %cst_26 : f32 to vector<8x8xf32>
    %71 = arith.select %69, %67, %70 : vector<8x8xi1>, vector<8x8xf32>
    %cst_27 = arith.constant dense<0xFF800000> : vector<8xf32>
    %72 = vector.multi_reduction <maximumf>, %71, %cst_27 [1] : vector<8x8xf32> to vector<8xf32>
    %73 = vector.shape_cast %72 : vector<8xf32> to vector<8x1xf32>
    %74 = vector.broadcast %73 : vector<8x1xf32> to vector<8x8xf32>
    %75 = arith.subf %71, %74 : vector<8x8xf32>
    %76 = math.exp %75 : vector<8x8xf32>
    %cst_28 = arith.constant dense<0.000000e+00> : vector<8xf32>
    %77 = vector.multi_reduction <add>, %76, %cst_28 [1] : vector<8x8xf32> to vector<8xf32>
    %78 = vector.shape_cast %77 : vector<8xf32> to vector<8x1xf32>
    %79 = vector.broadcast %78 : vector<8x1xf32> to vector<8x8xf32>
    %80 = arith.divf %76, %79 : vector<8x8xf32>
    %81 = arith.truncf %80 : vector<8x8xf32> to vector<8x8xbf16>
    %cst_29 = arith.constant dense<0.000000e+00> : vector<8x32xf32>
    %82 = tpu.matmul %81, %66, %cst_29 {dimension_numbers = #tpu.dot_dimension_numbers<[1], [0], [0], [1], [0, 0, 1, 1], [], []>} : vector<8x8xbf16>, vector<8x32xbf16>, vector<8x32xf32> -> vector<8x32xf32>
    %83 = tpu.concatenate %25, %44, %63, %82 in 1 : vector<8x32xf32>, vector<8x32xf32>, vector<8x32xf32>, vector<8x32xf32> -> vector<8x128xf32>
    %84 = arith.truncf %83 : vector<8x128xf32> to vector<8x128xbf16>
    %c0_30 = arith.constant 0 : index
    %c0_31 = arith.constant 0 : index
    %c0_32 = arith.constant 0 : index
    %85 = vector.load %arg5[%c0_30, %c0_31, %c0_32] : memref<1x8x128xbf16, #tpu.memory_space<vmem>>, vector<1x8x128xbf16>
    %86 = vector.shape_cast %85 : vector<1x8x128xbf16> to vector<8x128xbf16>
    %87 = vector.shape_cast %84 : vector<8x128xbf16> to vector<1x8x128xbf16>
    tpu.vector_store %arg5[%c0_30, %c0_31, %c0_32], %87 {strides = array<i32>} : memref<1x8x128xbf16, #tpu.memory_space<vmem>>, vector<1x8x128xbf16>,
    return
  }
  func.func @transform_0(%arg0: i32, %arg1: i32) -> (i32, i32, i32) {
    %c0_i32 = arith.constant 0 : i32
    %c0_i32_0 = arith.constant 0 : i32
    return %arg0, %arg1, %c0_i32 : i32, i32, i32
  }
  func.func @transform_1(%arg0: i32, %arg1: i32) -> (i32, i32, i32) {
    %c0_i32 = arith.constant 0 : i32
    %c1_i32 = arith.constant 1 : i32
    %c0_i32_0 = arith.constant 0 : i32
    return %arg0, %c0_i32, %c1_i32 : i32, i32, i32
  }
  func.func @transform_2(%arg0: i32, %arg1: i32) -> (i32, i32, i32) {
    %c0_i32 = arith.constant 0 : i32
    %c2_i32 = arith.constant 2 : i32
    %c0_i32_0 = arith.constant 0 : i32
    return %arg0, %c0_i32, %c2_i32 : i32, i32, i32
  }
  func.func @transform_3(%arg0: i32, %arg1: i32) -> (i32, i32, i32) {
    %c0_i32 = arith.constant 0 : i32
    %c0_i32_0 = arith.constant 0 : i32
    return %arg0, %arg1, %c0_i32 : i32, i32, i32
  }
}

module attributes {stable_mosaic.version = 11 : i64} {
  func.func @_matmul_kernel(%arg0: i32, %arg1: i32, %arg2: i32, %arg3: memref<16x128xbf16, #tpu.memory_space<vmem>>, %arg4: memref<128x128xbf16, #tpu.memory_space<vmem>>, %arg5: memref<1x128xf32, #tpu.memory_space<vmem>>, %arg6: memref<16x128xbf16, #tpu.memory_space<vmem>>, %arg7: memref<16x128xbf16, #tpu.memory_space<vmem>>) attributes {dimension_semantics = [#tpu.dimension_semantics<parallel>, #tpu.dimension_semantics<parallel>, #tpu.dimension_semantics<arbitrary>], iteration_bounds = array<i64: 1, 1, 1>, scalar_prefetch = 0 : i64, scratch_operands = 0 : i64, tpu.core_type = #tpu.core_type<tc>, window_params = [{transform_indices = @transform_0, window_bounds = array<i64: 16, 128>}, {transform_indices = @transform_1, window_bounds = array<i64: 128, 128>}, {transform_indices = @transform_2, window_bounds = array<i64: 1, 128>}, {transform_indices = @transform_3, window_bounds = array<i64: 16, 128>}, {transform_indices = @transform_4, window_bounds = array<i64: 16, 128>}]} {
    %c0 = arith.constant 0 : index
    %c0_0 = arith.constant 0 : index
    %0 = vector.load %arg3[%c0, %c0_0] : memref<16x128xbf16, #tpu.memory_space<vmem>>, vector<16x128xbf16>
    %c0_1 = arith.constant 0 : index
    %c0_2 = arith.constant 0 : index
    %1 = vector.load %arg4[%c0_1, %c0_2] : memref<128x128xbf16, #tpu.memory_space<vmem>>, vector<128x128xbf16>
    %cst = arith.constant dense<0.000000e+00> : vector<16x128xf32>
    %2 = tpu.matmul %0, %1, %cst {dimension_numbers = #tpu.dot_dimension_numbers<[1], [0], [0], [1], [0, 0, 1, 1], [], []>} : vector<16x128xbf16>, vector<128x128xbf16>, vector<16x128xf32> -> vector<16x128xf32>
    %c0_3 = arith.constant 0 : index
    %c0_4 = arith.constant 0 : index
    %3 = vector.load %arg5[%c0_3, %c0_4] : memref<1x128xf32, #tpu.memory_space<vmem>>, vector<1x128xf32>
    %4 = vector.broadcast %3 : vector<1x128xf32> to vector<16x128xf32>
    %5 = arith.addf %2, %4 : vector<16x128xf32>
    %c0_5 = arith.constant 0 : index
    %c0_6 = arith.constant 0 : index
    %6 = vector.load %arg6[%c0_5, %c0_6] : memref<16x128xbf16, #tpu.memory_space<vmem>>, vector<16x128xbf16>
    %7 = arith.extf %6 : vector<16x128xbf16> to vector<16x128xf32>
    %8 = arith.addf %5, %7 : vector<16x128xf32>
    %9 = arith.truncf %8 : vector<16x128xf32> to vector<16x128xbf16>
    %c0_7 = arith.constant 0 : index
    %c0_8 = arith.constant 0 : index
    %10 = vector.load %arg7[%c0_7, %c0_8] : memref<16x128xbf16, #tpu.memory_space<vmem>>, vector<16x128xbf16>
    tpu.vector_store %arg7[%c0_7, %c0_8], %9 {strides = array<i32>} : memref<16x128xbf16, #tpu.memory_space<vmem>>, vector<16x128xbf16>,
    return
  }
  func.func @transform_0(%arg0: i32, %arg1: i32, %arg2: i32) -> (i32, i32) {
    %c0_i32 = arith.constant 0 : i32
    return %arg0, %arg2 : i32, i32
  }
  func.func @transform_1(%arg0: i32, %arg1: i32, %arg2: i32) -> (i32, i32) {
    %c0_i32 = arith.constant 0 : i32
    return %arg2, %arg1 : i32, i32
  }
  func.func @transform_2(%arg0: i32, %arg1: i32, %arg2: i32) -> (i32, i32) {
    %c0_i32 = arith.constant 0 : i32
    %c0_i32_0 = arith.constant 0 : i32
    return %c0_i32, %arg1 : i32, i32
  }
  func.func @transform_3(%arg0: i32, %arg1: i32, %arg2: i32) -> (i32, i32) {
    %c0_i32 = arith.constant 0 : i32
    return %arg0, %arg1 : i32, i32
  }
  func.func @transform_4(%arg0: i32, %arg1: i32, %arg2: i32) -> (i32, i32) {
    %c0_i32 = arith.constant 0 : i32
    return %arg0, %arg1 : i32, i32
  }
}

module attributes {stable_mosaic.version = 11 : i64} {
  func.func @_matmul_kernel(%arg0: i32, %arg1: i32, %arg2: i32, %arg3: memref<16x128xbf16, #tpu.memory_space<vmem>>, %arg4: memref<128x256xbf16, #tpu.memory_space<vmem>>, %arg5: memref<1x256xf32, #tpu.memory_space<vmem>>, %arg6: memref<1x128xf32, #tpu.memory_space<vmem>>, %arg7: memref<1x128xf32, #tpu.memory_space<vmem>>, %arg8: memref<16x256xbf16, #tpu.memory_space<vmem>>) attributes {dimension_semantics = [#tpu.dimension_semantics<parallel>, #tpu.dimension_semantics<parallel>, #tpu.dimension_semantics<arbitrary>], iteration_bounds = array<i64: 1, 1, 1>, scalar_prefetch = 0 : i64, scratch_operands = 0 : i64, tpu.core_type = #tpu.core_type<tc>, window_params = [{transform_indices = @transform_0, window_bounds = array<i64: 16, 128>}, {transform_indices = @transform_1, window_bounds = array<i64: 128, 256>}, {transform_indices = @transform_2, window_bounds = array<i64: 1, 256>}, {transform_indices = @transform_3, window_bounds = array<i64: 1, 128>}, {transform_indices = @transform_4, window_bounds = array<i64: 1, 128>}, {transform_indices = @transform_5, window_bounds = array<i64: 16, 256>}]} {
    %c0 = arith.constant 0 : index
    %c0_0 = arith.constant 0 : index
    %0 = vector.load %arg3[%c0, %c0_0] : memref<16x128xbf16, #tpu.memory_space<vmem>>, vector<16x128xbf16>
    %1 = arith.extf %0 : vector<16x128xbf16> to vector<16x128xf32>
    %cst = arith.constant dense<0.000000e+00> : vector<16xf32>
    %2 = vector.multi_reduction <add>, %1, %cst [1] : vector<16x128xf32> to vector<16xf32>
    %3 = vector.shape_cast %2 : vector<16xf32> to vector<16x1xf32>
    %cst_1 = arith.constant 1.280000e+02 : f32
    %4 = vector.broadcast %cst_1 : f32 to vector<16x1xf32>
    %5 = arith.divf %3, %4 : vector<16x1xf32>
    %6 = vector.broadcast %5 : vector<16x1xf32> to vector<16x128xf32>
    %7 = arith.subf %1, %6 : vector<16x128xf32>
    %8 = arith.mulf %7, %7 : vector<16x128xf32>
    %cst_2 = arith.constant dense<0.000000e+00> : vector<16xf32>
    %9 = vector.multi_reduction <add>, %8, %cst_2 [1] : vector<16x128xf32> to vector<16xf32>
    %10 = vector.shape_cast %9 : vector<16xf32> to vector<16x1xf32>
    %cst_3 = arith.constant 1.280000e+02 : f32
    %11 = vector.broadcast %cst_3 : f32 to vector<16x1xf32>
    %12 = arith.divf %10, %11 : vector<16x1xf32>
    %cst_4 = arith.constant 9.99999974E-6 : f32
    %13 = vector.broadcast %cst_4 : f32 to vector<16x1xf32>
    %14 = arith.addf %12, %13 : vector<16x1xf32>
    %15 = math.rsqrt %14 : vector<16x1xf32>
    %16 = vector.broadcast %15 : vector<16x1xf32> to vector<16x128xf32>
    %17 = arith.mulf %7, %16 : vector<16x128xf32>
    %c0_5 = arith.constant 0 : index
    %c0_6 = arith.constant 0 : index
    %18 = vector.load %arg6[%c0_5, %c0_6] : memref<1x128xf32, #tpu.memory_space<vmem>>, vector<1x128xf32>
    %19 = vector.broadcast %18 : vector<1x128xf32> to vector<16x128xf32>
    %20 = arith.mulf %17, %19 : vector<16x128xf32>
    %c0_7 = arith.constant 0 : index
    %c0_8 = arith.constant 0 : index
    %21 = vector.load %arg7[%c0_7, %c0_8] : memref<1x128xf32, #tpu.memory_space<vmem>>, vector<1x128xf32>
    %22 = vector.broadcast %21 : vector<1x128xf32> to vector<16x128xf32>
    %23 = arith.addf %20, %22 : vector<16x128xf32>
    %24 = arith.truncf %23 : vector<16x128xf32> to vector<16x128xbf16>
    %c0_9 = arith.constant 0 : index
    %c0_10 = arith.constant 0 : index
    %25 = vector.load %arg4[%c0_9, %c0_10] : memref<128x256xbf16, #tpu.memory_space<vmem>>, vector<128x256xbf16>
    %cst_11 = arith.constant dense<0.000000e+00> : vector<16x256xf32>
    %26 = tpu.matmul %24, %25, %cst_11 {dimension_numbers = #tpu.dot_dimension_numbers<[1], [0], [0], [1], [0, 0, 1, 1], [], []>} : vector<16x128xbf16>, vector<128x256xbf16>, vector<16x256xf32> -> vector<16x256xf32>
    %c0_12 = arith.constant 0 : index
    %c0_13 = arith.constant 0 : index
    %27 = vector.load %arg5[%c0_12, %c0_13] : memref<1x256xf32, #tpu.memory_space<vmem>>, vector<1x256xf32>
    %28 = vector.broadcast %27 : vector<1x256xf32> to vector<16x256xf32>
    %29 = arith.addf %26, %28 : vector<16x256xf32>
    %cst_14 = arith.constant 5.000000e-01 : f32
    %30 = vector.broadcast %cst_14 : f32 to vector<16x256xf32>
    %31 = arith.mulf %30, %29 : vector<16x256xf32>
    %cst_15 = arith.constant 4.471500e-02 : f32
    %32 = vector.broadcast %cst_15 : f32 to vector<16x256xf32>
    %33 = arith.mulf %32, %29 : vector<16x256xf32>
    %34 = arith.mulf %33, %29 : vector<16x256xf32>
    %35 = arith.mulf %34, %29 : vector<16x256xf32>
    %36 = arith.addf %29, %35 : vector<16x256xf32>
    %cst_16 = arith.constant 0.797884583 : f32
    %37 = vector.broadcast %cst_16 : f32 to vector<16x256xf32>
    %38 = arith.mulf %37, %36 : vector<16x256xf32>
    %39 = math.tanh %38 : vector<16x256xf32>
    %cst_17 = arith.constant 1.000000e+00 : f32
    %40 = vector.broadcast %cst_17 : f32 to vector<16x256xf32>
    %41 = arith.addf %40, %39 : vector<16x256xf32>
    %42 = arith.mulf %31, %41 : vector<16x256xf32>
    %43 = arith.truncf %42 : vector<16x256xf32> to vector<16x256xbf16>
    %c0_18 = arith.constant 0 : index
    %c0_19 = arith.constant 0 : index
    %44 = vector.load %arg8[%c0_18, %c0_19] : memref<16x256xbf16, #tpu.memory_space<vmem>>, vector<16x256xbf16>
    tpu.vector_store %arg8[%c0_18, %c0_19], %43 {strides = array<i32>} : memref<16x256xbf16, #tpu.memory_space<vmem>>, vector<16x256xbf16>,
    return
  }
  func.func @transform_0(%arg0: i32, %arg1: i32, %arg2: i32) -> (i32, i32) {
    %c0_i32 = arith.constant 0 : i32
    return %arg0, %arg2 : i32, i32
  }
  func.func @transform_1(%arg0: i32, %arg1: i32, %arg2: i32) -> (i32, i32) {
    %c0_i32 = arith.constant 0 : i32
    return %arg2, %arg1 : i32, i32
  }
  func.func @transform_2(%arg0: i32, %arg1: i32, %arg2: i32) -> (i32, i32) {
    %c0_i32 = arith.constant 0 : i32
    %c0_i32_0 = arith.constant 0 : i32
    return %c0_i32, %arg1 : i32, i32
  }
  func.func @transform_3(%arg0: i32, %arg1: i32, %arg2: i32) -> (i32, i32) {
    %c0_i32 = arith.constant 0 : i32
    %c0_i32_0 = arith.constant 0 : i32
    return %c0_i32, %arg2 : i32, i32
  }
  func.func @transform_4(%arg0: i32, %arg1: i32, %arg2: i32) -> (i32, i32) {
    %c0_i32 = arith.constant 0 : i32
    %c0_i32_0 = arith.constant 0 : i32
    return %c0_i32, %arg2 : i32, i32
  }
  func.func @transform_5(%arg0: i32, %arg1: i32, %arg2: i32) -> (i32, i32) {
    %c0_i32 = arith.constant 0 : i32
    return %arg0, %arg1 : i32, i32
  }
}

module attributes {stable_mosaic.version = 11 : i64} {
  func.func @_matmul_kernel(%arg0: i32, %arg1: i32, %arg2: i32, %arg3: memref<16x256xbf16, #tpu.memory_space<vmem>>, %arg4: memref<256x128xbf16, #tpu.memory_space<vmem>>, %arg5: memref<1x128xf32, #tpu.memory_space<vmem>>, %arg6: memref<16x128xbf16, #tpu.memory_space<vmem>>, %arg7: memref<16x128xbf16, #tpu.memory_space<vmem>>) attributes {dimension_semantics = [#tpu.dimension_semantics<parallel>, #tpu.dimension_semantics<parallel>, #tpu.dimension_semantics<arbitrary>], iteration_bounds = array<i64: 1, 1, 1>, scalar_prefetch = 0 : i64, scratch_operands = 0 : i64, tpu.core_type = #tpu.core_type<tc>, window_params = [{transform_indices = @transform_0, window_bounds = array<i64: 16, 256>}, {transform_indices = @transform_1, window_bounds = array<i64: 256, 128>}, {transform_indices = @transform_2, window_bounds = array<i64: 1, 128>}, {transform_indices = @transform_3, window_bounds = array<i64: 16, 128>}, {transform_indices = @transform_4, window_bounds = array<i64: 16, 128>}]} {
    %c0 = arith.constant 0 : index
    %c0_0 = arith.constant 0 : index
    %0 = vector.load %arg3[%c0, %c0_0] : memref<16x256xbf16, #tpu.memory_space<vmem>>, vector<16x256xbf16>
    %c0_1 = arith.constant 0 : index
    %c0_2 = arith.constant 0 : index
    %1 = vector.load %arg4[%c0_1, %c0_2] : memref<256x128xbf16, #tpu.memory_space<vmem>>, vector<256x128xbf16>
    %cst = arith.constant dense<0.000000e+00> : vector<16x128xf32>
    %2 = tpu.matmul %0, %1, %cst {dimension_numbers = #tpu.dot_dimension_numbers<[1], [0], [0], [1], [0, 0, 1, 1], [], []>} : vector<16x256xbf16>, vector<256x128xbf16>, vector<16x128xf32> -> vector<16x128xf32>
    %c0_3 = arith.constant 0 : index
    %c0_4 = arith.constant 0 : index
    %3 = vector.load %arg5[%c0_3, %c0_4] : memref<1x128xf32, #tpu.memory_space<vmem>>, vector<1x128xf32>
    %4 = vector.broadcast %3 : vector<1x128xf32> to vector<16x128xf32>
    %5 = arith.addf %2, %4 : vector<16x128xf32>
    %c0_5 = arith.constant 0 : index
    %c0_6 = arith.constant 0 : index
    %6 = vector.load %arg6[%c0_5, %c0_6] : memref<16x128xbf16, #tpu.memory_space<vmem>>, vector<16x128xbf16>
    %7 = arith.extf %6 : vector<16x128xbf16> to vector<16x128xf32>
    %8 = arith.addf %5, %7 : vector<16x128xf32>
    %9 = arith.truncf %8 : vector<16x128xf32> to vector<16x128xbf16>
    %c0_7 = arith.constant 0 : index
    %c0_8 = arith.constant 0 : index
    %10 = vector.load %arg7[%c0_7, %c0_8] : memref<16x128xbf16, #tpu.memory_space<vmem>>, vector<16x128xbf16>
    tpu.vector_store %arg7[%c0_7, %c0_8], %9 {strides = array<i32>} : memref<16x128xbf16, #tpu.memory_space<vmem>>, vector<16x128xbf16>,
    return
  }
  func.func @transform_0(%arg0: i32, %arg1: i32, %arg2: i32) -> (i32, i32) {
    %c0_i32 = arith.constant 0 : i32
    return %arg0, %arg2 : i32, i32
  }
  func.func @transform_1(%arg0: i32, %arg1: i32, %arg2: i32) -> (i32, i32) {
    %c0_i32 = arith.constant 0 : i32
    return %arg2, %arg1 : i32, i32
  }
  func.func @transform_2(%arg0: i32, %arg1: i32, %arg2: i32) -> (i32, i32) {
    %c0_i32 = arith.constant 0 : i32
    %c0_i32_0 = arith.constant 0 : i32
    return %c0_i32, %arg1 : i32, i32
  }
  func.func @transform_3(%arg0: i32, %arg1: i32, %arg2: i32) -> (i32, i32) {
    %c0_i32 = arith.constant 0 : i32
    return %arg0, %arg1 : i32, i32
  }
  func.func @transform_4(%arg0: i32, %arg1: i32, %arg2: i32) -> (i32, i32) {
    %c0_i32 = arith.constant 0 : i32
    return %arg0, %arg1 : i32, i32
  }
}

module attributes {stable_mosaic.version = 11 : i64} {
  func.func @_matmul_kernel(%arg0: i32, %arg1: i32, %arg2: i32, %arg3: memref<16x128xbf16, #tpu.memory_space<vmem>>, %arg4: memref<128x128xbf16, #tpu.memory_space<vmem>>, %arg5: memref<1x128xf32, #tpu.memory_space<vmem>>, %arg6: memref<1x128xf32, #tpu.memory_space<vmem>>, %arg7: memref<16x128xbf16, #tpu.memory_space<vmem>>) attributes {dimension_semantics = [#tpu.dimension_semantics<parallel>, #tpu.dimension_semantics<parallel>, #tpu.dimension_semantics<arbitrary>], iteration_bounds = array<i64: 1, 3, 1>, scalar_prefetch = 0 : i64, scratch_operands = 0 : i64, tpu.core_type = #tpu.core_type<tc>, window_params = [{transform_indices = @transform_0, window_bounds = array<i64: 16, 128>}, {transform_indices = @transform_1, window_bounds = array<i64: 128, 128>}, {transform_indices = @transform_2, window_bounds = array<i64: 1, 128>}, {transform_indices = @transform_3, window_bounds = array<i64: 1, 128>}, {transform_indices = @transform_4, window_bounds = array<i64: 16, 128>}]} {
    %c0 = arith.constant 0 : index
    %c0_0 = arith.constant 0 : index
    %0 = vector.load %arg3[%c0, %c0_0] : memref<16x128xbf16, #tpu.memory_space<vmem>>, vector<16x128xbf16>
    %1 = arith.extf %0 : vector<16x128xbf16> to vector<16x128xf32>
    %cst = arith.constant dense<0.000000e+00> : vector<16xf32>
    %2 = vector.multi_reduction <add>, %1, %cst [1] : vector<16x128xf32> to vector<16xf32>
    %3 = vector.shape_cast %2 : vector<16xf32> to vector<16x1xf32>
    %cst_1 = arith.constant 1.280000e+02 : f32
    %4 = vector.broadcast %cst_1 : f32 to vector<16x1xf32>
    %5 = arith.divf %3, %4 : vector<16x1xf32>
    %6 = vector.broadcast %5 : vector<16x1xf32> to vector<16x128xf32>
    %7 = arith.subf %1, %6 : vector<16x128xf32>
    %8 = arith.mulf %7, %7 : vector<16x128xf32>
    %cst_2 = arith.constant dense<0.000000e+00> : vector<16xf32>
    %9 = vector.multi_reduction <add>, %8, %cst_2 [1] : vector<16x128xf32> to vector<16xf32>
    %10 = vector.shape_cast %9 : vector<16xf32> to vector<16x1xf32>
    %cst_3 = arith.constant 1.280000e+02 : f32
    %11 = vector.broadcast %cst_3 : f32 to vector<16x1xf32>
    %12 = arith.divf %10, %11 : vector<16x1xf32>
    %cst_4 = arith.constant 9.99999974E-6 : f32
    %13 = vector.broadcast %cst_4 : f32 to vector<16x1xf32>
    %14 = arith.addf %12, %13 : vector<16x1xf32>
    %15 = math.rsqrt %14 : vector<16x1xf32>
    %16 = vector.broadcast %15 : vector<16x1xf32> to vector<16x128xf32>
    %17 = arith.mulf %7, %16 : vector<16x128xf32>
    %c0_5 = arith.constant 0 : index
    %c0_6 = arith.constant 0 : index
    %18 = vector.load %arg5[%c0_5, %c0_6] : memref<1x128xf32, #tpu.memory_space<vmem>>, vector<1x128xf32>
    %19 = vector.broadcast %18 : vector<1x128xf32> to vector<16x128xf32>
    %20 = arith.mulf %17, %19 : vector<16x128xf32>
    %c0_7 = arith.constant 0 : index
    %c0_8 = arith.constant 0 : index
    %21 = vector.load %arg6[%c0_7, %c0_8] : memref<1x128xf32, #tpu.memory_space<vmem>>, vector<1x128xf32>
    %22 = vector.broadcast %21 : vector<1x128xf32> to vector<16x128xf32>
    %23 = arith.addf %20, %22 : vector<16x128xf32>
    %24 = arith.truncf %23 : vector<16x128xf32> to vector<16x128xbf16>
    %c0_9 = arith.constant 0 : index
    %c0_10 = arith.constant 0 : index
    %25 = vector.load %arg4[%c0_9, %c0_10] : memref<128x128xbf16, #tpu.memory_space<vmem>>, vector<128x128xbf16>
    %cst_11 = arith.constant dense<0.000000e+00> : vector<16x128xf32>
    %26 = tpu.matmul %24, %25, %cst_11 {dimension_numbers = #tpu.dot_dimension_numbers<[1], [0], [0], [1], [0, 0, 1, 1], [], []>} : vector<16x128xbf16>, vector<128x128xbf16>, vector<16x128xf32> -> vector<16x128xf32>
    %27 = arith.truncf %26 : vector<16x128xf32> to vector<16x128xbf16>
    %c0_12 = arith.constant 0 : index
    %c0_13 = arith.constant 0 : index
    %28 = vector.load %arg7[%c0_12, %c0_13] : memref<16x128xbf16, #tpu.memory_space<vmem>>, vector<16x128xbf16>
    tpu.vector_store %arg7[%c0_12, %c0_13], %27 {strides = array<i32>} : memref<16x128xbf16, #tpu.memory_space<vmem>>, vector<16x128xbf16>,
    return
  }
  func.func @transform_0(%arg0: i32, %arg1: i32, %arg2: i32) -> (i32, i32) {
    %c0_i32 = arith.constant 0 : i32
    return %arg0, %arg2 : i32, i32
  }
  func.func @transform_1(%arg0: i32, %arg1: i32, %arg2: i32) -> (i32, i32) {
    %c0_i32 = arith.constant 0 : i32
    return %arg2, %arg1 : i32, i32
  }
  func.func @transform_2(%arg0: i32, %arg1: i32, %arg2: i32) -> (i32, i32) {
    %c0_i32 = arith.constant 0 : i32
    %c0_i32_0 = arith.constant 0 : i32
    return %c0_i32, %arg2 : i32, i32
  }
  func.func @transform_3(%arg0: i32, %arg1: i32, %arg2: i32) -> (i32, i32) {
    %c0_i32 = arith.constant 0 : i32
    %c0_i32_0 = arith.constant 0 : i32
    return %c0_i32, %arg2 : i32, i32
  }
  func.func @transform_4(%arg0: i32, %arg1: i32, %arg2: i32) -> (i32, i32) {
    %c0_i32 = arith.constant 0 : i32
    return %arg0, %arg1 : i32, i32
  }
}

module attributes {stable_mosaic.version = 11 : i64} {
  func.func @_matmul_kernel(%arg0: i32, %arg1: i32, %arg2: i32, %arg3: memref<16x128xbf16, #tpu.memory_space<vmem>>, %arg4: memref<128x128xbf16, #tpu.memory_space<vmem>>, %arg5: memref<1x128xf32, #tpu.memory_space<vmem>>, %arg6: memref<16x128xbf16, #tpu.memory_space<vmem>>, %arg7: memref<16x128xbf16, #tpu.memory_space<vmem>>) attributes {dimension_semantics = [#tpu.dimension_semantics<parallel>, #tpu.dimension_semantics<parallel>, #tpu.dimension_semantics<arbitrary>], iteration_bounds = array<i64: 1, 1, 1>, scalar_prefetch = 0 : i64, scratch_operands = 0 : i64, tpu.core_type = #tpu.core_type<tc>, window_params = [{transform_indices = @transform_0, window_bounds = array<i64: 16, 128>}, {transform_indices = @transform_1, window_bounds = array<i64: 128, 128>}, {transform_indices = @transform_2, window_bounds = array<i64: 1, 128>}, {transform_indices = @transform_3, window_bounds = array<i64: 16, 128>}, {transform_indices = @transform_4, window_bounds = array<i64: 16, 128>}]} {
    %c0 = arith.constant 0 : index
    %c0_0 = arith.constant 0 : index
    %0 = vector.load %arg3[%c0, %c0_0] : memref<16x128xbf16, #tpu.memory_space<vmem>>, vector<16x128xbf16>
    %c0_1 = arith.constant 0 : index
    %c0_2 = arith.constant 0 : index
    %1 = vector.load %arg4[%c0_1, %c0_2] : memref<128x128xbf16, #tpu.memory_space<vmem>>, vector<128x128xbf16>
    %cst = arith.constant dense<0.000000e+00> : vector<16x128xf32>
    %2 = tpu.matmul %0, %1, %cst {dimension_numbers = #tpu.dot_dimension_numbers<[1], [0], [0], [1], [0, 0, 1, 1], [], []>} : vector<16x128xbf16>, vector<128x128xbf16>, vector<16x128xf32> -> vector<16x128xf32>
    %c0_3 = arith.constant 0 : index
    %c0_4 = arith.constant 0 : index
    %3 = vector.load %arg5[%c0_3, %c0_4] : memref<1x128xf32, #tpu.memory_space<vmem>>, vector<1x128xf32>
    %4 = vector.broadcast %3 : vector<1x128xf32> to vector<16x128xf32>
    %5 = arith.addf %2, %4 : vector<16x128xf32>
    %c0_5 = arith.constant 0 : index
    %c0_6 = arith.constant 0 : index
    %6 = vector.load %arg6[%c0_5, %c0_6] : memref<16x128xbf16, #tpu.memory_space<vmem>>, vector<16x128xbf16>
    %7 = arith.extf %6 : vector<16x128xbf16> to vector<16x128xf32>
    %8 = arith.addf %5, %7 : vector<16x128xf32>
    %9 = arith.truncf %8 : vector<16x128xf32> to vector<16x128xbf16>
    %c0_7 = arith.constant 0 : index
    %c0_8 = arith.constant 0 : index
    %10 = vector.load %arg7[%c0_7, %c0_8] : memref<16x128xbf16, #tpu.memory_space<vmem>>, vector<16x128xbf16>
    tpu.vector_store %arg7[%c0_7, %c0_8], %9 {strides = array<i32>} : memref<16x128xbf16, #tpu.memory_space<vmem>>, vector<16x128xbf16>,
    return
  }
  func.func @transform_0(%arg0: i32, %arg1: i32, %arg2: i32) -> (i32, i32) {
    %c0_i32 = arith.constant 0 : i32
    return %arg0, %arg2 : i32, i32
  }
  func.func @transform_1(%arg0: i32, %arg1: i32, %arg2: i32) -> (i32, i32) {
    %c0_i32 = arith.constant 0 : i32
    return %arg2, %arg1 : i32, i32
  }
  func.func @transform_2(%arg0: i32, %arg1: i32, %arg2: i32) -> (i32, i32) {
    %c0_i32 = arith.constant 0 : i32
    %c0_i32_0 = arith.constant 0 : i32
    return %c0_i32, %arg1 : i32, i32
  }
  func.func @transform_3(%arg0: i32, %arg1: i32, %arg2: i32) -> (i32, i32) {
    %c0_i32 = arith.constant 0 : i32
    return %arg0, %arg1 : i32, i32
  }
  func.func @transform_4(%arg0: i32, %arg1: i32, %arg2: i32) -> (i32, i32) {
    %c0_i32 = arith.constant 0 : i32
    return %arg0, %arg1 : i32, i32
  }
}

module attributes {stable_mosaic.version = 11 : i64} {
  func.func @_matmul_kernel(%arg0: i32, %arg1: i32, %arg2: i32, %arg3: memref<16x128xbf16, #tpu.memory_space<vmem>>, %arg4: memref<128x256xbf16, #tpu.memory_space<vmem>>, %arg5: memref<1x256xf32, #tpu.memory_space<vmem>>, %arg6: memref<1x128xf32, #tpu.memory_space<vmem>>, %arg7: memref<1x128xf32, #tpu.memory_space<vmem>>, %arg8: memref<16x256xbf16, #tpu.memory_space<vmem>>) attributes {dimension_semantics = [#tpu.dimension_semantics<parallel>, #tpu.dimension_semantics<parallel>, #tpu.dimension_semantics<arbitrary>], iteration_bounds = array<i64: 1, 1, 1>, scalar_prefetch = 0 : i64, scratch_operands = 0 : i64, tpu.core_type = #tpu.core_type<tc>, window_params = [{transform_indices = @transform_0, window_bounds = array<i64: 16, 128>}, {transform_indices = @transform_1, window_bounds = array<i64: 128, 256>}, {transform_indices = @transform_2, window_bounds = array<i64: 1, 256>}, {transform_indices = @transform_3, window_bounds = array<i64: 1, 128>}, {transform_indices = @transform_4, window_bounds = array<i64: 1, 128>}, {transform_indices = @transform_5, window_bounds = array<i64: 16, 256>}]} {
    %c0 = arith.constant 0 : index
    %c0_0 = arith.constant 0 : index
    %0 = vector.load %arg3[%c0, %c0_0] : memref<16x128xbf16, #tpu.memory_space<vmem>>, vector<16x128xbf16>
    %1 = arith.extf %0 : vector<16x128xbf16> to vector<16x128xf32>
    %cst = arith.constant dense<0.000000e+00> : vector<16xf32>
    %2 = vector.multi_reduction <add>, %1, %cst [1] : vector<16x128xf32> to vector<16xf32>
    %3 = vector.shape_cast %2 : vector<16xf32> to vector<16x1xf32>
    %cst_1 = arith.constant 1.280000e+02 : f32
    %4 = vector.broadcast %cst_1 : f32 to vector<16x1xf32>
    %5 = arith.divf %3, %4 : vector<16x1xf32>
    %6 = vector.broadcast %5 : vector<16x1xf32> to vector<16x128xf32>
    %7 = arith.subf %1, %6 : vector<16x128xf32>
    %8 = arith.mulf %7, %7 : vector<16x128xf32>
    %cst_2 = arith.constant dense<0.000000e+00> : vector<16xf32>
    %9 = vector.multi_reduction <add>, %8, %cst_2 [1] : vector<16x128xf32> to vector<16xf32>
    %10 = vector.shape_cast %9 : vector<16xf32> to vector<16x1xf32>
    %cst_3 = arith.constant 1.280000e+02 : f32
    %11 = vector.broadcast %cst_3 : f32 to vector<16x1xf32>
    %12 = arith.divf %10, %11 : vector<16x1xf32>
    %cst_4 = arith.constant 9.99999974E-6 : f32
    %13 = vector.broadcast %cst_4 : f32 to vector<16x1xf32>
    %14 = arith.addf %12, %13 : vector<16x1xf32>
    %15 = math.rsqrt %14 : vector<16x1xf32>
    %16 = vector.broadcast %15 : vector<16x1xf32> to vector<16x128xf32>
    %17 = arith.mulf %7, %16 : vector<16x128xf32>
    %c0_5 = arith.constant 0 : index
    %c0_6 = arith.constant 0 : index
    %18 = vector.load %arg6[%c0_5, %c0_6] : memref<1x128xf32, #tpu.memory_space<vmem>>, vector<1x128xf32>
    %19 = vector.broadcast %18 : vector<1x128xf32> to vector<16x128xf32>
    %20 = arith.mulf %17, %19 : vector<16x128xf32>
    %c0_7 = arith.constant 0 : index
    %c0_8 = arith.constant 0 : index
    %21 = vector.load %arg7[%c0_7, %c0_8] : memref<1x128xf32, #tpu.memory_space<vmem>>, vector<1x128xf32>
    %22 = vector.broadcast %21 : vector<1x128xf32> to vector<16x128xf32>
    %23 = arith.addf %20, %22 : vector<16x128xf32>
    %24 = arith.truncf %23 : vector<16x128xf32> to vector<16x128xbf16>
    %c0_9 = arith.constant 0 : index
    %c0_10 = arith.constant 0 : index
    %25 = vector.load %arg4[%c0_9, %c0_10] : memref<128x256xbf16, #tpu.memory_space<vmem>>, vector<128x256xbf16>
    %cst_11 = arith.constant dense<0.000000e+00> : vector<16x256xf32>
    %26 = tpu.matmul %24, %25, %cst_11 {dimension_numbers = #tpu.dot_dimension_numbers<[1], [0], [0], [1], [0, 0, 1, 1], [], []>} : vector<16x128xbf16>, vector<128x256xbf16>, vector<16x256xf32> -> vector<16x256xf32>
    %c0_12 = arith.constant 0 : index
    %c0_13 = arith.constant 0 : index
    %27 = vector.load %arg5[%c0_12, %c0_13] : memref<1x256xf32, #tpu.memory_space<vmem>>, vector<1x256xf32>
    %28 = vector.broadcast %27 : vector<1x256xf32> to vector<16x256xf32>
    %29 = arith.addf %26, %28 : vector<16x256xf32>
    %cst_14 = arith.constant 5.000000e-01 : f32
    %30 = vector.broadcast %cst_14 : f32 to vector<16x256xf32>
    %31 = arith.mulf %30, %29 : vector<16x256xf32>
    %cst_15 = arith.constant 4.471500e-02 : f32
    %32 = vector.broadcast %cst_15 : f32 to vector<16x256xf32>
    %33 = arith.mulf %32, %29 : vector<16x256xf32>
    %34 = arith.mulf %33, %29 : vector<16x256xf32>
    %35 = arith.mulf %34, %29 : vector<16x256xf32>
    %36 = arith.addf %29, %35 : vector<16x256xf32>
    %cst_16 = arith.constant 0.797884583 : f32
    %37 = vector.broadcast %cst_16 : f32 to vector<16x256xf32>
    %38 = arith.mulf %37, %36 : vector<16x256xf32>
    %39 = math.tanh %38 : vector<16x256xf32>
    %cst_17 = arith.constant 1.000000e+00 : f32
    %40 = vector.broadcast %cst_17 : f32 to vector<16x256xf32>
    %41 = arith.addf %40, %39 : vector<16x256xf32>
    %42 = arith.mulf %31, %41 : vector<16x256xf32>
    %43 = arith.truncf %42 : vector<16x256xf32> to vector<16x256xbf16>
    %c0_18 = arith.constant 0 : index
    %c0_19 = arith.constant 0 : index
    %44 = vector.load %arg8[%c0_18, %c0_19] : memref<16x256xbf16, #tpu.memory_space<vmem>>, vector<16x256xbf16>
    tpu.vector_store %arg8[%c0_18, %c0_19], %43 {strides = array<i32>} : memref<16x256xbf16, #tpu.memory_space<vmem>>, vector<16x256xbf16>,
    return
  }
  func.func @transform_0(%arg0: i32, %arg1: i32, %arg2: i32) -> (i32, i32) {
    %c0_i32 = arith.constant 0 : i32
    return %arg0, %arg2 : i32, i32
  }
  func.func @transform_1(%arg0: i32, %arg1: i32, %arg2: i32) -> (i32, i32) {
    %c0_i32 = arith.constant 0 : i32
    return %arg2, %arg1 : i32, i32
  }
  func.func @transform_2(%arg0: i32, %arg1: i32, %arg2: i32) -> (i32, i32) {
    %c0_i32 = arith.constant 0 : i32
    %c0_i32_0 = arith.constant 0 : i32
    return %c0_i32, %arg1 : i32, i32
  }
  func.func @transform_3(%arg0: i32, %arg1: i32, %arg2: i32) -> (i32, i32) {
    %c0_i32 = arith.constant 0 : i32
    %c0_i32_0 = arith.constant 0 : i32
    return %c0_i32, %arg2 : i32, i32
  }
  func.func @transform_4(%arg0: i32, %arg1: i32, %arg2: i32) -> (i32, i32) {
    %c0_i32 = arith.constant 0 : i32
    %c0_i32_0 = arith.constant 0 : i32
    return %c0_i32, %arg2 : i32, i32
  }
  func.func @transform_5(%arg0: i32, %arg1: i32, %arg2: i32) -> (i32, i32) {
    %c0_i32 = arith.constant 0 : i32
    return %arg0, %arg1 : i32, i32
  }
}

module attributes {stable_mosaic.version = 11 : i64} {
  func.func @_matmul_kernel(%arg0: i32, %arg1: i32, %arg2: i32, %arg3: memref<8x128xbf16, #tpu.memory_space<vmem>>, %arg4: memref<128x128xbf16, #tpu.memory_space<vmem>>, %arg5: memref<1x128xf32, #tpu.memory_space<vmem>>, %arg6: memref<1x128xf32, #tpu.memory_space<vmem>>, %arg7: memref<1x128xf32, #tpu.memory_space<vmem>>, %arg8: memref<8x128xbf16, #tpu.memory_space<vmem>>) attributes {dimension_semantics = [#tpu.dimension_semantics<parallel>, #tpu.dimension_semantics<parallel>, #tpu.dimension_semantics<arbitrary>], iteration_bounds = array<i64: 1, 1, 1>, scalar_prefetch = 0 : i64, scratch_operands = 0 : i64, tpu.core_type = #tpu.core_type<tc>, window_params = [{transform_indices = @transform_0, window_bounds = array<i64: 8, 128>}, {transform_indices = @transform_1, window_bounds = array<i64: 128, 128>}, {transform_indices = @transform_2, window_bounds = array<i64: 1, 128>}, {transform_indices = @transform_3, window_bounds = array<i64: 1, 128>}, {transform_indices = @transform_4, window_bounds = array<i64: 1, 128>}, {transform_indices = @transform_5, window_bounds = array<i64: 8, 128>}]} {
    %c0 = arith.constant 0 : index
    %c0_0 = arith.constant 0 : index
    %0 = vector.load %arg3[%c0, %c0_0] : memref<8x128xbf16, #tpu.memory_space<vmem>>, vector<8x128xbf16>
    %1 = arith.extf %0 : vector<8x128xbf16> to vector<8x128xf32>
    %cst = arith.constant dense<0.000000e+00> : vector<8xf32>
    %2 = vector.multi_reduction <add>, %1, %cst [1] : vector<8x128xf32> to vector<8xf32>
    %3 = vector.shape_cast %2 : vector<8xf32> to vector<8x1xf32>
    %cst_1 = arith.constant 1.280000e+02 : f32
    %4 = vector.broadcast %cst_1 : f32 to vector<8x1xf32>
    %5 = arith.divf %3, %4 : vector<8x1xf32>
    %6 = vector.broadcast %5 : vector<8x1xf32> to vector<8x128xf32>
    %7 = arith.subf %1, %6 : vector<8x128xf32>
    %8 = arith.mulf %7, %7 : vector<8x128xf32>
    %cst_2 = arith.constant dense<0.000000e+00> : vector<8xf32>
    %9 = vector.multi_reduction <add>, %8, %cst_2 [1] : vector<8x128xf32> to vector<8xf32>
    %10 = vector.shape_cast %9 : vector<8xf32> to vector<8x1xf32>
    %cst_3 = arith.constant 1.280000e+02 : f32
    %11 = vector.broadcast %cst_3 : f32 to vector<8x1xf32>
    %12 = arith.divf %10, %11 : vector<8x1xf32>
    %cst_4 = arith.constant 9.99999974E-6 : f32
    %13 = vector.broadcast %cst_4 : f32 to vector<8x1xf32>
    %14 = arith.addf %12, %13 : vector<8x1xf32>
    %15 = math.rsqrt %14 : vector<8x1xf32>
    %16 = vector.broadcast %15 : vector<8x1xf32> to vector<8x128xf32>
    %17 = arith.mulf %7, %16 : vector<8x128xf32>
    %c0_5 = arith.constant 0 : index
    %c0_6 = arith.constant 0 : index
    %18 = vector.load %arg6[%c0_5, %c0_6] : memref<1x128xf32, #tpu.memory_space<vmem>>, vector<1x128xf32>
    %19 = vector.broadcast %18 : vector<1x128xf32> to vector<8x128xf32>
    %20 = arith.mulf %17, %19 : vector<8x128xf32>
    %c0_7 = arith.constant 0 : index
    %c0_8 = arith.constant 0 : index
    %21 = vector.load %arg7[%c0_7, %c0_8] : memref<1x128xf32, #tpu.memory_space<vmem>>, vector<1x128xf32>
    %22 = vector.broadcast %21 : vector<1x128xf32> to vector<8x128xf32>
    %23 = arith.addf %20, %22 : vector<8x128xf32>
    %24 = arith.truncf %23 : vector<8x128xf32> to vector<8x128xbf16>
    %c0_9 = arith.constant 0 : index
    %c0_10 = arith.constant 0 : index
    %25 = vector.load %arg4[%c0_9, %c0_10] : memref<128x128xbf16, #tpu.memory_space<vmem>>, vector<128x128xbf16>
    %cst_11 = arith.constant dense<0.000000e+00> : vector<8x128xf32>
    %26 = tpu.matmul %24, %25, %cst_11 {dimension_numbers = #tpu.dot_dimension_numbers<[1], [0], [0], [1], [0, 0, 1, 1], [], []>} : vector<8x128xbf16>, vector<128x128xbf16>, vector<8x128xf32> -> vector<8x128xf32>
    %c0_12 = arith.constant 0 : index
    %c0_13 = arith.constant 0 : index
    %27 = vector.load %arg5[%c0_12, %c0_13] : memref<1x128xf32, #tpu.memory_space<vmem>>, vector<1x128xf32>
    %28 = vector.broadcast %27 : vector<1x128xf32> to vector<8x128xf32>
    %29 = arith.addf %26, %28 : vector<8x128xf32>
    %30 = arith.truncf %29 : vector<8x128xf32> to vector<8x128xbf16>
    %c0_14 = arith.constant 0 : index
    %c0_15 = arith.constant 0 : index
    %31 = vector.load %arg8[%c0_14, %c0_15] : memref<8x128xbf16, #tpu.memory_space<vmem>>, vector<8x128xbf16>
    tpu.vector_store %arg8[%c0_14, %c0_15], %30 {strides = array<i32>} : memref<8x128xbf16, #tpu.memory_space<vmem>>, vector<8x128xbf16>,
    return
  }
  func.func @transform_0(%arg0: i32, %arg1: i32, %arg2: i32) -> (i32, i32) {
    %c0_i32 = arith.constant 0 : i32
    return %arg0, %arg2 : i32, i32
  }
  func.func @transform_1(%arg0: i32, %arg1: i32, %arg2: i32) -> (i32, i32) {
    %c0_i32 = arith.constant 0 : i32
    return %arg2, %arg1 : i32, i32
  }
  func.func @transform_2(%arg0: i32, %arg1: i32, %arg2: i32) -> (i32, i32) {
    %c0_i32 = arith.constant 0 : i32
    %c0_i32_0 = arith.constant 0 : i32
    return %c0_i32, %arg1 : i32, i32
  }
  func.func @transform_3(%arg0: i32, %arg1: i32, %arg2: i32) -> (i32, i32) {
    %c0_i32 = arith.constant 0 : i32
    %c0_i32_0 = arith.constant 0 : i32
    return %c0_i32, %arg2 : i32, i32
  }
  func.func @transform_4(%arg0: i32, %arg1: i32, %arg2: i32) -> (i32, i32) {
    %c0_i32 = arith.constant 0 : i32
    %c0_i32_0 = arith.constant 0 : i32
    return %c0_i32, %arg2 : i32, i32
  }
  func.func @transform_5(%arg0: i32, %arg1: i32, %arg2: i32) -> (i32, i32) {
    %c0_i32 = arith.constant 0 : i32
    return %arg0, %arg1 : i32, i32
  }
}

module attributes {stable_mosaic.version = 11 : i64} {
  func.func @_matmul_kernel(%arg0: i32, %arg1: i32, %arg2: i32, %arg3: memref<8x128xbf16, #tpu.memory_space<vmem>>, %arg4: memref<128x512xbf16, #tpu.memory_space<vmem>>, %arg5: memref<1x512xf32, #tpu.memory_space<vmem>>, %arg6: memref<8x512xf32, #tpu.memory_space<vmem>>) attributes {dimension_semantics = [#tpu.dimension_semantics<parallel>, #tpu.dimension_semantics<parallel>, #tpu.dimension_semantics<arbitrary>], iteration_bounds = array<i64: 1, 1, 1>, scalar_prefetch = 0 : i64, scratch_operands = 0 : i64, tpu.core_type = #tpu.core_type<tc>, window_params = [{transform_indices = @transform_0, window_bounds = array<i64: 8, 128>}, {transform_indices = @transform_1, window_bounds = array<i64: 128, 512>}, {transform_indices = @transform_2, window_bounds = array<i64: 1, 512>}, {transform_indices = @transform_3, window_bounds = array<i64: 8, 512>}]} {
    %c0 = arith.constant 0 : index
    %c0_0 = arith.constant 0 : index
    %0 = vector.load %arg3[%c0, %c0_0] : memref<8x128xbf16, #tpu.memory_space<vmem>>, vector<8x128xbf16>
    %c0_1 = arith.constant 0 : index
    %c0_2 = arith.constant 0 : index
    %1 = vector.load %arg4[%c0_1, %c0_2] : memref<128x512xbf16, #tpu.memory_space<vmem>>, vector<128x512xbf16>
    %cst = arith.constant dense<0.000000e+00> : vector<8x512xf32>
    %2 = tpu.matmul %0, %1, %cst {dimension_numbers = #tpu.dot_dimension_numbers<[1], [0], [0], [1], [0, 0, 1, 1], [], []>} : vector<8x128xbf16>, vector<128x512xbf16>, vector<8x512xf32> -> vector<8x512xf32>
    %c0_3 = arith.constant 0 : index
    %c0_4 = arith.constant 0 : index
    %3 = vector.load %arg5[%c0_3, %c0_4] : memref<1x512xf32, #tpu.memory_space<vmem>>, vector<1x512xf32>
    %4 = vector.broadcast %3 : vector<1x512xf32> to vector<8x512xf32>
    %5 = arith.addf %2, %4 : vector<8x512xf32>
    %c0_5 = arith.constant 0 : index
    %c0_6 = arith.constant 0 : index
    %6 = vector.load %arg6[%c0_5, %c0_6] : memref<8x512xf32, #tpu.memory_space<vmem>>, vector<8x512xf32>
    tpu.vector_store %arg6[%c0_5, %c0_6], %5 {strides = array<i32>} : memref<8x512xf32, #tpu.memory_space<vmem>>, vector<8x512xf32>,
    return
  }
  func.func @transform_0(%arg0: i32, %arg1: i32, %arg2: i32) -> (i32, i32) {
    %c0_i32 = arith.constant 0 : i32
    return %arg0, %arg2 : i32, i32
  }
  func.func @transform_1(%arg0: i32, %arg1: i32, %arg2: i32) -> (i32, i32) {
    %c0_i32 = arith.constant 0 : i32
    return %arg2, %arg1 : i32, i32
  }
  func.func @transform_2(%arg0: i32, %arg1: i32, %arg2: i32) -> (i32, i32) {
    %c0_i32 = arith.constant 0 : i32
    %c0_i32_0 = arith.constant 0 : i32
    return %c0_i32, %arg1 : i32, i32
  }
  func.func @transform_3(%arg0: i32, %arg1: i32, %arg2: i32) -> (i32, i32) {
    %c0_i32 = arith.constant 0 : i32
    return %arg0, %arg1 : i32, i32
  }
}

module attributes {stable_mosaic.version = 11 : i64} {
  func.func @_lstm_rec_kernel(%arg0: i32, %arg1: memref<2x512xf32, #tpu.memory_space<vmem>>, %arg2: memref<128x512xbf16, #tpu.memory_space<vmem>>, %arg3: memref<2x128xf32, #tpu.memory_space<vmem>>, %arg4: memref<1x128xf32, #tpu.memory_space<vmem>>, %arg5: memref<1x128xf32, #tpu.memory_space<vmem>>) attributes {dimension_semantics = [#tpu.dimension_semantics<arbitrary>], iteration_bounds = array<i64: 1>, scalar_prefetch = 0 : i64, scratch_operands = 2 : i64, tpu.core_type = #tpu.core_type<tc>, window_params = [{pipeline_mode = #tpu.pipeline_mode<synchronous>, transform_indices = @transform_0, window_bounds = array<i64: 2, 512>}, {pipeline_mode = #tpu.pipeline_mode<synchronous>, transform_indices = @transform_1, window_bounds = array<i64: 128, 512>}, {pipeline_mode = #tpu.pipeline_mode<synchronous>, transform_indices = @transform_2, window_bounds = array<i64: 2, 128>}]} {
    %cst = arith.constant 0.000000e+00 : f32
    %0 = vector.broadcast %cst : f32 to vector<1x128xf32>
    %c0 = arith.constant 0 : index
    %c0_0 = arith.constant 0 : index
    %1 = vector.load %arg4[%c0, %c0_0] : memref<1x128xf32, #tpu.memory_space<vmem>>, vector<1x128xf32>
    tpu.vector_store %arg4[%c0, %c0_0], %0 {strides = array<i32>} : memref<1x128xf32, #tpu.memory_space<vmem>>, vector<1x128xf32>,
    %cst_1 = arith.constant 0.000000e+00 : f32
    %2 = vector.broadcast %cst_1 : f32 to vector<1x128xf32>
    %c0_2 = arith.constant 0 : index
    %c0_3 = arith.constant 0 : index
    %3 = vector.load %arg5[%c0_2, %c0_3] : memref<1x128xf32, #tpu.memory_space<vmem>>, vector<1x128xf32>
    tpu.vector_store %arg5[%c0_2, %c0_3], %2 {strides = array<i32>} : memref<1x128xf32, #tpu.memory_space<vmem>>, vector<1x128xf32>,
    %c0_4 = arith.constant 0 : index
    %c0_5 = arith.constant 0 : index
    %4 = vector.load %arg1[%c0_4, %c0_5] : memref<2x512xf32, #tpu.memory_space<vmem>>, vector<1x512xf32>
    %c0_6 = arith.constant 0 : index
    %c0_7 = arith.constant 0 : index
    %5 = vector.load %arg4[%c0_6, %c0_7] : memref<1x128xf32, #tpu.memory_space<vmem>>, vector<1x128xf32>
    %6 = arith.truncf %5 : vector<1x128xf32> to vector<1x128xbf16>
    %c0_8 = arith.constant 0 : index
    %c0_9 = arith.constant 0 : index
    %7 = vector.load %arg2[%c0_8, %c0_9] : memref<128x512xbf16, #tpu.memory_space<vmem>>, vector<128x512xbf16>
    %cst_10 = arith.constant dense<0.000000e+00> : vector<1x512xf32>
    %8 = tpu.matmul %6, %7, %cst_10 {dimension_numbers = #tpu.dot_dimension_numbers<[1], [0], [0], [1], [0, 0, 1, 1], [], []>} : vector<1x128xbf16>, vector<128x512xbf16>, vector<1x512xf32> -> vector<1x512xf32>
    %9 = arith.addf %4, %8 : vector<1x512xf32>
    %10 = vector.extract_strided_slice %9 {offsets = [0, 0], sizes = [1, 128], strides = [1, 1]} : vector<1x512xf32> to vector<1x128xf32>
    %cst_11 = arith.constant 0.000000e+00 : f32
    %11 = vector.broadcast %cst_11 : f32 to vector<1x128xf32>
    %12 = arith.subf %11, %10 : vector<1x128xf32>
    %13 = math.exp %12 : vector<1x128xf32>
    %cst_12 = arith.constant 1.000000e+00 : f32
    %14 = vector.broadcast %cst_12 : f32 to vector<1x128xf32>
    %15 = arith.addf %14, %13 : vector<1x128xf32>
    %cst_13 = arith.constant 1.000000e+00 : f32
    %16 = vector.broadcast %cst_13 : f32 to vector<1x128xf32>
    %17 = arith.divf %16, %15 : vector<1x128xf32>
    %18 = vector.extract_strided_slice %9 {offsets = [0, 128], sizes = [1, 128], strides = [1, 1]} : vector<1x512xf32> to vector<1x128xf32>
    %cst_14 = arith.constant 0.000000e+00 : f32
    %19 = vector.broadcast %cst_14 : f32 to vector<1x128xf32>
    %20 = arith.subf %19, %18 : vector<1x128xf32>
    %21 = math.exp %20 : vector<1x128xf32>
    %cst_15 = arith.constant 1.000000e+00 : f32
    %22 = vector.broadcast %cst_15 : f32 to vector<1x128xf32>
    %23 = arith.addf %22, %21 : vector<1x128xf32>
    %cst_16 = arith.constant 1.000000e+00 : f32
    %24 = vector.broadcast %cst_16 : f32 to vector<1x128xf32>
    %25 = arith.divf %24, %23 : vector<1x128xf32>
    %26 = vector.extract_strided_slice %9 {offsets = [0, 256], sizes = [1, 128], strides = [1, 1]} : vector<1x512xf32> to vector<1x128xf32>
    %27 = math.tanh %26 : vector<1x128xf32>
    %28 = vector.extract_strided_slice %9 {offsets = [0, 384], sizes = [1, 128], strides = [1, 1]} : vector<1x512xf32> to vector<1x128xf32>
    %cst_17 = arith.constant 0.000000e+00 : f32
    %29 = vector.broadcast %cst_17 : f32 to vector<1x128xf32>
    %30 = arith.subf %29, %28 : vector<1x128xf32>
    %31 = math.exp %30 : vector<1x128xf32>
    %cst_18 = arith.constant 1.000000e+00 : f32
    %32 = vector.broadcast %cst_18 : f32 to vector<1x128xf32>
    %33 = arith.addf %32, %31 : vector<1x128xf32>
    %cst_19 = arith.constant 1.000000e+00 : f32
    %34 = vector.broadcast %cst_19 : f32 to vector<1x128xf32>
    %35 = arith.divf %34, %33 : vector<1x128xf32>
    %c0_20 = arith.constant 0 : index
    %c0_21 = arith.constant 0 : index
    %36 = vector.load %arg5[%c0_20, %c0_21] : memref<1x128xf32, #tpu.memory_space<vmem>>, vector<1x128xf32>
    %37 = arith.mulf %25, %36 : vector<1x128xf32>
    %38 = arith.mulf %17, %27 : vector<1x128xf32>
    %39 = arith.addf %37, %38 : vector<1x128xf32>
    %40 = math.tanh %39 : vector<1x128xf32>
    %41 = arith.mulf %35, %40 : vector<1x128xf32>
    %c0_22 = arith.constant 0 : index
    %c0_23 = arith.constant 0 : index
    %42 = vector.load %arg5[%c0_22, %c0_23] : memref<1x128xf32, #tpu.memory_space<vmem>>, vector<1x128xf32>
    tpu.vector_store %arg5[%c0_22, %c0_23], %39 {strides = array<i32>} : memref<1x128xf32, #tpu.memory_space<vmem>>, vector<1x128xf32>,
    %c0_24 = arith.constant 0 : index
    %c0_25 = arith.constant 0 : index
    %43 = vector.load %arg4[%c0_24, %c0_25] : memref<1x128xf32, #tpu.memory_space<vmem>>, vector<1x128xf32>
    tpu.vector_store %arg4[%c0_24, %c0_25], %41 {strides = array<i32>} : memref<1x128xf32, #tpu.memory_space<vmem>>, vector<1x128xf32>,
    %c0_26 = arith.constant 0 : index
    %c0_27 = arith.constant 0 : index
    %44 = vector.load %arg3[%c0_26, %c0_27] : memref<2x128xf32, #tpu.memory_space<vmem>>, vector<1x128xf32>
    tpu.vector_store %arg3[%c0_26, %c0_27], %41 {strides = array<i32>} : memref<2x128xf32, #tpu.memory_space<vmem>>, vector<1x128xf32>,
    %c1 = arith.constant 1 : index
    %c0_28 = arith.constant 0 : index
    %45 = vector.load %arg1[%c1, %c0_28] : memref<2x512xf32, #tpu.memory_space<vmem>>, vector<1x512xf32>
    %c0_29 = arith.constant 0 : index
    %c0_30 = arith.constant 0 : index
    %46 = vector.load %arg4[%c0_29, %c0_30] : memref<1x128xf32, #tpu.memory_space<vmem>>, vector<1x128xf32>
    %47 = arith.truncf %46 : vector<1x128xf32> to vector<1x128xbf16>
    %c0_31 = arith.constant 0 : index
    %c0_32 = arith.constant 0 : index
    %48 = vector.load %arg2[%c0_31, %c0_32] : memref<128x512xbf16, #tpu.memory_space<vmem>>, vector<128x512xbf16>
    %cst_33 = arith.constant dense<0.000000e+00> : vector<1x512xf32>
    %49 = tpu.matmul %47, %48, %cst_33 {dimension_numbers = #tpu.dot_dimension_numbers<[1], [0], [0], [1], [0, 0, 1, 1], [], []>} : vector<1x128xbf16>, vector<128x512xbf16>, vector<1x512xf32> -> vector<1x512xf32>
    %50 = arith.addf %45, %49 : vector<1x512xf32>
    %51 = vector.extract_strided_slice %50 {offsets = [0, 0], sizes = [1, 128], strides = [1, 1]} : vector<1x512xf32> to vector<1x128xf32>
    %cst_34 = arith.constant 0.000000e+00 : f32
    %52 = vector.broadcast %cst_34 : f32 to vector<1x128xf32>
    %53 = arith.subf %52, %51 : vector<1x128xf32>
    %54 = math.exp %53 : vector<1x128xf32>
    %cst_35 = arith.constant 1.000000e+00 : f32
    %55 = vector.broadcast %cst_35 : f32 to vector<1x128xf32>
    %56 = arith.addf %55, %54 : vector<1x128xf32>
    %cst_36 = arith.constant 1.000000e+00 : f32
    %57 = vector.broadcast %cst_36 : f32 to vector<1x128xf32>
    %58 = arith.divf %57, %56 : vector<1x128xf32>
    %59 = vector.extract_strided_slice %50 {offsets = [0, 128], sizes = [1, 128], strides = [1, 1]} : vector<1x512xf32> to vector<1x128xf32>
    %cst_37 = arith.constant 0.000000e+00 : f32
    %60 = vector.broadcast %cst_37 : f32 to vector<1x128xf32>
    %61 = arith.subf %60, %59 : vector<1x128xf32>
    %62 = math.exp %61 : vector<1x128xf32>
    %cst_38 = arith.constant 1.000000e+00 : f32
    %63 = vector.broadcast %cst_38 : f32 to vector<1x128xf32>
    %64 = arith.addf %63, %62 : vector<1x128xf32>
    %cst_39 = arith.constant 1.000000e+00 : f32
    %65 = vector.broadcast %cst_39 : f32 to vector<1x128xf32>
    %66 = arith.divf %65, %64 : vector<1x128xf32>
    %67 = vector.extract_strided_slice %50 {offsets = [0, 256], sizes = [1, 128], strides = [1, 1]} : vector<1x512xf32> to vector<1x128xf32>
    %68 = math.tanh %67 : vector<1x128xf32>
    %69 = vector.extract_strided_slice %50 {offsets = [0, 384], sizes = [1, 128], strides = [1, 1]} : vector<1x512xf32> to vector<1x128xf32>
    %cst_40 = arith.constant 0.000000e+00 : f32
    %70 = vector.broadcast %cst_40 : f32 to vector<1x128xf32>
    %71 = arith.subf %70, %69 : vector<1x128xf32>
    %72 = math.exp %71 : vector<1x128xf32>
    %cst_41 = arith.constant 1.000000e+00 : f32
    %73 = vector.broadcast %cst_41 : f32 to vector<1x128xf32>
    %74 = arith.addf %73, %72 : vector<1x128xf32>
    %cst_42 = arith.constant 1.000000e+00 : f32
    %75 = vector.broadcast %cst_42 : f32 to vector<1x128xf32>
    %76 = arith.divf %75, %74 : vector<1x128xf32>
    %c0_43 = arith.constant 0 : index
    %c0_44 = arith.constant 0 : index
    %77 = vector.load %arg5[%c0_43, %c0_44] : memref<1x128xf32, #tpu.memory_space<vmem>>, vector<1x128xf32>
    %78 = arith.mulf %66, %77 : vector<1x128xf32>
    %79 = arith.mulf %58, %68 : vector<1x128xf32>
    %80 = arith.addf %78, %79 : vector<1x128xf32>
    %81 = math.tanh %80 : vector<1x128xf32>
    %82 = arith.mulf %76, %81 : vector<1x128xf32>
    %c0_45 = arith.constant 0 : index
    %c0_46 = arith.constant 0 : index
    %83 = vector.load %arg5[%c0_45, %c0_46] : memref<1x128xf32, #tpu.memory_space<vmem>>, vector<1x128xf32>
    tpu.vector_store %arg5[%c0_45, %c0_46], %80 {strides = array<i32>} : memref<1x128xf32, #tpu.memory_space<vmem>>, vector<1x128xf32>,
    %c0_47 = arith.constant 0 : index
    %c0_48 = arith.constant 0 : index
    %84 = vector.load %arg4[%c0_47, %c0_48] : memref<1x128xf32, #tpu.memory_space<vmem>>, vector<1x128xf32>
    tpu.vector_store %arg4[%c0_47, %c0_48], %82 {strides = array<i32>} : memref<1x128xf32, #tpu.memory_space<vmem>>, vector<1x128xf32>,
    %c1_49 = arith.constant 1 : index
    %c0_50 = arith.constant 0 : index
    %85 = vector.load %arg3[%c1_49, %c0_50] : memref<2x128xf32, #tpu.memory_space<vmem>>, vector<1x128xf32>
    tpu.vector_store %arg3[%c1_49, %c0_50], %82 {strides = array<i32>} : memref<2x128xf32, #tpu.memory_space<vmem>>, vector<1x128xf32>,
    return
  }
  func.func @transform_0(%arg0: i32) -> (i32, i32) {
    %c0_i32 = arith.constant 0 : i32
    %c0_i32_0 = arith.constant 0 : i32
    %c0_i32_1 = arith.constant 0 : i32
    return %c0_i32, %c0_i32_0 : i32, i32
  }
  func.func @transform_1(%arg0: i32) -> (i32, i32) {
    %c0_i32 = arith.constant 0 : i32
    %c0_i32_0 = arith.constant 0 : i32
    %c0_i32_1 = arith.constant 0 : i32
    return %c0_i32, %c0_i32_0 : i32, i32
  }
  func.func @transform_2(%arg0: i32) -> (i32, i32) {
    %c0_i32 = arith.constant 0 : i32
    %c0_i32_0 = arith.constant 0 : i32
    %c0_i32_1 = arith.constant 0 : i32
    return %c0_i32, %c0_i32_0 : i32, i32
  }
}

module attributes {stable_mosaic.version = 11 : i64} {
  func.func @_matmul_kernel(%arg0: i32, %arg1: i32, %arg2: i32, %arg3: memref<8x256xbf16, #tpu.memory_space<vmem>>, %arg4: memref<256x128xbf16, #tpu.memory_space<vmem>>, %arg5: memref<1x128xf32, #tpu.memory_space<vmem>>, %arg6: memref<8x128xbf16, #tpu.memory_space<vmem>>) attributes {dimension_semantics = [#tpu.dimension_semantics<parallel>, #tpu.dimension_semantics<parallel>, #tpu.dimension_semantics<arbitrary>], iteration_bounds = array<i64: 1, 1, 1>, scalar_prefetch = 0 : i64, scratch_operands = 0 : i64, tpu.core_type = #tpu.core_type<tc>, window_params = [{transform_indices = @transform_0, window_bounds = array<i64: 8, 256>}, {transform_indices = @transform_1, window_bounds = array<i64: 256, 128>}, {transform_indices = @transform_2, window_bounds = array<i64: 1, 128>}, {transform_indices = @transform_3, window_bounds = array<i64: 8, 128>}]} {
    %c0 = arith.constant 0 : index
    %c0_0 = arith.constant 0 : index
    %0 = vector.load %arg3[%c0, %c0_0] : memref<8x256xbf16, #tpu.memory_space<vmem>>, vector<8x256xbf16>
    %c0_1 = arith.constant 0 : index
    %c0_2 = arith.constant 0 : index
    %1 = vector.load %arg4[%c0_1, %c0_2] : memref<256x128xbf16, #tpu.memory_space<vmem>>, vector<256x128xbf16>
    %cst = arith.constant dense<0.000000e+00> : vector<8x128xf32>
    %2 = tpu.matmul %0, %1, %cst {dimension_numbers = #tpu.dot_dimension_numbers<[1], [0], [0], [1], [0, 0, 1, 1], [], []>} : vector<8x256xbf16>, vector<256x128xbf16>, vector<8x128xf32> -> vector<8x128xf32>
    %c0_3 = arith.constant 0 : index
    %c0_4 = arith.constant 0 : index
    %3 = vector.load %arg5[%c0_3, %c0_4] : memref<1x128xf32, #tpu.memory_space<vmem>>, vector<1x128xf32>
    %4 = vector.broadcast %3 : vector<1x128xf32> to vector<8x128xf32>
    %5 = arith.addf %2, %4 : vector<8x128xf32>
    %cst_5 = arith.constant 0.000000e+00 : f32
    %6 = vector.broadcast %cst_5 : f32 to vector<8x128xf32>
    %7 = arith.maximumf %5, %6 : vector<8x128xf32>
    %8 = arith.truncf %7 : vector<8x128xf32> to vector<8x128xbf16>
    %c0_6 = arith.constant 0 : index
    %c0_7 = arith.constant 0 : index
    %9 = vector.load %arg6[%c0_6, %c0_7] : memref<8x128xbf16, #tpu.memory_space<vmem>>, vector<8x128xbf16>
    tpu.vector_store %arg6[%c0_6, %c0_7], %8 {strides = array<i32>} : memref<8x128xbf16, #tpu.memory_space<vmem>>, vector<8x128xbf16>,
    return
  }
  func.func @transform_0(%arg0: i32, %arg1: i32, %arg2: i32) -> (i32, i32) {
    %c0_i32 = arith.constant 0 : i32
    return %arg0, %arg2 : i32, i32
  }
  func.func @transform_1(%arg0: i32, %arg1: i32, %arg2: i32) -> (i32, i32) {
    %c0_i32 = arith.constant 0 : i32
    return %arg2, %arg1 : i32, i32
  }
  func.func @transform_2(%arg0: i32, %arg1: i32, %arg2: i32) -> (i32, i32) {
    %c0_i32 = arith.constant 0 : i32
    %c0_i32_0 = arith.constant 0 : i32
    return %c0_i32, %arg1 : i32, i32
  }
  func.func @transform_3(%arg0: i32, %arg1: i32, %arg2: i32) -> (i32, i32) {
    %c0_i32 = arith.constant 0 : i32
    return %arg0, %arg1 : i32, i32
  }
}

module attributes {stable_mosaic.version = 11 : i64} {
  func.func @_matmul_kernel(%arg0: i32, %arg1: i32, %arg2: i32, %arg3: memref<8x128xbf16, #tpu.memory_space<vmem>>, %arg4: memref<128x128xbf16, #tpu.memory_space<vmem>>, %arg5: memref<1x128xf32, #tpu.memory_space<vmem>>, %arg6: memref<8x128xbf16, #tpu.memory_space<vmem>>) attributes {dimension_semantics = [#tpu.dimension_semantics<parallel>, #tpu.dimension_semantics<parallel>, #tpu.dimension_semantics<arbitrary>], iteration_bounds = array<i64: 1, 1, 1>, scalar_prefetch = 0 : i64, scratch_operands = 0 : i64, tpu.core_type = #tpu.core_type<tc>, window_params = [{transform_indices = @transform_0, window_bounds = array<i64: 8, 128>}, {transform_indices = @transform_1, window_bounds = array<i64: 128, 128>}, {transform_indices = @transform_2, window_bounds = array<i64: 1, 128>}, {transform_indices = @transform_3, window_bounds = array<i64: 8, 128>}]} {
    %c0 = arith.constant 0 : index
    %c0_0 = arith.constant 0 : index
    %0 = vector.load %arg3[%c0, %c0_0] : memref<8x128xbf16, #tpu.memory_space<vmem>>, vector<8x128xbf16>
    %c0_1 = arith.constant 0 : index
    %c0_2 = arith.constant 0 : index
    %1 = vector.load %arg4[%c0_1, %c0_2] : memref<128x128xbf16, #tpu.memory_space<vmem>>, vector<128x128xbf16>
    %cst = arith.constant dense<0.000000e+00> : vector<8x128xf32>
    %2 = tpu.matmul %0, %1, %cst {dimension_numbers = #tpu.dot_dimension_numbers<[1], [0], [0], [1], [0, 0, 1, 1], [], []>} : vector<8x128xbf16>, vector<128x128xbf16>, vector<8x128xf32> -> vector<8x128xf32>
    %c0_3 = arith.constant 0 : index
    %c0_4 = arith.constant 0 : index
    %3 = vector.load %arg5[%c0_3, %c0_4] : memref<1x128xf32, #tpu.memory_space<vmem>>, vector<1x128xf32>
    %4 = vector.broadcast %3 : vector<1x128xf32> to vector<8x128xf32>
    %5 = arith.addf %2, %4 : vector<8x128xf32>
    %cst_5 = arith.constant 0.000000e+00 : f32
    %6 = vector.broadcast %cst_5 : f32 to vector<8x128xf32>
    %7 = arith.maximumf %5, %6 : vector<8x128xf32>
    %8 = arith.truncf %7 : vector<8x128xf32> to vector<8x128xbf16>
    %c0_6 = arith.constant 0 : index
    %c0_7 = arith.constant 0 : index
    %9 = vector.load %arg6[%c0_6, %c0_7] : memref<8x128xbf16, #tpu.memory_space<vmem>>, vector<8x128xbf16>
    tpu.vector_store %arg6[%c0_6, %c0_7], %8 {strides = array<i32>} : memref<8x128xbf16, #tpu.memory_space<vmem>>, vector<8x128xbf16>,
    return
  }
  func.func @transform_0(%arg0: i32, %arg1: i32, %arg2: i32) -> (i32, i32) {
    %c0_i32 = arith.constant 0 : i32
    return %arg0, %arg2 : i32, i32
  }
  func.func @transform_1(%arg0: i32, %arg1: i32, %arg2: i32) -> (i32, i32) {
    %c0_i32 = arith.constant 0 : i32
    return %arg2, %arg1 : i32, i32
  }
  func.func @transform_2(%arg0: i32, %arg1: i32, %arg2: i32) -> (i32, i32) {
    %c0_i32 = arith.constant 0 : i32
    %c0_i32_0 = arith.constant 0 : i32
    return %c0_i32, %arg1 : i32, i32
  }
  func.func @transform_3(%arg0: i32, %arg1: i32, %arg2: i32) -> (i32, i32) {
    %c0_i32 = arith.constant 0 : i32
    return %arg0, %arg1 : i32, i32
  }
}

module attributes {stable_mosaic.version = 11 : i64} {
  func.func @_matmul_kernel(%arg0: i32, %arg1: i32, %arg2: i32, %arg3: memref<8x128xbf16, #tpu.memory_space<vmem>>, %arg4: memref<128x128xbf16, #tpu.memory_space<vmem>>, %arg5: memref<1x128xf32, #tpu.memory_space<vmem>>, %arg6: memref<8x128xf32, #tpu.memory_space<vmem>>) attributes {dimension_semantics = [#tpu.dimension_semantics<parallel>, #tpu.dimension_semantics<parallel>, #tpu.dimension_semantics<arbitrary>], iteration_bounds = array<i64: 1, 1, 1>, scalar_prefetch = 0 : i64, scratch_operands = 0 : i64, tpu.core_type = #tpu.core_type<tc>, window_params = [{transform_indices = @transform_0, window_bounds = array<i64: 8, 128>}, {transform_indices = @transform_1, window_bounds = array<i64: 128, 128>}, {transform_indices = @transform_2, window_bounds = array<i64: 1, 128>}, {transform_indices = @transform_3, window_bounds = array<i64: 8, 128>}]} {
    %c0 = arith.constant 0 : index
    %c0_0 = arith.constant 0 : index
    %0 = vector.load %arg3[%c0, %c0_0] : memref<8x128xbf16, #tpu.memory_space<vmem>>, vector<8x128xbf16>
    %c0_1 = arith.constant 0 : index
    %c0_2 = arith.constant 0 : index
    %1 = vector.load %arg4[%c0_1, %c0_2] : memref<128x128xbf16, #tpu.memory_space<vmem>>, vector<128x128xbf16>
    %cst = arith.constant dense<0.000000e+00> : vector<8x128xf32>
    %2 = tpu.matmul %0, %1, %cst {dimension_numbers = #tpu.dot_dimension_numbers<[1], [0], [0], [1], [0, 0, 1, 1], [], []>} : vector<8x128xbf16>, vector<128x128xbf16>, vector<8x128xf32> -> vector<8x128xf32>
    %c0_3 = arith.constant 0 : index
    %c0_4 = arith.constant 0 : index
    %3 = vector.load %arg5[%c0_3, %c0_4] : memref<1x128xf32, #tpu.memory_space<vmem>>, vector<1x128xf32>
    %4 = vector.broadcast %3 : vector<1x128xf32> to vector<8x128xf32>
    %5 = arith.addf %2, %4 : vector<8x128xf32>
    %c0_5 = arith.constant 0 : index
    %c0_6 = arith.constant 0 : index
    %6 = vector.load %arg6[%c0_5, %c0_6] : memref<8x128xf32, #tpu.memory_space<vmem>>, vector<8x128xf32>
    tpu.vector_store %arg6[%c0_5, %c0_6], %5 {strides = array<i32>} : memref<8x128xf32, #tpu.memory_space<vmem>>, vector<8x128xf32>,
    return
  }
  func.func @transform_0(%arg0: i32, %arg1: i32, %arg2: i32) -> (i32, i32) {
    %c0_i32 = arith.constant 0 : i32
    return %arg0, %arg2 : i32, i32
  }
  func.func @transform_1(%arg0: i32, %arg1: i32, %arg2: i32) -> (i32, i32) {
    %c0_i32 = arith.constant 0 : i32
    return %arg2, %arg1 : i32, i32
  }
  func.func @transform_2(%arg0: i32, %arg1: i32, %arg2: i32) -> (i32, i32) {
    %c0_i32 = arith.constant 0 : i32
    %c0_i32_0 = arith.constant 0 : i32
    return %c0_i32, %arg1 : i32, i32
  }
  func.func @transform_3(%arg0: i32, %arg1: i32, %arg2: i32) -> (i32, i32) {
    %c0_i32 = arith.constant 0 : i32
    return %arg0, %arg1 : i32, i32
  }
}

</mosaic_0001>

<bundles_post_ra>
// kernel: forward.25
= control target key start
LH: loop header
LB: loop body
LE: loop exit
PB: predicated region body
PF: predicated region fallthrough
CT: control target
= control target key end

     0   :  { %s1324_s15 = smov 0   ;;  %s1326_s16 = smov 0   ;;  %s1710_s0 = inlined_call_operand.vmem [shape: bf16[8192,27], index: 0, kind: input, shape index: {}]   ;;  %s1711_s1 = inlined_call_operand.vmem [shape: bf16[27,3], index: 1, kind: input, shape index: {}]   ;;  %s1712_s2 = inlined_call_operand.vmem [shape: f32[1,3], index: 2, kind: input, shape index: {}]   ;;  %s1713_s3 = inlined_call_operand.vmem [shape: f32[1,3], index: 3, kind: input, shape index: {}]   ;;  %s1714_s4 = inlined_call_operand.vmem [shape: bf16[8192,3], index: 4, kind: output, shape index: {}]  }
   0x1   :  { %s1328_s17 = smov 0  }
   0x2 LB: > { %s33_s18 = sadd.s32 1, %s1292_s16  ;;  %p1032_p0 = scmp.ge.s32.totalorder %s1296_s17, 1  ;;  %s1296_s17 = sphi %s1328_s17, %s14_s17   ;;  %s1292_s16 = sphi %s1326_s16, %s1716_s16   ;;  %s1288_s15 = sphi %s1324_s15, %s1715_s15  }
   0x3   : > { %p35_p1 = scmp.ge.s32.totalorder %s33_s18, 32  ;;  %p221_p2 = scmp.lt.s32.totalorder %s1296_s17, 33 }
   0x5   : > { %s1718_s18 = smov (%p35_p1, %s33_s18), 0  ;;  %p222_p3 = pnand %p1032_p0, %p221_p2 }
   0x6   : > { %s1033_s23 = sshll.u32 (!%p222_p3), %s1288_s15, 5 }
   0x7   : > { %225 = sbr.rel (%p222_p3) target bundleno = 242 (0xf2), region = 36  ;;  %p268_p4 = scmp.lt.s32.totalorder (!%p222_p3), %s1033_s23, 1023 }
   0xc   : > { %v1107_v0 = vld [vmem:[%s1711_s1 + $0x8] sm:$0xf]  ;;  %v1176_v1 = vld [vmem:[%s1711_s1 + $0x8] sm:$0x30]  ;;  %vm477_vm0 = vcmask 1044480   ;;  %vm478_vm1 = vcmask 1045504  }
   0xd   : > { %v1108_v2 = vor.u32 %v1176_v1, %v1107_v0  ;;  %v1298_v3 = vmov 65535   ;;  %s1720_s23 = smov (!%p268_p4, %s1033_s23), 1023  ;;  %v1175_v7 = vld [vmem:[%s1711_s1] sm:$0xff]  ;;  %vm428_vm2 = vcmask 220160   ;;  %vm869_vm3 = vcmask 19456  }
   0xe   : > { %v479_v4 = vsel %vm477_vm0, 4294967295, %v1298_v3  ;;  %s1034_s26 = sshll.u32 %s1720_s23, 2  ;;  %v1396_v24 = vld [vmem:[%s1712_s2] ss:$0 sm:$0xff] }
   0xf   : > { %v480_v5 = vsel %vm478_vm1, %v479_v4, 0  ;;  %s1359_s29 = scalar_lea.vmem %s1710_s0, %s1034_s26  ;;  %v1401_v25 = vld [vmem:[%s1713_s3] ss:$0 sm:$0xff]  ;;  %s1436_s10 = scalar_lea.vmem %s1714_s4, %s1034_s26 }
  0x10   : > { %v482_v6 = vand.u32 %v1108_v2, %v480_v5  ;;  %v1159_v8 = vld [vmem:[%s1359_s29] sm:$0xff]  ;;  %v1160_v12 = vld [vmem:[%s1359_s29 + $0x8] sm:$0xff]  ;;  %v1161_v16 = vld [vmem:[%s1359_s29 + $0x10] sm:$0xff] }
  0x11   : > { %v1163_v9 = vld [vmem:[%s1359_s29 + $0x20] sm:$0xff]  ;;  %v1164_v13 = vld [vmem:[%s1359_s29 + $0x28] sm:$0xff]  ;;  %v1165_v17 = vld [vmem:[%s1359_s29 + $0x30] sm:$0xff] }
  0x12   : > { %490 = vmatpush.bf16.msra.mxu0 %v482_v6  ;;  %1177 = vmatpush.bf16.msra.mxu1 %v482_v6  ;;  %v1167_v10 = vld [vmem:[%s1359_s29 + $0x40] sm:$0xff]  ;;  %v1168_v14 = vld [vmem:[%s1359_s29 + $0x48] sm:$0xff]  ;;  %v1169_v18 = vld [vmem:[%s1359_s29 + $0x50] sm:$0xff] }
  0x13   : > { %1178 = vmatpush.bf16.msra.mxu2 %v482_v6  ;;  %1179 = vmatpush.bf16.msra.mxu3 %v482_v6  ;;  %v1171_v11 = vld [vmem:[%s1359_s29 + $0x60] sm:$0xff]  ;;  %v1172_v15 = vld [vmem:[%s1359_s29 + $0x68] sm:$0xff]  ;;  %v1173_v19 = vld [vmem:[%s1359_s29 + $0x70] sm:$0xff] }
  0x14   : > { %v1162_v20 = vld [vmem:[%s1359_s29 + $0x18] sm:$0xff] }
  0x15   : > { %v1166_v21 = vld [vmem:[%s1359_s29 + $0x38] sm:$0xff] }
  0x16   : > { %491 = vmatpush.bf16.msra.mxu0 %v1175_v7  ;;  %1180 = vmatpush.bf16.msra.mxu1 %v1175_v7  ;;  %v1170_v22 = vld [vmem:[%s1359_s29 + $0x58] sm:$0xff] }
  0x17   : > { %1181 = vmatpush.bf16.msra.mxu2 %v1175_v7  ;;  %1182 = vmatpush.bf16.msra.mxu3 %v1175_v7  ;;  %v1174_v23 = vld [vmem:[%s1359_s29 + $0x78] sm:$0xff] }
  0x19   : > { %1109 = vmatmul.msk.bf16.vlgmr.msra.gmra.mxu0 %vm428_vm2, %v1159_v8  ;;  %1113 = vmatmul.msk.bf16.vlgmr.msra.gmra.mxu1 %vm428_vm2, %v1163_v9 }
  0x1a   : > { %1117 = vmatmul.msk.bf16.vlgmr.msra.gmra.mxu2 %vm428_vm2, %v1167_v10  ;;  %1121 = vmatmul.msk.bf16.vlgmr.msra.gmra.mxu3 %vm428_vm2, %v1171_v11 }
  0x29   : > { %1110 = vmatmul.msk.bf16.gmra.mxu0 %vm428_vm2, %v1160_v12  ;;  %1114 = vmatmul.msk.bf16.gmra.mxu1 %vm428_vm2, %v1164_v13 }
  0x2a   : > { %1118 = vmatmul.msk.bf16.gmra.mxu2 %vm428_vm2, %v1168_v14  ;;  %1122 = vmatmul.msk.bf16.gmra.mxu3 %vm428_vm2, %v1172_v15 }
  0x39   : > { %1111 = vmatmul.msk.bf16.gmra.mxu0 %vm428_vm2, %v1161_v16  ;;  %1115 = vmatmul.msk.bf16.gmra.mxu1 %vm428_vm2, %v1165_v17 }
  0x3a   : > { %1119 = vmatmul.msk.bf16.gmra.mxu2 %vm428_vm2, %v1169_v18  ;;  %1123 = vmatmul.msk.bf16.gmra.mxu3 %vm428_vm2, %v1173_v19 }
  0x49   : > { %1112 = vmatmul.msk.bf16.gmra.mxu0 %vm428_vm2, %v1162_v20  ;;  %1116 = vmatmul.msk.bf16.gmra.mxu1 %vm428_vm2, %v1166_v21 }
  0x4a   : > { %1120 = vmatmul.msk.bf16.gmra.mxu2 %vm428_vm2, %v1170_v22  ;;  %1124 = vmatmul.msk.bf16.gmra.mxu3 %vm428_vm2, %v1174_v23 }
  0x96   : > { %v493_v26 = vpop.f32.mrf.mxu0  ;;  %v513_v27 = vpop.f32.mrf.mxu1 }
  0x97   : > { %v577_v28 = vmul.f32 %v1396_v24, %v493_v26  ;;  %v585_v29 = vmul.f32 %v1396_v24, %v513_v27 }
  0x99   : > { %v613_v30 = vadd.f32 %v1401_v25, %v577_v28  ;;  %v621_v31 = vadd.f32 %v1401_v25, %v585_v29 }
  0x9b   : > { %v677_v32 = vmin.f32 %v613_v30, 0.0  ;;  %v685_v33 = vmin.f32 %v621_v31, 0.0  ;;  %vm645_vm4 = vcmp.gt.f32.partialorder %v613_v30, 0.0  ;;  %vm653_vm5 = vcmp.gt.f32.partialorder %v621_v31, 0.0 }
  0x9d   : > { %v709_v34 = vmul.f32 1.442695, %v677_v32  ;;  %v725_v35 = vmul.f32 1.442695, %v685_v33  ;;  %v533_v36 = vpop.f32.mrf.mxu2  ;;  %v553_v37 = vpop.f32.mrf.mxu3 }
  0x9e   : > { %v593_v38 = vmul.f32 %v1396_v24, %v533_v36  ;;  %v601_v39 = vmul.f32 %v1396_v24, %v553_v37  ;;  %v495_v40 = vpop.f32.mrf.mxu0  ;;  %v515_v41 = vpop.f32.mrf.mxu1 }
  0x9f   : > { %1210 = vpow2.f32 %v709_v34  ;;  %v578_v42 = vmul.f32 %v1396_v24, %v495_v40  ;;  %v586_v43 = vmul.f32 %v1396_v24, %v515_v41 }
  0xa0   : > { %1212 = vpow2.f32 %v725_v35  ;;  %v1412_v44 = vadd.f32 %v1401_v25, %v593_v38  ;;  %v1415_v45 = vadd.f32 %v1401_v25, %v601_v39 }
  0xa1   : > { %v1418_v46 = vadd.f32 %v1401_v25, %v578_v42  ;;  %v1421_v47 = vadd.f32 %v1401_v25, %v586_v43 }
  0xa2   : > { %v693_v48 = vmin.f32 %v1412_v44, 0.0  ;;  %v701_v49 = vmin.f32 %v1415_v45, 0.0  ;;  %vm661_vm6 = vcmp.gt.f32.partialorder %v1412_v44, 0.0  ;;  %vm669_vm7 = vcmp.gt.f32.partialorder %v1415_v45, 0.0 }
  0xa3   : > { %v678_v50 = vmin.f32 %v1418_v46, 0.0  ;;  %v686_v51 = vmin.f32 %v1421_v47, 0.0  ;;  %vm646_vm8 = vcmp.gt.f32.partialorder %v1418_v46, 0.0  ;;  %vm654_vm9 = vcmp.gt.f32.partialorder %v1421_v47, 0.0 }
  0xa4   : > { %v741_v52 = vmul.f32 1.442695, %v693_v48  ;;  %v757_v53 = vmul.f32 1.442695, %v701_v49 }
  0xa5   : > { %v1211_v54 = vpop.eup %1210  ;;  %v711_v55 = vmul.f32 1.442695, %v678_v50  ;;  %v727_v56 = vmul.f32 1.442695, %v686_v51  ;;  %v535_v57 = vpop.f32.mrf.mxu2 }
  0xa6   : > { %v555_v58 = vpop.f32.mrf.mxu3  ;;  %v1213_v59 = vpop.eup %1212  ;;  %v1125_v60 = vadd.f32 -1.0, %v1211_v54  ;;  %1214 = vpow2.f32 %v741_v52  ;;  %v594_v61 = vmul.f32 %v1396_v24, %v535_v57 }
  0xa7   : > { %v602_v62 = vmul.f32 %v1396_v24, %v555_v58  ;;  %v498_v63 = vpop.f32.mrf.mxu0  ;;  %v518_v0 = vpop.f32.mrf.mxu1  ;;  %v1133_v1 = vadd.f32 -1.0, %v1213_v59  ;;  %1216 = vpow2.f32 %v757_v53 }
  0xa8   : > { %v579_v2 = vmul.f32 %v1396_v24, %v498_v63  ;;  %v587_v3 = vmul.f32 %v1396_v24, %v518_v0  ;;  %v805_v4 = vsel %vm645_vm4, %v613_v30, %v1125_v60  ;;  %1218 = vpow2.f32 %v711_v55 }
  0xa9   : > { %v1440_v5 = vadd.f32 %v1401_v25, %v594_v61  ;;  %v1443_v6 = vadd.f32 %v1401_v25, %v602_v62  ;;  %v837_v7 = vpack.c.bf16 %v805_v4, %v805_v4  ;;  %v813_v8 = vsel %vm653_vm5, %v621_v31, %v1133_v1 }
  0xaa   : > { %1220 = vpow2.f32 %v727_v56  ;;  %v1447_v9 = vadd.f32 %v1401_v25, %v579_v2  ;;  %v845_v10 = vpack.c.bf16 %v813_v8, %v813_v8  ;;  %v1456_v14 = vadd.f32 %v1401_v25, %v587_v3 }
  0xab   : > { %v694_v11 = vmin.f32 %v1440_v5, 0.0  ;;  %870 = vst.msk [vmem:[%s1436_s10] sm:$0xf] %vm869_vm3, %v837_v7  ;;  %v702_v12 = vmin.f32 %v1443_v6, 0.0  ;;  %vm662_vm10 = vcmp.gt.f32.partialorder %v1440_v5, 0.0  ;;  %vm670_vm11 = vcmp.gt.f32.partialorder %v1443_v6, 0.0 }
  0xac   : > { %v679_v13 = vmin.f32 %v1447_v9, 0.0  ;;  %v1215_v15 = vpop.eup %1214  ;;  %878 = vst.msk [vmem:[%s1436_s10 + $0x20] sm:$0xf] %vm869_vm3, %v845_v10  ;;  %v687_v27 = vmin.f32 %v1456_v14, 0.0  ;;  %vm647_vm12 = vcmp.gt.f32.partialorder %v1447_v9, 0.0  ;;  %vm655_vm13 = vcmp.gt.f32.partialorder %v1456_v14, 0.0 }
  0xad   : > { %v743_v16 = vmul.f32 1.442695, %v694_v11  ;;  %v1217_v17 = vpop.eup %1216  ;;  %v1141_v18 = vadd.f32 -1.0, %v1215_v15  ;;  %v759_v19 = vmul.f32 1.442695, %v702_v12  ;;  %v538_v21 = vpop.f32.mrf.mxu2 }
  0xae   : > { %v713_v20 = vmul.f32 1.442695, %v679_v13  ;;  %v558_v22 = vpop.f32.mrf.mxu3  ;;  %v1219_v23 = vpop.eup %1218  ;;  %v1149_v26 = vadd.f32 -1.0, %v1217_v17  ;;  %v595_v28 = vmul.f32 %v1396_v24, %v538_v21  ;;  %v729_v40 = vmul.f32 1.442695, %v687_v27 }
  0xaf   : > { %1222 = vpow2.f32 %v743_v16  ;;  %v500_v29 = vpop.f32.mrf.mxu0  ;;  %v520_v30 = vpop.f32.mrf.mxu1  ;;  %v821_v32 = vsel %vm661_vm6, %v1412_v44, %v1141_v18  ;;  %v1126_v33 = vadd.f32 -1.0, %v1219_v23  ;;  %v603_v34 = vmul.f32 %v1396_v24, %v558_v22 }
  0xb0   : > { %v1221_v31 = vpop.eup %1220  ;;  %1224 = vpow2.f32 %v759_v19  ;;  %v853_v35 = vpack.c.bf16 %v821_v32, %v821_v32  ;;  %v829_v36 = vsel %vm669_vm7, %v1415_v45, %v1149_v26  ;;  %v1476_v41 = vadd.f32 %v1401_v25, %v595_v28 }
  0xb1   : > { %v1134_v37 = vadd.f32 -1.0, %v1221_v31  ;;  %1226 = vpow2.f32 %v713_v20  ;;  %v861_v38 = vpack.c.bf16 %v829_v36, %v829_v36  ;;  %v806_v39 = vsel %vm646_vm8, %v1418_v46, %v1126_v33 }
  0xb2   : > { %886 = vst.msk [vmem:[%s1436_s10 + $0x40] sm:$0xf] %vm869_vm3, %v853_v35  ;;  %v838_v42 = vpack.c.bf16 %v806_v39, %v806_v39  ;;  %v1484_v44 = vadd.f32 %v1401_v25, %v603_v34  ;;  %v580_v45 = vmul.f32 %v1396_v24, %v500_v29  ;;  %1228 = vpow2.f32 %v729_v40 }
  0xb3   : > { %v814_v43 = vsel %vm654_vm9, %v1421_v47, %v1134_v37  ;;  %894 = vst.msk [vmem:[%s1436_s10 + $0x60] sm:$0xf] %vm869_vm3, %v861_v38  ;;  %v695_v48 = vmin.f32 %v1476_v41, 0.0  ;;  %v588_v51 = vmul.f32 %v1396_v24, %v520_v30  ;;  %vm663_vm14 = vcmp.gt.f32.partialorder %v1476_v41, 0.0 }
  0xb4   : > { %v846_v46 = vpack.c.bf16 %v814_v43, %v814_v43  ;;  %871 = vst.msk [vmem:[%s1436_s10 + $0x4] sm:$0xf] %vm869_vm3, %v838_v42  ;;  %v703_v50 = vmin.f32 %v1484_v44, 0.0  ;;  %v1495_v47 = vadd.f32 %v1401_v25, %v580_v45  ;;  %vm671_vm15 = vcmp.gt.f32.partialorder %v1484_v44, 0.0 }
  0xb5   : > { %v1223_v49 = vpop.eup %1222  ;;  %v745_v54 = vmul.f32 1.442695, %v695_v48  ;;  %v540_v55 = vpop.f32.mrf.mxu2  ;;  %v1507_v0 = vadd.f32 %v1401_v25, %v588_v51 }
  0xb6   : > { %v1225_v52 = vpop.eup %1224  ;;  %879 = vst.msk [vmem:[%s1436_s10 + $0x24] sm:$0xf] %vm869_vm3, %v846_v46  ;;  %v1142_v53 = vadd.f32 -1.0, %v1223_v49  ;;  %v560_v56 = vpop.f32.mrf.mxu3  ;;  %v761_v59 = vmul.f32 1.442695, %v703_v50  ;;  %v680_v60 = vmin.f32 %v1495_v47, 0.0  ;;  %v596_v13 = vmul.f32 %v1396_v24, %v540_v55 }
  0xb7   : > { %v1227_v57 = vpop.eup %1226  ;;  %v1150_v58 = vadd.f32 -1.0, %v1225_v52  ;;  %v503_v61 = vpop.f32.mrf.mxu0  ;;  %1230 = vpow2.f32 %v745_v54  ;;  %v604_v15 = vmul.f32 %v1396_v24, %v560_v56  ;;  %vm648_vm0 = vcmp.gt.f32.partialorder %v1495_v47, 0.0 }
  0xb8   : > { %v822_v62 = vsel %vm662_vm10, %v1440_v5, %v1142_v53  ;;  %v1127_v63 = vadd.f32 -1.0, %v1227_v57  ;;  %1232 = vpow2.f32 %v761_v59  ;;  %v715_v3 = vmul.f32 1.442695, %v680_v60  ;;  %v523_v4 = vpop.f32.mrf.mxu1  ;;  %v1229_v7 = vpop.eup %1228 }
  0xb9   : > { %v854_v1 = vpack.c.bf16 %v822_v62, %v822_v62  ;;  %v830_v2 = vsel %vm670_vm11, %v1443_v6, %v1150_v58  ;;  %v688_v5 = vmin.f32 %v1507_v0, 0.0  ;;  %v1135_v12 = vadd.f32 -1.0, %v1229_v7 }
  0xba   : > { %v862_v8 = vpack.c.bf16 %v830_v2, %v830_v2  ;;  %v807_v10 = vsel %vm647_vm12, %v1447_v9, %v1127_v63  ;;  %1234 = vpow2.f32 %v715_v3  ;;  %v581_v16 = vmul.f32 %v1396_v24, %v503_v61 }
  0xbb   : > { %887 = vst.msk [vmem:[%s1436_s10 + $0x44] sm:$0xf] %vm869_vm3, %v854_v1  ;;  %v839_v11 = vpack.c.bf16 %v807_v10, %v807_v10  ;;  %v731_v6 = vmul.f32 1.442695, %v688_v5  ;;  %v589_v9 = vmul.f32 %v1396_v24, %v523_v4  ;;  %v815_v17 = vsel %vm655_vm13, %v1456_v14, %v1135_v12 }
  0xbc   : > { %895 = vst.msk [vmem:[%s1436_s10 + $0x64] sm:$0xf] %vm869_vm3, %v862_v8  ;;  %v1525_v18 = vadd.f32 %v1401_v25, %v596_v13  ;;  %v847_v20 = vpack.c.bf16 %v815_v17, %v815_v17  ;;  %v1528_v21 = vadd.f32 %v1401_v25, %v604_v15  ;;  %v1531_v22 = vadd.f32 %v1401_v25, %v581_v16 }
  0xbd   : > { %872 = vst.msk [vmem:[%s1436_s10 + $0x8] sm:$0xf] %vm869_vm3, %v839_v11  ;;  %v1231_v19 = vpop.eup %1230  ;;  %1236 = vpow2.f32 %v731_v6  ;;  %v543_v23 = vpop.f32.mrf.mxu2  ;;  %v1536_v29 = vadd.f32 %v1401_v25, %v589_v9  ;;  %vm656_vm1 = vcmp.gt.f32.partialorder %v1507_v0, 0.0 }
  0xbe   : > { %v563_v26 = vpop.f32.mrf.mxu3  ;;  %v1233_v27 = vpop.eup %1232  ;;  %v1143_v28 = vadd.f32 -1.0, %v1231_v19  ;;  %v696_v14 = vmin.f32 %v1525_v18, 0.0  ;;  %880 = vst.msk [vmem:[%s1436_s10 + $0x28] sm:$0xf] %vm869_vm3, %v847_v20  ;;  %v704_v32 = vmin.f32 %v1528_v21, 0.0  ;;  %v681_v36 = vmin.f32 %v1531_v22, 0.0 }
  0xbf   : > { %v505_v30 = vpop.f32.mrf.mxu0  ;;  %v1151_v31 = vadd.f32 -1.0, %v1233_v27  ;;  %v689_v45 = vmin.f32 %v1536_v29, 0.0  ;;  %v597_v49 = vmul.f32 %v1396_v24, %v543_v23  ;;  %vm664_vm2 = vcmp.gt.f32.partialorder %v1525_v18, 0.0 }
  0xc0   : > { %v1235_v33 = vpop.eup %1234  ;;  %v823_v34 = vsel %vm663_vm14, %v1476_v41, %v1143_v28  ;;  %v747_v35 = vmul.f32 1.442695, %v696_v14  ;;  %v763_v40 = vmul.f32 1.442695, %v704_v32  ;;  %v717_v43 = vmul.f32 1.442695, %v681_v36  ;;  %v525_v46 = vpop.f32.mrf.mxu1 }
  0xc1   : > { %v855_v37 = vpack.c.bf16 %v823_v34, %v823_v34  ;;  %v831_v38 = vsel %vm671_vm15, %v1484_v44, %v1151_v31  ;;  %v1128_v39 = vadd.f32 -1.0, %v1235_v33  ;;  %v605_v44 = vmul.f32 %v1396_v24, %v563_v26 }
  0xc2   : > { %v863_v42 = vpack.c.bf16 %v831_v38, %v831_v38  ;;  %1238 = vpow2.f32 %v747_v35  ;;  %v733_v52 = vmul.f32 1.442695, %v689_v45  ;;  %v1558_v53 = vadd.f32 %v1401_v25, %v597_v49 }
  0xc3   : > { %v1237_v48 = vpop.eup %1236  ;;  %888 = vst.msk [vmem:[%s1436_s10 + $0x48] sm:$0xf] %vm869_vm3, %v855_v37  ;;  %v808_v41 = vsel %vm648_vm0, %v1495_v47, %v1128_v39  ;;  %1240 = vpow2.f32 %v763_v40  ;;  %v1561_v54 = vadd.f32 %v1401_v25, %v605_v44  ;;  %v582_v55 = vmul.f32 %v1396_v24, %v505_v30 }
  0xc4   : > { %896 = vst.msk [vmem:[%s1436_s10 + $0x68] sm:$0xf] %vm869_vm3, %v863_v42  ;;  %v840_v50 = vpack.c.bf16 %v808_v41, %v808_v41  ;;  %v1136_v51 = vadd.f32 -1.0, %v1237_v48  ;;  %1242 = vpow2.f32 %v717_v43  ;;  %v590_v47 = vmul.f32 %v1396_v24, %v525_v46 }
  0xc5   : > { %v545_v56 = vpop.f32.mrf.mxu2  ;;  %1244 = vpow2.f32 %v733_v52  ;;  %v697_v62 = vmin.f32 %v1558_v53, 0.0  ;;  %vm672_vm4 = vcmp.gt.f32.partialorder %v1528_v21, 0.0  ;;  %vm649_vm5 = vcmp.gt.f32.partialorder %v1531_v22, 0.0 }
  0xc6   : > { %v565_v57 = vpop.f32.mrf.mxu3  ;;  %873 = vst.msk [vmem:[%s1436_s10 + $0xc] sm:$0xf] %vm869_vm3, %v840_v50  ;;  %v816_v58 = vsel %vm656_vm1, %v1507_v0, %v1136_v51  ;;  %v598_v59 = vmul.f32 %v1396_v24, %v545_v56  ;;  %v705_v2 = vmin.f32 %v1561_v54, 0.0  ;;  %v1578_v0 = vadd.f32 %v1401_v25, %v582_v55 }
  0xc7   : > { %v606_v60 = vmul.f32 %v1396_v24, %v565_v57  ;;  %v848_v61 = vpack.c.bf16 %v816_v58, %v816_v58  ;;  %v508_v63 = vpop.f32.mrf.mxu0  ;;  %v749_v7 = vmul.f32 1.442695, %v697_v62  ;;  %v1583_v8 = vadd.f32 %v1401_v25, %v590_v47 }
  0xc8   : > { %v1239_v1 = vpop.eup %1238  ;;  %v1586_v10 = vadd.f32 %v1401_v25, %v598_v59  ;;  %v765_v12 = vmul.f32 1.442695, %v705_v2  ;;  %v682_v13 = vmin.f32 %v1578_v0, 0.0  ;;  %v583_v9 = vmul.f32 %v1396_v24, %v508_v63  ;;  %v528_v26 = vpop.f32.mrf.mxu1 }
  0xc9   : > { %v1241_v3 = vpop.eup %1240  ;;  %881 = vst.msk [vmem:[%s1436_s10 + $0x2c] sm:$0xf] %vm869_vm3, %v848_v61  ;;  %v1144_v4 = vadd.f32 -1.0, %v1239_v1  ;;  %v1590_v6 = vadd.f32 %v1401_v25, %v606_v60  ;;  %1246 = vpow2.f32 %v749_v7  ;;  %v690_v14 = vmin.f32 %v1583_v8, 0.0 }
  0xca   : > { %v1243_v5 = vpop.eup %1242  ;;  %v1152_v11 = vadd.f32 -1.0, %v1241_v3  ;;  %1248 = vpow2.f32 %v765_v12  ;;  %v719_v23 = vmul.f32 1.442695, %v682_v13  ;;  %vm657_vm6 = vcmp.gt.f32.partialorder %v1536_v29, 0.0 }
  0xcb   : > { %v824_v15 = vsel %vm664_vm2, %v1525_v18, %v1144_v4  ;;  %v1129_v16 = vadd.f32 -1.0, %v1243_v5  ;;  %v1245_v17 = vpop.eup %1244  ;;  %vm665_vm7 = vcmp.gt.f32.partialorder %v1558_v53, 0.0  ;;  %v706_v34 = vmin.f32 %v1590_v6, 0.0 }
  0xcc   : > { %v856_v19 = vpack.c.bf16 %v824_v15, %v824_v15  ;;  %v832_v20 = vsel %vm672_vm4, %v1528_v21, %v1152_v11  ;;  %v1137_v28 = vadd.f32 -1.0, %v1245_v17  ;;  %1250 = vpow2.f32 %v719_v23 }
  0xcd   : > { %v864_v27 = vpack.c.bf16 %v832_v20, %v832_v20  ;;  %v809_v18 = vsel %vm649_vm5, %v1531_v22, %v1129_v16  ;;  %v698_v21 = vmin.f32 %v1586_v10, 0.0  ;;  %v548_v31 = vpop.f32.mrf.mxu2  ;;  %v735_v22 = vmul.f32 1.442695, %v690_v14 }
  0xce   : > { %889 = vst.msk [vmem:[%s1436_s10 + $0x4c] sm:$0xf] %vm869_vm3, %v856_v19  ;;  %v841_v30 = vpack.c.bf16 %v809_v18, %v809_v18  ;;  %v568_v32 = vpop.f32.mrf.mxu3  ;;  %v817_v33 = vsel %vm657_vm6, %v1536_v29, %v1137_v28  ;;  %v1615_v37 = vadd.f32 %v1401_v25, %v583_v9  ;;  %v591_v38 = vmul.f32 %v1396_v24, %v528_v26 }
  0xcf   : > { %897 = vst.msk [vmem:[%s1436_s10 + $0x6c] sm:$0xf] %vm869_vm3, %v864_v27  ;;  %v849_v35 = vpack.c.bf16 %v817_v33, %v817_v33  ;;  %v751_v36 = vmul.f32 1.442695, %v698_v21  ;;  %v1247_v39 = vpop.eup %1246  ;;  %1252 = vpow2.f32 %v735_v22  ;;  %v767_v40 = vmul.f32 1.442695, %v706_v34  ;;  %v510_v43 = vpop.f32.mrf.mxu0 }
  0xd0   : > { %874 = vst.msk [vmem:[%s1436_s10 + $0x10] sm:$0xf] %vm869_vm3, %v841_v30  ;;  %v599_v29 = vmul.f32 %v1396_v24, %v548_v31  ;;  %v607_v42 = vmul.f32 %v1396_v24, %v568_v32  ;;  %v1249_v45 = vpop.eup %1248  ;;  %v1145_v46 = vadd.f32 -1.0, %v1247_v39  ;;  %vm673_vm8 = vcmp.gt.f32.partialorder %v1561_v54, 0.0 }
  0xd1   : > { %882 = vst.msk [vmem:[%s1436_s10 + $0x30] sm:$0xf] %vm869_vm3, %v849_v35  ;;  %1254 = vpow2.f32 %v751_v36  ;;  %v683_v48 = vmin.f32 %v1615_v37, 0.0  ;;  %v1153_v41 = vadd.f32 -1.0, %v1249_v45  ;;  %v1625_v49 = vadd.f32 %v1401_v25, %v591_v38 }
  0xd2   : > { %1256 = vpow2.f32 %v767_v40  ;;  %v1628_v44 = vadd.f32 %v1401_v25, %v599_v29  ;;  %v1251_v50 = vpop.eup %1250  ;;  %v825_v51 = vsel %vm665_vm7, %v1558_v53, %v1145_v46  ;;  %v1634_v55 = vadd.f32 %v1401_v25, %v607_v42  ;;  %v530_v53 = vpop.f32.mrf.mxu1 }
  0xd3   : > { %v721_v52 = vmul.f32 1.442695, %v683_v48  ;;  %v584_v47 = vmul.f32 %v1396_v24, %v510_v43  ;;  %v857_v56 = vpack.c.bf16 %v825_v51, %v825_v51  ;;  %v833_v57 = vsel %vm673_vm8, %v1561_v54, %v1153_v41 }
  0xd4   : > { %vm650_vm9 = vcmp.gt.f32.partialorder %v1578_v0, 0.0  ;;  %v1130_v58 = vadd.f32 -1.0, %v1251_v50  ;;  %v865_v59 = vpack.c.bf16 %v833_v57, %v833_v57  ;;  %vm658_vm10 = vcmp.gt.f32.partialorder %v1583_v8, 0.0 }
  0xd5   : > { %1258 = vpow2.f32 %v721_v52  ;;  %v691_v60 = vmin.f32 %v1625_v49, 0.0  ;;  %v1253_v61 = vpop.eup %1252  ;;  %890 = vst.msk [vmem:[%s1436_s10 + $0x50] sm:$0xf] %vm869_vm3, %v857_v56  ;;  %vm666_vm11 = vcmp.gt.f32.partialorder %v1586_v10, 0.0  ;;  %v699_v54 = vmin.f32 %v1628_v44, 0.0  ;;  %v550_v9 = vpop.f32.mrf.mxu2 }
  0xd6   : > { %v810_v62 = vsel %vm650_vm9, %v1578_v0, %v1130_v58  ;;  %v707_v63 = vmin.f32 %v1634_v55, 0.0  ;;  %898 = vst.msk [vmem:[%s1436_s10 + $0x70] sm:$0xf] %vm869_vm3, %v865_v59  ;;  %v1138_v3 = vadd.f32 -1.0, %v1253_v61  ;;  %v1650_v7 = vadd.f32 %v1401_v25, %v584_v47  ;;  %v570_v23 = vpop.f32.mrf.mxu3 }
  0xd7   : > { %v1255_v1 = vpop.eup %1254  ;;  %v842_v2 = vpack.c.bf16 %v810_v62, %v810_v62  ;;  %v737_v4 = vmul.f32 1.442695, %v691_v60  ;;  %v753_v12 = vmul.f32 1.442695, %v699_v54  ;;  %v592_v0 = vmul.f32 %v1396_v24, %v530_v53 }
  0xd8   : > { %v1257_v5 = vpop.eup %1256  ;;  %v1146_v11 = vadd.f32 -1.0, %v1255_v1  ;;  %v769_v13 = vmul.f32 1.442695, %v707_v63  ;;  %v818_v15 = vsel %vm658_vm10, %v1583_v8, %v1138_v3  ;;  %vm674_vm12 = vcmp.gt.f32.partialorder %v1590_v6, 0.0 }
  0xd9   : > { %875 = vst.msk [vmem:[%s1436_s10 + $0x14] sm:$0xf] %vm869_vm3, %v842_v2  ;;  %v1154_v16 = vadd.f32 -1.0, %v1257_v5  ;;  %1260 = vpow2.f32 %v737_v4  ;;  %v850_v17 = vpack.c.bf16 %v818_v15, %v818_v15  ;;  %v684_v20 = vmin.f32 %v1650_v7, 0.0 }
  0xda   : > { %v826_v19 = vsel %vm666_vm11, %v1586_v10, %v1146_v11  ;;  %1262 = vpow2.f32 %v753_v12  ;;  %v628_v18 = vadd.f32 %v1401_v25, %v592_v0  ;;  %v600_v21 = vmul.f32 %v1396_v24, %v550_v9 }
  0xdb   : > { %v1259_v26 = vpop.eup %1258  ;;  %v858_v27 = vpack.c.bf16 %v826_v19, %v826_v19  ;;  %v834_v8 = vsel %vm674_vm12, %v1590_v6, %v1154_v16  ;;  %1264 = vpow2.f32 %v769_v13  ;;  %883 = vst.msk [vmem:[%s1436_s10 + $0x34] sm:$0xf] %vm869_vm3, %v850_v17  ;;  %v723_v30 = vmul.f32 1.442695, %v684_v20 }
  0xdc   : > { %v866_v28 = vpack.c.bf16 %v834_v8, %v834_v8  ;;  %v1131_v14 = vadd.f32 -1.0, %v1259_v26  ;;  %vm651_vm13 = vcmp.gt.f32.partialorder %v1615_v37, 0.0  ;;  %v692_v10 = vmin.f32 %v628_v18, 0.0 }
  0xdd   : > { %891 = vst.msk [vmem:[%s1436_s10 + $0x54] sm:$0xf] %vm869_vm3, %v858_v27  ;;  %v608_v31 = vmul.f32 %v1396_v24, %v570_v23  ;;  %1266 = vpow2.f32 %v723_v30  ;;  %v636_v32 = vadd.f32 %v1401_v25, %v600_v21  ;;  %vm659_vm14 = vcmp.gt.f32.partialorder %v1625_v49, 0.0 }
  0xde   : > { %899 = vst.msk [vmem:[%s1436_s10 + $0x74] sm:$0xf] %vm869_vm3, %v866_v28  ;;  %v811_v6 = vsel %vm651_vm13, %v1615_v37, %v1131_v14  ;;  %v739_v34 = vmul.f32 1.442695, %v692_v10  ;;  %vm667_vm15 = vcmp.gt.f32.partialorder %v1628_v44, 0.0  ;;  %vm675_vm0 = vcmp.gt.f32.partialorder %v1634_v55, 0.0 }
  0xdf   : > { %v1261_v33 = vpop.eup %1260  ;;  %v843_v22 = vpack.c.bf16 %v811_v6, %v811_v6  ;;  %v644_v35 = vadd.f32 %v1401_v25, %v608_v31  ;;  %v700_v39 = vmin.f32 %v636_v32, 0.0  ;;  %vm652_vm1 = vcmp.gt.f32.partialorder %v1650_v7, 0.0 }
  0xe0   : > { %v1263_v36 = vpop.eup %1262  ;;  %v1139_v38 = vadd.f32 -1.0, %v1261_v33  ;;  %1268 = vpow2.f32 %v739_v34  ;;  %vm660_vm2 = vcmp.gt.f32.partialorder %v628_v18, 0.0  ;;  %vm668_vm4 = vcmp.gt.f32.partialorder %v636_v32, 0.0 }
  0xe1   : > { %v1265_v40 = vpop.eup %1264  ;;  %876 = vst.msk [vmem:[%s1436_s10 + $0x18] sm:$0xf] %vm869_vm3, %v843_v22  ;;  %v1147_v24 = vadd.f32 -1.0, %v1263_v36  ;;  %v708_v37 = vmin.f32 %v644_v35, 0.0  ;;  %v755_v43 = vmul.f32 1.442695, %v700_v39 }
  0xe2   : > { %v819_v29 = vsel %vm659_vm14, %v1625_v49, %v1139_v38  ;;  %v1155_v42 = vadd.f32 -1.0, %v1265_v40  ;;  %vm676_vm5 = vcmp.gt.f32.partialorder %v644_v35, 0.0 }
  0xe3   : > { %v851_v25 = vpack.c.bf16 %v819_v29, %v819_v29  ;;  %v827_v45 = vsel %vm667_vm15, %v1628_v44, %v1147_v24  ;;  %v771_v46 = vmul.f32 1.442695, %v708_v37  ;;  %v1267_v48 = vpop.eup %1266  ;;  %1270 = vpow2.f32 %v755_v43 }
  0xe4   : > { %v859_v41 = vpack.c.bf16 %v827_v45, %v827_v45  ;;  %v835_v50 = vsel %vm675_vm0, %v1634_v55, %v1155_v42  ;;  %v1132_v51 = vadd.f32 -1.0, %v1267_v48 }
  0xe5   : > { %884 = vst.msk [vmem:[%s1436_s10 + $0x38] sm:$0xf] %vm869_vm3, %v851_v25  ;;  %v867_v49 = vpack.c.bf16 %v835_v50, %v835_v50  ;;  %1272 = vpow2.f32 %v771_v46 }
  0xe6   : > { %892 = vst.msk [vmem:[%s1436_s10 + $0x58] sm:$0xf] %vm869_vm3, %v859_v41  ;;  %v1269_v44 = vpop.eup %1268  ;;  %v812_v52 = vsel %vm652_vm1, %v1650_v7, %v1132_v51 }
  0xe7   : > { %900 = vst.msk [vmem:[%s1436_s10 + $0x78] sm:$0xf] %vm869_vm3, %v867_v49  ;;  %v844_v47 = vpack.c.bf16 %v812_v52, %v812_v52  ;;  %v1140_v56 = vadd.f32 -1.0, %v1269_v44 }
  0xe9   : > { %v1271_v55 = vpop.eup %1270  ;;  %877 = vst.msk [vmem:[%s1436_s10 + $0x1c] sm:$0xf] %vm869_vm3, %v844_v47  ;;  %v820_v57 = vsel %vm660_vm2, %v628_v18, %v1140_v56 }
  0xea   : > { %v852_v59 = vpack.c.bf16 %v820_v57, %v820_v57  ;;  %v1148_v60 = vadd.f32 -1.0, %v1271_v55 }
  0xeb   : > { %v1273_v58 = vpop.eup %1272 }
  0xec   : > { %v1156_v53 = vadd.f32 -1.0, %v1273_v58  ;;  %885 = vst.msk [vmem:[%s1436_s10 + $0x3c] sm:$0xf] %vm869_vm3, %v852_v59  ;;  %v828_v61 = vsel %vm668_vm4, %v636_v32, %v1148_v60 }
  0xed   : > { %v860_v62 = vpack.c.bf16 %v828_v61, %v828_v61 }
  0xee   : > { %v836_v54 = vsel %vm676_vm5, %v644_v35, %v1156_v53 }
  0xef   : > { %v868_v63 = vpack.c.bf16 %v836_v54, %v836_v54  ;;  %893 = vst.msk [vmem:[%s1436_s10 + $0x5c] sm:$0xf] %vm869_vm3, %v860_v62 }
  0xf1   : > { %901 = vst.msk [vmem:[%s1436_s10 + $0x7c] sm:$0xf] %vm869_vm3, %v868_v63 }
  0xf2 PF: > { %s14_s17 = sadd.s32 1, %s1296_s17   ;;  %s1715_s15 = smov %s1292_s16 }
  0xf3   : > { %p11_p5 = scmp.ge.s32.totalorder %s14_s17, 34   ;;  %s1716_s16 = smov %s1718_s18 }
  0xf5   :  { %13 = sbr.rel (!%p11_p5) target bundleno = 2 (0x2), region = 75 }

// kernel: forward.27
= control target key start
LH: loop header
LB: loop body
LE: loop exit
PB: predicated region body
PF: predicated region fallthrough
CT: control target
= control target key end

     0   :  { %v66_v2 = vmov 128.0   ;;  %s99_s0 = inlined_call_operand.vmem [shape: bf16[8,128], index: 0, kind: input, shape index: {}]   ;;  %s100_s1 = inlined_call_operand.vmem [shape: f32[1,128], index: 1, kind: input, shape index: {}]   ;;  %s101_s2 = inlined_call_operand.vmem [shape: f32[1,128], index: 2, kind: input, shape index: {}]   ;;  %s102_s3 = inlined_call_operand.vmem [shape: bf16[8,128], index: 3, kind: output, shape index: {}]  }
   0x1   :  { %v14_v0 = vld [vmem:[%s99_s0] sm:$0xf]  ;;  %62 = vrcp.f32 %v66_v2 }
   0x2   :  { %v15_v1 = vunpack.c.l.bf16 %v14_v0  ;;  %v60_v22 = vld [vmem:[%s100_s1] ss:$0 sm:$0xff] }
   0x3   :  { %v61_v24 = vld [vmem:[%s101_s2] ss:$0 sm:$0xff] }
   0x4   :  { %16 = vadd.xlane.f32.xlu0 %v15_v1 }
   0x7   :  { %v63_v3 = vpop.eup %62 }
   0x8   :  { %v19_v4 = vmul.f32 128.0, %v63_v3  ;;  %vm23_vm0 = vweird.f32 %v63_v3 }
   0xa   :  { %v20_v5 = vsub.f32 1.0, %v19_v4 }
   0xc   :  { %v21_v6 = vmul.f32 %v63_v3, %v20_v5 }
   0xe   :  { %v22_v7 = vadd.f32 %v63_v3, %v21_v6 }
  0x10   :  { %v24_v8 = vsel %vm23_vm0, %v63_v3, %v22_v7 }
  0x77   :  { %v17_v9 = vpop.xlane.xlu0 %16 }
  0x78   :  { %v25_v10 = vmul.f32 %v24_v8, %v17_v9 }
  0x7a   :  { %v26_v11 = vsub.f32 %v15_v1, %v25_v10 }
  0x7c   :  { %v27_v12 = vmul.f32 %v26_v11, %v26_v11 }
  0x7e   :  { %28 = vadd.xlane.f32.xlu0 %v27_v12 }
  0xf1   :  { %v29_v13 = vpop.xlane.xlu0 %28 }
  0xf2   :  { %v30_v14 = vmul.f32 %v29_v13, %v24_v8 }
  0xf4   :  { %v31_v15 = vadd.f32 1e-05, %v30_v14 }
  0xf6   :  { %64 = vrsqrt.f32 %v31_v15  ;;  %vm38_vm2 = vweird.f32 %v31_v15 }
  0xfc   :  { %v65_v16 = vpop.eup %64 }
  0xfd   :  { %v33_v17 = vmul.f32 %v65_v16, %v31_v15  ;;  %vm39_vm1 = vweird.f32 %v65_v16 }
  0xfe   :  { %vm40_vm3 = vmor %vm38_vm2, %vm39_vm1 }
  0xff   :  { %v34_v18 = vmul.f32 %v65_v16, %v33_v17 }
 0x101   :  { %v35_v19 = vmul.f32 0.5, %v34_v18 }
 0x103   :  { %v36_v20 = vsub.f32 1.5, %v35_v19 }
 0x105   :  { %v37_v21 = vmul.f32 %v65_v16, %v36_v20 }
 0x107   :  { %v41_v23 = vsel %vm40_vm3, %v65_v16, %v37_v21 }
 0x108   :  { %v42_v25 = vmul.f32 %v41_v23, %v26_v11 }
 0x10a   :  { %v47_v26 = vmul.f32 %v60_v22, %v42_v25 }
 0x10c   :  { %v52_v27 = vadd.f32 %v61_v24, %v47_v26 }
 0x10e   :  { %v53_v28 = vpack.c.bf16 %v52_v27, %v52_v27 }
 0x110   :  { %54 = vst [vmem:[%s102_s3] sm:$0xf] %v53_v28 }

// kernel: forward.26
= control target key start
LH: loop header
LB: loop body
LE: loop exit
PB: predicated region body
PF: predicated region fallthrough
CT: control target
= control target key end

     0   :  { %v3202_v59 = vmov 3072.0   ;;  %s4281_s0 = inlined_call_operand.vmem [shape: bf16[8,3072], index: 0, kind: input, shape index: {}]   ;;  %s4282_s1 = inlined_call_operand.vmem [shape: bf16[3072,128], index: 1, kind: input, shape index: {}]   ;;  %s4283_s3 = inlined_call_operand.vmem [shape: f32[1,3072], index: 3, kind: input, shape index: {}]   ;;  %s4284_s4 = inlined_call_operand.vmem [shape: f32[1,3072], index: 4, kind: input, shape index: {}]   ;;  %s4285_s2 = inlined_call_operand.vmem [shape: f32[1,128], index: 2, kind: input, shape index: {}]   ;;  %s4286_s5 = inlined_call_operand.vmem [shape: bf16[8,128], index: 5, kind: output, shape index: {}]  }
   0x1   :  { %v3236_v0 = vld [vmem:[%s4281_s0] sm:$0xff]  ;;  %v3241_v1 = vld [vmem:[%s4281_s0 + $0x8] sm:$0xff]  ;;  %v3249_v5 = vld [vmem:[%s4281_s0 + $0x10] sm:$0xff]  ;;  %3198 = vrcp.f32 %v3202_v59 }
   0x2   :  { %v32_v2 = vunpack.c.l.bf16 %v3236_v0  ;;  %v33_v3 = vunpack.c.h.bf16 %v3236_v0  ;;  %v34_v4 = vunpack.c.l.bf16 %v3241_v1  ;;  %v35_v6 = vunpack.c.h.bf16 %v3241_v1  ;;  %v3262_v10 = vld [vmem:[%s4281_s0 + $0x18] sm:$0xff]  ;;  %v3273_v15 = vld [vmem:[%s4281_s0 + $0x20] sm:$0xff]  ;;  %v3284_v20 = vld [vmem:[%s4281_s0 + $0x28] sm:$0xff] }
   0x3   :  { %v36_v8 = vunpack.c.l.bf16 %v3249_v5  ;;  %v37_v11 = vunpack.c.h.bf16 %v3249_v5  ;;  %v38_v13 = vunpack.c.l.bf16 %v3262_v10  ;;  %v39_v16 = vunpack.c.h.bf16 %v3262_v10  ;;  %v3295_v25 = vld [vmem:[%s4281_s0 + $0x30] sm:$0xff]  ;;  %v3306_v30 = vld [vmem:[%s4281_s0 + $0x38] sm:$0xff]  ;;  %v3317_v35 = vld [vmem:[%s4281_s0 + $0x40] sm:$0xff] }
   0x4   :  { %v56_v7 = vadd.f32 %v33_v3, %v32_v2  ;;  %v40_v18 = vunpack.c.l.bf16 %v3273_v15  ;;  %v41_v21 = vunpack.c.h.bf16 %v3273_v15  ;;  %v42_v23 = vunpack.c.l.bf16 %v3284_v20  ;;  %v3328_v40 = vld [vmem:[%s4281_s0 + $0x48] sm:$0xff]  ;;  %v3339_v45 = vld [vmem:[%s4281_s0 + $0x50] sm:$0xff]  ;;  %v3350_v50 = vld [vmem:[%s4281_s0 + $0x58] sm:$0xff] }
   0x5   :  { %v43_v26 = vunpack.c.h.bf16 %v3284_v20  ;;  %v44_v28 = vunpack.c.l.bf16 %v3295_v25  ;;  %v45_v31 = vunpack.c.h.bf16 %v3295_v25  ;;  %v46_v33 = vunpack.c.l.bf16 %v3306_v30  ;;  %v3035_v20 = vld [vmem:[%s4282_s1 + $0xf8] sm:$0xff]  ;;  %v3010_v59 = vld [vmem:[%s4282_s1 + $0x30] sm:$0xff]  ;;  %v3009_v25 = vld [vmem:[%s4282_s1 + $0x28] sm:$0xff] }
   0x6   :  { %v57_v9 = vadd.f32 %v56_v7, %v34_v4  ;;  %v47_v36 = vunpack.c.h.bf16 %v3306_v30  ;;  %v48_v38 = vunpack.c.l.bf16 %v3317_v35  ;;  %v49_v41 = vunpack.c.h.bf16 %v3317_v35  ;;  %1957 = vmatpush.bf16.msra.mxu3 %v3035_v20  ;;  %v3008_v30 = vld [vmem:[%s4282_s1 + $0x20] sm:$0xff]  ;;  %v3007_v35 = vld [vmem:[%s4282_s1 + $0x18] sm:$0xff] }
   0x7   :  { %v50_v43 = vunpack.c.l.bf16 %v3328_v40  ;;  %v51_v46 = vunpack.c.h.bf16 %v3328_v40  ;;  %v52_v48 = vunpack.c.l.bf16 %v3339_v45  ;;  %v53_v51 = vunpack.c.h.bf16 %v3339_v45  ;;  %v3199_v60 = vpop.eup %3198  ;;  %v3006_v40 = vld [vmem:[%s4282_s1 + $0x10] sm:$0xff]  ;;  %v3005_v45 = vld [vmem:[%s4282_s1 + $0x8] sm:$0xff] }
   0x8   :  { %v58_v12 = vadd.f32 %v57_v9, %v35_v6  ;;  %v54_v53 = vunpack.c.l.bf16 %v3350_v50  ;;  %v55_v55 = vunpack.c.h.bf16 %v3350_v50  ;;  %v82_v61 = vmul.f32 3072.0, %v3199_v60  ;;  %v3004_v50 = vld [vmem:[%s4282_s1] sm:$0xff] }
   0x9   :  { %vm86_vm0 = vweird.f32 %v3199_v60 }
   0xa   :  { %v59_v14 = vadd.f32 %v58_v12, %v36_v8  ;;  %v83_v62 = vsub.f32 1.0, %v82_v61  ;;  %v3034_v61 = vld [vmem:[%s4282_s1 + $0xf0] sm:$0xff] }
   0xb   :  { %1958 = vmatpush.bf16.msra.mxu3 %v3034_v61 }
   0xc   :  { %v60_v17 = vadd.f32 %v59_v14, %v37_v11  ;;  %v84_v63 = vmul.f32 %v3199_v60, %v83_v62 }
   0xe   :  { %v61_v19 = vadd.f32 %v60_v17, %v38_v13  ;;  %v85_v7 = vadd.f32 %v3199_v60, %v84_v63 }
  0x10   :  { %v62_v22 = vadd.f32 %v61_v19, %v39_v16  ;;  %v3365_v9 = vsel %vm86_vm0, %v3199_v60, %v85_v7  ;;  %v3018_v60 = vld [vmem:[%s4282_s1 + $0x70] sm:$0xff] }
  0x12   :  { %v63_v24 = vadd.f32 %v62_v22, %v40_v18 }
  0x14   :  { %v64_v27 = vadd.f32 %v63_v24, %v41_v21 }
  0x16   :  { %v65_v29 = vadd.f32 %v64_v27, %v42_v23 }
  0x18   :  { %v66_v32 = vadd.f32 %v65_v29, %v43_v26 }
  0x1a   :  { %v67_v34 = vadd.f32 %v66_v32, %v44_v28 }
  0x1c   :  { %v68_v37 = vadd.f32 %v67_v34, %v45_v31 }
  0x1e   :  { %v69_v39 = vadd.f32 %v68_v37, %v46_v33 }
  0x20   :  { %v70_v42 = vadd.f32 %v69_v39, %v47_v36 }
  0x22   :  { %v71_v44 = vadd.f32 %v70_v42, %v48_v38 }
  0x24   :  { %v72_v47 = vadd.f32 %v71_v44, %v49_v41 }
  0x26   :  { %v73_v49 = vadd.f32 %v72_v47, %v50_v43 }
  0x28   :  { %v74_v52 = vadd.f32 %v73_v49, %v51_v46 }
  0x2a   :  { %v75_v54 = vadd.f32 %v74_v52, %v52_v48 }
  0x2c   :  { %v76_v56 = vadd.f32 %v75_v54, %v53_v51  ;;  %v3011_v54 = vld [vmem:[%s4282_s1 + $0x38] sm:$0xff] }
  0x2d   :  { %1918 = vmatpush.bf16.msra.mxu0 %v3011_v54 }
  0x2e   :  { %v77_v57 = vadd.f32 %v76_v56, %v54_v53  ;;  %v3027_v56 = vld [vmem:[%s4282_s1 + $0xb8] sm:$0xff] }
  0x2f   :  { %1944 = vmatpush.bf16.msra.mxu2 %v3027_v56 }
  0x30   :  { %v78_v58 = vadd.f32 %v77_v57, %v55_v55 }
  0x31   :  { %1919 = vmatpush.bf16.msra.mxu0 %v3010_v59 }
  0x32   :  { %79 = vadd.xlane.f32.xlu0 %v78_v58 }
  0x35   :  { %1920 = vmatpush.bf16.msra.mxu0 %v3009_v25 }
  0x39   :  { %1921 = vmatpush.bf16.msra.mxu0 %v3008_v30  ;;  %v3043_v30 = vld [vmem:[%s4282_s1 + $0x138] sm:$0xff] }
  0x3d   :  { %1922 = vmatpush.bf16.msra.mxu0 %v3007_v35  ;;  %v3041_v35 = vld [vmem:[%s4282_s1 + $0x128] sm:$0xff] }
  0x41   :  { %1923 = vmatpush.bf16.msra.mxu0 %v3006_v40  ;;  %v3039_v40 = vld [vmem:[%s4282_s1 + $0x118] sm:$0xff] }
  0x45   :  { %1924 = vmatpush.bf16.msra.mxu0 %v3005_v45  ;;  %v3037_v45 = vld [vmem:[%s4282_s1 + $0x108] sm:$0xff] }
  0x49   :  { %1925 = vmatpush.bf16.msra.mxu0 %v3004_v50 }
  0x4d   :  { %1970 = vmatpush.bf16.msrb.mxu0 %v3043_v30  ;;  %v3734_v30 = vld [vmem:[%s4283_s3] sm:$0xff] }
  0xa5   :  { %v80_v12 = vpop.xlane.xlu0 %79 }
  0xa6   :  { %v3368_v14 = vmul.f32 %v3365_v9, %v80_v12 }
  0xa8   :  { %v3373_v17 = vsub.f32 %v32_v2, %v3368_v14  ;;  %v3378_v19 = vsub.f32 %v33_v3, %v3368_v14  ;;  %v3383_v22 = vsub.f32 %v34_v4, %v3368_v14  ;;  %v3392_v2 = vsub.f32 %v35_v6, %v3368_v14 }
  0xa9   :  { %v3397_v0 = vsub.f32 %v36_v8, %v3368_v14  ;;  %v3404_v29 = vsub.f32 %v37_v11, %v3368_v14  ;;  %v3411_v6 = vsub.f32 %v38_v13, %v3368_v14  ;;  %v3418_v37 = vsub.f32 %v39_v16, %v3368_v14 }
  0xaa   :  { %v113_v24 = vmul.f32 %v3373_v17, %v3373_v17  ;;  %v114_v27 = vmul.f32 %v3378_v19, %v3378_v19  ;;  %v115_v3 = vmul.f32 %v3383_v22, %v3383_v22  ;;  %v116_v32 = vmul.f32 %v3392_v2, %v3392_v2 }
  0xab   :  { %v117_v8 = vmul.f32 %v3397_v0, %v3397_v0  ;;  %v118_v5 = vmul.f32 %v3404_v29, %v3404_v29  ;;  %v3425_v39 = vsub.f32 %v40_v18, %v3368_v14  ;;  %v119_v13 = vmul.f32 %v3411_v6, %v3411_v6 }
  0xac   :  { %v137_v4 = vadd.f32 %v114_v27, %v113_v24  ;;  %v3432_v44 = vsub.f32 %v41_v21, %v3368_v14  ;;  %v120_v10 = vmul.f32 %v3418_v37, %v3418_v37  ;;  %v3439_v47 = vsub.f32 %v42_v23, %v3368_v14  ;;  %v3019_v23 = vld [vmem:[%s4282_s1 + $0x78] sm:$0xff] }
  0xad   :  { %v121_v18 = vmul.f32 %v3425_v39, %v3425_v39  ;;  %v3446_v52 = vsub.f32 %v43_v26, %v3368_v14  ;;  %v3465_v26 = vsub.f32 %v44_v28, %v3368_v14  ;;  %1931 = vmatpush.bf16.msra.mxu1 %v3019_v23  ;;  %v3026_v28 = vld [vmem:[%s4282_s1 + $0xb0] sm:$0xff]  ;;  %v3484_v62 = vsub.f32 %v45_v31, %v3368_v14  ;;  %v3017_v31 = vld [vmem:[%s4282_s1 + $0x68] sm:$0xff] }
  0xae   :  { %v138_v1 = vadd.f32 %v137_v4, %v115_v3  ;;  %v122_v15 = vmul.f32 %v3432_v44, %v3432_v44  ;;  %v123_v57 = vmul.f32 %v3439_v47, %v3439_v47  ;;  %v3491_v12 = vsub.f32 %v46_v33, %v3368_v14  ;;  %1945 = vmatpush.bf16.msra.mxu2 %v3026_v28  ;;  %v3025_v33 = vld [vmem:[%s4282_s1 + $0xa8] sm:$0xff] }
  0xaf   :  { %v124_v63 = vmul.f32 %v3446_v52, %v3446_v52  ;;  %v125_v24 = vmul.f32 %v3465_v26, %v3465_v26  ;;  %v3033_v3 = vld [vmem:[%s4282_s1 + $0xe8] sm:$0xff]  ;;  %v3510_v4 = vsub.f32 %v47_v36, %v3368_v14  ;;  %v3016_v36 = vld [vmem:[%s4282_s1 + $0x60] sm:$0xff]  ;;  %v3569_v56 = vsub.f32 %v52_v48, %v3368_v14  ;;  %v3022_v48 = vld [vmem:[%s4282_s1 + $0x90] sm:$0xff] }
  0xb0   :  { %v139_v34 = vadd.f32 %v138_v1, %v116_v32  ;;  %v126_v32 = vmul.f32 %v3484_v62, %v3484_v62  ;;  %1959 = vmatpush.bf16.msra.mxu3 %v3033_v3  ;;  %v3588_v59 = vsub.f32 %v53_v51, %v3368_v14  ;;  %v3595_v61 = vsub.f32 %v54_v53, %v3368_v14  ;;  %v3013_v51 = vld [vmem:[%s4282_s1 + $0x48] sm:$0xff] }
  0xb1   :  { %1932 = vmatpush.bf16.msra.mxu1 %v3018_v60  ;;  %v3021_v53 = vld [vmem:[%s4282_s1 + $0x88] sm:$0xff] }
  0xb2   :  { %v140_v11 = vadd.f32 %v139_v34, %v117_v8  ;;  %v3517_v8 = vsub.f32 %v48_v38, %v3368_v14  ;;  %v127_v34 = vmul.f32 %v3491_v12, %v3491_v12  ;;  %1946 = vmatpush.bf16.msra.mxu2 %v3025_v33  ;;  %v3024_v38 = vld [vmem:[%s4282_s1 + $0xa0] sm:$0xff]  ;;  %v134_v25 = vmul.f32 %v3588_v59, %v3588_v59 }
  0xb3   :  { %v135_v33 = vmul.f32 %v3595_v61, %v3595_v61 }
  0xb4   :  { %v141_v42 = vadd.f32 %v140_v11, %v118_v5  ;;  %v3032_v11 = vld [vmem:[%s4282_s1 + $0xe0] sm:$0xff] }
  0xb5   :  { %1933 = vmatpush.bf16.msra.mxu1 %v3017_v31  ;;  %1960 = vmatpush.bf16.msra.mxu3 %v3032_v11  ;;  %v3067_v11 = vld [vmem:[%s4282_s1 + $0x1f8] sm:$0xff] }
  0xb6   :  { %v142_v16 = vadd.f32 %v141_v42, %v119_v13  ;;  %v3536_v13 = vsub.f32 %v49_v41, %v3368_v14  ;;  %v128_v42 = vmul.f32 %v3510_v4, %v3510_v4  ;;  %v3015_v41 = vld [vmem:[%s4282_s1 + $0x58] sm:$0xff]  ;;  %1947 = vmatpush.bf16.msra.mxu2 %v3024_v38 }
  0xb7   :  { %v3059_v38 = vld [vmem:[%s4282_s1 + $0x1b8] sm:$0xff] }
  0xb8   :  { %v143_v49 = vadd.f32 %v142_v16, %v120_v10  ;;  %v3543_v16 = vsub.f32 %v50_v43, %v3368_v14  ;;  %v3023_v43 = vld [vmem:[%s4282_s1 + $0x98] sm:$0xff]  ;;  %v130_v54 = vmul.f32 %v3536_v13, %v3536_v13 }
  0xb9   :  { %1934 = vmatpush.bf16.msra.mxu1 %v3016_v36  ;;  %v3051_v36 = vld [vmem:[%s4282_s1 + $0x178] sm:$0xff] }
  0xba   :  { %v144_v21 = vadd.f32 %v143_v49, %v121_v18  ;;  %v129_v18 = vmul.f32 %v3517_v8, %v3517_v8  ;;  %v131_v20 = vmul.f32 %v3543_v16, %v3543_v16  ;;  %1948 = vmatpush.bf16.msra.mxu2 %v3023_v43  ;;  %v3057_v43 = vld [vmem:[%s4282_s1 + $0x1a8] sm:$0xff] }
  0xbc   :  { %v145_v58 = vadd.f32 %v144_v21, %v122_v15  ;;  %v3031_v15 = vld [vmem:[%s4282_s1 + $0xd8] sm:$0xff]  ;;  %v3562_v21 = vsub.f32 %v51_v46, %v3368_v14  ;;  %v3014_v46 = vld [vmem:[%s4282_s1 + $0x50] sm:$0xff] }
  0xbd   :  { %1935 = vmatpush.bf16.msra.mxu1 %v3015_v41  ;;  %1961 = vmatpush.bf16.msra.mxu3 %v3031_v15  ;;  %v3049_v41 = vld [vmem:[%s4282_s1 + $0x168] sm:$0xff] }
  0xbe   :  { %v146_v7 = vadd.f32 %v145_v58, %v123_v57  ;;  %v3030_v58 = vld [vmem:[%s4282_s1 + $0xd0] sm:$0xff]  ;;  %v132_v60 = vmul.f32 %v3562_v21, %v3562_v21  ;;  %1949 = vmatpush.bf16.msra.mxu2 %v3022_v48  ;;  %v3065_v15 = vld [vmem:[%s4282_s1 + $0x1e8] sm:$0xff]  ;;  %v3055_v48 = vld [vmem:[%s4282_s1 + $0x198] sm:$0xff] }
  0xc0   :  { %v147_v27 = vadd.f32 %v146_v7, %v124_v63  ;;  %v133_v63 = vmul.f32 %v3569_v56, %v3569_v56 }
  0xc1   :  { %1936 = vmatpush.bf16.msra.mxu1 %v3014_v46  ;;  %1962 = vmatpush.bf16.msra.mxu3 %v3030_v58  ;;  %v3047_v46 = vld [vmem:[%s4282_s1 + $0x158] sm:$0xff] }
  0xc2   :  { %v148_v1 = vadd.f32 %v147_v27, %v125_v24  ;;  %v3029_v24 = vld [vmem:[%s4282_s1 + $0xc8] sm:$0xff]  ;;  %v3614_v27 = vsub.f32 %v55_v55, %v3368_v14  ;;  %1950 = vmatpush.bf16.msra.mxu2 %v3021_v53  ;;  %v3012_v55 = vld [vmem:[%s4282_s1 + $0x40] sm:$0xff]  ;;  %v3063_v58 = vld [vmem:[%s4282_s1 + $0x1d8] sm:$0xff] }
  0xc3   :  { %v3020_v14 = vld [vmem:[%s4282_s1 + $0x80] sm:$0xff]  ;;  %v3053_v53 = vld [vmem:[%s4282_s1 + $0x188] sm:$0xff] }
  0xc4   :  { %v149_v5 = vadd.f32 %v148_v1, %v126_v32  ;;  %v136_v32 = vmul.f32 %v3614_v27, %v3614_v27 }
  0xc5   :  { %1937 = vmatpush.bf16.msra.mxu1 %v3013_v51  ;;  %1963 = vmatpush.bf16.msra.mxu3 %v3029_v24  ;;  %v3045_v51 = vld [vmem:[%s4282_s1 + $0x148] sm:$0xff] }
  0xc6   :  { %v150_v10 = vadd.f32 %v149_v5, %v127_v34  ;;  %v3028_v5 = vld [vmem:[%s4282_s1 + $0xc0] sm:$0xff]  ;;  %1951 = vmatpush.bf16.msra.mxu2 %v3020_v14  ;;  %v3061_v24 = vld [vmem:[%s4282_s1 + $0x1c8] sm:$0xff] }
  0xc8   :  { %v151_v49 = vadd.f32 %v150_v10, %v128_v42  ;;  %v3042_v42 = vld [vmem:[%s4282_s1 + $0x130] sm:$0xff] }
  0xc9   :  { %1938 = vmatpush.bf16.msra.mxu1 %v3012_v55  ;;  %1964 = vmatpush.bf16.msra.mxu3 %v3028_v5  ;;  %v3050_v10 = vld [vmem:[%s4282_s1 + $0x170] sm:$0xff] }
  0xca   :  { %v152_v23 = vadd.f32 %v151_v49, %v129_v18  ;;  %1996 = vmatpush.bf16.msrb.mxu2 %v3059_v38  ;;  %v3058_v18 = vld [vmem:[%s4282_s1 + $0x1b0] sm:$0xff]  ;;  %1971 = vmatpush.bf16.msrb.mxu0 %v3042_v42  ;;  %v3739_v38 = vld [vmem:[%s4284_s4] sm:$0xff] }
  0xcb   :  { %v3066_v49 = vld [vmem:[%s4282_s1 + $0x1f0] sm:$0xff]  ;;  %v282_v42 = vperm.slane %v3739_v38, 0 }
  0xcc   :  { %v153_v57 = vadd.f32 %v152_v23, %v130_v54  ;;  %v3040_v54 = vld [vmem:[%s4282_s1 + $0x120] sm:$0xff] }
  0xcd   :  { %1983 = vmatpush.bf16.msrb.mxu1 %v3051_v36  ;;  %2009 = vmatpush.bf16.msrb.mxu3 %v3067_v11  ;;  %v3048_v23 = vld [vmem:[%s4282_s1 + $0x160] sm:$0xff]  ;;  %v204_v11 = vperm.slane %v3734_v30, 0 }
  0xce   :  { %v154_v28 = vadd.f32 %v153_v57, %v131_v20  ;;  %1997 = vmatpush.bf16.msrb.mxu2 %v3058_v18  ;;  %1972 = vmatpush.bf16.msrb.mxu0 %v3041_v35  ;;  %v3056_v20 = vld [vmem:[%s4282_s1 + $0x1a0] sm:$0xff]  ;;  %v206_v18 = vperm.slane %v3734_v30, 2 }
  0xcf   :  { %v3064_v57 = vld [vmem:[%s4282_s1 + $0x1e0] sm:$0xff] }
  0xd0   :  { %v155_v7 = vadd.f32 %v154_v28, %v132_v60  ;;  %v3038_v60 = vld [vmem:[%s4282_s1 + $0x110] sm:$0xff] }
  0xd1   :  { %1984 = vmatpush.bf16.msrb.mxu1 %v3050_v10  ;;  %2010 = vmatpush.bf16.msrb.mxu3 %v3066_v49  ;;  %v3046_v28 = vld [vmem:[%s4282_s1 + $0x150] sm:$0xff]  ;;  %v205_v10 = vperm.slane %v3734_v30, 1  ;;  %v207_v49 = vperm.slane %v3734_v30, 3 }
  0xd2   :  { %v156_v31 = vadd.f32 %v155_v7, %v133_v63  ;;  %1998 = vmatpush.bf16.msrb.mxu2 %v3057_v43  ;;  %1973 = vmatpush.bf16.msrb.mxu0 %v3040_v54  ;;  %v3054_v63 = vld [vmem:[%s4282_s1 + $0x190] sm:$0xff]  ;;  %v284_v43 = vperm.slane %v3739_v38, 2 }
  0xd3   :  { %v3062_v7 = vld [vmem:[%s4282_s1 + $0x1d0] sm:$0xff] }
  0xd4   :  { %v157_v3 = vadd.f32 %v156_v31, %v134_v25  ;;  %v3036_v25 = vld [vmem:[%s4282_s1 + $0x100] sm:$0xff] }
  0xd5   :  { %1985 = vmatpush.bf16.msrb.mxu1 %v3049_v41  ;;  %2011 = vmatpush.bf16.msrb.mxu3 %v3065_v15  ;;  %v3044_v31 = vld [vmem:[%s4282_s1 + $0x140] sm:$0xff]  ;;  %v283_v41 = vperm.slane %v3739_v38, 1  ;;  %v285_v15 = vperm.slane %v3739_v38, 3 }
  0xd6   :  { %v158_v1 = vadd.f32 %v157_v3, %v135_v33  ;;  %1999 = vmatpush.bf16.msrb.mxu2 %v3056_v20  ;;  %1974 = vmatpush.bf16.msrb.mxu0 %v3039_v40  ;;  %v3052_v33 = vld [vmem:[%s4282_s1 + $0x180] sm:$0xff] }
  0xd7   :  { %v3060_v3 = vld [vmem:[%s4282_s1 + $0x1c0] sm:$0xff] }
  0xd8   :  { %v159_v34 = vadd.f32 %v158_v1, %v136_v32 }
  0xd9   :  { %1986 = vmatpush.bf16.msrb.mxu1 %v3048_v23  ;;  %2012 = vmatpush.bf16.msrb.mxu3 %v3064_v57 }
  0xda   :  { %160 = vadd.xlane.f32.xlu0 %v159_v34  ;;  %2000 = vmatpush.bf16.msrb.mxu2 %v3055_v48 }
  0xdb   :  { %1975 = vmatpush.bf16.msrb.mxu0 %v3038_v60 }
  0xdd   :  { %1987 = vmatpush.bf16.msrb.mxu1 %v3047_v46  ;;  %2013 = vmatpush.bf16.msrb.mxu3 %v3063_v58 }
  0xde   :  { %2001 = vmatpush.bf16.msrb.mxu2 %v3054_v63 }
  0xdf   :  { %1976 = vmatpush.bf16.msrb.mxu0 %v3037_v45 }
  0xe1   :  { %1988 = vmatpush.bf16.msrb.mxu1 %v3046_v28  ;;  %2014 = vmatpush.bf16.msrb.mxu3 %v3062_v7 }
  0xe2   :  { %2002 = vmatpush.bf16.msrb.mxu2 %v3053_v53 }
  0xe3   :  { %1977 = vmatpush.bf16.msrb.mxu0 %v3036_v25 }
  0xe5   :  { %1989 = vmatpush.bf16.msrb.mxu1 %v3045_v51  ;;  %2015 = vmatpush.bf16.msrb.mxu3 %v3061_v24  ;;  %v3099_v24 = vld [vmem:[%s4282_s1 + $0x2f8] sm:$0xff] }
  0xe6   :  { %2003 = vmatpush.bf16.msrb.mxu2 %v3052_v33 }
  0xe9   :  { %1990 = vmatpush.bf16.msrb.mxu1 %v3044_v31  ;;  %2016 = vmatpush.bf16.msrb.mxu3 %v3060_v3  ;;  %v208_v31 = vperm.slane %v3734_v30, 4  ;;  %v209_v3 = vperm.slane %v3734_v30, 5 }
 0x14d   :  { %v161_v32 = vpop.xlane.xlu0 %160 }
 0x14e   :  { %v162_v1 = vmul.f32 %v161_v32, %v3365_v9  ;;  %v3780_v32 = vld [vmem:[%s4283_s3 + $0x10] sm:$0xff] }
 0x150   :  { %v163_v34 = vadd.f32 1e-05, %v162_v1  ;;  %v3082_v1 = vld [vmem:[%s4282_s1 + $0x270] sm:$0xff] }
 0x152   :  { %3200 = vrsqrt.f32 %v163_v34  ;;  %vm170_vm2 = vweird.f32 %v163_v34 }
 0x158   :  { %v3201_v50 = vpop.eup %3200 }
 0x159   :  { %v165_v55 = vmul.f32 %v3201_v50, %v163_v34  ;;  %vm171_vm1 = vweird.f32 %v3201_v50  ;;  %v210_v34 = vperm.slane %v3734_v30, 6 }
 0x15a   :  { %vm172_vm3 = vmor %vm170_vm2, %vm171_vm1 }
 0x15b   :  { %v166_v14 = vmul.f32 %v3201_v50, %v165_v55  ;;  %v211_v55 = vperm.slane %v3734_v30, 7 }
 0x15d   :  { %v167_v5 = vmul.f32 0.5, %v166_v14  ;;  %v3797_v14 = vld [vmem:[%s4284_s4 + $0x10] sm:$0xff] }
 0x15f   :  { %v168_v36 = vsub.f32 1.5, %v167_v5  ;;  %v3090_v5 = vld [vmem:[%s4282_s1 + $0x2b0] sm:$0xff] }
 0x161   :  { %v169_v9 = vmul.f32 %v3201_v50, %v168_v36  ;;  %v286_v36 = vperm.slane %v3739_v38, 4 }
 0x163   :  { %v3746_v35 = vsel %vm172_vm3, %v3201_v50, %v169_v9 }
 0x164   :  { %v174_v54 = vmul.f32 %v3746_v35, %v3373_v17  ;;  %v175_v23 = vmul.f32 %v3746_v35, %v3378_v19  ;;  %v176_v20 = vmul.f32 %v3746_v35, %v3383_v22  ;;  %v177_v57 = vmul.f32 %v3746_v35, %v3392_v2  ;;  %v3075_v19 = vld [vmem:[%s4282_s1 + $0x238] sm:$0xff] }
 0x165   :  { %v3083_v22 = vld [vmem:[%s4282_s1 + $0x278] sm:$0xff]  ;;  %v178_v25 = vmul.f32 %v3746_v35, %v3397_v0  ;;  %v179_v33 = vmul.f32 %v3746_v35, %v3404_v29  ;;  %v3074_v0 = vld [vmem:[%s4282_s1 + $0x230] sm:$0xff]  ;;  %v180_v29 = vmul.f32 %v3746_v35, %v3411_v6  ;;  %v181_v50 = vmul.f32 %v3746_v35, %v3418_v37 }
 0x166   :  { %v252_v40 = vmul.f32 %v204_v11, %v174_v54  ;;  %v253_v46 = vmul.f32 %v205_v10, %v175_v23  ;;  %v254_v48 = vmul.f32 %v206_v18, %v176_v20  ;;  %v255_v58 = vmul.f32 %v207_v49, %v177_v57  ;;  %v3091_v2 = vld [vmem:[%s4282_s1 + $0x2b8] sm:$0xff]  ;;  %v3098_v6 = vld [vmem:[%s4282_s1 + $0x2f0] sm:$0xff]  ;;  %v3089_v57 = vld [vmem:[%s4282_s1 + $0x2a8] sm:$0xff] }
 0x167   :  { %v287_v37 = vperm.slane %v3739_v38, 5  ;;  %v256_v30 = vmul.f32 %v208_v31, %v178_v25  ;;  %v257_v9 = vmul.f32 %v209_v3, %v179_v33  ;;  %v288_v11 = vperm.slane %v3739_v38, 6 }
 0x168   :  { %v330_v60 = vadd.f32 %v282_v42, %v252_v40  ;;  %v331_v28 = vadd.f32 %v283_v41, %v253_v46  ;;  %v332_v63 = vadd.f32 %v284_v43, %v254_v48  ;;  %v333_v7 = vadd.f32 %v285_v15, %v255_v58  ;;  %v3073_v43 = vld [vmem:[%s4282_s1 + $0x228] sm:$0xff] }
 0x169   :  { %v289_v42 = vperm.slane %v3739_v38, 7  ;;  %v220_v10 = vperm.slane %v3780_v32, 0  ;;  %v221_v18 = vperm.slane %v3780_v32, 1  ;;  %v222_v49 = vperm.slane %v3780_v32, 2  ;;  %v3081_v15 = vld [vmem:[%s4282_s1 + $0x268] sm:$0xff] }
 0x16a   :  { %v354_v45 = vpack.c.bf16 %v330_v60, %v330_v60  ;;  %v355_v51 = vpack.c.bf16 %v331_v28, %v331_v28  ;;  %v356_v17 = vpack.c.bf16 %v332_v63, %v332_v63  ;;  %v357_v53 = vpack.c.bf16 %v333_v7, %v333_v7  ;;  %v3097_v40 = vld [vmem:[%s4282_s1 + $0x2e8] sm:$0xff] }
 0x16b   :  { %v223_v41 = vperm.slane %v3780_v32, 3  ;;  %v258_v54 = vmul.f32 %v210_v34, %v180_v29  ;;  %v259_v38 = vmul.f32 %v211_v55, %v181_v50  ;;  %v298_v23 = vperm.slane %v3797_v14, 0 }
 0x16c   :  { %1926 = vmatmul.bf16.vlgmr.msra.gmra.mxu0 %v354_v45  ;;  %1939 = vmatmul.bf16.vlgmr.msra.gmra.mxu1 %v355_v51  ;;  %v224_v20 = vperm.slane %v3780_v32, 4  ;;  %v299_v46 = vperm.slane %v3797_v14, 1  ;;  %v300_v48 = vperm.slane %v3797_v14, 2  ;;  %v301_v58 = vperm.slane %v3797_v14, 3 }
 0x16d   :  { %1952 = vmatmul.bf16.vlgmr.msra.gmra.mxu2 %v356_v17  ;;  %1965 = vmatmul.bf16.vlgmr.msra.gmra.mxu3 %v357_v53  ;;  %v225_v60 = vperm.slane %v3780_v32, 5  ;;  %v334_v28 = vadd.f32 %v286_v36, %v256_v30  ;;  %v335_v63 = vadd.f32 %v287_v37, %v257_v9  ;;  %v190_v7 = vmul.f32 %v3746_v35, %v3517_v8  ;;  %v3072_v8 = vld [vmem:[%s4282_s1 + $0x220] sm:$0xff]  ;;  %v3071_v36 = vld [vmem:[%s4282_s1 + $0x218] sm:$0xff] }
 0x16e   :  { %2022 = vmatpush.bf16.msra.mxu0 %v3075_v19  ;;  %2035 = vmatpush.bf16.msra.mxu1 %v3083_v22  ;;  %v191_v45 = vmul.f32 %v3746_v35, %v3536_v13  ;;  %v192_v51 = vmul.f32 %v3746_v35, %v3543_v16  ;;  %v193_v17 = vmul.f32 %v3746_v35, %v3562_v21  ;;  %v3080_v13 = vld [vmem:[%s4282_s1 + $0x260] sm:$0xff]  ;;  %v302_v21 = vperm.slane %v3797_v14, 4  ;;  %v3079_v37 = vld [vmem:[%s4282_s1 + $0x258] sm:$0xff] }
 0x16f   :  { %2048 = vmatpush.bf16.msra.mxu2 %v3091_v2  ;;  %2061 = vmatpush.bf16.msra.mxu3 %v3099_v24  ;;  %v194_v53 = vmul.f32 %v3746_v35, %v3569_v56  ;;  %v195_v19 = vmul.f32 %v3746_v35, %v3588_v59  ;;  %v336_v16 = vadd.f32 %v288_v11, %v258_v54  ;;  %v3088_v56 = vld [vmem:[%s4282_s1 + $0x2a0] sm:$0xff]  ;;  %v303_v33 = vperm.slane %v3797_v14, 5 }
 0x170   :  { %v337_v22 = vadd.f32 %v289_v42, %v259_v38  ;;  %v268_v2 = vmul.f32 %v220_v10, %v190_v7  ;;  %v3096_v59 = vld [vmem:[%s4282_s1 + $0x2e0] sm:$0xff]  ;;  %v269_v24 = vmul.f32 %v221_v18, %v191_v45  ;;  %v270_v25 = vmul.f32 %v222_v49, %v192_v51  ;;  %v3087_v18 = vld [vmem:[%s4282_s1 + $0x298] sm:$0xff]  ;;  %v3077_v51 = vld [vmem:[%s4282_s1 + $0x248] sm:$0xff] }
 0x171   :  { %v271_v31 = vmul.f32 %v223_v41, %v193_v17  ;;  %v358_v3 = vpack.c.bf16 %v334_v28, %v334_v28  ;;  %v226_v29 = vperm.slane %v3780_v32, 6  ;;  %v196_v9 = vmul.f32 %v3746_v35, %v3595_v61  ;;  %v3095_v49 = vld [vmem:[%s4282_s1 + $0x2d8] sm:$0xff]  ;;  %v3887_v61 = vld [vmem:[%s4283_s3 + $0x8] sm:$0xff] }
 0x172   :  { %2023 = vmatpush.bf16.msra.mxu0 %v3074_v0  ;;  %2036 = vmatpush.bf16.msra.mxu1 %v3082_v1  ;;  %v3857_v0 = vadd.f32 %v298_v23, %v268_v2  ;;  %v272_v1 = vmul.f32 %v224_v20, %v194_v53  ;;  %v3860_v34 = vadd.f32 %v299_v46, %v269_v24  ;;  %v304_v11 = vperm.slane %v3797_v14, 6  ;;  %v3078_v23 = vld [vmem:[%s4282_s1 + $0x250] sm:$0xff]  ;;  %v3918_v28 = vld [vmem:[%s4284_s4 + $0x8] sm:$0xff]  ;;  %v3092_v24 = vld [vmem:[%s4282_s1 + $0x2c0] sm:$0xff] }
 0x173   :  { %2049 = vmatpush.bf16.msra.mxu2 %v3090_v5  ;;  %2062 = vmatpush.bf16.msra.mxu3 %v3098_v6  ;;  %v3862_v50 = vadd.f32 %v300_v48, %v270_v25  ;;  %v3864_v55 = vadd.f32 %v301_v58, %v271_v31  ;;  %v273_v5 = vmul.f32 %v225_v60, %v195_v19  ;;  %v227_v41 = vperm.slane %v3780_v32, 7  ;;  %v3070_v32 = vld [vmem:[%s4282_s1 + $0x210] sm:$0xff]  ;;  %v3107_v25 = vld [vmem:[%s4282_s1 + $0x338] sm:$0xff] }
 0x174   :  { %v359_v6 = vpack.c.bf16 %v335_v63, %v335_v63  ;;  %v3872_v30 = vadd.f32 %v302_v21, %v272_v1  ;;  %v360_v42 = vpack.c.bf16 %v336_v16, %v336_v16  ;;  %v361_v10 = vpack.c.bf16 %v337_v22, %v337_v22  ;;  %v3068_v21 = vld [vmem:[%s4282_s1 + $0x200] sm:$0xff]  ;;  %v3115_v31 = vld [vmem:[%s4282_s1 + $0x378] sm:$0xff] }
 0x175   :  { %v197_v54 = vmul.f32 %v3746_v35, %v3614_v27  ;;  %v305_v38 = vperm.slane %v3797_v14, 7  ;;  %v3086_v27 = vld [vmem:[%s4282_s1 + $0x290] sm:$0xff]  ;;  %v182_v46 = vmul.f32 %v3746_v35, %v3425_v39  ;;  %v183_v48 = vmul.f32 %v3746_v35, %v3432_v44  ;;  %v3069_v44 = vld [vmem:[%s4282_s1 + $0x208] sm:$0xff]  ;;  %v3123_v1 = vld [vmem:[%s4282_s1 + $0x3b8] sm:$0xff] }
 0x176   :  { %2024 = vmatpush.bf16.msra.mxu0 %v3073_v43  ;;  %2037 = vmatpush.bf16.msra.mxu1 %v3081_v15  ;;  %v3889_v43 = vadd.f32 %v303_v33, %v273_v5  ;;  %v274_v15 = vmul.f32 %v226_v29, %v196_v9  ;;  %v3094_v14 = vld [vmem:[%s4282_s1 + $0x2d0] sm:$0xff]  ;;  %v213_v58 = vperm.slane %v3887_v61, 1  ;;  %v214_v60 = vperm.slane %v3887_v61, 2  ;;  %v3131_v29 = vld [vmem:[%s4282_s1 + $0x3f8] sm:$0xff] }
 0x177   :  { %2050 = vmatpush.bf16.msra.mxu2 %v3089_v57  ;;  %2063 = vmatpush.bf16.msra.mxu3 %v3097_v40  ;;  %v212_v57 = vperm.slane %v3887_v61, 0  ;;  %v275_v40 = vmul.f32 %v227_v41, %v197_v54  ;;  %v184_v63 = vmul.f32 %v3746_v35, %v3439_v47  ;;  %v185_v7 = vmul.f32 %v3746_v35, %v3446_v52  ;;  %v3085_v47 = vld [vmem:[%s4282_s1 + $0x288] sm:$0xff]  ;;  %v3106_v9 = vld [vmem:[%s4282_s1 + $0x330] sm:$0xff] }
 0x178   :  { %v3900_v20 = vadd.f32 %v304_v11, %v274_v15  ;;  %v215_v39 = vperm.slane %v3887_v61, 3  ;;  %v3093_v52 = vld [vmem:[%s4282_s1 + $0x2c8] sm:$0xff]  ;;  %v290_v53 = vperm.slane %v3918_v28, 0  ;;  %v261_v19 = vmul.f32 %v213_v58, %v183_v48  ;;  %v3114_v11 = vld [vmem:[%s4282_s1 + $0x370] sm:$0xff]  ;;  %v3127_v48 = vld [vmem:[%s4282_s1 + $0x3d8] sm:$0xff] }
 0x179   :  { %v3925_v45 = vadd.f32 %v305_v38, %v275_v40  ;;  %v260_v17 = vmul.f32 %v212_v57, %v182_v46  ;;  %v292_v16 = vperm.slane %v3918_v28, 2  ;;  %v293_v2 = vperm.slane %v3918_v28, 3  ;;  %v3105_v41 = vld [vmem:[%s4282_s1 + $0x328] sm:$0xff]  ;;  %v3103_v57 = vld [vmem:[%s4282_s1 + $0x318] sm:$0xff]  ;;  %v3102_v58 = vld [vmem:[%s4282_s1 + $0x310] sm:$0xff] }
 0x17a   :  { %2025 = vmatpush.bf16.msra.mxu0 %v3072_v8  ;;  %2038 = vmatpush.bf16.msra.mxu1 %v3080_v13  ;;  %v291_v8 = vperm.slane %v3918_v28, 1  ;;  %v262_v13 = vmul.f32 %v214_v60, %v184_v63  ;;  %v263_v22 = vmul.f32 %v215_v39, %v185_v7  ;;  %v3113_v15 = vld [vmem:[%s4282_s1 + $0x368] sm:$0xff]  ;;  %v3111_v40 = vld [vmem:[%s4282_s1 + $0x358] sm:$0xff]  ;;  %v3110_v60 = vld [vmem:[%s4282_s1 + $0x350] sm:$0xff]  ;;  %v186_v39 = vmul.f32 %v3746_v35, %v3465_v26 }
 0x17b   :  { %2051 = vmatpush.bf16.msra.mxu2 %v3088_v56  ;;  %2064 = vmatpush.bf16.msra.mxu3 %v3096_v59  ;;  %v3076_v56 = vld [vmem:[%s4282_s1 + $0x240] sm:$0xff]  ;;  %v338_v33 = vadd.f32 %v290_v53, %v260_v17  ;;  %v3121_v54 = vld [vmem:[%s4282_s1 + $0x3a8] sm:$0xff]  ;;  %v3119_v46 = vld [vmem:[%s4282_s1 + $0x398] sm:$0xff]  ;;  %v218_v17 = vperm.slane %v3887_v61, 6  ;;  %v189_v53 = vmul.f32 %v3746_v35, %v3510_v4 }
 0x17c   :  { %1978 = vmatmul.bf16.vlgmr.msrb.gmra.mxu0 %v358_v3  ;;  %1991 = vmatmul.bf16.vlgmr.msrb.gmra.mxu1 %v359_v6  ;;  %v3084_v59 = vld [vmem:[%s4282_s1 + $0x280] sm:$0xff]  ;;  %v339_v3 = vadd.f32 %v291_v8, %v261_v19  ;;  %v340_v5 = vadd.f32 %v292_v16, %v262_v13  ;;  %v341_v6 = vadd.f32 %v293_v2, %v263_v22  ;;  %v3129_v38 = vld [vmem:[%s4282_s1 + $0x3e8] sm:$0xff]  ;;  %v3118_v63 = vld [vmem:[%s4282_s1 + $0x390] sm:$0xff]  ;;  %v219_v19 = vperm.slane %v3887_v61, 7 }
 0x17d   :  { %2004 = vmatmul.bf16.vlgmr.msrb.gmra.mxu2 %v360_v42  ;;  %2017 = vmatmul.bf16.vlgmr.msrb.gmra.mxu3 %v361_v10  ;;  %v3126_v7 = vld [vmem:[%s4282_s1 + $0x3d0] sm:$0xff]  ;;  %v3101_v26 = vld [vmem:[%s4282_s1 + $0x308] sm:$0xff]  ;;  %v295_v13 = vperm.slane %v3918_v28, 5  ;;  %v296_v22 = vperm.slane %v3918_v28, 6 }
 0x17e   :  { %2026 = vmatpush.bf16.msra.mxu0 %v3071_v36  ;;  %2039 = vmatpush.bf16.msra.mxu1 %v3079_v37  ;;  %v362_v36 = vpack.c.bf16 %v338_v33, %v338_v33  ;;  %v363_v37 = vpack.c.bf16 %v339_v3, %v339_v3  ;;  %v364_v42 = vpack.c.bf16 %v340_v5, %v340_v5  ;;  %v3125_v4 = vld [vmem:[%s4282_s1 + $0x3c8] sm:$0xff] }
 0x17f   :  { %2052 = vmatpush.bf16.msra.mxu2 %v3087_v18  ;;  %2065 = vmatpush.bf16.msra.mxu3 %v3095_v49  ;;  %v365_v10 = vpack.c.bf16 %v341_v6, %v341_v6  ;;  %v3122_v18 = vld [vmem:[%s4282_s1 + $0x3b0] sm:$0xff]  ;;  %v267_v2 = vmul.f32 %v219_v19, %v189_v53  ;;  %v3148_v53 = vld [vmem:[%s4282_s1 + $0x480] sm:$0xff] }
 0x180   :  { %v3130_v49 = vld [vmem:[%s4282_s1 + $0x3f0] sm:$0xff]  ;;  %v3156_v19 = vld [vmem:[%s4282_s1 + $0x4c0] sm:$0xff] }
 0x182   :  { %2027 = vmatpush.bf16.msra.mxu0 %v3070_v32  ;;  %2040 = vmatpush.bf16.msra.mxu1 %v3078_v23  ;;  %v3104_v32 = vld [vmem:[%s4282_s1 + $0x320] sm:$0xff] }
 0x183   :  { %2053 = vmatpush.bf16.msra.mxu2 %v3086_v27  ;;  %2066 = vmatpush.bf16.msra.mxu3 %v3094_v14  ;;  %v3112_v23 = vld [vmem:[%s4282_s1 + $0x360] sm:$0xff] }
 0x184   :  { %v3120_v27 = vld [vmem:[%s4282_s1 + $0x3a0] sm:$0xff] }
 0x185   :  { %v3128_v14 = vld [vmem:[%s4282_s1 + $0x3e0] sm:$0xff] }
 0x186   :  { %2028 = vmatpush.bf16.msra.mxu0 %v3069_v44  ;;  %2041 = vmatpush.bf16.msra.mxu1 %v3077_v51  ;;  %v216_v44 = vperm.slane %v3887_v61, 4  ;;  %v187_v51 = vmul.f32 %v3746_v35, %v3484_v62  ;;  %v3109_v62 = vld [vmem:[%s4282_s1 + $0x348] sm:$0xff] }
 0x187   :  { %2054 = vmatpush.bf16.msra.mxu2 %v3085_v47  ;;  %2067 = vmatpush.bf16.msra.mxu3 %v3093_v52  ;;  %v217_v47 = vperm.slane %v3887_v61, 5  ;;  %v188_v52 = vmul.f32 %v3746_v35, %v3491_v12  ;;  %v3117_v12 = vld [vmem:[%s4282_s1 + $0x388] sm:$0xff]  ;;  %v294_v61 = vperm.slane %v3918_v28, 4 }
 0x188   :  { %v264_v35 = vmul.f32 %v216_v44, %v186_v39  ;;  %v3133_v39 = vld [vmem:[%s4282_s1 + $0x408] sm:$0xff] }
 0x189   :  { %v265_v8 = vmul.f32 %v217_v47, %v187_v51  ;;  %v266_v16 = vmul.f32 %v218_v17, %v188_v52  ;;  %v3141_v44 = vld [vmem:[%s4282_s1 + $0x448] sm:$0xff]  ;;  %v3132_v52 = vld [vmem:[%s4282_s1 + $0x400] sm:$0xff] }
 0x18a   :  { %2029 = vmatpush.bf16.msra.mxu0 %v3068_v21  ;;  %2042 = vmatpush.bf16.msra.mxu1 %v3076_v56  ;;  %v297_v21 = vperm.slane %v3918_v28, 7  ;;  %v3100_v56 = vld [vmem:[%s4282_s1 + $0x300] sm:$0xff]  ;;  %v342_v33 = vadd.f32 %v294_v61, %v264_v35  ;;  %v3149_v51 = vld [vmem:[%s4282_s1 + $0x488] sm:$0xff]  ;;  %v370_v35 = vpack.c.bf16 %v3857_v0, %v3857_v0  ;;  %v371_v61 = vpack.c.bf16 %v3860_v34, %v3860_v34  ;;  %v3186_v0 = vld [vmem:[%s4282_s1 + $0x5b0] sm:$0xff] }
 0x18b   :  { %2055 = vmatpush.bf16.msra.mxu2 %v3084_v59  ;;  %2068 = vmatpush.bf16.msra.mxu3 %v3092_v24  ;;  %v3108_v59 = vld [vmem:[%s4282_s1 + $0x340] sm:$0xff]  ;;  %v343_v3 = vadd.f32 %v295_v13, %v265_v8  ;;  %v344_v5 = vadd.f32 %v296_v22, %v266_v16  ;;  %v3157_v47 = vld [vmem:[%s4282_s1 + $0x4c8] sm:$0xff]  ;;  %v3170_v8 = vld [vmem:[%s4282_s1 + $0x530] sm:$0xff]  ;;  %v372_v16 = vpack.c.bf16 %v3862_v50, %v3862_v50 }
 0x18c   :  { %v3116_v24 = vld [vmem:[%s4282_s1 + $0x380] sm:$0xff]  ;;  %v345_v6 = vadd.f32 %v297_v21, %v267_v2  ;;  %v3178_v13 = vld [vmem:[%s4282_s1 + $0x570] sm:$0xff]  ;;  %v373_v22 = vpack.c.bf16 %v3864_v55, %v3864_v55  ;;  %v3169_v50 = vld [vmem:[%s4282_s1 + $0x528] sm:$0xff] }
 0x18d   :  { %2030 = vmatmul.bf16.vlgmr.msra.gmra.mxu0 %v362_v36  ;;  %2043 = vmatmul.bf16.vlgmr.msra.gmra.mxu1 %v363_v37  ;;  %v3124_v28 = vld [vmem:[%s4282_s1 + $0x3c0] sm:$0xff]  ;;  %v366_v36 = vpack.c.bf16 %v342_v33, %v342_v33  ;;  %v367_v37 = vpack.c.bf16 %v343_v3, %v343_v3  ;;  %v3194_v34 = vld [vmem:[%s4282_s1 + $0x5f0] sm:$0xff]  ;;  %v3177_v55 = vld [vmem:[%s4282_s1 + $0x568] sm:$0xff] }
 0x18e   :  { %2074 = vmatpush.bf16.msrb.mxu0 %v3107_v25  ;;  %2087 = vmatpush.bf16.msrb.mxu1 %v3115_v31  ;;  %v3139_v25 = vld [vmem:[%s4282_s1 + $0x438] sm:$0xff]  ;;  %v3140_v17 = vld [vmem:[%s4282_s1 + $0x440] sm:$0xff]  ;;  %v3185_v2 = vld [vmem:[%s4282_s1 + $0x5a8] sm:$0xff] }
 0x18f   :  { %2100 = vmatpush.bf16.msrb.mxu2 %v3123_v1  ;;  %2113 = vmatpush.bf16.msrb.mxu3 %v3131_v29  ;;  %v3147_v31 = vld [vmem:[%s4282_s1 + $0x478] sm:$0xff]  ;;  %v3193_v21 = vld [vmem:[%s4282_s1 + $0x5e8] sm:$0xff] }
 0x190   :  { %2056 = vmatmul.bf16.vlgmr.msra.gmra.mxu2 %v364_v42  ;;  %2069 = vmatmul.bf16.vlgmr.msra.gmra.mxu3 %v365_v10  ;;  %v3155_v1 = vld [vmem:[%s4282_s1 + $0x4b8] sm:$0xff]  ;;  %v368_v42 = vpack.c.bf16 %v344_v5, %v344_v5  ;;  %v369_v10 = vpack.c.bf16 %v345_v6, %v345_v6  ;;  %v3182_v5 = vld [vmem:[%s4282_s1 + $0x590] sm:$0xff] }
 0x191   :  { %v3163_v29 = vld [vmem:[%s4282_s1 + $0x4f8] sm:$0xff]  ;;  %v3190_v6 = vld [vmem:[%s4282_s1 + $0x5d0] sm:$0xff] }
 0x192   :  { %2075 = vmatpush.bf16.msrb.mxu0 %v3106_v9  ;;  %2088 = vmatpush.bf16.msrb.mxu1 %v3114_v11  ;;  %v3138_v9 = vld [vmem:[%s4282_s1 + $0x430] sm:$0xff]  ;;  %v3183_v33 = vld [vmem:[%s4282_s1 + $0x598] sm:$0xff] }
 0x193   :  { %2101 = vmatpush.bf16.msrb.mxu2 %v3122_v18  ;;  %2114 = vmatpush.bf16.msrb.mxu3 %v3130_v49  ;;  %v3146_v11 = vld [vmem:[%s4282_s1 + $0x470] sm:$0xff]  ;;  %v3191_v3 = vld [vmem:[%s4282_s1 + $0x5d8] sm:$0xff] }
 0x194   :  { %v3154_v18 = vld [vmem:[%s4282_s1 + $0x4b0] sm:$0xff] }
 0x195   :  { %v3162_v49 = vld [vmem:[%s4282_s1 + $0x4f0] sm:$0xff] }
 0x196   :  { %2076 = vmatpush.bf16.msrb.mxu0 %v3105_v41  ;;  %2089 = vmatpush.bf16.msrb.mxu1 %v3113_v15  ;;  %v3137_v41 = vld [vmem:[%s4282_s1 + $0x428] sm:$0xff] }
 0x197   :  { %2102 = vmatpush.bf16.msrb.mxu2 %v3121_v54  ;;  %2115 = vmatpush.bf16.msrb.mxu3 %v3129_v38  ;;  %v3145_v15 = vld [vmem:[%s4282_s1 + $0x468] sm:$0xff] }
 0x198   :  { %v3153_v54 = vld [vmem:[%s4282_s1 + $0x4a8] sm:$0xff] }
 0x199   :  { %v3161_v38 = vld [vmem:[%s4282_s1 + $0x4e8] sm:$0xff] }
 0x19a   :  { %2077 = vmatpush.bf16.msrb.mxu0 %v3104_v32  ;;  %2090 = vmatpush.bf16.msrb.mxu1 %v3112_v23  ;;  %v3136_v32 = vld [vmem:[%s4282_s1 + $0x420] sm:$0xff] }
 0x19b   :  { %2103 = vmatpush.bf16.msrb.mxu2 %v3120_v27  ;;  %2116 = vmatpush.bf16.msrb.mxu3 %v3128_v14  ;;  %v3144_v23 = vld [vmem:[%s4282_s1 + $0x460] sm:$0xff] }
 0x19c   :  { %v3152_v27 = vld [vmem:[%s4282_s1 + $0x4a0] sm:$0xff] }
 0x19d   :  { %v3160_v14 = vld [vmem:[%s4282_s1 + $0x4e0] sm:$0xff] }
 0x19e   :  { %2078 = vmatpush.bf16.msrb.mxu0 %v3103_v57  ;;  %2091 = vmatpush.bf16.msrb.mxu1 %v3111_v40  ;;  %v3135_v57 = vld [vmem:[%s4282_s1 + $0x418] sm:$0xff] }
 0x19f   :  { %2104 = vmatpush.bf16.msrb.mxu2 %v3119_v46  ;;  %2117 = vmatpush.bf16.msrb.mxu3 %v3127_v48  ;;  %v3143_v40 = vld [vmem:[%s4282_s1 + $0x458] sm:$0xff] }
 0x1a0   :  { %v3151_v46 = vld [vmem:[%s4282_s1 + $0x498] sm:$0xff] }
 0x1a1   :  { %v3159_v48 = vld [vmem:[%s4282_s1 + $0x4d8] sm:$0xff] }
 0x1a2   :  { %2079 = vmatpush.bf16.msrb.mxu0 %v3102_v58  ;;  %2092 = vmatpush.bf16.msrb.mxu1 %v3110_v60  ;;  %v3134_v58 = vld [vmem:[%s4282_s1 + $0x410] sm:$0xff] }
 0x1a3   :  { %2105 = vmatpush.bf16.msrb.mxu2 %v3118_v63  ;;  %2118 = vmatpush.bf16.msrb.mxu3 %v3126_v7  ;;  %v3142_v60 = vld [vmem:[%s4282_s1 + $0x450] sm:$0xff] }
 0x1a4   :  { %v3150_v63 = vld [vmem:[%s4282_s1 + $0x490] sm:$0xff] }
 0x1a5   :  { %v3158_v7 = vld [vmem:[%s4282_s1 + $0x4d0] sm:$0xff] }
 0x1a6   :  { %2080 = vmatpush.bf16.msrb.mxu0 %v3101_v26  ;;  %2093 = vmatpush.bf16.msrb.mxu1 %v3109_v62  ;;  %v3171_v26 = vld [vmem:[%s4282_s1 + $0x538] sm:$0xff] }
 0x1a7   :  { %2106 = vmatpush.bf16.msrb.mxu2 %v3117_v12  ;;  %2119 = vmatpush.bf16.msrb.mxu3 %v3125_v4  ;;  %v3179_v62 = vld [vmem:[%s4282_s1 + $0x578] sm:$0xff] }
 0x1a8   :  { %v3187_v12 = vld [vmem:[%s4282_s1 + $0x5b8] sm:$0xff] }
 0x1a9   :  { %v3195_v4 = vld [vmem:[%s4282_s1 + $0x5f8] sm:$0xff] }
 0x1aa   :  { %2081 = vmatpush.bf16.msrb.mxu0 %v3100_v56  ;;  %2094 = vmatpush.bf16.msrb.mxu1 %v3108_v59  ;;  %v3168_v56 = vld [vmem:[%s4282_s1 + $0x520] sm:$0xff] }
 0x1ab   :  { %2107 = vmatpush.bf16.msrb.mxu2 %v3116_v24  ;;  %2120 = vmatpush.bf16.msrb.mxu3 %v3124_v28  ;;  %v3176_v59 = vld [vmem:[%s4282_s1 + $0x560] sm:$0xff] }
 0x1ac   :  { %v3184_v24 = vld [vmem:[%s4282_s1 + $0x5a0] sm:$0xff] }
 0x1ad   :  { %2082 = vmatmul.bf16.vlgmr.msrb.gmra.mxu0 %v366_v36  ;;  %2095 = vmatmul.bf16.vlgmr.msrb.gmra.mxu1 %v367_v37  ;;  %v3192_v28 = vld [vmem:[%s4282_s1 + $0x5e0] sm:$0xff]  ;;  %v3165_v36 = vld [vmem:[%s4282_s1 + $0x508] sm:$0xff] }
 0x1ae   :  { %2126 = vmatpush.bf16.msra.mxu0 %v3139_v25  ;;  %2139 = vmatpush.bf16.msra.mxu1 %v3147_v31  ;;  %v3167_v25 = vld [vmem:[%s4282_s1 + $0x518] sm:$0xff]  ;;  %v3173_v37 = vld [vmem:[%s4282_s1 + $0x548] sm:$0xff] }
 0x1af   :  { %2152 = vmatpush.bf16.msra.mxu2 %v3155_v1  ;;  %2165 = vmatpush.bf16.msra.mxu3 %v3163_v29  ;;  %v3175_v31 = vld [vmem:[%s4282_s1 + $0x558] sm:$0xff]  ;;  %v3166_v1 = vld [vmem:[%s4282_s1 + $0x510] sm:$0xff] }
 0x1b0   :  { %2108 = vmatmul.bf16.vlgmr.msrb.gmra.mxu2 %v368_v42  ;;  %2121 = vmatmul.bf16.vlgmr.msrb.gmra.mxu3 %v369_v10  ;;  %v3174_v29 = vld [vmem:[%s4282_s1 + $0x550] sm:$0xff]  ;;  %v3164_v42 = vld [vmem:[%s4282_s1 + $0x500] sm:$0xff] }
 0x1b1   :  { %v3172_v10 = vld [vmem:[%s4282_s1 + $0x540] sm:$0xff] }
 0x1b2   :  { %2127 = vmatpush.bf16.msra.mxu0 %v3138_v9  ;;  %2140 = vmatpush.bf16.msra.mxu1 %v3146_v11  ;;  %v3181_v9 = vld [vmem:[%s4282_s1 + $0x588] sm:$0xff] }
 0x1b3   :  { %2153 = vmatpush.bf16.msra.mxu2 %v3154_v18  ;;  %2166 = vmatpush.bf16.msra.mxu3 %v3162_v49  ;;  %v3189_v11 = vld [vmem:[%s4282_s1 + $0x5c8] sm:$0xff]  ;;  %v3180_v18 = vld [vmem:[%s4282_s1 + $0x580] sm:$0xff] }
 0x1b4   :  { %v3188_v49 = vld [vmem:[%s4282_s1 + $0x5c0] sm:$0xff] }
 0x1b6   :  { %2128 = vmatpush.bf16.msra.mxu0 %v3137_v41  ;;  %2141 = vmatpush.bf16.msra.mxu1 %v3145_v15  ;;  %v374_v41 = vpack.c.bf16 %v3872_v30, %v3872_v30  ;;  %v375_v15 = vpack.c.bf16 %v3889_v43, %v3889_v43 }
 0x1b7   :  { %2154 = vmatpush.bf16.msra.mxu2 %v3153_v54  ;;  %2167 = vmatpush.bf16.msra.mxu3 %v3161_v38  ;;  %v376_v54 = vpack.c.bf16 %v3900_v20, %v3900_v20  ;;  %v377_v38 = vpack.c.bf16 %v3925_v45, %v3925_v45 }
 0x1ba   :  { %2129 = vmatpush.bf16.msra.mxu0 %v3136_v32  ;;  %2142 = vmatpush.bf16.msra.mxu1 %v3144_v23  ;;  %v3197_v32 = vld [vmem:[%s4285_s2] ss:$0 sm:$0xff] }
 0x1bb   :  { %2155 = vmatpush.bf16.msra.mxu2 %v3152_v27  ;;  %2168 = vmatpush.bf16.msra.mxu3 %v3160_v14 }
 0x1be   :  { %2130 = vmatpush.bf16.msra.mxu0 %v3135_v57  ;;  %2143 = vmatpush.bf16.msra.mxu1 %v3143_v40 }
 0x1bf   :  { %2156 = vmatpush.bf16.msra.mxu2 %v3151_v46  ;;  %2169 = vmatpush.bf16.msra.mxu3 %v3159_v48 }
 0x1c2   :  { %2131 = vmatpush.bf16.msra.mxu0 %v3134_v58  ;;  %2144 = vmatpush.bf16.msra.mxu1 %v3142_v60 }
 0x1c3   :  { %2157 = vmatpush.bf16.msra.mxu2 %v3150_v63  ;;  %2170 = vmatpush.bf16.msra.mxu3 %v3158_v7 }
 0x1c6   :  { %2132 = vmatpush.bf16.msra.mxu0 %v3133_v39  ;;  %2145 = vmatpush.bf16.msra.mxu1 %v3141_v44 }
 0x1c7   :  { %2158 = vmatpush.bf16.msra.mxu2 %v3149_v51  ;;  %2171 = vmatpush.bf16.msra.mxu3 %v3157_v47 }
 0x1ca   :  { %2133 = vmatpush.bf16.msra.mxu0 %v3132_v52  ;;  %2146 = vmatpush.bf16.msra.mxu1 %v3140_v17 }
 0x1cb   :  { %2159 = vmatpush.bf16.msra.mxu2 %v3148_v53  ;;  %2172 = vmatpush.bf16.msra.mxu3 %v3156_v19 }
 0x1cd   :  { %2134 = vmatmul.bf16.vlgmr.msra.gmra.mxu0 %v370_v35  ;;  %2147 = vmatmul.bf16.vlgmr.msra.gmra.mxu1 %v371_v61 }
 0x1ce   :  { %2178 = vmatpush.bf16.msrb.mxu0 %v3171_v26  ;;  %2191 = vmatpush.bf16.msrb.mxu1 %v3179_v62 }
 0x1cf   :  { %2204 = vmatpush.bf16.msrb.mxu2 %v3187_v12  ;;  %2217 = vmatpush.bf16.msrb.mxu3 %v3195_v4 }
 0x1d0   :  { %2160 = vmatmul.bf16.vlgmr.msra.gmra.mxu2 %v372_v16  ;;  %2173 = vmatmul.bf16.vlgmr.msra.gmra.mxu3 %v373_v22 }
 0x1d2   :  { %2179 = vmatpush.bf16.msrb.mxu0 %v3170_v8  ;;  %2192 = vmatpush.bf16.msrb.mxu1 %v3178_v13 }
 0x1d3   :  { %2205 = vmatpush.bf16.msrb.mxu2 %v3186_v0  ;;  %2218 = vmatpush.bf16.msrb.mxu3 %v3194_v34 }
 0x1d6   :  { %2180 = vmatpush.bf16.msrb.mxu0 %v3169_v50  ;;  %2193 = vmatpush.bf16.msrb.mxu1 %v3177_v55 }
 0x1d7   :  { %2206 = vmatpush.bf16.msrb.mxu2 %v3185_v2  ;;  %2219 = vmatpush.bf16.msrb.mxu3 %v3193_v21 }
 0x1da   :  { %2181 = vmatpush.bf16.msrb.mxu0 %v3168_v56  ;;  %2194 = vmatpush.bf16.msrb.mxu1 %v3176_v59 }
 0x1db   :  { %2207 = vmatpush.bf16.msrb.mxu2 %v3184_v24  ;;  %2220 = vmatpush.bf16.msrb.mxu3 %v3192_v28 }
 0x1de   :  { %2182 = vmatpush.bf16.msrb.mxu0 %v3167_v25  ;;  %2195 = vmatpush.bf16.msrb.mxu1 %v3175_v31 }
 0x1df   :  { %2208 = vmatpush.bf16.msrb.mxu2 %v3183_v33  ;;  %2221 = vmatpush.bf16.msrb.mxu3 %v3191_v3 }
 0x1e2   :  { %2183 = vmatpush.bf16.msrb.mxu0 %v3166_v1  ;;  %2196 = vmatpush.bf16.msrb.mxu1 %v3174_v29 }
 0x1e3   :  { %2209 = vmatpush.bf16.msrb.mxu2 %v3182_v5  ;;  %2222 = vmatpush.bf16.msrb.mxu3 %v3190_v6 }
 0x1e6   :  { %2184 = vmatpush.bf16.msrb.mxu0 %v3165_v36  ;;  %2197 = vmatpush.bf16.msrb.mxu1 %v3173_v37 }
 0x1e7   :  { %2210 = vmatpush.bf16.msrb.mxu2 %v3181_v9  ;;  %2223 = vmatpush.bf16.msrb.mxu3 %v3189_v11 }
 0x1e9   :  { %v1927_v23 = vpop.f32.mrf.mxu0  ;;  %v1940_v27 = vpop.f32.mrf.mxu1 }
 0x1ea   :  { %2185 = vmatpush.bf16.msrb.mxu0 %v3164_v42  ;;  %2198 = vmatpush.bf16.msrb.mxu1 %v3172_v10  ;;  %v1928_v30 = vadd.f32 %v3197_v32, %v1927_v23 }
 0x1eb   :  { %2211 = vmatpush.bf16.msrb.mxu2 %v3180_v18  ;;  %2224 = vmatpush.bf16.msrb.mxu3 %v3188_v49 }
 0x1ec   :  { %v1941_v14 = vadd.f32 %v1940_v27, %v1928_v30 }
 0x1ed   :  { %2186 = vmatmul.bf16.vlgmr.msrb.gmra.mxu0 %v374_v41  ;;  %2199 = vmatmul.bf16.vlgmr.msrb.gmra.mxu1 %v375_v15 }
 0x1ee   :  { %2212 = vmatmul.bf16.vlgmr.msrb.gmra.mxu2 %v376_v54  ;;  %2225 = vmatmul.bf16.vlgmr.msrb.gmra.mxu3 %v377_v38 }
 0x1f0   :  { %v1953_v57 = vpop.f32.mrf.mxu2  ;;  %v1966_v43 = vpop.f32.mrf.mxu3 }
 0x1f1   :  { %v1954_v40 = vadd.f32 %v1953_v57, %v1941_v14  ;;  %v1929_v46 = vpop.f32.mrf.mxu0  ;;  %v1942_v20 = vpop.f32.mrf.mxu1 }
 0x1f3   :  { %v1967_v48 = vadd.f32 %v1966_v43, %v1954_v40 }
 0x1f8   :  { %v1955_v58 = vpop.f32.mrf.mxu2  ;;  %v1968_v45 = vpop.f32.mrf.mxu3 }
 0x1f9   :  { %v1979_v60 = vpop.f32.mrf.mxu0  ;;  %v1992_v63 = vpop.f32.mrf.mxu1 }
 0x1fa   :  { %v1980_v7 = vadd.f32 %v1979_v60, %v1967_v48 }
 0x1fc   :  { %v1993_v39 = vadd.f32 %v1992_v63, %v1980_v7 }
 0x200   :  { %v2005_v44 = vpop.f32.mrf.mxu2  ;;  %v2018_v51 = vpop.f32.mrf.mxu3 }
 0x201   :  { %v2006_v47 = vadd.f32 %v2005_v44, %v1993_v39  ;;  %v1981_v52 = vpop.f32.mrf.mxu0  ;;  %v1994_v17 = vpop.f32.mrf.mxu1 }
 0x203   :  { %v2019_v53 = vadd.f32 %v2018_v51, %v2006_v47 }
 0x208   :  { %v2007_v19 = vpop.f32.mrf.mxu2  ;;  %v2020_v26 = vpop.f32.mrf.mxu3 }
 0x20a   :  { %v2031_v62 = vpop.f32.mrf.mxu0  ;;  %v2044_v12 = vpop.f32.mrf.mxu1 }
 0x20b   :  { %v2032_v4 = vadd.f32 %v2031_v62, %v2019_v53 }
 0x20d   :  { %v2045_v35 = vadd.f32 %v2044_v12, %v2032_v4 }
 0x212   :  { %v2033_v16 = vpop.f32.mrf.mxu0  ;;  %v2046_v22 = vpop.f32.mrf.mxu1 }
 0x213   :  { %v2057_v61 = vpop.f32.mrf.mxu2  ;;  %v2070_v8 = vpop.f32.mrf.mxu3 }
 0x214   :  { %v2058_v13 = vadd.f32 %v2057_v61, %v2045_v35 }
 0x216   :  { %v2071_v0 = vadd.f32 %v2070_v8, %v2058_v13 }
 0x21b   :  { %v2059_v34 = vpop.f32.mrf.mxu2  ;;  %v2072_v50 = vpop.f32.mrf.mxu3 }
 0x22a   :  { %v2083_v55 = vpop.f32.mrf.mxu0  ;;  %v2096_v2 = vpop.f32.mrf.mxu1 }
 0x22b   :  { %v2084_v3 = vadd.f32 %v2083_v55, %v2071_v0 }
 0x22d   :  { %v2097_v36 = vadd.f32 %v2096_v2, %v2084_v3 }
 0x232   :  { %v2085_v59 = vpop.f32.mrf.mxu0  ;;  %v2098_v24 = vpop.f32.mrf.mxu1 }
 0x233   :  { %v2109_v21 = vpop.f32.mrf.mxu2  ;;  %v2122_v56 = vpop.f32.mrf.mxu3 }
 0x234   :  { %v2110_v37 = vadd.f32 %v2109_v21, %v2097_v36 }
 0x236   :  { %v2123_v42 = vadd.f32 %v2122_v56, %v2110_v37 }
 0x23b   :  { %v2111_v28 = vpop.f32.mrf.mxu2  ;;  %v2124_v25 = vpop.f32.mrf.mxu3 }
 0x24a   :  { %v2135_v31 = vpop.f32.mrf.mxu0  ;;  %v2148_v33 = vpop.f32.mrf.mxu1 }
 0x24b   :  { %v2136_v10 = vadd.f32 %v2135_v31, %v2123_v42 }
 0x24d   :  { %v2149_v18 = vadd.f32 %v2148_v33, %v2136_v10 }
 0x252   :  { %v2137_v5 = vpop.f32.mrf.mxu0  ;;  %v2150_v6 = vpop.f32.mrf.mxu1 }
 0x253   :  { %v2161_v1 = vpop.f32.mrf.mxu2  ;;  %v2174_v29 = vpop.f32.mrf.mxu3 }
 0x254   :  { %v2162_v49 = vadd.f32 %v2161_v1, %v2149_v18 }
 0x256   :  { %v2175_v41 = vadd.f32 %v2174_v29, %v2162_v49 }
 0x25b   :  { %v2163_v9 = vpop.f32.mrf.mxu2  ;;  %v2176_v11 = vpop.f32.mrf.mxu3 }
 0x26a   :  { %v2187_v15 = vpop.f32.mrf.mxu0  ;;  %v2200_v54 = vpop.f32.mrf.mxu1 }
 0x26b   :  { %v2188_v38 = vadd.f32 %v2187_v15, %v2175_v41 }
 0x26d   :  { %v2201_v32 = vadd.f32 %v2200_v54, %v2188_v38 }
 0x271   :  { %v2213_v23 = vpop.f32.mrf.mxu2  ;;  %v2226_v27 = vpop.f32.mrf.mxu3 }
 0x272   :  { %v2214_v30 = vadd.f32 %v2213_v23, %v2201_v32  ;;  %v2189_v14 = vpop.f32.mrf.mxu0  ;;  %v2202_v57 = vpop.f32.mrf.mxu1 }
 0x274   :  { %v2227_v43 = vadd.f32 %v2226_v27, %v2214_v30 }
 0x276   :  { %v2230_v40 = vpack.c.bf16 %v2227_v43, %v2227_v43 }
 0x278   :  { %2231 = vst [vmem:[%s4286_s5] sm:$0xf] %v2230_v40 }
 0x279   :  { %v2215_v46 = vpop.f32.mrf.mxu2  ;;  %v2228_v20 = vpop.f32.mrf.mxu3 }

// kernel: forward.28
= control target key start
LH: loop header
LB: loop body
LE: loop exit
PB: predicated region body
PF: predicated region fallthrough
CT: control target
= control target key end

     0   :  { %s881_s15 = smov 0   ;;  %s883_s16 = smov 0   ;;  %s984_s0 = inlined_call_operand.vmem [shape: bf16[16,128], index: 0, kind: input, shape index: {}]   ;;  %s985_s1 = inlined_call_operand.vmem [shape: bf16[128,384], index: 1, kind: input, shape index: {}]   ;;  %s986_s2 = inlined_call_operand.vmem [shape: f32[1,128], index: 2, kind: input, shape index: {}]   ;;  %s987_s3 = inlined_call_operand.vmem [shape: f32[1,128], index: 3, kind: input, shape index: {}]   ;;  %s988_s4 = inlined_call_operand.vmem [shape: bf16[16,384], index: 4, kind: output, shape index: {}]  }
   0x1   :  { %s885_s17 = smov 0   ;;  %s887_s18 = smov 0  }
   0x2   :  { %s889_s19 = smov 0  }
   0x3 LB: > { %s29_s20 = sadd.s32 1, %s849_s18  ;;  %s701_s21 = sadd.s32 4294967295, %s853_s19   ;;  %s853_s19 = sphi %s889_s19, %s14_s19   ;;  %s849_s18 = sphi %s887_s18, %s993_s18   ;;  %s845_s17 = sphi %s885_s17, %s992_s17   ;;  %s841_s16 = sphi %s883_s16, %s991_s16   ;;  %s837_s15 = sphi %s881_s15, %s990_s15  }
   0x4   : > { %p31_p0 = scmp.ge.s32.totalorder %s29_s20, 3  ;;  %p77_p1 = scmp.ne.s32.totalorder %s841_s16, %s837_s15 }
   0x5   : > { %p78_p2 = scmp.eq.s32.totalorder %s853_s19, 0  ;;  %p161_p4 = scmp.eq.s32.totalorder %s701_s21, 2 }
   0x6   : > { %s995_s20 = smov (%p31_p0, %s29_s20), 0  ;;  %s70_s23 = sadd.s32 1, %s841_s16 }
   0x7   : > { %p79_p3 = por %p78_p2, %p77_p1  ;;  %s66_s22 = ssub.s32 %s849_s18, %s995_s20 }
   0x8   : > { %p68_p5 = scmp.eq.s32.totalorder %s66_s22, 0  ;;  %p916_p6 = por %p161_p4, %p77_p1 }
   0x9   : > { %p707_p7 = scmp.ge.s32.totalorder %s853_s19, 3 }
   0xa   : > { %s921_s25 = scalar_select %p68_p5, %s841_s16, %s70_s23  }
   0xb   : > { %207 = sbr.rel (%p707_p7) target bundleno = 36 (0x24), region = 28 }
  0x10   : > { %210 = sbr.rel (!%p79_p3) target bundleno = 36 (0x24), region = 32  ;;  %s212_s26 = sand.u32 (%p79_p3), 1, %s841_s16  }
  0x11   : > { %s709_s27 = sshll.u32 (%p79_p3), %s849_s18, 2  ;;  %s708_s28 = sshll.u32 (%p79_p3), %s212_s26, 6 }
  0x12   : > { %s929_s5 = scalar_lea.vmem (%p79_p3), %s985_s1, %s709_s27  ;;  %s214_s6 = scalar_lea.vmem (%p79_p3), [#allocation2], %s708_s28 }
  0x13   : > { %v236_v0 = vld [vmem:[%s929_s5] sm:$0xf] (%p79_p3)  ;;  %v238_v1 = vld [vmem:[%s929_s5 + $0xc] sm:$0xf] (%p79_p3)  ;;  %v240_v2 = vld [vmem:[%s929_s5 + $0x18] sm:$0xf] (%p79_p3) }
  0x14   : > { %237 = vst [vmem:[%s214_s6] sm:$0xf] (%p79_p3), %v236_v0  ;;  %v242_v3 = vld [vmem:[%s929_s5 + $0x24] sm:$0xf] (%p79_p3)  ;;  %v244_v4 = vld [vmem:[%s929_s5 + $0x30] sm:$0xf] (%p79_p3) }
  0x15   : > { %239 = vst [vmem:[%s214_s6 + $0x4] sm:$0xf] %v238_v1  ;;  %v246_v5 = vld [vmem:[%s929_s5 + $0x3c] sm:$0xf]  ;;  %v248_v6 = vld [vmem:[%s929_s5 + $0x48] sm:$0xf] }
  0x16   : > { %241 = vst [vmem:[%s214_s6 + $0x8] sm:$0xf] %v240_v2  ;;  %v250_v7 = vld [vmem:[%s929_s5 + $0x54] sm:$0xf]  ;;  %v252_v8 = vld [vmem:[%s929_s5 + $0x60] sm:$0xf] }
  0x17   : > { %243 = vst [vmem:[%s214_s6 + $0xc] sm:$0xf] %v242_v3  ;;  %v254_v9 = vld [vmem:[%s929_s5 + $0x6c] sm:$0xf]  ;;  %v256_v10 = vld [vmem:[%s929_s5 + $0x78] sm:$0xf] }
  0x18   : > { %245 = vst [vmem:[%s214_s6 + $0x10] sm:$0xf] %v244_v4  ;;  %v258_v11 = vld [vmem:[%s929_s5 + $0x84] sm:$0xf]  ;;  %v260_v12 = vld [vmem:[%s929_s5 + $0x90] sm:$0xf] }
  0x19   : > { %247 = vst [vmem:[%s214_s6 + $0x14] sm:$0xf] %v246_v5  ;;  %v262_v13 = vld [vmem:[%s929_s5 + $0x9c] sm:$0xf]  ;;  %v264_v14 = vld [vmem:[%s929_s5 + $0xa8] sm:$0xf] }
  0x1a   : > { %249 = vst [vmem:[%s214_s6 + $0x18] sm:$0xf] %v248_v6  ;;  %v266_v15 = vld [vmem:[%s929_s5 + $0xb4] sm:$0xf] }
  0x1b   : > { %251 = vst [vmem:[%s214_s6 + $0x1c] sm:$0xf] %v250_v7 }
  0x1c   : > { %253 = vst [vmem:[%s214_s6 + $0x20] sm:$0xf] %v252_v8 }
  0x1d   : > { %255 = vst [vmem:[%s214_s6 + $0x24] sm:$0xf] %v254_v9 }
  0x1e   : > { %257 = vst [vmem:[%s214_s6 + $0x28] sm:$0xf] %v256_v10 }
  0x1f   : > { %259 = vst [vmem:[%s214_s6 + $0x2c] sm:$0xf] %v258_v11 }
  0x20   : > { %261 = vst [vmem:[%s214_s6 + $0x30] sm:$0xf] %v260_v12 }
  0x21   : > { %263 = vst [vmem:[%s214_s6 + $0x34] sm:$0xf] %v262_v13 }
  0x22   : > { %265 = vst [vmem:[%s214_s6 + $0x38] sm:$0xf] %v264_v14 }
  0x23   : > { %267 = vst [vmem:[%s214_s6 + $0x3c] sm:$0xf] %v266_v15 }
  0x24 PF: > { %p710_p8 = scmp.ge.s32.totalorder %s853_s19, 1  ;;  %p322_p9 = scmp.lt.s32.totalorder %s853_s19, 4 }
  0x26   : > { %p323_p10 = pnand %p710_p8, %p322_p9 }
  0x27   : > { %s329_s9 = sand.u32 (!%p323_p10), 1, %s837_s15  }
  0x28   : > { %326 = sbr.rel (%p323_p10) target bundleno = 470 (0x1d6), region = 73  ;;  %s711_s10 = sshll.u32 (!%p323_p10), %s329_s9, 6 }
  0x29   : > { %s331_s11 = scalar_lea.vmem (!%p323_p10), [#allocation2], %s711_s10  ;;  %s712_s22 = sshll.u32 (!%p323_p10), %s329_s9, 3 }
  0x2a   : > { %s366_s23 = scalar_lea.vmem (!%p323_p10), [#allocation3], %s712_s22 }
  0x2d   : > { %v758_v16 = vld [vmem:[%s984_s0] sm:$0xff]   ;;  %v855_v19 = vmov 128.0   ;;  %v756_v34 = vld [vmem:[%s331_s11 + $0x38] sm:$0xff]  ;;  %v755_v35 = vld [vmem:[%s331_s11 + $0x30] sm:$0xff]  ;;  %s746_s26 = sshll.u32 (%p916_p6), %s845_s17, 2 }
  0x2e   : > { %v759_v17 = vunpack.c.l.bf16 %v758_v16  ;;  %v760_v18 = vunpack.c.h.bf16 %v758_v16  ;;  %809 = vrcp.f32 %v855_v19  ;;  %512 = vmatpush.bf16.msra.mxu0 %v756_v34  ;;  %v754_v36 = vld [vmem:[%s331_s11 + $0x28] sm:$0xff]  ;;  %v753_v37 = vld [vmem:[%s331_s11 + $0x20] sm:$0xff]  ;;  %v752_v38 = vld [vmem:[%s331_s11 + $0x18] sm:$0xff]  ;;  %s541_s29 = scalar_lea.vmem (%p916_p6), %s988_s4, %s746_s26 }
  0x2f   : > { %v751_v39 = vld [vmem:[%s331_s11 + $0x10] sm:$0xff]  ;;  %v750_v40 = vld [vmem:[%s331_s11 + $0x8] sm:$0xff]  ;;  %v749_v42 = vld [vmem:[%s331_s11] sm:$0xff] }
  0x30   : > { %388 = vadd.xlane.f32.xlu0 %v759_v17  ;;  %v807_v61 = vld [vmem:[%s986_s2] ss:$0 sm:$0xff] }
  0x31   : > { %v808_v2 = vld [vmem:[%s987_s3] ss:$0 sm:$0xff] }
  0x32   : > { %513 = vmatpush.bf16.msra.mxu0 %v755_v35 }
  0x34   : > { %v810_v20 = vpop.eup %809 }
  0x35   : > { %v393_v21 = vmul.f32 128.0, %v810_v20  ;;  %vm397_vm0 = vweird.f32 %v810_v20 }
  0x36   : > { %514 = vmatpush.bf16.msra.mxu0 %v754_v36 }
  0x37   : > { %v394_v22 = vsub.f32 1.0, %v393_v21 }
  0x38   : > { %390 = vadd.xlane.f32.xlu0 %v760_v18 }
  0x39   : > { %v395_v23 = vmul.f32 %v810_v20, %v394_v22 }
  0x3a   : > { %515 = vmatpush.bf16.msra.mxu0 %v753_v37 }
  0x3b   : > { %v396_v24 = vadd.f32 %v810_v20, %v395_v23 }
  0x3d   : > { %v398_v25 = vsel %vm397_vm0, %v810_v20, %v396_v24 }
  0x3e   : > { %516 = vmatpush.bf16.msra.mxu0 %v752_v38 }
  0x42   : > { %517 = vmatpush.bf16.msra.mxu0 %v751_v39 }
  0x46   : > { %518 = vmatpush.bf16.msra.mxu0 %v750_v40 }
  0x4a   : > { %519 = vmatpush.bf16.msra.mxu0 %v749_v42 }
  0xa3   : > { %v389_v26 = vpop.xlane.xlu0 %388 }
  0xa4   : > { %v399_v27 = vmul.f32 %v398_v25, %v389_v26 }
  0xa6   : > { %v401_v28 = vsub.f32 %v759_v17, %v399_v27 }
  0xa8   : > { %v403_v29 = vmul.f32 %v401_v28, %v401_v28 }
  0xaa   : > { %405 = vadd.xlane.f32.xlu1 %v403_v29 }
  0xab   : > { %v391_v30 = vpop.xlane.xlu0 %390 }
  0xac   : > { %v400_v31 = vmul.f32 %v398_v25, %v391_v30 }
  0xae   : > { %v402_v32 = vsub.f32 %v760_v18, %v400_v31 }
  0xb0   : > { %v404_v33 = vmul.f32 %v402_v32, %v402_v32 }
  0xb2   : > { %407 = vadd.xlane.f32.xlu1 %v404_v33 }
 0x11d   : > { %v406_v41 = vpop.xlane.xlu1 %405 }
 0x11e   : > { %v409_v43 = vmul.f32 %v406_v41, %v398_v25 }
 0x120   : > { %v411_v44 = vadd.f32 1e-05, %v409_v43 }
 0x122   : > { %811 = vrsqrt.f32 %v411_v44  ;;  %vm419_vm2 = vweird.f32 %v411_v44 }
 0x125   : > { %v408_v45 = vpop.xlane.xlu1 %407 }
 0x126   : > { %v410_v46 = vmul.f32 %v408_v45, %v398_v25 }
 0x128   : > { %v812_v47 = vpop.eup %811  ;;  %v412_v48 = vadd.f32 1e-05, %v410_v46 }
 0x129   : > { %v414_v49 = vmul.f32 %v812_v47, %v411_v44  ;;  %vm420_vm1 = vweird.f32 %v812_v47 }
 0x12a   : > { %813 = vrsqrt.f32 %v412_v48  ;;  %vm421_vm3 = vmor %vm419_vm2, %vm420_vm1  ;;  %vm429_vm5 = vweird.f32 %v412_v48 }
 0x12b   : > { %v415_v50 = vmul.f32 %v812_v47, %v414_v49 }
 0x12d   : > { %v416_v51 = vmul.f32 0.5, %v415_v50 }
 0x12f   : > { %v417_v52 = vsub.f32 1.5, %v416_v51 }
 0x130   : > { %v814_v53 = vpop.eup %813 }
 0x131   : > { %v418_v54 = vmul.f32 %v812_v47, %v417_v52  ;;  %v424_v55 = vmul.f32 %v814_v53, %v412_v48  ;;  %vm430_vm4 = vweird.f32 %v814_v53 }
 0x132   : > { %vm431_vm6 = vmor %vm429_vm5, %vm430_vm4 }
 0x133   : > { %v425_v56 = vmul.f32 %v814_v53, %v424_v55  ;;  %v422_v58 = vsel %vm421_vm3, %v812_v47, %v418_v54 }
 0x134   : > { %v433_v60 = vmul.f32 %v422_v58, %v401_v28 }
 0x135   : > { %v426_v57 = vmul.f32 0.5, %v425_v56 }
 0x136   : > { %v439_v1 = vmul.f32 %v807_v61, %v433_v60 }
 0x137   : > { %v427_v59 = vsub.f32 1.5, %v426_v57 }
 0x138   : > { %v445_v4 = vadd.f32 %v808_v2, %v439_v1 }
 0x139   : > { %v428_v62 = vmul.f32 %v814_v53, %v427_v59 }
 0x13b   : > { %v432_v63 = vsel %vm431_vm6, %v814_v53, %v428_v62 }
 0x13c   : > { %v434_v0 = vmul.f32 %v432_v63, %v402_v32 }
 0x13e   : > { %v440_v3 = vmul.f32 %v807_v61, %v434_v0 }
 0x140   : > { %v446_v5 = vadd.f32 %v808_v2, %v440_v3 }
 0x142   : > { %v447_v6 = vpack.c.bf16 %v446_v5, %v445_v4 }
 0x144   : > { %520 = vmatmul.bf16.vlgmr.msra.gmra.mxu0 %v447_v6 }
 0x1c1   : > { %v521_v7 = vpop.f32.mrf.mxu0 }
 0x1c8   : > { %536 = sbr.rel (!%p916_p6) target bundleno = 470 (0x1d6), region = 81 }
 0x1c9   : > { %v523_v8 = vpop.f32.mrf.mxu0 }
 0x1ca   : > { %v764_v9 = vpack.c.bf16 %v523_v8, %v521_v7 }
 0x1cc   : > { %765 = vst [vmem:[%s366_s23] sm:$0xff] %v764_v9  }
 0x1d3   : > { %v558_v10 = vld [vmem:[%s366_s23] sm:$0xf]  ;;  %v560_v11 = vld [vmem:[%s366_s23 + $0x4] sm:$0xf] }
 0x1d4   : > { %559 = vst [vmem:[%s541_s29] sm:$0xf] %v558_v10 }
 0x1d5   : > { %561 = vst [vmem:[%s541_s29 + $0xc] sm:$0xf] %v560_v11 }
 0x1d6 PF: > { %s14_s19 = sadd.s32 1, %s853_s19   ;;  %s990_s15 = smov %s841_s16 }
 0x1d7   : > { %p11_p11 = scmp.ge.s32.totalorder %s14_s19, 5   ;;  %s991_s16 = smov %s921_s25 }
 0x1d8   : > { %s992_s17 = smov %s849_s18  ;;  %s993_s18 = smov %s995_s20 }
 0x1d9   :  { %13 = sbr.rel (!%p11_p11) target bundleno = 3 (0x3), region = 162 }

// kernel: forward.30
= control target key start
LH: loop header
LB: loop body
LE: loop exit
PB: predicated region body
PF: predicated region fallthrough
CT: control target
= control target key end

     0   :  { %s237_s1 = inlined_call_operand.vmem [shape: bf16[128,128], index: 1, kind: input, shape index: {}]   ;;  %s238_s2 = inlined_call_operand.vmem [shape: f32[1,128], index: 2, kind: input, shape index: {}]   ;;  %s239_s0 = inlined_call_operand.vmem [shape: bf16[16,128], index: 0, kind: input, shape index: {}]   ;;  %s240_s3 = inlined_call_operand.vmem [shape: bf16[16,128], index: 3, kind: input, shape index: {}]   ;;  %s241_s4 = inlined_call_operand.vmem [shape: bf16[16,128], index: 4, kind: output, shape index: {}]  }
   0x1   :  { %v165_v0 = vld [vmem:[%s237_s1 + $0x38] sm:$0xff]  ;;  %v164_v1 = vld [vmem:[%s237_s1 + $0x30] sm:$0xff]  ;;  %v163_v2 = vld [vmem:[%s237_s1 + $0x28] sm:$0xff] }
   0x2   :  { %93 = vmatpush.bf16.msra.mxu0 %v165_v0  ;;  %v162_v3 = vld [vmem:[%s237_s1 + $0x20] sm:$0xff]  ;;  %v161_v4 = vld [vmem:[%s237_s1 + $0x18] sm:$0xff]  ;;  %v160_v5 = vld [vmem:[%s237_s1 + $0x10] sm:$0xff] }
   0x3   :  { %v159_v6 = vld [vmem:[%s237_s1 + $0x8] sm:$0xff]  ;;  %v158_v7 = vld [vmem:[%s237_s1] sm:$0xff] }
   0x4   :  { %v157_v8 = vld [vmem:[%s239_s0] sm:$0xff] }
   0x5   :  { %v175_v10 = vld [vmem:[%s238_s2] ss:$0 sm:$0xff] }
   0x6   :  { %94 = vmatpush.bf16.msra.mxu0 %v164_v1  ;;  %v167_v11 = vld [vmem:[%s240_s3] sm:$0xff]  }
   0x7   :  { %v168_v13 = vunpack.c.l.bf16 %v167_v11  ;;  %v169_v14 = vunpack.c.h.bf16 %v167_v11 }
   0xa   :  { %95 = vmatpush.bf16.msra.mxu0 %v163_v2 }
   0xe   :  { %96 = vmatpush.bf16.msra.mxu0 %v162_v3 }
  0x12   :  { %97 = vmatpush.bf16.msra.mxu0 %v161_v4 }
  0x16   :  { %98 = vmatpush.bf16.msra.mxu0 %v160_v5 }
  0x1a   :  { %99 = vmatpush.bf16.msra.mxu0 %v159_v6 }
  0x1e   :  { %100 = vmatpush.bf16.msra.mxu0 %v158_v7 }
  0x21   :  { %101 = vmatmul.bf16.vlgmr.msra.gmra.mxu0 %v157_v8 }
  0x9e   :  { %v102_v9 = vpop.f32.mrf.mxu0 }
  0x9f   :  { %v103_v12 = vadd.f32 %v175_v10, %v102_v9 }
  0xa1   :  { %v111_v17 = vadd.f32 %v168_v13, %v103_v12 }
  0xa6   :  { %v104_v15 = vpop.f32.mrf.mxu0 }
  0xa7   :  { %v105_v16 = vadd.f32 %v175_v10, %v104_v15 }
  0xa9   :  { %v112_v18 = vadd.f32 %v169_v14, %v105_v16 }
  0xab   :  { %v173_v19 = vpack.c.bf16 %v112_v18, %v111_v17 }
  0xad   :  { %174 = vst [vmem:[%s241_s4] sm:$0xff] %v173_v19  }

// kernel: forward.29
= control target key start
LH: loop header
LB: loop body
LE: loop exit
PB: predicated region body
PF: predicated region fallthrough
CT: control target
= control target key end

     0   :  { %s789_s12 = smov 0   ;;  %s791_s13 = smov 0   ;;  %s896_s0 = inlined_call_operand.vmem [shape: bf16[2,8,384], index: 0, kind: input, shape index: {}, may-alias: {0,1,2}]   ;;  %s897_s1 = inlined_call_operand.vmem [shape: bf16[2,8,384], index: 1, kind: input, shape index: {}, may-alias: {0,1,2}]   ;;  %s898_s2 = inlined_call_operand.vmem [shape: bf16[2,8,384], index: 2, kind: input, shape index: {}, may-alias: {0,1,2}]   ;;  %s899_s3 = inlined_call_operand.vmem [shape: bf16[2,8,128], index: 3, kind: output, shape index: {}]  }
   0x1   :  { %s793_s14 = smov 0  }
   0x2 LB: > { %s25_s15 = sadd.s32 1, %s760_s13  ;;  %p681_p0 = scmp.ge.s32.totalorder %s764_s14, 1  ;;  %s764_s14 = sphi %s793_s14, %s13_s14   ;;  %s760_s13 = sphi %s791_s13, %s901_s13   ;;  %s756_s12 = sphi %s789_s12, %s900_s12  }
   0x3   : > { %p27_p1 = scmp.ge.s32.totalorder %s25_s15, 2  ;;  %p179_p2 = scmp.lt.s32.totalorder %s764_s14, 3 }
   0x5   : > { %s903_s15 = smov (%p27_p1, %s25_s15), 0  ;;  %p180_p3 = pnand %p681_p0, %p179_p2 }
   0x6   : > { %p221_p4 = scmp.lt.s32.totalorder (!%p180_p3), %s756_s12, 1  ;;  %s766_s23 = smov (!%p180_p3), 96  }
   0x7   : > { %183 = sbr.rel (%p180_p3) target bundleno = 1086 (0x43e), region = 32  ;;  %s767_s24 = smov (!%p180_p3), 64  }
   0x8   : > { %s768_s25 = smov (!%p180_p3), 32  }
   0xc   : > { %s905_s12 = smov (!%p221_p4, %s756_s12), 1  ;;  %vm255_vm0 = vcmask 261120   ;;  %v253_v9 = vlaneseq  ;;  %vm277_vm2 = vcmask 64512   ;;  %vm306_vm3 = vcmask 1043456  }
   0xd   : > { %s810_s16 = smul.u32 12, %s905_s12  ;;  %s685_s29 = sshll.u32 %s905_s12, 2 }
   0xe   : > { %v828_v11 = vand.u32 127, %v253_v9  ;;  %s248_s5 = scalar_lea.vmem %s899_s3, %s685_s29 }
   0xf   : > { %s622_s19 = scalar_lea.vmem %s897_s1, %s810_s16  ;;  %s229_s22 = scalar_lea.vmem %s896_s0, %s810_s16 }
  0x10   : > { %v686_v0 = vld [vmem:[%s622_s19 + $0x4] sm:$0xf]  ;;  %v250_v4 = vld [vmem:[%s229_s22] sm:$0xf]  ;;  %vm275_vm1 = vcmp.lt.s32.totalorder %v828_v11, 5  ;;  %s626_s28 = scalar_lea.vmem %s898_s2, %s810_s16 }
  0x11   : > { %v260_v1 = vsel %vm255_vm0, %v686_v0, 0  ;;  %v329_v2 = vunpack.c.l.b16 %v686_v0  ;;  %v324_v5 = vunpack.c.l.b16 %v250_v4  ;;  %v687_v29 = vld [vmem:[%s626_s28 + $0x8] sm:$0xf] }
  0x12   : > { %269 = vmatpush.bf16.xpose.msra.mxu0 %v260_v1  ;;  %v308_v31 = vsel %vm306_vm3, %v687_v29, 0  ;;  %v379_v45 = vunpack.c.l.b16 %v687_v29 }
  0x13   : > { %v330_v3 = vpack.c.b16 %v329_v2, %v329_v2  ;;  %v325_v6 = vpack.c.b16 %v324_v5, %v324_v5  ;;  %317 = vmatpush.bf16.msra.mxu1 %v308_v31 }
  0x14   : > { %v380_v49 = vpack.c.b16 %v379_v45, %v379_v45 }
  0x15   : > { %331 = vrot.lane.b32.xlu1 %v330_v3, %s766_s23  ;;  %404 = vrot.lane.b32.xlu2 %v330_v3, %s767_s24 }
  0x19   : > { %688 = vmatmul.msk.bf16.vlgmr.msra.gmra.mxu0 %vm255_vm0, %v250_v4 }
  0x1d   : > { %326 = vrot.lane.b32.xlu1 %v325_v6, %s766_s23  ;;  %474 = vrot.lane.b32.xlu2 %v330_v3, %s768_s25 }
  0x25   : > { %472 = vrot.lane.b32.xlu1 %v325_v6, %s768_s25 }
  0x6f   : > { %v405_v16 = vpop.permute.xlu2 %404 }
  0x70   : > { %v410_v30 = vsel %vm255_vm0, %v405_v16, 0 }
  0x71   : > { %419 = vmatpush.bf16.xpose.msrb.mxu1 %v410_v30 }
  0x77   : > { %v475_v17 = vpop.permute.xlu2 %474 }
  0x78   : > { %v480_v18 = vsel %vm255_vm0, %v475_v17, 0 }
  0x79   : > { %489 = vmatpush.bf16.xpose.msrb.mxu0 %v480_v18 }
  0x87   : > { %v332_v7 = vpop.permute.xlu1 %331 }
  0x88   : > { %v337_v8 = vsel %vm255_vm0, %v332_v7, 0 }
  0x89   : > { %346 = vmatpush.bf16.xpose.msra.mxu2 %v337_v8 }
  0x8f   : > { %v327_v10 = vpop.permute.xlu1 %326 }
  0x90   : > { %690 = vmatmul.msk.bf16.vlgmr.msra.gmra.mxu2 %vm255_vm0, %v327_v10 }
  0x96   : > { %v271_v12 = vpop.f32.mrf.mxu0 }
  0x97   : > { %v276_v13 = vsel %vm275_vm1, %v271_v12, -1e+30  ;;  %v473_v19 = vpop.permute.xlu1 %472 }
  0x98   : > { %v278_v14 = vsel %vm277_vm2, %v276_v13, -inf  ;;  %694 = vmatmul.msk.bf16.vlgmr.msrb.gmra.mxu0 %vm255_vm0, %v473_v19 }
  0x99   : > { %279 = vmax.xlane.f32.xlu0 %v278_v14 }
  0x9e   : > { %v273_v15 = vpop.f32.mrf.mxu0 }
 0x10c   : > { %v280_v20 = vpop.xlane.xlu0 %279 }
 0x10d   : > { %v281_v21 = vsub.f32 %v276_v13, %v280_v20 }
 0x10f   : > { %v282_v22 = vmul.f32 1.442695, %v281_v21 }
 0x111   : > { %726 = vpow2.f32 %v282_v22 }
 0x113   : > { %v348_v23 = vpop.f32.mrf.mxu2 }
 0x114   : > { %v352_v24 = vsel %vm275_vm1, %v348_v23, -1e+30 }
 0x115   : > { %v353_v25 = vsel %vm277_vm2, %v352_v24, -inf  ;;  %v491_v32 = vpop.f32.mrf.mxu0 }
 0x116   : > { %354 = vmax.xlane.f32.xlu2 %v353_v25  ;;  %v495_v33 = vsel %vm275_vm1, %v491_v32, -1e+30 }
 0x117   : > { %v727_v26 = vpop.eup %726  ;;  %v496_v35 = vsel %vm277_vm2, %v495_v33, -inf }
 0x118   : > { %v284_v27 = vsel %vm277_vm2, %v727_v26, 0.0 }
 0x119   : > { %285 = vadd.xlane.f32.xlu0 %v284_v27 }
 0x11b   : > { %v350_v28 = vpop.f32.mrf.mxu2 }
 0x11d   : > { %v493_v39 = vpop.f32.mrf.mxu0 }
 0x12d   : > { %402 = vrot.lane.b32.xlu0 %v325_v6, %s767_s24 }
 0x157   : > { %497 = vmax.xlane.f32.xlu0 %v496_v35 }
 0x16b   : > { %521 = vrot.lane.b32.xlu0 %v380_v49, %s768_s25 }
 0x189   : > { %v355_v34 = vpop.xlane.xlu2 %354 }
 0x18a   : > { %v356_v36 = vsub.f32 %v352_v24, %v355_v34 }
 0x18c   : > { %v286_v37 = vpop.xlane.xlu0 %285  ;;  %v357_v38 = vmul.f32 1.442695, %v356_v36 }
 0x18d   : > { %728 = vrcp.f32 %v286_v37  ;;  %v298_v46 = vand.u32 2147483648, %v286_v37  ;;  %v296_v48 = vand.u32 2147483647, %v286_v37  ;;  %vm292_vm5 = vweird.f32 %v286_v37 }
 0x18e   : > { %730 = vpow2.f32 %v357_v38 }
 0x18f   : > { %v299_v51 = vor.u32 1.1754944e-38, %v298_v46  ;;  %vm297_vm7 = vcmp.eq.f32.partialorder %v296_v48, 8.507059e+37 }
 0x193   : > { %v729_v40 = vpop.eup %728 }
 0x194   : > { %v851_v41 = vpop.eup %730  ;;  %v288_v42 = vmul.f32 %v729_v40, %v286_v37  ;;  %vm293_vm4 = vweird.f32 %v729_v40 }
 0x195   : > { %v359_v43 = vsel %vm277_vm2, %v851_v41, 0.0  ;;  %vm294_vm6 = vmor %vm292_vm5, %vm293_vm4 }
 0x196   : > { %v289_v44 = vsub.f32 1.0, %v288_v42  ;;  %360 = vadd.xlane.f32.xlu2 %v359_v43 }
 0x198   : > { %v290_v47 = vmul.f32 %v729_v40, %v289_v44 }
 0x19a   : > { %v291_v50 = vadd.f32 %v729_v40, %v290_v47 }
 0x19c   : > { %v295_v52 = vsel %vm294_vm6, %v729_v40, %v291_v50 }
 0x19d   : > { %v300_v53 = vsel %vm297_vm7, %v299_v51, %v295_v52  ;;  %vm557_vm7 = vcmask 785408  }
 0x19e   : > { %v301_v54 = vmul.f32 %v727_v26, %v300_v53 }
 0x19f   : > { %v403_v56 = vpop.permute.xlu0 %402 }
 0x1a0   : > { %v302_v55 = vpack.c.bf16 %v301_v54, %v301_v54 }
 0x1a2   : > { %689 = vmatmul.msk.bf16.vlgmr.msra.gmra.mxu1 %vm277_vm2, %v302_v55 }
 0x1b2   : > { %692 = vmatmul.msk.bf16.vlgmr.msrb.gmra.mxu1 %vm255_vm0, %v403_v56 }
 0x1ca   : > { %v498_v58 = vpop.xlane.xlu0 %497 }
 0x1cb   : > { %v499_v59 = vsub.f32 %v495_v33, %v498_v58 }
 0x1cd   : > { %v500_v61 = vmul.f32 1.442695, %v499_v59 }
 0x1cf   : > { %732 = vpow2.f32 %v500_v61 }
 0x1d5   : > { %v733_v1 = vpop.eup %732 }
 0x1d6   : > { %v502_v3 = vsel %vm277_vm2, %v733_v1, 0.0 }
 0x1dd   : > { %v522_v4 = vpop.permute.xlu0 %521 }
 0x1de   : > { %v527_v5 = vsel %vm306_vm3, %v522_v4, 0 }
 0x1df   : > { %536 = vmatpush.bf16.msrb.mxu2 %v527_v5 }
 0x209   : > { %v361_v24 = vpop.xlane.xlu2 %360 }
 0x20a   : > { %vm367_vm12 = vweird.f32 %v361_v24  ;;  %v373_v29 = vand.u32 2147483648, %v361_v24  ;;  %v371_v31 = vand.u32 2147483647, %v361_v24 }
 0x20c   : > { %v374_v32 = vor.u32 1.1754944e-38, %v373_v29  ;;  %vm372_vm15 = vcmp.eq.f32.partialorder %v371_v31, 8.507059e+37 }
 0x21f   : > { %v858_v57 = vpop.f32.mrf.mxu1 }
 0x227   : > { %v321_v60 = vpop.f32.mrf.mxu1 }
 0x22f   : > { %v421_v62 = vpop.f32.mrf.mxu1 }
 0x230   : > { %v425_v63 = vsel %vm275_vm1, %v421_v62, -1e+30 }
 0x231   : > { %v426_v0 = vsel %vm277_vm2, %v425_v63, -inf }
 0x232   : > { %427 = vmax.xlane.f32.xlu1 %v426_v0 }
 0x237   : > { %v423_v2 = vpop.f32.mrf.mxu1 }
 0x23a   : > { %503 = vadd.xlane.f32.xlu1 %v502_v3 }
 0x253   : > { %451 = vrot.lane.b32.xlu1 %v380_v49, %s767_s24 }
 0x2a5   : > { %v428_v6 = vpop.xlane.xlu1 %427 }
 0x2a6   : > { %v429_v7 = vsub.f32 %v425_v63, %v428_v6 }
 0x2a8   : > { %v430_v8 = vmul.f32 1.442695, %v429_v7 }
 0x2aa   : > { %734 = vpow2.f32 %v430_v8 }
 0x2ad   : > { %v504_v9 = vpop.xlane.xlu1 %503 }
 0x2ae   : > { %736 = vrcp.f32 %v504_v9  ;;  %v516_v15 = vand.u32 2147483648, %v504_v9  ;;  %v514_v17 = vand.u32 2147483647, %v504_v9  ;;  %vm510_vm9 = vweird.f32 %v504_v9 }
 0x2af   : > { %738 = vrcp.f32 %v361_v24 }
 0x2b0   : > { %v866_v10 = vpop.eup %734  ;;  %v517_v19 = vor.u32 1.1754944e-38, %v516_v15  ;;  %vm515_vm11 = vcmp.eq.f32.partialorder %v514_v17, 8.507059e+37 }
 0x2b1   : > { %v432_v11 = vsel %vm277_vm2, %v866_v10, 0.0 }
 0x2b2   : > { %433 = vadd.xlane.f32.xlu2 %v432_v11 }
 0x2b4   : > { %v737_v12 = vpop.eup %736 }
 0x2b5   : > { %v506_v13 = vmul.f32 %v737_v12, %v504_v9  ;;  %vm511_vm8 = vweird.f32 %v737_v12  ;;  %v739_v25 = vpop.eup %738 }
 0x2b6   : > { %vm512_vm10 = vmor %vm510_vm9, %vm511_vm8  ;;  %v363_v26 = vmul.f32 %v739_v25, %v361_v24  ;;  %vm368_vm13 = vweird.f32 %v739_v25 }
 0x2b7   : > { %v507_v14 = vsub.f32 1.0, %v506_v13  ;;  %vm369_vm14 = vmor %vm367_vm12, %vm368_vm13 }
 0x2b8   : > { %v364_v27 = vsub.f32 1.0, %v363_v26 }
 0x2b9   : > { %v508_v16 = vmul.f32 %v737_v12, %v507_v14 }
 0x2ba   : > { %v365_v28 = vmul.f32 %v739_v25, %v364_v27 }
 0x2bb   : > { %v509_v18 = vadd.f32 %v737_v12, %v508_v16 }
 0x2bc   : > { %v366_v30 = vadd.f32 %v739_v25, %v365_v28 }
 0x2bd   : > { %v513_v20 = vsel %vm512_vm10, %v737_v12, %v509_v18 }
 0x2be   : > { %v518_v21 = vsel %vm515_vm11, %v517_v19, %v513_v20  ;;  %v370_v34 = vsel %vm369_vm14, %v739_v25, %v366_v30 }
 0x2bf   : > { %v519_v22 = vmul.f32 %v733_v1, %v518_v21  ;;  %v375_v35 = vsel %vm372_vm15, %v374_v32, %v370_v34 }
 0x2c0   : > { %v376_v38 = vmul.f32 %v851_v41, %v375_v35 }
 0x2c1   : > { %v520_v23 = vpack.c.bf16 %v519_v22, %v519_v22 }
 0x2c2   : > { %v377_v45 = vpack.c.bf16 %v376_v38, %v376_v38 }
 0x2c3   : > { %695 = vmatmul.msk.bf16.vlgmr.msrb.gmra.mxu2 %vm277_vm2, %v520_v23 }
 0x2c5   : > { %v452_v36 = vpop.permute.xlu1 %451 }
 0x2c6   : > { %v457_v42 = vsel %vm306_vm3, %v452_v36, 0 }
 0x2ca   : > { %381 = vrot.lane.b32.xlu2 %v380_v49, %s766_s23 }
 0x325   : > { %v434_v33 = vpop.xlane.xlu2 %433 }
 0x326   : > { %740 = vrcp.f32 %v434_v33  ;;  %v446_v48 = vand.u32 2147483648, %v434_v33  ;;  %vm440_vm4 = vweird.f32 %v434_v33  ;;  %v444_v49 = vand.u32 2147483647, %v434_v33 }
 0x328   : > { %v447_v50 = vor.u32 1.1754944e-38, %v446_v48  ;;  %vm445_vm6 = vcmp.eq.f32.partialorder %v444_v49, 8.507059e+37 }
 0x32c   : > { %v741_v37 = vpop.eup %740 }
 0x32d   : > { %v436_v39 = vmul.f32 %v741_v37, %v434_v33  ;;  %v382_v40 = vpop.permute.xlu2 %381  ;;  %vm441_vm1 = vweird.f32 %v741_v37 }
 0x32e   : > { %v387_v43 = vsel %vm306_vm3, %v382_v40, 0  ;;  %vm442_vm5 = vmor %vm440_vm4, %vm441_vm1  ;;  %vm555_vm3 = vcmask 523264  }
 0x32f   : > { %v437_v44 = vsub.f32 1.0, %v436_v39  ;;  %396 = vmatpush.bf16.msra.mxu3 %v387_v43 }
 0x331   : > { %v438_v46 = vmul.f32 %v741_v37, %v437_v44 }
 0x332   : > { %691 = vmatmul.msk.bf16.vlgmr.msra.gmra.mxu3 %vm277_vm2, %v377_v45 }
 0x333   : > { %466 = vmatpush.bf16.msrb.mxu3 %v457_v42  ;;  %v439_v47 = vadd.f32 %v741_v37, %v438_v46 }
 0x335   : > { %v443_v41 = vsel %vm442_vm5, %v741_v37, %v439_v47 }
 0x336   : > { %v448_v51 = vsel %vm445_vm6, %v447_v50, %v443_v41 }
 0x337   : > { %v449_v52 = vmul.f32 %v866_v10, %v448_v51 }
 0x339   : > { %v450_v53 = vpack.c.bf16 %v449_v52, %v449_v52 }
 0x342   : > { %693 = vmatmul.msk.bf16.vlgmr.msrb.gmra.mxu3 %vm277_vm2, %v450_v53 }
 0x346   : > { %v538_v54 = vpop.f32.mrf.mxu2 }
 0x347   : > { %551 = vrot.lane.b32.xlu1 %v538_v54, %s766_s23 }
 0x34e   : > { %v540_v55 = vpop.f32.mrf.mxu2 }
 0x3b5   : > { %v398_v56 = vpop.f32.mrf.mxu3 }
 0x3b6   : > { %543 = vrot.lane.b32.xlu2 %v398_v56, %s768_s25 }
 0x3b9   : > { %v552_v0 = vpop.permute.xlu1 %551 }
 0x3bd   : > { %v400_v58 = vpop.f32.mrf.mxu3 }
 0x3c5   : > { %v468_v59 = vpop.f32.mrf.mxu3 }
 0x3c6   : > { %547 = vrot.lane.b32.xlu0 %v468_v59, %s767_s24 }
 0x3cd   : > { %v470_v60 = vpop.f32.mrf.mxu3 }
 0x410   : > { %v544_v61 = vpop.permute.xlu2 %543 }
 0x411   : > { %v554_v62 = vsel %vm255_vm0, %v858_v57, %v544_v61 }
 0x438   : > { %v548_v63 = vpop.permute.xlu0 %547 }
 0x439   : > { %v556_v1 = vsel %vm555_vm3, %v554_v62, %v548_v63 }
 0x43a   : > { %v558_v2 = vsel %vm557_vm7, %v556_v1, %v552_v0 }
 0x43b   : > { %v559_v3 = vpack.c.bf16 %v558_v2, %v558_v2 }
 0x43d   : > { %560 = vst [vmem:[%s248_s5] sm:$0xf] %v559_v3 }
 0x43e PF: > { %s13_s14 = sadd.s32 1, %s764_s14   ;;  %s900_s12 = smov %s760_s13 }
 0x43f   : > { %p10_p5 = scmp.ge.s32.totalorder %s13_s14, 4   ;;  %s901_s13 = smov %s903_s15 }
 0x441   :  { %12 = sbr.rel (!%p10_p5) target bundleno = 2 (0x2), region = 68 }

// kernel: forward.31
= control target key start
LH: loop header
LB: loop body
LE: loop exit
PB: predicated region body
PF: predicated region fallthrough
CT: control target
= control target key end

     0   :  { %10 = vsyncpa [#allocation3], 0  ;;  %s401_s21 = smov [#allocation2]   ;;  %s563_s0 = inlined_call_operand.vmem [shape: bf16[16,128], index: 0, kind: input, shape index: {}]   ;;  %s564_s1 = inlined_call_operand.vmem [shape: bf16[128,256], index: 1, kind: input, shape index: {}]   ;;  %s565_s2 = inlined_call_operand.vmem [shape: f32[1,256], index: 2, kind: input, shape index: {}]   ;;  %s566_s3 = inlined_call_operand.vmem [shape: f32[1,128], index: 3, kind: input, shape index: {}]   ;;  %s567_s4 = inlined_call_operand.hbm [shape: f32[1,128], index: 4, kind: input, shape index: {}]   ;;  %s568_s5 = inlined_call_operand.vmem [shape: bf16[16,256], index: 5, kind: output, shape index: {}]  }
   0x1   :  { %s24_s20 = sshll.u32 %s567_s4, 4  ;;  %s26_s22 = sshll.u32 %s401_s21, 4  ;;  %s25_s20 = int_to_ptr.hbm [resolvable:$true] %s24_s20  ;;  %s27_s22 = int_to_ptr.vmem [resolvable:$true] %s26_s22 }
   0x2   :  { %29 = dma.hbm_to_vmem [thread:$0]  %s25_s20, 16, %s27_s22, [#allocation3]  }
   0x3   :  { %399 = dma.done.wait [#allocation3], 16  }
   0x4   :  { %400 = vsyncadd [#allocation3], 4294967280  ;;  %v354_v0 = vld [vmem:[%s563_s0] sm:$0xff]   ;;  %v402_v3 = vmov 128.0   ;;  %v331_v18 = vld [vmem:[%s564_s1 + $0x70] sm:$0xf] }
   0x5   :  { %v355_v1 = vunpack.c.l.bf16 %v354_v0  ;;  %v356_v2 = vunpack.c.h.bf16 %v354_v0  ;;  %361 = vrcp.f32 %v402_v3  ;;  %v352_v19 = vld [vmem:[%s564_s1 + $0x74] sm:$0xf0]  ;;  %v351_v20 = vld [vmem:[%s564_s1 + $0x74] sm:$0xf]  ;;  %v333_v22 = vld [vmem:[%s564_s1 + $0x78] sm:$0xf0] }
   0x6   :  { %v332_v21 = vor.u32 %v352_v19, %v331_v18  ;;  %v336_v23 = vor.u32 %v351_v20, %v333_v22  ;;  %v323_v24 = vld [vmem:[%s564_s1 + $0x60] sm:$0xf]  ;;  %v350_v25 = vld [vmem:[%s564_s1 + $0x64] sm:$0xf0]  ;;  %v349_v26 = vld [vmem:[%s564_s1 + $0x64] sm:$0xf] }
   0x7   :  { %38 = vadd.xlane.f32.xlu0 %v355_v1  ;;  %v324_v27 = vor.u32 %v350_v25, %v323_v24  ;;  %v325_v28 = vld [vmem:[%s564_s1 + $0x68] sm:$0xf0]  ;;  %v315_v30 = vld [vmem:[%s564_s1 + $0x50] sm:$0xf]  ;;  %v348_v31 = vld [vmem:[%s564_s1 + $0x54] sm:$0xf0] }
   0x8   :  { %200 = vmatpush.bf16.msra.mxu0 %v332_v21  ;;  %214 = vmatpush.bf16.msra.mxu1 %v336_v23  ;;  %v328_v29 = vor.u32 %v349_v26, %v325_v28  ;;  %v347_v32 = vld [vmem:[%s564_s1 + $0x54] sm:$0xf]  ;;  %v316_v33 = vor.u32 %v348_v31, %v315_v30  ;;  %v317_v34 = vld [vmem:[%s564_s1 + $0x58] sm:$0xf0]  ;;  %v307_v36 = vld [vmem:[%s564_s1 + $0x40] sm:$0xf] }
   0x9   :  { %v320_v35 = vor.u32 %v347_v32, %v317_v34  ;;  %v346_v37 = vld [vmem:[%s564_s1 + $0x44] sm:$0xf0]  ;;  %v345_v38 = vld [vmem:[%s564_s1 + $0x44] sm:$0xf]  ;;  %v309_v40 = vld [vmem:[%s564_s1 + $0x48] sm:$0xf0] }
   0xa   :  { %v308_v39 = vor.u32 %v346_v37, %v307_v36  ;;  %v312_v41 = vor.u32 %v345_v38, %v309_v40  ;;  %v299_v42 = vld [vmem:[%s564_s1 + $0x30] sm:$0xf]  ;;  %v344_v43 = vld [vmem:[%s564_s1 + $0x34] sm:$0xf0]  ;;  %v343_v44 = vld [vmem:[%s564_s1 + $0x34] sm:$0xf] }
   0xb   :  { %v362_v4 = vpop.eup %361  ;;  %v300_v45 = vor.u32 %v344_v43, %v299_v42  ;;  %v301_v46 = vld [vmem:[%s564_s1 + $0x38] sm:$0xf0]  ;;  %v291_v48 = vld [vmem:[%s564_s1 + $0x20] sm:$0xf]  ;;  %v342_v49 = vld [vmem:[%s564_s1 + $0x24] sm:$0xf0] }
   0xc   :  { %v43_v5 = vmul.f32 128.0, %v362_v4  ;;  %vm47_vm0 = vweird.f32 %v362_v4  ;;  %201 = vmatpush.bf16.msra.mxu0 %v324_v27  ;;  %215 = vmatpush.bf16.msra.mxu1 %v328_v29  ;;  %v304_v47 = vor.u32 %v343_v44, %v301_v46  ;;  %v341_v50 = vld [vmem:[%s564_s1 + $0x24] sm:$0xf]  ;;  %v292_v51 = vor.u32 %v342_v49, %v291_v48  ;;  %v293_v52 = vld [vmem:[%s564_s1 + $0x28] sm:$0xf0] }
   0xd   :  { %v296_v53 = vor.u32 %v341_v50, %v293_v52  ;;  %v283_v54 = vld [vmem:[%s564_s1 + $0x10] sm:$0xf]  ;;  %v340_v55 = vld [vmem:[%s564_s1 + $0x14] sm:$0xf0]  ;;  %v339_v56 = vld [vmem:[%s564_s1 + $0x14] sm:$0xf] }
   0xe   :  { %v44_v6 = vsub.f32 1.0, %v43_v5  ;;  %v284_v57 = vor.u32 %v340_v55, %v283_v54  ;;  %v285_v58 = vld [vmem:[%s564_s1 + $0x18] sm:$0xf0]  ;;  %v275_v59 = vld [vmem:[%s564_s1] sm:$0xf] }
   0xf   :  { %40 = vadd.xlane.f32.xlu0 %v356_v2  ;;  %v338_v60 = vld [vmem:[%s564_s1 + $0x4] sm:$0xf0]  ;;  %v288_v61 = vor.u32 %v339_v56, %v285_v58  ;;  %v337_v62 = vld [vmem:[%s564_s1 + $0x4] sm:$0xf]  ;;  %v277_v63 = vld [vmem:[%s564_s1 + $0x8] sm:$0xf0] }
  0x10   :  { %v45_v7 = vmul.f32 %v362_v4, %v44_v6  ;;  %202 = vmatpush.bf16.msra.mxu0 %v316_v33  ;;  %216 = vmatpush.bf16.msra.mxu1 %v320_v35  ;;  %v280_v3 = vor.u32 %v337_v62, %v277_v63  ;;  %v359_v23 = vld [vmem:[%s566_s3] ss:$0 sm:$0xff] }
  0x11   :  { %v360_v28 = vld [vmem:[#allocation2] ss:$0 sm:$0xff] }
  0x12   :  { %v46_v8 = vadd.f32 %v362_v4, %v45_v7 }
  0x14   :  { %v439_v9 = vsel %vm47_vm0, %v362_v4, %v46_v8  ;;  %203 = vmatpush.bf16.msra.mxu0 %v308_v39  ;;  %217 = vmatpush.bf16.msra.mxu1 %v312_v41 }
  0x18   :  { %204 = vmatpush.bf16.msra.mxu0 %v300_v45  ;;  %218 = vmatpush.bf16.msra.mxu1 %v304_v47 }
  0x1c   :  { %205 = vmatpush.bf16.msra.mxu0 %v292_v51  ;;  %219 = vmatpush.bf16.msra.mxu1 %v296_v53 }
  0x20   :  { %206 = vmatpush.bf16.msra.mxu0 %v284_v57  ;;  %220 = vmatpush.bf16.msra.mxu1 %v288_v61 }
  0x24   :  { %221 = vmatpush.bf16.msra.mxu1 %v280_v3 }
  0x7a   :  { %v39_v10 = vpop.xlane.xlu0 %38 }
  0x7b   :  { %v49_v11 = vmul.f32 %v439_v9, %v39_v10 }
  0x7d   :  { %v442_v12 = vsub.f32 %v355_v1, %v49_v11  ;;  %v276_v1 = vor.u32 %v338_v60, %v275_v59 }
  0x7f   :  { %v53_v13 = vmul.f32 %v442_v12, %v442_v12  ;;  %207 = vmatpush.bf16.msra.mxu0 %v276_v1 }
  0x81   :  { %55 = vadd.xlane.f32.xlu1 %v53_v13 }
  0x82   :  { %v41_v14 = vpop.xlane.xlu0 %40 }
  0x83   :  { %v50_v15 = vmul.f32 %v439_v9, %v41_v14 }
  0x85   :  { %v447_v16 = vsub.f32 %v356_v2, %v50_v15 }
  0x87   :  { %v54_v17 = vmul.f32 %v447_v16, %v447_v16 }
  0x89   :  { %57 = vadd.xlane.f32.xlu1 %v54_v17 }
  0xf4   :  { %v56_v0 = vpop.xlane.xlu1 %55 }
  0xf5   :  { %v59_v2 = vmul.f32 %v56_v0, %v439_v9 }
  0xf7   :  { %v61_v4 = vadd.f32 1e-05, %v59_v2 }
  0xf9   :  { %363 = vrsqrt.f32 %v61_v4  ;;  %vm69_vm2 = vweird.f32 %v61_v4 }
  0xfc   :  { %v58_v5 = vpop.xlane.xlu1 %57 }
  0xfd   :  { %v60_v6 = vmul.f32 %v58_v5, %v439_v9 }
  0xff   :  { %v364_v7 = vpop.eup %363  ;;  %v62_v8 = vadd.f32 1e-05, %v60_v6 }
 0x100   :  { %v64_v10 = vmul.f32 %v364_v7, %v61_v4  ;;  %vm70_vm1 = vweird.f32 %v364_v7 }
 0x101   :  { %365 = vrsqrt.f32 %v62_v8  ;;  %vm71_vm3 = vmor %vm69_vm2, %vm70_vm1  ;;  %vm79_vm5 = vweird.f32 %v62_v8 }
 0x102   :  { %v65_v11 = vmul.f32 %v364_v7, %v64_v10 }
 0x104   :  { %v66_v13 = vmul.f32 0.5, %v65_v11 }
 0x106   :  { %v67_v14 = vsub.f32 1.5, %v66_v13 }
 0x107   :  { %v366_v15 = vpop.eup %365 }
 0x108   :  { %v68_v17 = vmul.f32 %v364_v7, %v67_v14  ;;  %v74_v18 = vmul.f32 %v366_v15, %v62_v8  ;;  %vm80_vm4 = vweird.f32 %v366_v15 }
 0x109   :  { %vm81_vm6 = vmor %vm79_vm5, %vm80_vm4 }
 0x10a   :  { %v75_v19 = vmul.f32 %v366_v15, %v74_v18  ;;  %v72_v21 = vsel %vm71_vm3, %v364_v7, %v68_v17 }
 0x10b   :  { %v83_v9 = vmul.f32 %v72_v21, %v442_v12  ;;  %v114_v12 = vld [vmem:[%s565_s2] sm:$0x3] }
 0x10c   :  { %v76_v20 = vmul.f32 0.5, %v75_v19  ;;  %v116_v33 = vperm.slane %v114_v12, 0  ;;  %v117_v34 = vperm.slane %v114_v12, 1 }
 0x10d   :  { %v89_v27 = vmul.f32 %v359_v23, %v83_v9 }
 0x10e   :  { %v77_v22 = vsub.f32 1.5, %v76_v20 }
 0x10f   :  { %v95_v30 = vadd.f32 %v360_v28, %v89_v27 }
 0x110   :  { %v78_v24 = vmul.f32 %v366_v15, %v77_v22 }
 0x112   :  { %v82_v25 = vsel %vm81_vm6, %v366_v15, %v78_v24 }
 0x113   :  { %v84_v26 = vmul.f32 %v82_v25, %v447_v16 }
 0x115   :  { %v90_v29 = vmul.f32 %v359_v23, %v84_v26 }
 0x117   :  { %v96_v31 = vadd.f32 %v360_v28, %v90_v29 }
 0x119   :  { %v97_v32 = vpack.c.bf16 %v96_v31, %v95_v30 }
 0x11b   :  { %208 = vmatmul.bf16.vlgmr.msra.gmra.mxu0 %v97_v32  ;;  %222 = vmatmul.bf16.vlgmr.msra.gmra.mxu1 %v97_v32 }
 0x198   :  { %v209_v35 = vpop.f32.mrf.mxu0  ;;  %v223_v36 = vpop.f32.mrf.mxu1 }
 0x199   :  { %v210_v37 = vadd.f32 %v209_v35, %v116_v33  ;;  %v224_v38 = vadd.f32 %v223_v36, %v117_v34 }
 0x19b   :  { %v232_v39 = vmul.f32 0.044715, %v210_v37  ;;  %v233_v16 = vmul.f32 0.044715, %v224_v38  ;;  %v228_v62 = vmul.f32 0.5, %v210_v37  ;;  %v229_v2 = vmul.f32 0.5, %v224_v38 }
 0x19d   :  { %v236_v40 = vmul.f32 %v232_v39, %v210_v37  ;;  %v237_v41 = vmul.f32 %v233_v16, %v224_v38 }
 0x19f   :  { %v240_v42 = vmul.f32 %v236_v40, %v210_v37  ;;  %v241_v43 = vmul.f32 %v237_v41, %v224_v38 }
 0x1a0   :  { %v211_v44 = vpop.f32.mrf.mxu0  ;;  %v225_v45 = vpop.f32.mrf.mxu1 }
 0x1a1   :  { %v244_v46 = vadd.f32 %v240_v42, %v210_v37  ;;  %v245_v47 = vadd.f32 %v241_v43, %v224_v38  ;;  %v212_v48 = vadd.f32 %v211_v44, %v116_v33  ;;  %v226_v49 = vadd.f32 %v225_v45, %v117_v34 }
 0x1a3   :  { %v248_v50 = vmul.f32 0.7978846, %v244_v46  ;;  %v249_v51 = vmul.f32 0.7978846, %v245_v47  ;;  %v234_v52 = vmul.f32 0.044715, %v212_v48 }
 0x1a4   :  { %v235_v53 = vmul.f32 0.044715, %v226_v49  ;;  %v230_v10 = vmul.f32 0.5, %v212_v48  ;;  %v231_v13 = vmul.f32 0.5, %v226_v49 }
 0x1a5   :  { %367 = vtanh.f32 %v248_v50  ;;  %v238_v54 = vmul.f32 %v234_v52, %v212_v48 }
 0x1a6   :  { %369 = vtanh.f32 %v249_v51  ;;  %v239_v55 = vmul.f32 %v235_v53, %v226_v49 }
 0x1a7   :  { %v242_v56 = vmul.f32 %v238_v54, %v212_v48 }
 0x1a8   :  { %v243_v57 = vmul.f32 %v239_v55, %v226_v49 }
 0x1a9   :  { %v246_v58 = vadd.f32 %v242_v56, %v212_v48 }
 0x1aa   :  { %v247_v59 = vadd.f32 %v243_v57, %v226_v49 }
 0x1ab   :  { %v368_v60 = vpop.eup %367  ;;  %v250_v0 = vmul.f32 0.7978846, %v246_v58 }
 0x1ac   :  { %v370_v61 = vpop.eup %369  ;;  %v256_v63 = vadd.f32 1.0, %v368_v60  ;;  %v251_v1 = vmul.f32 0.7978846, %v247_v59 }
 0x1ad   :  { %v257_v3 = vadd.f32 1.0, %v370_v61  ;;  %371 = vtanh.f32 %v250_v0 }
 0x1ae   :  { %v260_v4 = vmul.f32 %v256_v63, %v228_v62  ;;  %373 = vtanh.f32 %v251_v1 }
 0x1af   :  { %v261_v5 = vmul.f32 %v257_v3, %v229_v2 }
 0x1b1   :  { %v264_v6 = vpack.c.bf16 %v261_v5, %v260_v4 }
 0x1b3   :  { %266 = vst [vmem:[%s568_s5] sm:$0xff] %v264_v6  ;;  %v372_v7 = vpop.eup %371 }
 0x1b4   :  { %v374_v8 = vpop.eup %373  ;;  %v258_v11 = vadd.f32 1.0, %v372_v7 }
 0x1b5   :  { %v259_v14 = vadd.f32 1.0, %v374_v8 }
 0x1b6   :  { %v262_v15 = vmul.f32 %v258_v11, %v230_v10 }
 0x1b7   :  { %v263_v17 = vmul.f32 %v259_v14, %v231_v13 }
 0x1b9   :  { %v265_v18 = vpack.c.bf16 %v263_v17, %v262_v15 }
 0x1bb   :  { %267 = vst [vmem:[%s568_s5 + $0x8] sm:$0xff] %v265_v18 }
 0x1bc   :  { %272 = vsyncpa [#allocation3], 1 }

// kernel: forward.32
= control target key start
LH: loop header
LB: loop body
LE: loop exit
PB: predicated region body
PF: predicated region fallthrough
CT: control target
= control target key end

     0   :  { %9 = vsyncpa [#allocation3], 0  ;;  %s345_s18 = smov [#allocation2]   ;;  %s440_s0 = inlined_call_operand.vmem [shape: bf16[16,256], index: 0, kind: input, shape index: {}]   ;;  %s441_s1 = inlined_call_operand.vmem [shape: bf16[256,128], index: 1, kind: input, shape index: {}]   ;;  %s442_s2 = inlined_call_operand.hbm [shape: f32[1,128], index: 2, kind: input, shape index: {}]   ;;  %s443_s3 = inlined_call_operand.vmem [shape: bf16[16,128], index: 3, kind: input, shape index: {}]   ;;  %s444_s4 = inlined_call_operand.vmem [shape: bf16[16,128], index: 4, kind: output, shape index: {}]  }
   0x1   :  { %s19_s17 = sshll.u32 %s442_s2, 4  ;;  %s21_s19 = sshll.u32 %s345_s18, 4  ;;  %s20_s17 = int_to_ptr.hbm [resolvable:$true] %s19_s17  ;;  %s22_s19 = int_to_ptr.vmem [resolvable:$true] %s21_s19 }
   0x2   :  { %24 = dma.hbm_to_vmem [thread:$0]  %s20_s17, 16, %s22_s19, [#allocation3]  }
   0x3   :  { %343 = dma.done.wait [#allocation3], 16  }
   0x4   :  { %344 = vsyncadd [#allocation3], 4294967280  ;;  %v299_v0 = vld [vmem:[%s441_s1 + $0x38] sm:$0xff]  ;;  %v298_v2 = vld [vmem:[%s441_s1 + $0x30] sm:$0xff] }
   0x5   :  { %v307_v1 = vld [vmem:[%s441_s1 + $0x78] sm:$0xff]  ;;  %175 = vmatpush.bf16.msra.mxu0 %v299_v0  ;;  %v306_v3 = vld [vmem:[%s441_s1 + $0x70] sm:$0xff]  ;;  %v297_v4 = vld [vmem:[%s441_s1 + $0x28] sm:$0xff] }
   0x6   :  { %189 = vmatpush.bf16.msra.mxu1 %v307_v1  ;;  %v305_v5 = vld [vmem:[%s441_s1 + $0x68] sm:$0xff]  ;;  %v296_v6 = vld [vmem:[%s441_s1 + $0x20] sm:$0xff]  ;;  %v295_v8 = vld [vmem:[%s441_s1 + $0x18] sm:$0xff] }
   0x7   :  { %v304_v7 = vld [vmem:[%s441_s1 + $0x60] sm:$0xff]  ;;  %v303_v9 = vld [vmem:[%s441_s1 + $0x58] sm:$0xff]  ;;  %v294_v10 = vld [vmem:[%s441_s1 + $0x10] sm:$0xff] }
   0x8   :  { %v302_v11 = vld [vmem:[%s441_s1 + $0x50] sm:$0xff]  ;;  %v293_v12 = vld [vmem:[%s441_s1 + $0x8] sm:$0xff]  ;;  %v292_v14 = vld [vmem:[%s441_s1] sm:$0xff] }
   0x9   :  { %176 = vmatpush.bf16.msra.mxu0 %v298_v2  ;;  %v301_v13 = vld [vmem:[%s441_s1 + $0x48] sm:$0xff]  ;;  %v300_v15 = vld [vmem:[%s441_s1 + $0x40] sm:$0xff] }
   0xa   :  { %190 = vmatpush.bf16.msra.mxu1 %v306_v3  ;;  %v220_v16 = vld [vmem:[%s440_s0] sm:$0xf]  ;;  %v291_v17 = vld [vmem:[%s440_s0 + $0x4] sm:$0xf0]  ;;  %v290_v18 = vld [vmem:[%s440_s0 + $0x4] sm:$0xf] }
   0xb   :  { %v222_v19 = vld [vmem:[%s440_s0 + $0x8] sm:$0xf0]  ;;  %v221_v20 = vor.u32 %v291_v17, %v220_v16  ;;  %v318_v24 = vld [vmem:[#allocation2] ss:$0 sm:$0xff] }
   0xc   :  { %v225_v21 = vor.u32 %v290_v18, %v222_v19  ;;  %v309_v26 = vld [vmem:[%s443_s3] sm:$0xff]  }
   0xd   :  { %177 = vmatpush.bf16.msra.mxu0 %v297_v4  ;;  %v310_v29 = vunpack.c.l.bf16 %v309_v26  ;;  %v311_v31 = vunpack.c.h.bf16 %v309_v26 }
   0xe   :  { %191 = vmatpush.bf16.msra.mxu1 %v305_v5 }
  0x11   :  { %178 = vmatpush.bf16.msra.mxu0 %v296_v6 }
  0x12   :  { %192 = vmatpush.bf16.msra.mxu1 %v304_v7 }
  0x15   :  { %179 = vmatpush.bf16.msra.mxu0 %v295_v8 }
  0x16   :  { %193 = vmatpush.bf16.msra.mxu1 %v303_v9 }
  0x19   :  { %180 = vmatpush.bf16.msra.mxu0 %v294_v10 }
  0x1a   :  { %194 = vmatpush.bf16.msra.mxu1 %v302_v11 }
  0x1d   :  { %181 = vmatpush.bf16.msra.mxu0 %v293_v12 }
  0x1e   :  { %195 = vmatpush.bf16.msra.mxu1 %v301_v13 }
  0x21   :  { %182 = vmatpush.bf16.msra.mxu0 %v292_v14 }
  0x22   :  { %196 = vmatpush.bf16.msra.mxu1 %v300_v15 }
  0x24   :  { %183 = vmatmul.bf16.vlgmr.msra.gmra.mxu0 %v221_v20 }
  0x25   :  { %197 = vmatmul.bf16.vlgmr.msra.gmra.mxu1 %v225_v21 }
  0xa1   :  { %v184_v22 = vpop.f32.mrf.mxu0 }
  0xa2   :  { %v198_v23 = vpop.f32.mrf.mxu1  ;;  %v185_v25 = vadd.f32 %v318_v24, %v184_v22 }
  0xa4   :  { %v199_v28 = vadd.f32 %v198_v23, %v185_v25 }
  0xa6   :  { %v207_v34 = vadd.f32 %v310_v29, %v199_v28 }
  0xa9   :  { %v186_v27 = vpop.f32.mrf.mxu0 }
  0xaa   :  { %v187_v30 = vadd.f32 %v318_v24, %v186_v27  ;;  %v200_v32 = vpop.f32.mrf.mxu1 }
  0xac   :  { %v201_v33 = vadd.f32 %v200_v32, %v187_v30 }
  0xae   :  { %v208_v35 = vadd.f32 %v311_v31, %v201_v33 }
  0xb0   :  { %v315_v36 = vpack.c.bf16 %v208_v35, %v207_v34 }
  0xb2   :  { %316 = vst [vmem:[%s444_s4] sm:$0xff] %v315_v36  }
  0xb3   :  { %217 = vsyncpa [#allocation3], 1 }

// kernel: forward.33
= control target key start
LH: loop header
LB: loop body
LE: loop exit
PB: predicated region body
PF: predicated region fallthrough
CT: control target
= control target key end

     0   :  { %9 = vsyncpa [#allocation4], 0  ;;  %s1129_s0 = inlined_call_operand.vmem [shape: bf16[16,128], index: 0, kind: input, shape index: {}]   ;;  %s1130_s1 = inlined_call_operand.vmem [shape: bf16[128,384], index: 1, kind: input, shape index: {}]   ;;  %s1131_s2 = inlined_call_operand.hbm [shape: f32[1,128], index: 2, kind: input, shape index: {}]   ;;  %s1132_s3 = inlined_call_operand.hbm [shape: f32[1,128], index: 3, kind: input, shape index: {}]   ;;  %s1133_s4 = inlined_call_operand.vmem [shape: bf16[16,384], index: 4, kind: output, shape index: {}]  }
   0x1   :  { %10 = vsyncpa [#allocation6], 0  ;;  %s988_s15 = smov 0   ;;  %s990_s16 = smov 0  }
   0x2   :  { %s992_s17 = smov 0   ;;  %s994_s18 = smov 0  }
   0x3   :  { %s996_s19 = smov 0  }
   0x4 LB: > { %s715_s20 = sadd.s32 4294967295, %s958_s19   ;;  %s31_s21 = sadd.s32 1, %s954_s18  ;;  %s958_s19 = sphi %s996_s19, %s16_s19   ;;  %s954_s18 = sphi %s994_s18, %s1141_s18   ;;  %s950_s17 = sphi %s992_s17, %s1140_s17   ;;  %s946_s16 = sphi %s990_s16, %s1139_s16   ;;  %s942_s15 = sphi %s988_s15, %s1138_s15  }
   0x5   : > { %p33_p0 = scmp.ge.s32.totalorder %s31_s21, 3  ;;  %s72_s22 = sadd.s32 1, %s946_s16 }
   0x6   : > { %p79_p1 = scmp.ne.s32.totalorder %s946_s16, %s942_s15  ;;  %p80_p2 = scmp.eq.s32.totalorder %s958_s19, 0 }
   0x7   : > { %s1143_s21 = smov (%p33_p0, %s31_s21), 0  ;;  %p163_p4 = scmp.eq.s32.totalorder %s715_s20, 2 }
   0x8   : > { %p1021_p3 = por %p80_p2, %p79_p1  ;;  %s68_s24 = ssub.s32 %s954_s18, %s1143_s21 }
   0x9   : > { %p717_p5 = scmp.ge.s32.totalorder %s958_s19, 1  ;;  %p70_p6 = scmp.eq.s32.totalorder %s68_s24, 0 }
   0xa   : > { %p1028_p7 = por %p163_p4, %p79_p1  ;;  %p176_p8 = scmp.lt.s32.totalorder %s958_s19, 4 }
   0xb   : > { %s1034_s26 = scalar_select %p70_p6, %s946_s16, %s72_s22  }
   0xc   : > { %p1036_p9 = pnand %p717_p5, %p176_p8  ;;  %p1040_p10 = scmp.eq.s32.totalorder %s715_s20, 0 }
   0xd   : > { %s201_s5 = sshll.u32 %s1131_s2, 4  ;;  %s960_s6 = smov [#allocation3]   ;;  %s202_s5 = int_to_ptr.hbm [resolvable:$true] %s201_s5 }
   0xe   : > { %p790_p11 = pneg %p1036_p9  ;;  %s203_s7 = sshll.u32 %s960_s6, 4  ;;  %s204_s7 = int_to_ptr.vmem [resolvable:$true] %s203_s7 }
   0xf   : > { %s214_s10 = sshll.u32 %s1132_s3, 4  ;;  %s961_s11 = smov [#allocation5]   ;;  %s215_s10 = int_to_ptr.hbm [resolvable:$true] %s214_s10 }
  0x10   : > { %p791_p12 = pnand %p1040_p10, %p790_p11  ;;  %s216_s12 = sshll.u32 %s961_s11, 4  ;;  %s217_s12 = int_to_ptr.vmem [resolvable:$true] %s216_s12 }
  0x11   : > { %p721_p13 = scmp.ge.s32.totalorder %s958_s19, 3 }
  0x12   : > { %793 = dma.hbm_to_vmem [thread:$0]  (!%p791_p12), %s202_s5, 16, %s204_s7, [#allocation4]  }
  0x13   : > { %796 = dma.hbm_to_vmem [thread:$0]  (!%p791_p12), %s215_s10, 16, %s217_s12, [#allocation6]  }
  0x14   : > { %223 = sbr.rel (%p721_p13) target bundleno = 45 (0x2d), region = 28 }
  0x19   : > { %226 = sbr.rel (!%p1021_p3) target bundleno = 45 (0x2d), region = 32  ;;  %s228_s13 = sand.u32 (%p1021_p3), 1, %s946_s16  }
  0x1a   : > { %s723_s14 = sshll.u32 (%p1021_p3), %s954_s18, 2  ;;  %s722_s20 = sshll.u32 (%p1021_p3), %s228_s13, 6 }
  0x1b   : > { %s1062_s29 = scalar_lea.vmem (%p1021_p3), %s1130_s1, %s723_s14  ;;  %s230_s23 = scalar_lea.vmem (%p1021_p3), [#allocation2], %s722_s20 }
  0x1c   : > { %v252_v0 = vld [vmem:[%s1062_s29] sm:$0xf] (%p1021_p3)  ;;  %v254_v1 = vld [vmem:[%s1062_s29 + $0xc] sm:$0xf] (%p1021_p3)  ;;  %v256_v2 = vld [vmem:[%s1062_s29 + $0x18] sm:$0xf] (%p1021_p3) }
  0x1d   : > { %253 = vst [vmem:[%s230_s23] sm:$0xf] (%p1021_p3), %v252_v0  ;;  %v258_v3 = vld [vmem:[%s1062_s29 + $0x24] sm:$0xf] (%p1021_p3)  ;;  %v260_v4 = vld [vmem:[%s1062_s29 + $0x30] sm:$0xf] (%p1021_p3) }
  0x1e   : > { %255 = vst [vmem:[%s230_s23 + $0x4] sm:$0xf] %v254_v1  ;;  %v262_v5 = vld [vmem:[%s1062_s29 + $0x3c] sm:$0xf]  ;;  %v264_v6 = vld [vmem:[%s1062_s29 + $0x48] sm:$0xf] }
  0x1f   : > { %257 = vst [vmem:[%s230_s23 + $0x8] sm:$0xf] %v256_v2  ;;  %v266_v7 = vld [vmem:[%s1062_s29 + $0x54] sm:$0xf]  ;;  %v268_v8 = vld [vmem:[%s1062_s29 + $0x60] sm:$0xf] }
  0x20   : > { %259 = vst [vmem:[%s230_s23 + $0xc] sm:$0xf] %v258_v3  ;;  %v270_v9 = vld [vmem:[%s1062_s29 + $0x6c] sm:$0xf]  ;;  %v272_v10 = vld [vmem:[%s1062_s29 + $0x78] sm:$0xf] }
  0x21   : > { %261 = vst [vmem:[%s230_s23 + $0x10] sm:$0xf] %v260_v4  ;;  %v274_v11 = vld [vmem:[%s1062_s29 + $0x84] sm:$0xf]  ;;  %v276_v12 = vld [vmem:[%s1062_s29 + $0x90] sm:$0xf] }
  0x22   : > { %263 = vst [vmem:[%s230_s23 + $0x14] sm:$0xf] %v262_v5  ;;  %v278_v13 = vld [vmem:[%s1062_s29 + $0x9c] sm:$0xf]  ;;  %v280_v14 = vld [vmem:[%s1062_s29 + $0xa8] sm:$0xf] }
  0x23   : > { %265 = vst [vmem:[%s230_s23 + $0x18] sm:$0xf] %v264_v6  ;;  %v282_v15 = vld [vmem:[%s1062_s29 + $0xb4] sm:$0xf] }
  0x24   : > { %267 = vst [vmem:[%s230_s23 + $0x1c] sm:$0xf] %v266_v7 }
  0x25   : > { %269 = vst [vmem:[%s230_s23 + $0x20] sm:$0xf] %v268_v8 }
  0x26   : > { %271 = vst [vmem:[%s230_s23 + $0x24] sm:$0xf] %v270_v9 }
  0x27   : > { %273 = vst [vmem:[%s230_s23 + $0x28] sm:$0xf] %v272_v10 }
  0x28   : > { %275 = vst [vmem:[%s230_s23 + $0x2c] sm:$0xf] %v274_v11 }
  0x29   : > { %277 = vst [vmem:[%s230_s23 + $0x30] sm:$0xf] %v276_v12 }
  0x2a   : > { %279 = vst [vmem:[%s230_s23 + $0x34] sm:$0xf] %v278_v13 }
  0x2b   : > { %281 = vst [vmem:[%s230_s23 + $0x38] sm:$0xf] %v280_v14 }
  0x2c   : > { %283 = vst [vmem:[%s230_s23 + $0x3c] sm:$0xf] %v282_v15 }
  0x2d PF: > { %342 = sbr.rel (%p1036_p9) target bundleno = 478 (0x1de), region = 73  ;;  %s345_s30 = sand.u32 (!%p1036_p9), 1, %s942_s15  }
  0x2e   : > { %s725_s5 = sshll.u32 (!%p1036_p9), %s345_s30, 6 }
  0x2f   : > { %s1085_s6 = scalar_lea.vmem (!%p1036_p9), [#allocation2], %s725_s5 }
  0x32   : > { %933 = dma.done.wait (%p1040_p10), [#allocation4], 16  }
  0x33   : > { %935 = vsyncadd (%p1040_p10), [#allocation4], 4294967280 }
  0x34   : > { %937 = dma.done.wait (%p1040_p10), [#allocation6], 16  }
  0x35   : > { %939 = vsyncadd (%p1040_p10), [#allocation6], 4294967280  ;;  %v774_v16 = vld [vmem:[%s1129_s0] sm:$0xff]   ;;  %v962_v19 = vmov 128.0   ;;  %v772_v34 = vld [vmem:[%s1085_s6 + $0x38] sm:$0xff]  ;;  %s728_s28 = sshll.u32 %s345_s30, 3 }
  0x36   : > { %v775_v17 = vunpack.c.l.bf16 %v774_v16  ;;  %v776_v18 = vunpack.c.h.bf16 %v774_v16  ;;  %846 = vrcp.f32 %v962_v19  ;;  %526 = vmatpush.bf16.msra.mxu0 %v772_v34  ;;  %v771_v35 = vld [vmem:[%s1085_s6 + $0x30] sm:$0xff]  ;;  %v770_v36 = vld [vmem:[%s1085_s6 + $0x28] sm:$0xff]  ;;  %v769_v37 = vld [vmem:[%s1085_s6 + $0x20] sm:$0xff]  ;;  %s386_s8 = scalar_lea.vmem [#allocation7], %s728_s28  ;;  %s762_s9 = sshll.u32 (%p1028_p7), %s950_s17, 2 }
  0x37   : > { %v768_v38 = vld [vmem:[%s1085_s6 + $0x18] sm:$0xff]  ;;  %v767_v39 = vld [vmem:[%s1085_s6 + $0x10] sm:$0xff]  ;;  %v766_v40 = vld [vmem:[%s1085_s6 + $0x8] sm:$0xff]  ;;  %s555_s12 = scalar_lea.vmem (%p1028_p7), %s1133_s4, %s762_s9 }
  0x38   : > { %402 = vadd.xlane.f32.xlu0 %v775_v17  ;;  %v765_v42 = vld [vmem:[%s1085_s6] sm:$0xff] }
  0x39   : > { %v844_v61 = vld [vmem:[#allocation3] ss:$0 sm:$0xff]  ;;  %v845_v2 = vld [vmem:[#allocation5] ss:$0 sm:$0xff] }
  0x3a   : > { %527 = vmatpush.bf16.msra.mxu0 %v771_v35 }
  0x3c   : > { %v847_v20 = vpop.eup %846 }
  0x3d   : > { %v407_v21 = vmul.f32 128.0, %v847_v20  ;;  %vm411_vm0 = vweird.f32 %v847_v20 }
  0x3e   : > { %528 = vmatpush.bf16.msra.mxu0 %v770_v36 }
  0x3f   : > { %v408_v22 = vsub.f32 1.0, %v407_v21 }
  0x40   : > { %404 = vadd.xlane.f32.xlu0 %v776_v18 }
  0x41   : > { %v409_v23 = vmul.f32 %v847_v20, %v408_v22 }
  0x42   : > { %529 = vmatpush.bf16.msra.mxu0 %v769_v37 }
  0x43   : > { %v410_v24 = vadd.f32 %v847_v20, %v409_v23 }
  0x45   : > { %v412_v25 = vsel %vm411_vm0, %v847_v20, %v410_v24 }
  0x46   : > { %530 = vmatpush.bf16.msra.mxu0 %v768_v38 }
  0x4a   : > { %531 = vmatpush.bf16.msra.mxu0 %v767_v39 }
  0x4e   : > { %532 = vmatpush.bf16.msra.mxu0 %v766_v40 }
  0x52   : > { %533 = vmatpush.bf16.msra.mxu0 %v765_v42 }
  0xab   : > { %v403_v26 = vpop.xlane.xlu0 %402 }
  0xac   : > { %v413_v27 = vmul.f32 %v412_v25, %v403_v26 }
  0xae   : > { %v415_v28 = vsub.f32 %v775_v17, %v413_v27 }
  0xb0   : > { %v417_v29 = vmul.f32 %v415_v28, %v415_v28 }
  0xb2   : > { %419 = vadd.xlane.f32.xlu1 %v417_v29 }
  0xb3   : > { %v405_v30 = vpop.xlane.xlu0 %404 }
  0xb4   : > { %v414_v31 = vmul.f32 %v412_v25, %v405_v30 }
  0xb6   : > { %v416_v32 = vsub.f32 %v776_v18, %v414_v31 }
  0xb8   : > { %v418_v33 = vmul.f32 %v416_v32, %v416_v32 }
  0xba   : > { %421 = vadd.xlane.f32.xlu1 %v418_v33 }
 0x125   : > { %v420_v41 = vpop.xlane.xlu1 %419 }
 0x126   : > { %v423_v43 = vmul.f32 %v420_v41, %v412_v25 }
 0x128   : > { %v425_v44 = vadd.f32 1e-05, %v423_v43 }
 0x12a   : > { %848 = vrsqrt.f32 %v425_v44  ;;  %vm433_vm2 = vweird.f32 %v425_v44 }
 0x12d   : > { %v422_v45 = vpop.xlane.xlu1 %421 }
 0x12e   : > { %v424_v46 = vmul.f32 %v422_v45, %v412_v25 }
 0x130   : > { %v849_v47 = vpop.eup %848  ;;  %v426_v48 = vadd.f32 1e-05, %v424_v46 }
 0x131   : > { %v428_v49 = vmul.f32 %v849_v47, %v425_v44  ;;  %vm434_vm1 = vweird.f32 %v849_v47 }
 0x132   : > { %850 = vrsqrt.f32 %v426_v48  ;;  %vm435_vm3 = vmor %vm433_vm2, %vm434_vm1  ;;  %vm443_vm5 = vweird.f32 %v426_v48 }
 0x133   : > { %v429_v50 = vmul.f32 %v849_v47, %v428_v49 }
 0x135   : > { %v430_v51 = vmul.f32 0.5, %v429_v50 }
 0x137   : > { %v431_v52 = vsub.f32 1.5, %v430_v51 }
 0x138   : > { %v851_v53 = vpop.eup %850 }
 0x139   : > { %v432_v54 = vmul.f32 %v849_v47, %v431_v52  ;;  %v438_v55 = vmul.f32 %v851_v53, %v426_v48  ;;  %vm444_vm4 = vweird.f32 %v851_v53 }
 0x13a   : > { %vm445_vm6 = vmor %vm443_vm5, %vm444_vm4 }
 0x13b   : > { %v439_v56 = vmul.f32 %v851_v53, %v438_v55  ;;  %v436_v58 = vsel %vm435_vm3, %v849_v47, %v432_v54 }
 0x13c   : > { %v447_v60 = vmul.f32 %v436_v58, %v415_v28 }
 0x13d   : > { %v440_v57 = vmul.f32 0.5, %v439_v56 }
 0x13e   : > { %v453_v1 = vmul.f32 %v844_v61, %v447_v60 }
 0x13f   : > { %v441_v59 = vsub.f32 1.5, %v440_v57 }
 0x140   : > { %v459_v4 = vadd.f32 %v845_v2, %v453_v1 }
 0x141   : > { %v442_v62 = vmul.f32 %v851_v53, %v441_v59 }
 0x143   : > { %v446_v63 = vsel %vm445_vm6, %v851_v53, %v442_v62 }
 0x144   : > { %v448_v0 = vmul.f32 %v446_v63, %v416_v32 }
 0x146   : > { %v454_v3 = vmul.f32 %v844_v61, %v448_v0 }
 0x148   : > { %v460_v5 = vadd.f32 %v845_v2, %v454_v3 }
 0x14a   : > { %v461_v6 = vpack.c.bf16 %v460_v5, %v459_v4 }
 0x14c   : > { %534 = vmatmul.bf16.vlgmr.msra.gmra.mxu0 %v461_v6 }
 0x1c9   : > { %v535_v7 = vpop.f32.mrf.mxu0 }
 0x1d0   : > { %550 = sbr.rel (!%p1028_p7) target bundleno = 478 (0x1de), region = 89 }
 0x1d1   : > { %v537_v8 = vpop.f32.mrf.mxu0 }
 0x1d2   : > { %v780_v9 = vpack.c.bf16 %v537_v8, %v535_v7 }
 0x1d4   : > { %781 = vst [vmem:[%s386_s8] sm:$0xff] %v780_v9  }
 0x1db   : > { %v572_v10 = vld [vmem:[%s386_s8] sm:$0xf]  ;;  %v574_v11 = vld [vmem:[%s386_s8 + $0x4] sm:$0xf] }
 0x1dc   : > { %573 = vst [vmem:[%s555_s12] sm:$0xf] %v572_v10 }
 0x1dd   : > { %575 = vst [vmem:[%s555_s12 + $0xc] sm:$0xf] %v574_v11 }
 0x1de PF: > { %s16_s19 = sadd.s32 1, %s958_s19   ;;  %s1138_s15 = smov %s946_s16 }
 0x1df   : > { %p13_p0 = scmp.ge.s32.totalorder %s16_s19, 5   ;;  %s1139_s16 = smov %s1034_s26 }
 0x1e0   : > { %s1140_s17 = smov %s954_s18  ;;  %s1141_s18 = smov %s1143_s21 }
 0x1e1   :  { %15 = sbr.rel (!%p13_p0) target bundleno = 4 (0x4), region = 167 }
 0x1e6   :  { %613 = vsyncpa [#allocation4], 1 }
 0x1e7   :  { %615 = vsyncpa [#allocation4 + $0x1], 1 }
 0x1e8   :  { %616 = vsyncpa [#allocation6], 1 }

// kernel: forward.35
= control target key start
LH: loop header
LB: loop body
LE: loop exit
PB: predicated region body
PF: predicated region fallthrough
CT: control target
= control target key end

     0   :  { %9 = vsyncpa [#allocation3], 0  ;;  %s218_s18 = smov [#allocation2]   ;;  %s280_s0 = inlined_call_operand.vmem [shape: bf16[16,128], index: 0, kind: input, shape index: {}]   ;;  %s281_s1 = inlined_call_operand.vmem [shape: bf16[128,128], index: 1, kind: input, shape index: {}]   ;;  %s282_s2 = inlined_call_operand.hbm [shape: f32[1,128], index: 2, kind: input, shape index: {}]   ;;  %s283_s3 = inlined_call_operand.vmem [shape: bf16[16,128], index: 3, kind: input, shape index: {}]   ;;  %s284_s4 = inlined_call_operand.vmem [shape: bf16[16,128], index: 4, kind: output, shape index: {}]  }
   0x1   :  { %s19_s17 = sshll.u32 %s282_s2, 4  ;;  %s21_s19 = sshll.u32 %s218_s18, 4  ;;  %s20_s17 = int_to_ptr.hbm [resolvable:$true] %s19_s17  ;;  %s22_s19 = int_to_ptr.vmem [resolvable:$true] %s21_s19 }
   0x2   :  { %24 = dma.hbm_to_vmem [thread:$0]  %s20_s17, 16, %s22_s19, [#allocation3]  }
   0x3   :  { %216 = dma.done.wait [#allocation3], 16  }
   0x4   :  { %217 = vsyncadd [#allocation3], 4294967280  ;;  %v180_v0 = vld [vmem:[%s281_s1 + $0x38] sm:$0xff]  ;;  %v179_v1 = vld [vmem:[%s281_s1 + $0x30] sm:$0xff] }
   0x5   :  { %107 = vmatpush.bf16.msra.mxu0 %v180_v0  ;;  %v178_v2 = vld [vmem:[%s281_s1 + $0x28] sm:$0xff]  ;;  %v177_v3 = vld [vmem:[%s281_s1 + $0x20] sm:$0xff]  ;;  %v176_v4 = vld [vmem:[%s281_s1 + $0x18] sm:$0xff] }
   0x6   :  { %v175_v5 = vld [vmem:[%s281_s1 + $0x10] sm:$0xff]  ;;  %v174_v6 = vld [vmem:[%s281_s1 + $0x8] sm:$0xff]  ;;  %v173_v7 = vld [vmem:[%s281_s1] sm:$0xff] }
   0x7   :  { %v172_v8 = vld [vmem:[%s280_s0] sm:$0xff] }
   0x8   :  { %v191_v10 = vld [vmem:[#allocation2] ss:$0 sm:$0xff] }
   0x9   :  { %108 = vmatpush.bf16.msra.mxu0 %v179_v1  ;;  %v182_v11 = vld [vmem:[%s283_s3] sm:$0xff]  }
   0xa   :  { %v183_v13 = vunpack.c.l.bf16 %v182_v11  ;;  %v184_v14 = vunpack.c.h.bf16 %v182_v11 }
   0xd   :  { %109 = vmatpush.bf16.msra.mxu0 %v178_v2 }
  0x11   :  { %110 = vmatpush.bf16.msra.mxu0 %v177_v3 }
  0x15   :  { %111 = vmatpush.bf16.msra.mxu0 %v176_v4 }
  0x19   :  { %112 = vmatpush.bf16.msra.mxu0 %v175_v5 }
  0x1d   :  { %113 = vmatpush.bf16.msra.mxu0 %v174_v6 }
  0x21   :  { %114 = vmatpush.bf16.msra.mxu0 %v173_v7 }
  0x24   :  { %115 = vmatmul.bf16.vlgmr.msra.gmra.mxu0 %v172_v8 }
  0xa1   :  { %v116_v9 = vpop.f32.mrf.mxu0 }
  0xa2   :  { %v117_v12 = vadd.f32 %v191_v10, %v116_v9 }
  0xa4   :  { %v125_v17 = vadd.f32 %v183_v13, %v117_v12 }
  0xa9   :  { %v118_v15 = vpop.f32.mrf.mxu0 }
  0xaa   :  { %v119_v16 = vadd.f32 %v191_v10, %v118_v15 }
  0xac   :  { %v126_v18 = vadd.f32 %v184_v14, %v119_v16 }
  0xae   :  { %v188_v19 = vpack.c.bf16 %v126_v18, %v125_v17 }
  0xb0   :  { %189 = vst [vmem:[%s284_s4] sm:$0xff] %v188_v19  }
  0xb1   :  { %135 = vsyncpa [#allocation3], 1 }

// kernel: forward.36
= control target key start
LH: loop header
LB: loop body
LE: loop exit
PB: predicated region body
PF: predicated region fallthrough
CT: control target
= control target key end

     0   :  { %10 = vsyncpa [#allocation3], 0  ;;  %s606_s0 = inlined_call_operand.vmem [shape: bf16[16,128], index: 0, kind: input, shape index: {}]   ;;  %s607_s1 = inlined_call_operand.vmem [shape: bf16[128,256], index: 1, kind: input, shape index: {}]   ;;  %s608_s2 = inlined_call_operand.vmem [shape: f32[1,256], index: 2, kind: input, shape index: {}]   ;;  %s609_s3 = inlined_call_operand.hbm [shape: f32[1,128], index: 3, kind: input, shape index: {}]   ;;  %s610_s4 = inlined_call_operand.hbm [shape: f32[1,128], index: 4, kind: input, shape index: {}]   ;;  %s611_s5 = inlined_call_operand.vmem [shape: bf16[16,256], index: 5, kind: output, shape index: {}]  }
   0x1   :  { %s23_s20 = sshll.u32 %s609_s3, 4  ;;  %s24_s20 = int_to_ptr.hbm [resolvable:$true] %s23_s20 }
   0x2   :  { %11 = vsyncpa [#allocation5], 0  ;;  %s443_s21 = smov [#allocation2]   ;;  %s34_s25 = sshll.u32 %s610_s4, 4  ;;  %s35_s25 = int_to_ptr.hbm [resolvable:$true] %s34_s25 }
   0x3   :  { %s25_s22 = sshll.u32 %s443_s21, 4  ;;  %s444_s26 = smov [#allocation4]   ;;  %s26_s22 = int_to_ptr.vmem [resolvable:$true] %s25_s22 }
   0x4   :  { %28 = dma.hbm_to_vmem [thread:$0]  %s24_s20, 16, %s26_s22, [#allocation3]  }
   0x5   :  { %s36_s27 = sshll.u32 %s444_s26, 4  ;;  %s37_s27 = int_to_ptr.vmem [resolvable:$true] %s36_s27 }
   0x6   :  { %39 = dma.hbm_to_vmem [thread:$0]  %s35_s25, 16, %s37_s27, [#allocation5]  }
   0x7   :  { %439 = dma.done.wait [#allocation3], 16  }
   0x8   :  { %440 = vsyncadd [#allocation3], 4294967280 }
   0x9   :  { %441 = dma.done.wait [#allocation5], 16  }
   0xa   :  { %442 = vsyncadd [#allocation5], 4294967280  ;;  %v369_v0 = vld [vmem:[%s606_s0] sm:$0xff]   ;;  %v445_v3 = vmov 128.0   ;;  %v346_v18 = vld [vmem:[%s607_s1 + $0x70] sm:$0xf] }
   0xb   :  { %v370_v1 = vunpack.c.l.bf16 %v369_v0  ;;  %v371_v2 = vunpack.c.h.bf16 %v369_v0  ;;  %377 = vrcp.f32 %v445_v3  ;;  %v367_v19 = vld [vmem:[%s607_s1 + $0x74] sm:$0xf0]  ;;  %v366_v20 = vld [vmem:[%s607_s1 + $0x74] sm:$0xf]  ;;  %v348_v22 = vld [vmem:[%s607_s1 + $0x78] sm:$0xf0] }
   0xc   :  { %v347_v21 = vor.u32 %v367_v19, %v346_v18  ;;  %v351_v23 = vor.u32 %v366_v20, %v348_v22  ;;  %v338_v24 = vld [vmem:[%s607_s1 + $0x60] sm:$0xf]  ;;  %v365_v25 = vld [vmem:[%s607_s1 + $0x64] sm:$0xf0]  ;;  %v364_v26 = vld [vmem:[%s607_s1 + $0x64] sm:$0xf] }
   0xd   :  { %52 = vadd.xlane.f32.xlu0 %v370_v1  ;;  %v339_v27 = vor.u32 %v365_v25, %v338_v24  ;;  %v340_v28 = vld [vmem:[%s607_s1 + $0x68] sm:$0xf0]  ;;  %v330_v30 = vld [vmem:[%s607_s1 + $0x50] sm:$0xf]  ;;  %v363_v31 = vld [vmem:[%s607_s1 + $0x54] sm:$0xf0] }
   0xe   :  { %214 = vmatpush.bf16.msra.mxu0 %v347_v21  ;;  %228 = vmatpush.bf16.msra.mxu1 %v351_v23  ;;  %v343_v29 = vor.u32 %v364_v26, %v340_v28  ;;  %v362_v32 = vld [vmem:[%s607_s1 + $0x54] sm:$0xf]  ;;  %v331_v33 = vor.u32 %v363_v31, %v330_v30  ;;  %v332_v34 = vld [vmem:[%s607_s1 + $0x58] sm:$0xf0]  ;;  %v322_v36 = vld [vmem:[%s607_s1 + $0x40] sm:$0xf] }
   0xf   :  { %v335_v35 = vor.u32 %v362_v32, %v332_v34  ;;  %v361_v37 = vld [vmem:[%s607_s1 + $0x44] sm:$0xf0]  ;;  %v360_v38 = vld [vmem:[%s607_s1 + $0x44] sm:$0xf]  ;;  %v324_v40 = vld [vmem:[%s607_s1 + $0x48] sm:$0xf0] }
  0x10   :  { %v323_v39 = vor.u32 %v361_v37, %v322_v36  ;;  %v327_v41 = vor.u32 %v360_v38, %v324_v40  ;;  %v314_v42 = vld [vmem:[%s607_s1 + $0x30] sm:$0xf]  ;;  %v359_v43 = vld [vmem:[%s607_s1 + $0x34] sm:$0xf0]  ;;  %v358_v44 = vld [vmem:[%s607_s1 + $0x34] sm:$0xf] }
  0x11   :  { %v378_v4 = vpop.eup %377  ;;  %v315_v45 = vor.u32 %v359_v43, %v314_v42  ;;  %v316_v46 = vld [vmem:[%s607_s1 + $0x38] sm:$0xf0]  ;;  %v306_v48 = vld [vmem:[%s607_s1 + $0x20] sm:$0xf]  ;;  %v357_v49 = vld [vmem:[%s607_s1 + $0x24] sm:$0xf0] }
  0x12   :  { %v57_v5 = vmul.f32 128.0, %v378_v4  ;;  %vm61_vm0 = vweird.f32 %v378_v4  ;;  %215 = vmatpush.bf16.msra.mxu0 %v339_v27  ;;  %229 = vmatpush.bf16.msra.mxu1 %v343_v29  ;;  %v319_v47 = vor.u32 %v358_v44, %v316_v46  ;;  %v356_v50 = vld [vmem:[%s607_s1 + $0x24] sm:$0xf]  ;;  %v307_v51 = vor.u32 %v357_v49, %v306_v48  ;;  %v308_v52 = vld [vmem:[%s607_s1 + $0x28] sm:$0xf0] }
  0x13   :  { %v311_v53 = vor.u32 %v356_v50, %v308_v52  ;;  %v298_v54 = vld [vmem:[%s607_s1 + $0x10] sm:$0xf]  ;;  %v355_v55 = vld [vmem:[%s607_s1 + $0x14] sm:$0xf0]  ;;  %v354_v56 = vld [vmem:[%s607_s1 + $0x14] sm:$0xf] }
  0x14   :  { %v58_v6 = vsub.f32 1.0, %v57_v5  ;;  %v299_v57 = vor.u32 %v355_v55, %v298_v54  ;;  %v300_v58 = vld [vmem:[%s607_s1 + $0x18] sm:$0xf0]  ;;  %v290_v59 = vld [vmem:[%s607_s1] sm:$0xf] }
  0x15   :  { %54 = vadd.xlane.f32.xlu0 %v371_v2  ;;  %v353_v60 = vld [vmem:[%s607_s1 + $0x4] sm:$0xf0]  ;;  %v303_v61 = vor.u32 %v354_v56, %v300_v58  ;;  %v352_v62 = vld [vmem:[%s607_s1 + $0x4] sm:$0xf]  ;;  %v292_v63 = vld [vmem:[%s607_s1 + $0x8] sm:$0xf0] }
  0x16   :  { %v59_v7 = vmul.f32 %v378_v4, %v58_v6  ;;  %216 = vmatpush.bf16.msra.mxu0 %v331_v33  ;;  %230 = vmatpush.bf16.msra.mxu1 %v335_v35  ;;  %v295_v3 = vor.u32 %v352_v62, %v292_v63  ;;  %v375_v23 = vld [vmem:[#allocation2] ss:$0 sm:$0xff]  ;;  %v376_v28 = vld [vmem:[#allocation4] ss:$0 sm:$0xff] }
  0x17   :  { %v128_v33 = vld [vmem:[%s608_s2] sm:$0x3] }
  0x18   :  { %v60_v8 = vadd.f32 %v378_v4, %v59_v7  ;;  %v131_v34 = vperm.slane %v128_v33, 1 }
  0x1a   :  { %v485_v9 = vsel %vm61_vm0, %v378_v4, %v60_v8  ;;  %217 = vmatpush.bf16.msra.mxu0 %v323_v39  ;;  %231 = vmatpush.bf16.msra.mxu1 %v327_v41 }
  0x1e   :  { %218 = vmatpush.bf16.msra.mxu0 %v315_v45  ;;  %232 = vmatpush.bf16.msra.mxu1 %v319_v47 }
  0x22   :  { %219 = vmatpush.bf16.msra.mxu0 %v307_v51  ;;  %233 = vmatpush.bf16.msra.mxu1 %v311_v53 }
  0x26   :  { %220 = vmatpush.bf16.msra.mxu0 %v299_v57  ;;  %234 = vmatpush.bf16.msra.mxu1 %v303_v61 }
  0x2a   :  { %235 = vmatpush.bf16.msra.mxu1 %v295_v3 }
  0x80   :  { %v53_v10 = vpop.xlane.xlu0 %52 }
  0x81   :  { %v63_v11 = vmul.f32 %v485_v9, %v53_v10 }
  0x83   :  { %v488_v12 = vsub.f32 %v370_v1, %v63_v11  ;;  %v291_v1 = vor.u32 %v353_v60, %v290_v59 }
  0x85   :  { %v67_v13 = vmul.f32 %v488_v12, %v488_v12  ;;  %221 = vmatpush.bf16.msra.mxu0 %v291_v1 }
  0x87   :  { %69 = vadd.xlane.f32.xlu1 %v67_v13 }
  0x88   :  { %v55_v14 = vpop.xlane.xlu0 %54 }
  0x89   :  { %v64_v15 = vmul.f32 %v485_v9, %v55_v14 }
  0x8b   :  { %v493_v16 = vsub.f32 %v371_v2, %v64_v15 }
  0x8d   :  { %v68_v17 = vmul.f32 %v493_v16, %v493_v16 }
  0x8f   :  { %71 = vadd.xlane.f32.xlu1 %v68_v17 }
  0xfa   :  { %v70_v0 = vpop.xlane.xlu1 %69 }
  0xfb   :  { %v73_v2 = vmul.f32 %v70_v0, %v485_v9 }
  0xfd   :  { %v75_v4 = vadd.f32 1e-05, %v73_v2 }
  0xff   :  { %379 = vrsqrt.f32 %v75_v4  ;;  %vm83_vm2 = vweird.f32 %v75_v4 }
 0x102   :  { %v72_v5 = vpop.xlane.xlu1 %71 }
 0x103   :  { %v74_v6 = vmul.f32 %v72_v5, %v485_v9 }
 0x105   :  { %v380_v7 = vpop.eup %379  ;;  %v76_v8 = vadd.f32 1e-05, %v74_v6 }
 0x106   :  { %v78_v10 = vmul.f32 %v380_v7, %v75_v4  ;;  %vm84_vm1 = vweird.f32 %v380_v7 }
 0x107   :  { %381 = vrsqrt.f32 %v76_v8  ;;  %vm85_vm3 = vmor %vm83_vm2, %vm84_vm1  ;;  %vm93_vm5 = vweird.f32 %v76_v8 }
 0x108   :  { %v79_v11 = vmul.f32 %v380_v7, %v78_v10 }
 0x10a   :  { %v80_v13 = vmul.f32 0.5, %v79_v11 }
 0x10c   :  { %v81_v14 = vsub.f32 1.5, %v80_v13 }
 0x10d   :  { %v382_v15 = vpop.eup %381 }
 0x10e   :  { %v82_v17 = vmul.f32 %v380_v7, %v81_v14  ;;  %v88_v18 = vmul.f32 %v382_v15, %v76_v8  ;;  %vm94_vm4 = vweird.f32 %v382_v15 }
 0x10f   :  { %vm95_vm6 = vmor %vm93_vm5, %vm94_vm4 }
 0x110   :  { %v89_v19 = vmul.f32 %v382_v15, %v88_v18  ;;  %v86_v21 = vsel %vm85_vm3, %v380_v7, %v82_v17 }
 0x111   :  { %v97_v9 = vmul.f32 %v86_v21, %v488_v12  ;;  %v130_v12 = vperm.slane %v128_v33, 0 }
 0x112   :  { %v90_v20 = vmul.f32 0.5, %v89_v19 }
 0x113   :  { %v103_v27 = vmul.f32 %v375_v23, %v97_v9 }
 0x114   :  { %v91_v22 = vsub.f32 1.5, %v90_v20 }
 0x115   :  { %v109_v30 = vadd.f32 %v376_v28, %v103_v27 }
 0x116   :  { %v92_v24 = vmul.f32 %v382_v15, %v91_v22 }
 0x118   :  { %v96_v25 = vsel %vm95_vm6, %v382_v15, %v92_v24 }
 0x119   :  { %v98_v26 = vmul.f32 %v96_v25, %v493_v16 }
 0x11b   :  { %v104_v29 = vmul.f32 %v375_v23, %v98_v26 }
 0x11d   :  { %v110_v31 = vadd.f32 %v376_v28, %v104_v29 }
 0x11f   :  { %v111_v32 = vpack.c.bf16 %v110_v31, %v109_v30 }
 0x121   :  { %222 = vmatmul.bf16.vlgmr.msra.gmra.mxu0 %v111_v32  ;;  %236 = vmatmul.bf16.vlgmr.msra.gmra.mxu1 %v111_v32 }
 0x19e   :  { %v223_v35 = vpop.f32.mrf.mxu0  ;;  %v237_v36 = vpop.f32.mrf.mxu1 }
 0x19f   :  { %v224_v37 = vadd.f32 %v223_v35, %v130_v12  ;;  %v238_v38 = vadd.f32 %v237_v36, %v131_v34 }
 0x1a1   :  { %v246_v39 = vmul.f32 0.044715, %v224_v37  ;;  %v247_v16 = vmul.f32 0.044715, %v238_v38  ;;  %v242_v62 = vmul.f32 0.5, %v224_v37  ;;  %v243_v2 = vmul.f32 0.5, %v238_v38 }
 0x1a3   :  { %v250_v40 = vmul.f32 %v246_v39, %v224_v37  ;;  %v251_v41 = vmul.f32 %v247_v16, %v238_v38 }
 0x1a5   :  { %v254_v42 = vmul.f32 %v250_v40, %v224_v37  ;;  %v255_v43 = vmul.f32 %v251_v41, %v238_v38 }
 0x1a6   :  { %v225_v44 = vpop.f32.mrf.mxu0  ;;  %v239_v45 = vpop.f32.mrf.mxu1 }
 0x1a7   :  { %v258_v46 = vadd.f32 %v254_v42, %v224_v37  ;;  %v259_v47 = vadd.f32 %v255_v43, %v238_v38  ;;  %v226_v48 = vadd.f32 %v225_v44, %v130_v12  ;;  %v240_v49 = vadd.f32 %v239_v45, %v131_v34 }
 0x1a9   :  { %v262_v50 = vmul.f32 0.7978846, %v258_v46  ;;  %v263_v51 = vmul.f32 0.7978846, %v259_v47  ;;  %v248_v52 = vmul.f32 0.044715, %v226_v48 }
 0x1aa   :  { %v249_v53 = vmul.f32 0.044715, %v240_v49  ;;  %v244_v10 = vmul.f32 0.5, %v226_v48  ;;  %v245_v13 = vmul.f32 0.5, %v240_v49 }
 0x1ab   :  { %383 = vtanh.f32 %v262_v50  ;;  %v252_v54 = vmul.f32 %v248_v52, %v226_v48 }
 0x1ac   :  { %385 = vtanh.f32 %v263_v51  ;;  %v253_v55 = vmul.f32 %v249_v53, %v240_v49 }
 0x1ad   :  { %v256_v56 = vmul.f32 %v252_v54, %v226_v48 }
 0x1ae   :  { %v257_v57 = vmul.f32 %v253_v55, %v240_v49 }
 0x1af   :  { %v260_v58 = vadd.f32 %v256_v56, %v226_v48 }
 0x1b0   :  { %v261_v59 = vadd.f32 %v257_v57, %v240_v49 }
 0x1b1   :  { %v384_v60 = vpop.eup %383  ;;  %v264_v0 = vmul.f32 0.7978846, %v260_v58 }
 0x1b2   :  { %v386_v61 = vpop.eup %385  ;;  %v270_v63 = vadd.f32 1.0, %v384_v60  ;;  %v265_v1 = vmul.f32 0.7978846, %v261_v59 }
 0x1b3   :  { %v271_v3 = vadd.f32 1.0, %v386_v61  ;;  %387 = vtanh.f32 %v264_v0 }
 0x1b4   :  { %v274_v4 = vmul.f32 %v270_v63, %v242_v62  ;;  %389 = vtanh.f32 %v265_v1 }
 0x1b5   :  { %v275_v5 = vmul.f32 %v271_v3, %v243_v2 }
 0x1b7   :  { %v278_v6 = vpack.c.bf16 %v275_v5, %v274_v4 }
 0x1b9   :  { %280 = vst [vmem:[%s611_s5] sm:$0xff] %v278_v6  ;;  %v388_v7 = vpop.eup %387 }
 0x1ba   :  { %v390_v8 = vpop.eup %389  ;;  %v272_v11 = vadd.f32 1.0, %v388_v7 }
 0x1bb   :  { %v273_v14 = vadd.f32 1.0, %v390_v8 }
 0x1bc   :  { %v276_v15 = vmul.f32 %v272_v11, %v244_v10 }
 0x1bd   :  { %v277_v17 = vmul.f32 %v273_v14, %v245_v13 }
 0x1bf   :  { %v279_v18 = vpack.c.bf16 %v277_v17, %v276_v15 }
 0x1c1   :  { %281 = vst [vmem:[%s611_s5 + $0x8] sm:$0xff] %v279_v18 }
 0x1c2   :  { %286 = vsyncpa [#allocation3], 1 }
 0x1c3   :  { %287 = vsyncpa [#allocation5], 1 }

// kernel: forward.38
= control target key start
LH: loop header
LB: loop body
LE: loop exit
PB: predicated region body
PF: predicated region fallthrough
CT: control target
= control target key end

     0   :  { %10 = vsyncpa [#allocation3], 0  ;;  %s390_s0 = inlined_call_operand.vmem [shape: bf16[8,128], index: 0, kind: input, shape index: {}]   ;;  %s391_s1 = inlined_call_operand.vmem [shape: bf16[128,128], index: 1, kind: input, shape index: {}]   ;;  %s392_s2 = inlined_call_operand.hbm [shape: f32[1,128], index: 2, kind: input, shape index: {}]   ;;  %s393_s3 = inlined_call_operand.hbm [shape: f32[1,128], index: 3, kind: input, shape index: {}]   ;;  %s394_s4 = inlined_call_operand.hbm [shape: f32[1,128], index: 4, kind: input, shape index: {}]   ;;  %s395_s5 = inlined_call_operand.vmem [shape: bf16[8,128], index: 5, kind: output, shape index: {}]  }
   0x1   :  { %11 = vsyncpa [#allocation5], 0  ;;  %s32_s20 = sshll.u32 %s393_s3, 4  ;;  %s317_s21 = smov [#allocation4]   ;;  %s33_s20 = int_to_ptr.hbm [resolvable:$true] %s32_s20 }
   0x2   :  { %s34_s22 = sshll.u32 %s317_s21, 4  ;;  %s21_s25 = sshll.u32 %s392_s2, 4  ;;  %s35_s22 = int_to_ptr.vmem [resolvable:$true] %s34_s22  ;;  %s22_s25 = int_to_ptr.hbm [resolvable:$true] %s21_s25 }
   0x3   :  { %37 = dma.hbm_to_vmem [thread:$0]  %s33_s20, 16, %s35_s22, [#allocation5]  }
   0x4   :  { %s318_s26 = smov [#allocation2]   ;;  %s43_s30 = sshll.u32 %s394_s4, 4  ;;  %s44_s30 = int_to_ptr.hbm [resolvable:$true] %s43_s30 }
   0x5   :  { %s23_s27 = sshll.u32 %s318_s26, 4  ;;  %s319_s3 = smov [#allocation6]   ;;  %s24_s27 = int_to_ptr.vmem [resolvable:$true] %s23_s27 }
   0x6   :  { %26 = dma.hbm_to_vmem [thread:$0]  %s22_s25, 16, %s24_s27, [#allocation3]  }
   0x7   :  { %s45_s6 = sshll.u32 %s319_s3, 4  ;;  %s46_s6 = int_to_ptr.vmem [resolvable:$true] %s45_s6 }
   0x8   :  { %48 = dma.hbm_to_vmem [thread:$0]  %s44_s30, 16, %s46_s6, [#allocation5]  }
   0x9   :  { %313 = dma.done.wait [#allocation3], 16  }
   0xa   :  { %314 = vsyncadd [#allocation3], 4294967280 }
   0xb   :  { %315 = dma.done.wait [#allocation5], 32  }
   0xc   :  { %316 = vsyncadd [#allocation5], 4294967264  ;;  %v61_v0 = vld [vmem:[%s390_s0] sm:$0xf]  ;;  %v320_v2 = vmov 128.0   ;;  %v229_v3 = vld [vmem:[%s391_s1 + $0x38] sm:$0xff] }
   0xd   :  { %v62_v1 = vunpack.c.l.bf16 %v61_v0  ;;  %237 = vrcp.f32 %v320_v2  ;;  %169 = vmatpush.bf16.msra.mxu0 %v229_v3  ;;  %v228_v14 = vld [vmem:[%s391_s1 + $0x30] sm:$0xff]  ;;  %v227_v15 = vld [vmem:[%s391_s1 + $0x28] sm:$0xff]  ;;  %v226_v16 = vld [vmem:[%s391_s1 + $0x20] sm:$0xff] }
   0xe   :  { %v225_v17 = vld [vmem:[%s391_s1 + $0x18] sm:$0xff]  ;;  %v224_v18 = vld [vmem:[%s391_s1 + $0x10] sm:$0xff]  ;;  %v223_v19 = vld [vmem:[%s391_s1 + $0x8] sm:$0xff] }
   0xf   :  { %63 = vadd.xlane.f32.xlu0 %v62_v1  ;;  %v222_v20 = vld [vmem:[%s391_s1] sm:$0xff] }
  0x10   :  { %v234_v30 = vld [vmem:[#allocation4] ss:$0 sm:$0xff]  ;;  %v235_v33 = vld [vmem:[#allocation6] ss:$0 sm:$0xff]  ;;  %v236_v37 = vld [vmem:[#allocation2] ss:$0 sm:$0xff] }
  0x11   :  { %170 = vmatpush.bf16.msra.mxu0 %v228_v14 }
  0x13   :  { %v238_v4 = vpop.eup %237 }
  0x14   :  { %v66_v5 = vmul.f32 128.0, %v238_v4  ;;  %vm70_vm0 = vweird.f32 %v238_v4 }
  0x15   :  { %171 = vmatpush.bf16.msra.mxu0 %v227_v15 }
  0x16   :  { %v67_v6 = vsub.f32 1.0, %v66_v5 }
  0x18   :  { %v68_v7 = vmul.f32 %v238_v4, %v67_v6 }
  0x19   :  { %172 = vmatpush.bf16.msra.mxu0 %v226_v16 }
  0x1a   :  { %v69_v8 = vadd.f32 %v238_v4, %v68_v7 }
  0x1c   :  { %v71_v9 = vsel %vm70_vm0, %v238_v4, %v69_v8 }
  0x1d   :  { %173 = vmatpush.bf16.msra.mxu0 %v225_v17 }
  0x21   :  { %174 = vmatpush.bf16.msra.mxu0 %v224_v18 }
  0x25   :  { %175 = vmatpush.bf16.msra.mxu0 %v223_v19 }
  0x29   :  { %176 = vmatpush.bf16.msra.mxu0 %v222_v20 }
  0x82   :  { %v64_v10 = vpop.xlane.xlu0 %63 }
  0x83   :  { %v72_v11 = vmul.f32 %v71_v9, %v64_v10 }
  0x85   :  { %v73_v12 = vsub.f32 %v62_v1, %v72_v11 }
  0x87   :  { %v74_v13 = vmul.f32 %v73_v12, %v73_v12 }
  0x89   :  { %75 = vadd.xlane.f32.xlu0 %v74_v13 }
  0xfc   :  { %v76_v21 = vpop.xlane.xlu0 %75 }
  0xfd   :  { %v77_v22 = vmul.f32 %v76_v21, %v71_v9 }
  0xff   :  { %v78_v23 = vadd.f32 1e-05, %v77_v22 }
 0x101   :  { %239 = vrsqrt.f32 %v78_v23  ;;  %vm85_vm2 = vweird.f32 %v78_v23 }
 0x107   :  { %v240_v24 = vpop.eup %239 }
 0x108   :  { %v80_v25 = vmul.f32 %v240_v24, %v78_v23  ;;  %vm86_vm1 = vweird.f32 %v240_v24 }
 0x109   :  { %vm87_vm3 = vmor %vm85_vm2, %vm86_vm1 }
 0x10a   :  { %v81_v26 = vmul.f32 %v240_v24, %v80_v25 }
 0x10c   :  { %v82_v27 = vmul.f32 0.5, %v81_v26 }
 0x10e   :  { %v83_v28 = vsub.f32 1.5, %v82_v27 }
 0x110   :  { %v84_v29 = vmul.f32 %v240_v24, %v83_v28 }
 0x112   :  { %v88_v31 = vsel %vm87_vm3, %v240_v24, %v84_v29 }
 0x113   :  { %v89_v32 = vmul.f32 %v88_v31, %v73_v12 }
 0x115   :  { %v94_v34 = vmul.f32 %v234_v30, %v89_v32 }
 0x117   :  { %v99_v35 = vadd.f32 %v235_v33, %v94_v34 }
 0x119   :  { %v100_v36 = vpack.c.bf16 %v99_v35, %v99_v35 }
 0x11b   :  { %177 = vmatmul.bf16.vlgmr.msra.gmra.mxu0 %v100_v36 }
 0x198   :  { %v178_v38 = vpop.f32.mrf.mxu0 }
 0x199   :  { %v179_v39 = vadd.f32 %v236_v37, %v178_v38 }
 0x19b   :  { %v182_v40 = vpack.c.bf16 %v179_v39, %v179_v39 }
 0x19d   :  { %183 = vst [vmem:[%s395_s5] sm:$0xf] %v182_v40 }
 0x1a0   :  { %v180_v41 = vpop.f32.mrf.mxu0 }
 0x1a1   :  { %188 = vsyncpa [#allocation3], 1 }
 0x1a2   :  { %189 = vsyncpa [#allocation5], 1 }

// kernel: forward.39
= control target key start
LH: loop header
LB: loop body
LE: loop exit
PB: predicated region body
PF: predicated region fallthrough
CT: control target
= control target key end

     0   :  { %s667_s1 = inlined_call_operand.vmem [shape: bf16[128,512], index: 1, kind: input, shape index: {}]   ;;  %s668_s0 = inlined_call_operand.vmem [shape: bf16[8,128], index: 0, kind: input, shape index: {}]   ;;  %s669_s2 = inlined_call_operand.vmem [shape: f32[1,512], index: 2, kind: input, shape index: {}]   ;;  %s670_s3 = inlined_call_operand.vmem [shape: f32[8,512], index: 3, kind: output, shape index: {}]  }
   0x1   :  { %v391_v0 = vld [vmem:[%s667_s1 + $0xe0] sm:$0xf]  ;;  %v435_v1 = vld [vmem:[%s667_s1 + $0xec] sm:$0xf0]  ;;  %v433_v2 = vld [vmem:[%s667_s1 + $0xe4] sm:$0xf] }
   0x2   :  { %v392_v3 = vor.u32 %v435_v1, %v391_v0  ;;  %v393_v4 = vld [vmem:[%s667_s1 + $0xf0] sm:$0xf0]  ;;  %v399_v5 = vld [vmem:[%s667_s1 + $0xe8] sm:$0xf]  ;;  %v436_v6 = vld [vmem:[%s667_s1 + $0xf4] sm:$0xf0] }
   0x3   :  { %v396_v7 = vor.u32 %v433_v2, %v393_v4  ;;  %v400_v8 = vor.u32 %v436_v6, %v399_v5  ;;  %v434_v9 = vld [vmem:[%s667_s1 + $0xec] sm:$0xf]  ;;  %v401_v10 = vld [vmem:[%s667_s1 + $0xf8] sm:$0xf0]  ;;  %v375_v11 = vld [vmem:[%s667_s1 + $0xc0] sm:$0xf] }
   0x4   :  { %217 = vmatpush.bf16.msra.mxu0 %v392_v3  ;;  %v404_v12 = vor.u32 %v434_v9, %v401_v10  ;;  %v431_v13 = vld [vmem:[%s667_s1 + $0xcc] sm:$0xf0]  ;;  %v429_v14 = vld [vmem:[%s667_s1 + $0xc4] sm:$0xf]  ;;  %v377_v15 = vld [vmem:[%s667_s1 + $0xd0] sm:$0xf0] }
   0x5   :  { %230 = vmatpush.bf16.msra.mxu1 %v396_v7  ;;  %243 = vmatpush.bf16.msra.mxu2 %v400_v8  ;;  %v376_v16 = vor.u32 %v431_v13, %v375_v11  ;;  %v380_v17 = vor.u32 %v429_v14, %v377_v15  ;;  %v383_v18 = vld [vmem:[%s667_s1 + $0xc8] sm:$0xf]  ;;  %v432_v19 = vld [vmem:[%s667_s1 + $0xd4] sm:$0xf0]  ;;  %v430_v20 = vld [vmem:[%s667_s1 + $0xcc] sm:$0xf] }
   0x6   :  { %256 = vmatpush.bf16.msra.mxu3 %v404_v12  ;;  %v384_v21 = vor.u32 %v432_v19, %v383_v18  ;;  %v385_v22 = vld [vmem:[%s667_s1 + $0xd8] sm:$0xf0]  ;;  %v359_v23 = vld [vmem:[%s667_s1 + $0xa0] sm:$0xf]  ;;  %v427_v24 = vld [vmem:[%s667_s1 + $0xac] sm:$0xf0] }
   0x7   :  { %v388_v25 = vor.u32 %v430_v20, %v385_v22  ;;  %v425_v26 = vld [vmem:[%s667_s1 + $0xa4] sm:$0xf]  ;;  %v361_v27 = vld [vmem:[%s667_s1 + $0xb0] sm:$0xf0]  ;;  %v367_v28 = vld [vmem:[%s667_s1 + $0xa8] sm:$0xf]  ;;  %v360_v29 = vor.u32 %v427_v24, %v359_v23 }
   0x8   :  { %218 = vmatpush.bf16.msra.mxu0 %v376_v16  ;;  %v428_v30 = vld [vmem:[%s667_s1 + $0xb4] sm:$0xf0]  ;;  %v426_v31 = vld [vmem:[%s667_s1 + $0xac] sm:$0xf]  ;;  %v369_v32 = vld [vmem:[%s667_s1 + $0xb8] sm:$0xf0]  ;;  %v364_v33 = vor.u32 %v425_v26, %v361_v27 }
   0x9   :  { %231 = vmatpush.bf16.msra.mxu1 %v380_v17  ;;  %244 = vmatpush.bf16.msra.mxu2 %v384_v21  ;;  %v368_v34 = vor.u32 %v428_v30, %v367_v28  ;;  %v343_v35 = vld [vmem:[%s667_s1 + $0x80] sm:$0xf]  ;;  %v423_v36 = vld [vmem:[%s667_s1 + $0x8c] sm:$0xf0]  ;;  %v421_v37 = vld [vmem:[%s667_s1 + $0x84] sm:$0xf]  ;;  %v372_v38 = vor.u32 %v426_v31, %v369_v32 }
   0xa   :  { %257 = vmatpush.bf16.msra.mxu3 %v388_v25  ;;  %v345_v39 = vld [vmem:[%s667_s1 + $0x90] sm:$0xf0]  ;;  %v351_v40 = vld [vmem:[%s667_s1 + $0x88] sm:$0xf]  ;;  %v424_v41 = vld [vmem:[%s667_s1 + $0x94] sm:$0xf0]  ;;  %v344_v44 = vor.u32 %v423_v36, %v343_v35 }
   0xb   :  { %v422_v42 = vld [vmem:[%s667_s1 + $0x8c] sm:$0xf]  ;;  %v353_v43 = vld [vmem:[%s667_s1 + $0x98] sm:$0xf0]  ;;  %v348_v45 = vor.u32 %v421_v37, %v345_v39  ;;  %v352_v46 = vor.u32 %v424_v41, %v351_v40  ;;  %v327_v47 = vld [vmem:[%s667_s1 + $0x60] sm:$0xf] }
   0xc   :  { %219 = vmatpush.bf16.msra.mxu0 %v360_v29  ;;  %v419_v48 = vld [vmem:[%s667_s1 + $0x6c] sm:$0xf0]  ;;  %v417_v49 = vld [vmem:[%s667_s1 + $0x64] sm:$0xf]  ;;  %v356_v50 = vor.u32 %v422_v42, %v353_v43  ;;  %v329_v51 = vld [vmem:[%s667_s1 + $0x70] sm:$0xf0] }
   0xd   :  { %232 = vmatpush.bf16.msra.mxu1 %v364_v33  ;;  %245 = vmatpush.bf16.msra.mxu2 %v368_v34  ;;  %v335_v52 = vld [vmem:[%s667_s1 + $0x68] sm:$0xf]  ;;  %v420_v53 = vld [vmem:[%s667_s1 + $0x74] sm:$0xf0]  ;;  %v418_v54 = vld [vmem:[%s667_s1 + $0x6c] sm:$0xf]  ;;  %v328_v56 = vor.u32 %v419_v48, %v327_v47  ;;  %v332_v57 = vor.u32 %v417_v49, %v329_v51 }
   0xe   :  { %258 = vmatpush.bf16.msra.mxu3 %v372_v38  ;;  %v337_v55 = vld [vmem:[%s667_s1 + $0x78] sm:$0xf0]  ;;  %v336_v58 = vor.u32 %v420_v53, %v335_v52  ;;  %v311_v59 = vld [vmem:[%s667_s1 + $0x40] sm:$0xf]  ;;  %v415_v60 = vld [vmem:[%s667_s1 + $0x4c] sm:$0xf0] }
   0xf   :  { %v413_v61 = vld [vmem:[%s667_s1 + $0x44] sm:$0xf]  ;;  %v340_v62 = vor.u32 %v418_v54, %v337_v55  ;;  %v313_v63 = vld [vmem:[%s667_s1 + $0x50] sm:$0xf0]  ;;  %v319_v0 = vld [vmem:[%s667_s1 + $0x48] sm:$0xf]  ;;  %v312_v4 = vor.u32 %v415_v60, %v311_v59 }
  0x10   :  { %220 = vmatpush.bf16.msra.mxu0 %v344_v44  ;;  %v416_v1 = vld [vmem:[%s667_s1 + $0x54] sm:$0xf0]  ;;  %v414_v2 = vld [vmem:[%s667_s1 + $0x4c] sm:$0xf]  ;;  %v321_v3 = vld [vmem:[%s667_s1 + $0x58] sm:$0xf0]  ;;  %v316_v5 = vor.u32 %v413_v61, %v313_v63 }
  0x11   :  { %233 = vmatpush.bf16.msra.mxu1 %v348_v45  ;;  %246 = vmatpush.bf16.msra.mxu2 %v352_v46  ;;  %v320_v6 = vor.u32 %v416_v1, %v319_v0  ;;  %v295_v7 = vld [vmem:[%s667_s1 + $0x20] sm:$0xf]  ;;  %v411_v8 = vld [vmem:[%s667_s1 + $0x2c] sm:$0xf0]  ;;  %v409_v9 = vld [vmem:[%s667_s1 + $0x24] sm:$0xf]  ;;  %v324_v10 = vor.u32 %v414_v2, %v321_v3 }
  0x12   :  { %259 = vmatpush.bf16.msra.mxu3 %v356_v50  ;;  %v297_v11 = vld [vmem:[%s667_s1 + $0x30] sm:$0xf0]  ;;  %v303_v12 = vld [vmem:[%s667_s1 + $0x28] sm:$0xf]  ;;  %v412_v13 = vld [vmem:[%s667_s1 + $0x34] sm:$0xf0]  ;;  %v296_v16 = vor.u32 %v411_v8, %v295_v7 }
  0x13   :  { %v410_v14 = vld [vmem:[%s667_s1 + $0x2c] sm:$0xf]  ;;  %v305_v15 = vld [vmem:[%s667_s1 + $0x38] sm:$0xf0]  ;;  %v300_v17 = vor.u32 %v409_v9, %v297_v11  ;;  %v304_v18 = vor.u32 %v412_v13, %v303_v12  ;;  %v279_v19 = vld [vmem:[%s667_s1] sm:$0xf] }
  0x14   :  { %221 = vmatpush.bf16.msra.mxu0 %v328_v56  ;;  %v407_v20 = vld [vmem:[%s667_s1 + $0xc] sm:$0xf0]  ;;  %v405_v21 = vld [vmem:[%s667_s1 + $0x4] sm:$0xf]  ;;  %v308_v22 = vor.u32 %v410_v14, %v305_v15  ;;  %v281_v23 = vld [vmem:[%s667_s1 + $0x10] sm:$0xf0] }
  0x15   :  { %234 = vmatpush.bf16.msra.mxu1 %v332_v57  ;;  %247 = vmatpush.bf16.msra.mxu2 %v336_v58  ;;  %v287_v24 = vld [vmem:[%s667_s1 + $0x8] sm:$0xf]  ;;  %v408_v25 = vld [vmem:[%s667_s1 + $0x14] sm:$0xf0]  ;;  %v406_v26 = vld [vmem:[%s667_s1 + $0xc] sm:$0xf]  ;;  %v280_v28 = vor.u32 %v407_v20, %v279_v19  ;;  %v284_v29 = vor.u32 %v405_v21, %v281_v23 }
  0x16   :  { %260 = vmatpush.bf16.msra.mxu3 %v340_v62  ;;  %v289_v27 = vld [vmem:[%s667_s1 + $0x18] sm:$0xf0]  ;;  %v288_v30 = vor.u32 %v408_v25, %v287_v24  ;;  %v14_v32 = vld [vmem:[%s668_s0] sm:$0xf] }
  0x17   :  { %v292_v31 = vor.u32 %v406_v26, %v289_v27  ;;  %v47_v33 = vld [vmem:[%s669_s2] sm:$0xf] }
  0x18   :  { %222 = vmatpush.bf16.msra.mxu0 %v312_v4  ;;  %v49_v34 = vperm.slane %v47_v33, 0  ;;  %v50_v35 = vperm.slane %v47_v33, 1  ;;  %v51_v40 = vperm.slane %v47_v33, 2  ;;  %v52_v41 = vperm.slane %v47_v33, 3 }
  0x19   :  { %235 = vmatpush.bf16.msra.mxu1 %v316_v5  ;;  %248 = vmatpush.bf16.msra.mxu2 %v320_v6 }
  0x1a   :  { %261 = vmatpush.bf16.msra.mxu3 %v324_v10 }
  0x1c   :  { %223 = vmatpush.bf16.msra.mxu0 %v296_v16 }
  0x1d   :  { %236 = vmatpush.bf16.msra.mxu1 %v300_v17  ;;  %249 = vmatpush.bf16.msra.mxu2 %v304_v18 }
  0x1e   :  { %262 = vmatpush.bf16.msra.mxu3 %v308_v22 }
  0x20   :  { %224 = vmatpush.bf16.msra.mxu0 %v280_v28 }
  0x21   :  { %237 = vmatpush.bf16.msra.mxu1 %v284_v29  ;;  %250 = vmatpush.bf16.msra.mxu2 %v288_v30 }
  0x22   :  { %263 = vmatpush.bf16.msra.mxu3 %v292_v31 }
  0x23   :  { %225 = vmatmul.bf16.vlgmr.msra.gmra.mxu0 %v14_v32 }
  0x24   :  { %238 = vmatmul.bf16.vlgmr.msra.gmra.mxu1 %v14_v32  ;;  %251 = vmatmul.bf16.vlgmr.msra.gmra.mxu2 %v14_v32 }
  0x25   :  { %264 = vmatmul.bf16.vlgmr.msra.gmra.mxu3 %v14_v32 }
  0xa0   :  { %v226_v36 = vpop.f32.mrf.mxu0 }
  0xa1   :  { %v227_v37 = vadd.f32 %v226_v36, %v49_v34  ;;  %v239_v38 = vpop.f32.mrf.mxu1 }
  0xa2   :  { %v240_v39 = vadd.f32 %v239_v38, %v50_v35 }
  0xa3   :  { %269 = vst [vmem:[%s670_s3] sm:$0xff] %v227_v37 }
  0xa4   :  { %270 = vst [vmem:[%s670_s3 + $0x8] sm:$0xff] %v240_v39 }
  0xa7   :  { %v252_v42 = vpop.f32.mrf.mxu2 }
  0xa8   :  { %v253_v43 = vadd.f32 %v252_v42, %v51_v40  ;;  %v265_v44 = vpop.f32.mrf.mxu3  ;;  %v228_v45 = vpop.f32.mrf.mxu0 }
  0xa9   :  { %v266_v46 = vadd.f32 %v265_v44, %v52_v41  ;;  %v241_v47 = vpop.f32.mrf.mxu1 }
  0xaa   :  { %271 = vst [vmem:[%s670_s3 + $0x10] sm:$0xff] %v253_v43 }
  0xab   :  { %272 = vst [vmem:[%s670_s3 + $0x18] sm:$0xff] %v266_v46 }
  0xaf   :  { %v254_v48 = vpop.f32.mrf.mxu2 }
  0xb0   :  { %v267_v49 = vpop.f32.mrf.mxu3 }

// kernel: forward.47
= control target key start
LH: loop header
LB: loop body
LE: loop exit
PB: predicated region body
PF: predicated region fallthrough
CT: control target
= control target key end

     0   :  { %8 = vsyncpa [#allocation3], 0  ;;  %s310_s15 = smov [#allocation2]   ;;  %s388_s0 = inlined_call_operand.vmem [shape: bf16[8,256], index: 0, kind: input, shape index: {}]   ;;  %s389_s1 = inlined_call_operand.vmem [shape: bf16[256,128], index: 1, kind: input, shape index: {}]   ;;  %s390_s2 = inlined_call_operand.hbm [shape: f32[1,128], index: 2, kind: input, shape index: {}]   ;;  %s391_s3 = inlined_call_operand.vmem [shape: bf16[8,128], index: 3, kind: output, shape index: {}]  }
   0x1   :  { %s18_s14 = sshll.u32 %s390_s2, 4  ;;  %s20_s16 = sshll.u32 %s310_s15, 4  ;;  %s19_s14 = int_to_ptr.hbm [resolvable:$true] %s18_s14  ;;  %s21_s16 = int_to_ptr.vmem [resolvable:$true] %s20_s16 }
   0x2   :  { %23 = dma.hbm_to_vmem [thread:$0]  %s19_s14, 16, %s21_s16, [#allocation3]  }
   0x3   :  { %308 = dma.done.wait [#allocation3], 16  }
   0x4   :  { %309 = vsyncadd [#allocation3], 4294967280  ;;  %v273_v0 = vld [vmem:[%s389_s1 + $0x38] sm:$0xff]  ;;  %v272_v2 = vld [vmem:[%s389_s1 + $0x30] sm:$0xff] }
   0x5   :  { %v281_v1 = vld [vmem:[%s389_s1 + $0x78] sm:$0xff]  ;;  %168 = vmatpush.bf16.msra.mxu0 %v273_v0  ;;  %v280_v3 = vld [vmem:[%s389_s1 + $0x70] sm:$0xff]  ;;  %v271_v4 = vld [vmem:[%s389_s1 + $0x28] sm:$0xff] }
   0x6   :  { %181 = vmatpush.bf16.msra.mxu1 %v281_v1  ;;  %v279_v5 = vld [vmem:[%s389_s1 + $0x68] sm:$0xff]  ;;  %v270_v6 = vld [vmem:[%s389_s1 + $0x20] sm:$0xff]  ;;  %v269_v8 = vld [vmem:[%s389_s1 + $0x18] sm:$0xff] }
   0x7   :  { %v278_v7 = vld [vmem:[%s389_s1 + $0x60] sm:$0xff]  ;;  %v277_v9 = vld [vmem:[%s389_s1 + $0x58] sm:$0xff]  ;;  %v268_v10 = vld [vmem:[%s389_s1 + $0x10] sm:$0xff] }
   0x8   :  { %v276_v11 = vld [vmem:[%s389_s1 + $0x50] sm:$0xff]  ;;  %v267_v12 = vld [vmem:[%s389_s1 + $0x8] sm:$0xff]  ;;  %v28_v14 = vld [vmem:[%s388_s0] sm:$0xff] }
   0x9   :  { %169 = vmatpush.bf16.msra.mxu0 %v272_v2  ;;  %v275_v13 = vld [vmem:[%s389_s1 + $0x48] sm:$0xff]  ;;  %v66_v15 = vunpack.c.l.b16 %v28_v14  ;;  %v67_v16 = vunpack.c.h.b16 %v28_v14  ;;  %v266_v17 = vld [vmem:[%s389_s1] sm:$0xff] }
   0xa   :  { %182 = vmatpush.bf16.msra.mxu1 %v280_v3  ;;  %v274_v18 = vld [vmem:[%s389_s1 + $0x40] sm:$0xff] }
   0xb   :  { %v68_v19 = vpack.c.b16 %v66_v15, %v66_v15  ;;  %v69_v20 = vpack.c.b16 %v67_v16, %v67_v16  ;;  %v283_v21 = vld [vmem:[#allocation2] ss:$0 sm:$0xff] }
   0xd   :  { %170 = vmatpush.bf16.msra.mxu0 %v271_v4 }
   0xe   :  { %183 = vmatpush.bf16.msra.mxu1 %v279_v5 }
  0x11   :  { %171 = vmatpush.bf16.msra.mxu0 %v270_v6 }
  0x12   :  { %184 = vmatpush.bf16.msra.mxu1 %v278_v7 }
  0x15   :  { %172 = vmatpush.bf16.msra.mxu0 %v269_v8 }
  0x16   :  { %185 = vmatpush.bf16.msra.mxu1 %v277_v9 }
  0x19   :  { %173 = vmatpush.bf16.msra.mxu0 %v268_v10 }
  0x1a   :  { %186 = vmatpush.bf16.msra.mxu1 %v276_v11 }
  0x1d   :  { %174 = vmatpush.bf16.msra.mxu0 %v267_v12 }
  0x1e   :  { %187 = vmatpush.bf16.msra.mxu1 %v275_v13 }
  0x21   :  { %175 = vmatpush.bf16.msra.mxu0 %v266_v17 }
  0x22   :  { %188 = vmatpush.bf16.msra.mxu1 %v274_v18 }
  0x24   :  { %176 = vmatmul.bf16.vlgmr.msra.gmra.mxu0 %v68_v19 }
  0x25   :  { %189 = vmatmul.bf16.vlgmr.msra.gmra.mxu1 %v69_v20 }
  0xa1   :  { %v177_v22 = vpop.f32.mrf.mxu0 }
  0xa2   :  { %v190_v23 = vpop.f32.mrf.mxu1  ;;  %v178_v24 = vadd.f32 %v283_v21, %v177_v22 }
  0xa4   :  { %v191_v25 = vadd.f32 %v190_v23, %v178_v24 }
  0xa6   :  { %v194_v26 = vmax.f32 %v191_v25, 0.0 }
  0xa8   :  { %v195_v27 = vpack.c.bf16 %v194_v26, %v194_v26 }
  0xa9   :  { %v179_v28 = vpop.f32.mrf.mxu0 }
  0xaa   :  { %v192_v29 = vpop.f32.mrf.mxu1  ;;  %196 = vst [vmem:[%s391_s3] sm:$0xf] %v195_v27 }
  0xab   :  { %201 = vsyncpa [#allocation3], 1 }

// kernel: forward.48
= control target key start
LH: loop header
LB: loop body
LE: loop exit
PB: predicated region body
PF: predicated region fallthrough
CT: control target
= control target key end

     0   :  { %8 = vsyncpa [#allocation3], 0  ;;  %s186_s15 = smov [#allocation2]   ;;  %s240_s0 = inlined_call_operand.vmem [shape: bf16[8,128], index: 0, kind: input, shape index: {}]   ;;  %s241_s1 = inlined_call_operand.vmem [shape: bf16[128,128], index: 1, kind: input, shape index: {}]   ;;  %s242_s2 = inlined_call_operand.hbm [shape: f32[1,128], index: 2, kind: input, shape index: {}]   ;;  %s243_s3 = inlined_call_operand.vmem [shape: bf16[8,128], index: 3, kind: output, shape index: {}]  }
   0x1   :  { %s18_s14 = sshll.u32 %s242_s2, 4  ;;  %s20_s16 = sshll.u32 %s186_s15, 4  ;;  %s19_s14 = int_to_ptr.hbm [resolvable:$true] %s18_s14  ;;  %s21_s16 = int_to_ptr.vmem [resolvable:$true] %s20_s16 }
   0x2   :  { %23 = dma.hbm_to_vmem [thread:$0]  %s19_s14, 16, %s21_s16, [#allocation3]  }
   0x3   :  { %184 = dma.done.wait [#allocation3], 16  }
   0x4   :  { %185 = vsyncadd [#allocation3], 4294967280  ;;  %v157_v0 = vld [vmem:[%s241_s1 + $0x38] sm:$0xff]  ;;  %v156_v1 = vld [vmem:[%s241_s1 + $0x30] sm:$0xff] }
   0x5   :  { %97 = vmatpush.bf16.msra.mxu0 %v157_v0  ;;  %v155_v2 = vld [vmem:[%s241_s1 + $0x28] sm:$0xff]  ;;  %v154_v3 = vld [vmem:[%s241_s1 + $0x20] sm:$0xff]  ;;  %v153_v4 = vld [vmem:[%s241_s1 + $0x18] sm:$0xff] }
   0x6   :  { %v152_v5 = vld [vmem:[%s241_s1 + $0x10] sm:$0xff]  ;;  %v151_v6 = vld [vmem:[%s241_s1 + $0x8] sm:$0xff]  ;;  %v150_v7 = vld [vmem:[%s241_s1] sm:$0xff] }
   0x7   :  { %v28_v8 = vld [vmem:[%s240_s0] sm:$0xf] }
   0x8   :  { %v159_v9 = vld [vmem:[#allocation2] ss:$0 sm:$0xff] }
   0x9   :  { %98 = vmatpush.bf16.msra.mxu0 %v156_v1 }
   0xd   :  { %99 = vmatpush.bf16.msra.mxu0 %v155_v2 }
  0x11   :  { %100 = vmatpush.bf16.msra.mxu0 %v154_v3 }
  0x15   :  { %101 = vmatpush.bf16.msra.mxu0 %v153_v4 }
  0x19   :  { %102 = vmatpush.bf16.msra.mxu0 %v152_v5 }
  0x1d   :  { %103 = vmatpush.bf16.msra.mxu0 %v151_v6 }
  0x21   :  { %104 = vmatpush.bf16.msra.mxu0 %v150_v7 }
  0x24   :  { %105 = vmatmul.bf16.vlgmr.msra.gmra.mxu0 %v28_v8 }
  0xa1   :  { %v106_v10 = vpop.f32.mrf.mxu0 }
  0xa2   :  { %v107_v11 = vadd.f32 %v159_v9, %v106_v10 }
  0xa4   :  { %v110_v12 = vmax.f32 %v107_v11, 0.0 }
  0xa6   :  { %v111_v13 = vpack.c.bf16 %v110_v12, %v110_v12 }
  0xa8   :  { %112 = vst [vmem:[%s243_s3] sm:$0xf] %v111_v13 }
  0xa9   :  { %v108_v14 = vpop.f32.mrf.mxu0 }
  0xaa   :  { %117 = vsyncpa [#allocation3], 1 }

// kernel: forward.40
= control target key start
LH: loop header
LB: loop body
LE: loop exit
PB: predicated region body
PF: predicated region fallthrough
CT: control target
= control target key end

     0   :  { %vm267_vm0 = vcmask 1040384   ;;  %vm269_vm1 = vcmask 1042434   ;;  %vm271_vm2 = vcmask 1041408   ;;  %s1486_s1 = inlined_call_operand.vmem [shape: bf16[128,512], index: 1, kind: input, shape index: {}]   ;;  %s1487_s0 = inlined_call_operand.vmem [shape: f32[2,512], index: 0, kind: input, shape index: {}]   ;;  %s1488_s2 = inlined_call_operand.vmem [shape: f32[2,128], index: 2, kind: output, shape index: {}]  }
   0x1   :  { %v801_v0 = vld [vmem:[%s1486_s1 + $0xe0] sm:$0xf]  ;;  %v974_v1 = vld [vmem:[%s1486_s1 + $0xec] sm:$0xf0]  ;;  %v972_v2 = vld [vmem:[%s1486_s1 + $0xe4] sm:$0xf] }
   0x2   :  { %v802_v3 = vor.u32 %v974_v1, %v801_v0  ;;  %v803_v4 = vld [vmem:[%s1486_s1 + $0xf0] sm:$0xf0]  ;;  %v809_v5 = vld [vmem:[%s1486_s1 + $0xe8] sm:$0xf]  ;;  %v975_v6 = vld [vmem:[%s1486_s1 + $0xf4] sm:$0xf0] }
   0x3   :  { %v806_v7 = vor.u32 %v972_v2, %v803_v4  ;;  %v810_v8 = vor.u32 %v975_v6, %v809_v5  ;;  %v973_v9 = vld [vmem:[%s1486_s1 + $0xec] sm:$0xf]  ;;  %v811_v10 = vld [vmem:[%s1486_s1 + $0xf8] sm:$0xf0]  ;;  %v785_v11 = vld [vmem:[%s1486_s1 + $0xc0] sm:$0xf] }
   0x4   :  { %208 = vmatpush.bf16.msra.mxu0 %v802_v3  ;;  %v814_v12 = vor.u32 %v973_v9, %v811_v10  ;;  %v970_v13 = vld [vmem:[%s1486_s1 + $0xcc] sm:$0xf0]  ;;  %v968_v14 = vld [vmem:[%s1486_s1 + $0xc4] sm:$0xf]  ;;  %v787_v15 = vld [vmem:[%s1486_s1 + $0xd0] sm:$0xf0] }
   0x5   :  { %221 = vmatpush.bf16.msra.mxu1 %v806_v7  ;;  %234 = vmatpush.bf16.msra.mxu2 %v810_v8  ;;  %v786_v16 = vor.u32 %v970_v13, %v785_v11  ;;  %v790_v17 = vor.u32 %v968_v14, %v787_v15  ;;  %v793_v18 = vld [vmem:[%s1486_s1 + $0xc8] sm:$0xf]  ;;  %v971_v19 = vld [vmem:[%s1486_s1 + $0xd4] sm:$0xf0]  ;;  %v969_v20 = vld [vmem:[%s1486_s1 + $0xcc] sm:$0xf] }
   0x6   :  { %247 = vmatpush.bf16.msra.mxu3 %v814_v12  ;;  %v794_v21 = vor.u32 %v971_v19, %v793_v18  ;;  %v795_v22 = vld [vmem:[%s1486_s1 + $0xd8] sm:$0xf0]  ;;  %v769_v23 = vld [vmem:[%s1486_s1 + $0xa0] sm:$0xf]  ;;  %v966_v24 = vld [vmem:[%s1486_s1 + $0xac] sm:$0xf0] }
   0x7   :  { %v798_v25 = vor.u32 %v969_v20, %v795_v22  ;;  %v964_v26 = vld [vmem:[%s1486_s1 + $0xa4] sm:$0xf]  ;;  %v771_v27 = vld [vmem:[%s1486_s1 + $0xb0] sm:$0xf0]  ;;  %v777_v28 = vld [vmem:[%s1486_s1 + $0xa8] sm:$0xf]  ;;  %v770_v29 = vor.u32 %v966_v24, %v769_v23 }
   0x8   :  { %209 = vmatpush.bf16.msra.mxu0 %v786_v16  ;;  %v967_v30 = vld [vmem:[%s1486_s1 + $0xb4] sm:$0xf0]  ;;  %v965_v31 = vld [vmem:[%s1486_s1 + $0xac] sm:$0xf]  ;;  %v779_v32 = vld [vmem:[%s1486_s1 + $0xb8] sm:$0xf0]  ;;  %v774_v33 = vor.u32 %v964_v26, %v771_v27 }
   0x9   :  { %222 = vmatpush.bf16.msra.mxu1 %v790_v17  ;;  %235 = vmatpush.bf16.msra.mxu2 %v794_v21  ;;  %v778_v34 = vor.u32 %v967_v30, %v777_v28  ;;  %v753_v35 = vld [vmem:[%s1486_s1 + $0x80] sm:$0xf]  ;;  %v962_v36 = vld [vmem:[%s1486_s1 + $0x8c] sm:$0xf0]  ;;  %v960_v37 = vld [vmem:[%s1486_s1 + $0x84] sm:$0xf]  ;;  %v782_v38 = vor.u32 %v965_v31, %v779_v32 }
   0xa   :  { %248 = vmatpush.bf16.msra.mxu3 %v798_v25  ;;  %v755_v39 = vld [vmem:[%s1486_s1 + $0x90] sm:$0xf0]  ;;  %v761_v40 = vld [vmem:[%s1486_s1 + $0x88] sm:$0xf]  ;;  %v963_v41 = vld [vmem:[%s1486_s1 + $0x94] sm:$0xf0]  ;;  %v754_v44 = vor.u32 %v962_v36, %v753_v35 }
   0xb   :  { %v961_v42 = vld [vmem:[%s1486_s1 + $0x8c] sm:$0xf]  ;;  %v763_v43 = vld [vmem:[%s1486_s1 + $0x98] sm:$0xf0]  ;;  %v758_v45 = vor.u32 %v960_v37, %v755_v39  ;;  %v762_v46 = vor.u32 %v963_v41, %v761_v40  ;;  %v737_v47 = vld [vmem:[%s1486_s1 + $0x60] sm:$0xf] }
   0xc   :  { %210 = vmatpush.bf16.msra.mxu0 %v770_v29  ;;  %v958_v48 = vld [vmem:[%s1486_s1 + $0x6c] sm:$0xf0]  ;;  %v956_v49 = vld [vmem:[%s1486_s1 + $0x64] sm:$0xf]  ;;  %v766_v50 = vor.u32 %v961_v42, %v763_v43  ;;  %v739_v51 = vld [vmem:[%s1486_s1 + $0x70] sm:$0xf0] }
   0xd   :  { %223 = vmatpush.bf16.msra.mxu1 %v774_v33  ;;  %236 = vmatpush.bf16.msra.mxu2 %v778_v34  ;;  %v745_v52 = vld [vmem:[%s1486_s1 + $0x68] sm:$0xf]  ;;  %v959_v53 = vld [vmem:[%s1486_s1 + $0x74] sm:$0xf0]  ;;  %v957_v54 = vld [vmem:[%s1486_s1 + $0x6c] sm:$0xf]  ;;  %v738_v56 = vor.u32 %v958_v48, %v737_v47  ;;  %v742_v57 = vor.u32 %v956_v49, %v739_v51 }
   0xe   :  { %249 = vmatpush.bf16.msra.mxu3 %v782_v38  ;;  %v747_v55 = vld [vmem:[%s1486_s1 + $0x78] sm:$0xf0]  ;;  %v746_v58 = vor.u32 %v959_v53, %v745_v52  ;;  %v721_v59 = vld [vmem:[%s1486_s1 + $0x40] sm:$0xf]  ;;  %v954_v60 = vld [vmem:[%s1486_s1 + $0x4c] sm:$0xf0] }
   0xf   :  { %v952_v61 = vld [vmem:[%s1486_s1 + $0x44] sm:$0xf]  ;;  %v750_v62 = vor.u32 %v957_v54, %v747_v55  ;;  %v723_v63 = vld [vmem:[%s1486_s1 + $0x50] sm:$0xf0]  ;;  %v729_v0 = vld [vmem:[%s1486_s1 + $0x48] sm:$0xf]  ;;  %v722_v4 = vor.u32 %v954_v60, %v721_v59 }
  0x10   :  { %211 = vmatpush.bf16.msra.mxu0 %v754_v44  ;;  %v955_v1 = vld [vmem:[%s1486_s1 + $0x54] sm:$0xf0]  ;;  %v953_v2 = vld [vmem:[%s1486_s1 + $0x4c] sm:$0xf]  ;;  %v731_v3 = vld [vmem:[%s1486_s1 + $0x58] sm:$0xf0]  ;;  %v726_v6 = vor.u32 %v952_v61, %v723_v63 }
  0x11   :  { %224 = vmatpush.bf16.msra.mxu1 %v758_v45  ;;  %237 = vmatpush.bf16.msra.mxu2 %v762_v46  ;;  %v705_v5 = vld [vmem:[%s1486_s1 + $0x20] sm:$0xf]  ;;  %v730_v7 = vor.u32 %v955_v1, %v729_v0  ;;  %v950_v8 = vld [vmem:[%s1486_s1 + $0x2c] sm:$0xf0]  ;;  %v948_v9 = vld [vmem:[%s1486_s1 + $0x24] sm:$0xf]  ;;  %v734_v11 = vor.u32 %v953_v2, %v731_v3 }
  0x12   :  { %250 = vmatpush.bf16.msra.mxu3 %v766_v50  ;;  %v707_v10 = vld [vmem:[%s1486_s1 + $0x30] sm:$0xf0]  ;;  %v713_v12 = vld [vmem:[%s1486_s1 + $0x28] sm:$0xf]  ;;  %v951_v13 = vld [vmem:[%s1486_s1 + $0x34] sm:$0xf0]  ;;  %v706_v17 = vor.u32 %v950_v8, %v705_v5 }
  0x13   :  { %v1041_v14 = vmov 0.0   ;;  %v949_v15 = vld [vmem:[%s1486_s1 + $0x2c] sm:$0xf]  ;;  %v715_v16 = vld [vmem:[%s1486_s1 + $0x38] sm:$0xf0]  ;;  %v710_v18 = vor.u32 %v948_v9, %v707_v10  ;;  %v714_v19 = vor.u32 %v951_v13, %v713_v12 }
  0x14   :  { %212 = vmatpush.bf16.msra.mxu0 %v738_v56  ;;  %11 = vst [vmem:[#allocation2] sm:$0x1] %v1041_v14  ;;  %v689_v20 = vld [vmem:[%s1486_s1] sm:$0xf]  ;;  %v946_v21 = vld [vmem:[%s1486_s1 + $0xc] sm:$0xf0]  ;;  %v718_v23 = vor.u32 %v949_v15, %v715_v16 }
  0x15   :  { %225 = vmatpush.bf16.msra.mxu1 %v742_v57  ;;  %238 = vmatpush.bf16.msra.mxu2 %v746_v58  ;;  %12 = vst [vmem:[#allocation3] sm:$0x1] %v1041_v14  ;;  %v944_v22 = vld [vmem:[%s1486_s1 + $0x4] sm:$0xf]  ;;  %v691_v24 = vld [vmem:[%s1486_s1 + $0x10] sm:$0xf0]  ;;  %v690_v29 = vor.u32 %v946_v21, %v689_v20 }
  0x16   :  { %251 = vmatpush.bf16.msra.mxu3 %v750_v62  ;;  %v697_v25 = vld [vmem:[%s1486_s1 + $0x8] sm:$0xf]  ;;  %v947_v26 = vld [vmem:[%s1486_s1 + $0x14] sm:$0xf0]  ;;  %v945_v27 = vld [vmem:[%s1486_s1 + $0xc] sm:$0xf]  ;;  %v694_v30 = vor.u32 %v944_v22, %v691_v24 }
  0x17   :  { %v699_v28 = vld [vmem:[%s1486_s1 + $0x18] sm:$0xf0]  ;;  %v698_v31 = vor.u32 %v947_v26, %v697_v25  ;;  %v930_v38 = vld [vmem:[%s1486_s1 + $0xe0] sm:$0xf]  ;;  %v1006_v39 = vld [vmem:[%s1486_s1 + $0xec] sm:$0xf0] }
  0x18   :  { %213 = vmatpush.bf16.msra.mxu0 %v722_v4  ;;  %v702_v33 = vor.u32 %v945_v27, %v699_v28  ;;  %v1004_v40 = vld [vmem:[%s1486_s1 + $0xe4] sm:$0xf]  ;;  %v931_v42 = vor.u32 %v1006_v39, %v930_v38  ;;  %v932_v43 = vld [vmem:[%s1486_s1 + $0xf0] sm:$0xf0]  ;;  %v938_v44 = vld [vmem:[%s1486_s1 + $0xe8] sm:$0xf] }
  0x19   :  { %226 = vmatpush.bf16.msra.mxu1 %v726_v6  ;;  %239 = vmatpush.bf16.msra.mxu2 %v730_v7  ;;  %v1007_v45 = vld [vmem:[%s1486_s1 + $0xf4] sm:$0xf0]  ;;  %v935_v49 = vor.u32 %v1004_v40, %v932_v43  ;;  %v1005_v51 = vld [vmem:[%s1486_s1 + $0xec] sm:$0xf]  ;;  %v940_v52 = vld [vmem:[%s1486_s1 + $0xf8] sm:$0xf0] }
  0x1a   :  { %252 = vmatpush.bf16.msra.mxu3 %v734_v11  ;;  %v939_v50 = vor.u32 %v1007_v45, %v938_v44  ;;  %v13_v54 = vld [vmem:[%s1487_s0] ss:$2 sm:$0xf]  ;;  %v943_v57 = vor.u32 %v1005_v51, %v940_v52  ;;  %v1002_v59 = vld [vmem:[%s1486_s1 + $0xcc] sm:$0xf0] }
  0x1b   :  { %v14_v32 = vld [vmem:[#allocation2] sm:$0x1]  ;;  %v1000_v60 = vld [vmem:[%s1486_s1 + $0xc4] sm:$0xf]  ;;  %v916_v63 = vld [vmem:[%s1486_s1 + $0xd0] sm:$0xf0] }
  0x1c   :  { %214 = vmatpush.bf16.msra.mxu0 %v706_v17  ;;  %v15_v34 = vpack.c.bf16 %v14_v32, %v14_v32  ;;  %v914_v58 = vld [vmem:[%s1486_s1 + $0xc0] sm:$0xf]  ;;  %v922_v0 = vld [vmem:[%s1486_s1 + $0xc8] sm:$0xf]  ;;  %v1003_v1 = vld [vmem:[%s1486_s1 + $0xd4] sm:$0xf0]  ;;  %v919_v3 = vor.u32 %v1000_v60, %v916_v63 }
  0x1d   :  { %227 = vmatpush.bf16.msra.mxu1 %v710_v18  ;;  %240 = vmatpush.bf16.msra.mxu2 %v714_v19  ;;  %v915_v62 = vor.u32 %v1002_v59, %v914_v58  ;;  %v923_v4 = vor.u32 %v1003_v1, %v922_v0  ;;  %v1001_v5 = vld [vmem:[%s1486_s1 + $0xcc] sm:$0xf]  ;;  %v924_v6 = vld [vmem:[%s1486_s1 + $0xd8] sm:$0xf0]  ;;  %v898_v9 = vld [vmem:[%s1486_s1 + $0xa0] sm:$0xf] }
  0x1e   :  { %253 = vmatpush.bf16.msra.mxu3 %v718_v23  ;;  %v927_v8 = vor.u32 %v1001_v5, %v924_v6  ;;  %v998_v10 = vld [vmem:[%s1486_s1 + $0xac] sm:$0xf0]  ;;  %v996_v11 = vld [vmem:[%s1486_s1 + $0xa4] sm:$0xf]  ;;  %v900_v16 = vld [vmem:[%s1486_s1 + $0xb0] sm:$0xf0] }
  0x1f   :  { %v899_v18 = vor.u32 %v998_v10, %v898_v9  ;;  %v903_v19 = vor.u32 %v996_v11, %v900_v16  ;;  %v906_v20 = vld [vmem:[%s1486_s1 + $0xa8] sm:$0xf]  ;;  %v999_v21 = vld [vmem:[%s1486_s1 + $0xb4] sm:$0xf0]  ;;  %v997_v25 = vld [vmem:[%s1486_s1 + $0xac] sm:$0xf] }
  0x20   :  { %215 = vmatpush.bf16.msra.mxu0 %v690_v29  ;;  %v907_v26 = vor.u32 %v999_v21, %v906_v20  ;;  %v908_v27 = vld [vmem:[%s1486_s1 + $0xb8] sm:$0xf0]  ;;  %v882_v28 = vld [vmem:[%s1486_s1 + $0x80] sm:$0xf]  ;;  %v994_v29 = vld [vmem:[%s1486_s1 + $0x8c] sm:$0xf0] }
  0x21   :  { %228 = vmatpush.bf16.msra.mxu1 %v694_v30  ;;  %241 = vmatpush.bf16.msra.mxu2 %v698_v31  ;;  %v911_v32 = vor.u32 %v997_v25, %v908_v27  ;;  %v993_v40 = vld [vmem:[%s1486_s1 + $0x8c] sm:$0xf]  ;;  %v866_v43 = vld [vmem:[%s1486_s1 + $0x60] sm:$0xf]  ;;  %v990_v44 = vld [vmem:[%s1486_s1 + $0x6c] sm:$0xf0] }
  0x22   :  { %254 = vmatpush.bf16.msra.mxu3 %v702_v33  ;;  %v992_v33 = vld [vmem:[%s1486_s1 + $0x84] sm:$0xf]  ;;  %v989_v52 = vld [vmem:[%s1486_s1 + $0x6c] sm:$0xf]  ;;  %v986_v58 = vld [vmem:[%s1486_s1 + $0x4c] sm:$0xf0] }
  0x23   :  { %216 = vmatmul.bf16.vlgmr.msra.gmra.mxu0 %v15_v34  ;;  %v988_v45 = vld [vmem:[%s1486_s1 + $0x64] sm:$0xf]  ;;  %v858_v63 = vld [vmem:[%s1486_s1 + $0x48] sm:$0xf]  ;;  %v987_v1 = vld [vmem:[%s1486_s1 + $0x54] sm:$0xf0] }
  0x24   :  { %229 = vmatmul.bf16.vlgmr.msra.gmra.mxu1 %v15_v34  ;;  %242 = vmatmul.bf16.vlgmr.msra.gmra.mxu2 %v15_v34  ;;  %v859_v5 = vor.u32 %v987_v1, %v858_v63  ;;  %v985_v6 = vld [vmem:[%s1486_s1 + $0x4c] sm:$0xf]  ;;  %v834_v10 = vld [vmem:[%s1486_s1 + $0x20] sm:$0xf]  ;;  %v982_v11 = vld [vmem:[%s1486_s1 + $0x2c] sm:$0xf0] }
  0x25   :  { %255 = vmatmul.bf16.vlgmr.msra.gmra.mxu3 %v15_v34  ;;  %545 = vmatpush.bf16.msrb.mxu0 %v931_v42  ;;  %v883_v34 = vor.u32 %v994_v29, %v882_v28  ;;  %v842_v16 = vld [vmem:[%s1486_s1 + $0x28] sm:$0xf]  ;;  %v981_v20 = vld [vmem:[%s1486_s1 + $0x2c] sm:$0xf]  ;;  %v844_v21 = vld [vmem:[%s1486_s1 + $0x38] sm:$0xf0] }
  0x26   :  { %558 = vmatpush.bf16.msrb.mxu1 %v935_v49  ;;  %571 = vmatpush.bf16.msrb.mxu2 %v939_v50  ;;  %v991_v49 = vld [vmem:[%s1486_s1 + $0x74] sm:$0xf0]  ;;  %v978_v25 = vld [vmem:[%s1486_s1 + $0xc] sm:$0xf0]  ;;  %v820_v28 = vld [vmem:[%s1486_s1 + $0x10] sm:$0xf0] }
  0x27   :  { %584 = vmatpush.bf16.msrb.mxu3 %v943_v57  ;;  %v850_v57 = vld [vmem:[%s1486_s1 + $0x40] sm:$0xf]  ;;  %v826_v29 = vld [vmem:[%s1486_s1 + $0x8] sm:$0xf] }
  0x28   :  { %v851_v60 = vor.u32 %v986_v58, %v850_v57 }
  0x29   :  { %546 = vmatpush.bf16.msrb.mxu0 %v915_v62  ;;  %v852_v62 = vld [vmem:[%s1486_s1 + $0x50] sm:$0xf0] }
  0x2a   :  { %559 = vmatpush.bf16.msrb.mxu1 %v919_v3  ;;  %572 = vmatpush.bf16.msrb.mxu2 %v923_v4 }
  0x2b   :  { %585 = vmatpush.bf16.msrb.mxu3 %v927_v8  ;;  %v860_v8 = vld [vmem:[%s1486_s1 + $0x58] sm:$0xf0] }
  0x2c   :  { %v863_v9 = vor.u32 %v985_v6, %v860_v8 }
  0x2d   :  { %547 = vmatpush.bf16.msrb.mxu0 %v899_v18 }
  0x2e   :  { %560 = vmatpush.bf16.msrb.mxu1 %v903_v19  ;;  %573 = vmatpush.bf16.msrb.mxu2 %v907_v26  ;;  %v976_v26 = vld [vmem:[%s1486_s1 + $0x4] sm:$0xf] }
  0x2f   :  { %586 = vmatpush.bf16.msrb.mxu3 %v911_v32 }
  0x31   :  { %548 = vmatpush.bf16.msrb.mxu0 %v883_v34  ;;  %v979_v34 = vld [vmem:[%s1486_s1 + $0x14] sm:$0xf0] }
  0xa0   :  { %v217_v35 = vpop.f32.mrf.mxu0 }
  0xa1   :  { %v230_v36 = vpop.f32.mrf.mxu1 }
  0xa2   :  { %v264_v37 = vrot.slane %v230_v36, 7  ;;  %v890_v36 = vld [vmem:[%s1486_s1 + $0x88] sm:$0xf] }
  0xa4   :  { %v268_v53 = vsel %vm267_vm0, %v217_v35, %v264_v37  ;;  %v884_v35 = vld [vmem:[%s1486_s1 + $0x90] sm:$0xf0]  ;;  %v995_v37 = vld [vmem:[%s1486_s1 + $0x94] sm:$0xf0] }
  0xa5   :  { %v887_v38 = vor.u32 %v992_v33, %v884_v35  ;;  %v891_v39 = vor.u32 %v995_v37, %v890_v36  ;;  %v823_v33 = vor.u32 %v976_v26, %v820_v28  ;;  %v977_v35 = vld [vmem:[%s1486_s1 + $0xc] sm:$0xf] }
  0xa7   :  { %v243_v41 = vpop.f32.mrf.mxu2  ;;  %561 = vmatpush.bf16.msrb.mxu1 %v887_v38  ;;  %574 = vmatpush.bf16.msrb.mxu2 %v891_v39  ;;  %v827_v39 = vor.u32 %v979_v34, %v826_v29 }
  0xa8   :  { %v265_v46 = vrot.slane %v243_v41, 6  ;;  %v256_v47 = vpop.f32.mrf.mxu3  ;;  %v219_v48 = vpop.f32.mrf.mxu0  ;;  %v892_v41 = vld [vmem:[%s1486_s1 + $0x98] sm:$0xf0] }
  0xa9   :  { %v266_v55 = vrot.slane %v256_v47, 5  ;;  %v232_v56 = vpop.f32.mrf.mxu1  ;;  %v895_v42 = vor.u32 %v993_v40, %v892_v41  ;;  %v868_v47 = vld [vmem:[%s1486_s1 + $0x70] sm:$0xf0]  ;;  %v874_v48 = vld [vmem:[%s1486_s1 + $0x68] sm:$0xf] }
  0xaa   :  { %v871_v50 = vor.u32 %v988_v45, %v868_v47  ;;  %v875_v51 = vor.u32 %v991_v49, %v874_v48 }
  0xab   :  { %v270_v61 = vsel %vm269_vm1, %v265_v46, %v266_v55  ;;  %v867_v46 = vor.u32 %v990_v44, %v866_v43  ;;  %587 = vmatpush.bf16.msrb.mxu3 %v895_v42 }
  0xac   :  { %v272_v2 = vsel %vm271_vm2, %v268_v53, %v270_v61  ;;  %v876_v53 = vld [vmem:[%s1486_s1 + $0x78] sm:$0xf0]  ;;  %562 = vmatpush.bf16.msrb.mxu1 %v871_v50  ;;  %v984_v61 = vld [vmem:[%s1486_s1 + $0x44] sm:$0xf]  ;;  %575 = vmatpush.bf16.msrb.mxu2 %v875_v51 }
  0xad   :  { %v1303_v7 = vadd.f32 %v272_v2, %v13_v54  ;;  %v879_v55 = vor.u32 %v989_v52, %v876_v53  ;;  %549 = vmatpush.bf16.msrb.mxu0 %v867_v46  ;;  %v855_v4 = vor.u32 %v984_v61, %v852_v62 }
  0xaf   :  { %v275_v12 = vsub.f32 0.0, %v1303_v7  ;;  %v295_v13 = vrot.slane %v1303_v7, 1  ;;  %v319_v14 = vrot.slane %v1303_v7, 3  ;;  %v245_v15 = vpop.f32.mrf.mxu2  ;;  %588 = vmatpush.bf16.msrb.mxu3 %v879_v55  ;;  %v316_v32 = vrot.slane %v1303_v7, 2  ;;  %v828_v7 = vld [vmem:[%s1486_s1 + $0x18] sm:$0xf0] }
  0xb0   :  { %v258_v17 = vpop.f32.mrf.mxu3  ;;  %563 = vmatpush.bf16.msrb.mxu1 %v855_v4  ;;  %576 = vmatpush.bf16.msrb.mxu2 %v859_v5  ;;  %v831_v42 = vor.u32 %v977_v35, %v828_v7  ;;  %v340_v55 = vld [vmem:[#allocation3] sm:$0x1] }
  0xb1   :  { %v276_v22 = vmul.f32 1.442695, %v275_v12  ;;  %v297_v23 = vsub.f32 0.0, %v295_v13  ;;  %v321_v24 = vsub.f32 0.0, %v319_v14  ;;  %550 = vmatpush.bf16.msrb.mxu0 %v851_v60  ;;  %v980_v12 = vld [vmem:[%s1486_s1 + $0x24] sm:$0xf]  ;;  %v835_v14 = vor.u32 %v982_v11, %v834_v10 }
  0xb2   :  { %v836_v13 = vld [vmem:[%s1486_s1 + $0x30] sm:$0xf0]  ;;  %v983_v17 = vld [vmem:[%s1486_s1 + $0x34] sm:$0xf0] }
  0xb3   :  { %1009 = vpow2.f32 %v276_v22  ;;  %v298_v30 = vmul.f32 1.442695, %v297_v23  ;;  %v322_v31 = vmul.f32 1.442695, %v321_v24  ;;  %589 = vmatpush.bf16.msrb.mxu3 %v863_v9  ;;  %v839_v15 = vor.u32 %v980_v12, %v836_v13  ;;  %v818_v24 = vld [vmem:[%s1486_s1] sm:$0xf] }
  0xb4   :  { %v843_v19 = vor.u32 %v983_v17, %v842_v16  ;;  %v847_v23 = vor.u32 %v981_v20, %v844_v21  ;;  %v819_v27 = vor.u32 %v978_v25, %v818_v24 }
  0xb5   :  { %1011 = vpow2.f32 %v298_v30  ;;  %551 = vmatpush.bf16.msrb.mxu0 %v835_v14  ;;  %564 = vmatpush.bf16.msrb.mxu1 %v839_v15 }
  0xb6   :  { %1013 = vpow2.f32 %v322_v31  ;;  %577 = vmatpush.bf16.msrb.mxu2 %v843_v19  ;;  %v815_v19 = vld [vmem:[%s1487_s0 + $0x1] ss:$2 sm:$0xf] }
  0xb7   :  { %590 = vmatpush.bf16.msrb.mxu3 %v847_v23 }
  0xb9   :  { %v1010_v54 = vpop.eup %1009  ;;  %552 = vmatpush.bf16.msrb.mxu0 %v819_v27  ;;  %565 = vmatpush.bf16.msrb.mxu1 %v823_v33 }
  0xba   :  { %v1380_v56 = vadd.f32 1.0, %v1010_v54  ;;  %578 = vmatpush.bf16.msrb.mxu2 %v827_v39 }
  0xbb   :  { %v1012_v59 = vpop.eup %1011  ;;  %591 = vmatpush.bf16.msrb.mxu3 %v831_v42 }
  0xbc   :  { %v1014_v0 = vpop.eup %1013  ;;  %1015 = vrcp.f32 %v1380_v56  ;;  %v1401_v2 = vadd.f32 1.0, %v1012_v59  ;;  %v290_v37 = vand.u32 2147483648, %v1380_v56  ;;  %v288_v43 = vand.u32 2147483647, %v1380_v56 }
  0xbd   :  { %v1403_v3 = vadd.f32 1.0, %v1014_v0  ;;  %vm284_vm4 = vweird.f32 %v1380_v56 }
  0xbe   :  { %1017 = vrcp.f32 %v1401_v2  ;;  %v312_v46 = vand.u32 2147483648, %v1401_v2  ;;  %v310_v48 = vand.u32 2147483647, %v1401_v2  ;;  %v291_v50 = vor.u32 1.1754944e-38, %v290_v37 }
  0xbf   :  { %1019 = vrcp.f32 %v1403_v3  ;;  %vm289_vm7 = vcmp.eq.f32.partialorder %v288_v43, 8.507059e+37  ;;  %vm306_vm8 = vweird.f32 %v1401_v2  ;;  %v336_v0 = vand.u32 2147483648, %v1403_v3 }
  0xc0   :  { %1021 = vtanh.f32 %v316_v32  ;;  %v313_v54 = vor.u32 1.1754944e-38, %v312_v46  ;;  %vm311_vm10 = vcmp.eq.f32.partialorder %v310_v48, 8.507059e+37  ;;  %vm330_vm12 = vweird.f32 %v1403_v3 }
  0xc1   :  { %v334_v1 = vand.u32 2147483647, %v1403_v3  ;;  %v337_v4 = vor.u32 1.1754944e-38, %v336_v0 }
  0xc2   :  { %v1016_v18 = vpop.eup %1015 }
  0xc3   :  { %v280_v22 = vmul.f32 %v1016_v18, %v1380_v56  ;;  %vm285_vm3 = vweird.f32 %v1016_v18  ;;  %vm335_vm14 = vcmp.eq.f32.partialorder %v334_v1, 8.507059e+37 }
  0xc4   :  { %v1018_v30 = vpop.eup %1017  ;;  %vm286_vm5 = vmor %vm284_vm4, %vm285_vm3 }
  0xc5   :  { %v281_v31 = vsub.f32 1.0, %v280_v22  ;;  %v1020_v36 = vpop.eup %1019  ;;  %v302_v38 = vmul.f32 %v1018_v30, %v1401_v2  ;;  %vm307_vm6 = vweird.f32 %v1018_v30 }
  0xc6   :  { %v326_v41 = vmul.f32 %v1020_v36, %v1403_v3  ;;  %vm308_vm9 = vmor %vm306_vm8, %vm307_vm6  ;;  %v1022_v57 = vpop.eup %1021  ;;  %vm331_vm11 = vweird.f32 %v1020_v36 }
  0xc7   :  { %v282_v40 = vmul.f32 %v1016_v18, %v281_v31  ;;  %v303_v44 = vsub.f32 1.0, %v302_v38  ;;  %vm332_vm13 = vmor %vm330_vm12, %vm331_vm11 }
  0xc8   :  { %v327_v51 = vsub.f32 1.0, %v326_v41 }
  0xc9   :  { %v283_v45 = vadd.f32 %v1016_v18, %v282_v40  ;;  %v304_v47 = vmul.f32 %v1018_v30, %v303_v44 }
  0xca   :  { %v328_v59 = vmul.f32 %v1020_v36, %v327_v51 }
  0xcb   :  { %v287_v49 = vsel %vm286_vm5, %v1016_v18, %v283_v45  ;;  %v305_v52 = vadd.f32 %v1018_v30, %v304_v47 }
  0xcc   :  { %v292_v53 = vsel %vm289_vm7, %v291_v50, %v287_v49  ;;  %v329_v63 = vadd.f32 %v1020_v36, %v328_v59 }
  0xcd   :  { %v309_v56 = vsel %vm308_vm9, %v1018_v30, %v305_v52  ;;  %v342_v61 = vmul.f32 %v1022_v57, %v292_v53 }
  0xce   :  { %v314_v58 = vsel %vm311_vm10, %v313_v54, %v309_v56  ;;  %v333_v2 = vsel %vm332_vm13, %v1020_v36, %v329_v63 }
  0xcf   :  { %v341_v60 = vmul.f32 %v340_v55, %v314_v58  ;;  %v338_v6 = vsel %vm335_vm14, %v337_v4, %v333_v2 }
  0xd1   :  { %v343_v62 = vadd.f32 %v342_v61, %v341_v60 }
  0xd3   :  { %1023 = vtanh.f32 %v343_v62  ;;  %346 = vst [vmem:[#allocation3] sm:$0x1] %v343_v62 }
  0xd9   :  { %v1024_v5 = vpop.eup %1023 }
  0xda   :  { %v345_v8 = vmul.f32 %v1024_v5, %v338_v6  ;;  %v674_v1 = vld [vmem:[#allocation3] sm:$0x1] }
  0xdc   :  { %347 = vst [vmem:[#allocation2] sm:$0x1] %v345_v8 }
  0xdd   :  { %348 = vst [vmem:[%s1488_s2] sm:$0x1] %v345_v8 }
  0xe3   :  { %v351_v9 = vld [vmem:[#allocation2] sm:$0x1] }
  0xe4   :  { %v352_v10 = vpack.c.bf16 %v351_v9, %v351_v9 }
  0xe6   :  { %553 = vmatmul.bf16.vlgmr.msrb.gmra.mxu0 %v352_v10  ;;  %566 = vmatmul.bf16.vlgmr.msrb.gmra.mxu1 %v352_v10 }
  0xe7   :  { %579 = vmatmul.bf16.vlgmr.msrb.gmra.mxu2 %v352_v10  ;;  %592 = vmatmul.bf16.vlgmr.msrb.gmra.mxu3 %v352_v10 }
 0x163   :  { %v554_v11 = vpop.f32.mrf.mxu0  ;;  %v567_v3 = vpop.f32.mrf.mxu1 }
 0x164   :  { %v601_v12 = vrot.slane %v567_v3, 7 }
 0x166   :  { %v604_v20 = vsel %vm267_vm0, %v554_v11, %v601_v12 }
 0x16a   :  { %v580_v13 = vpop.f32.mrf.mxu2  ;;  %v593_v14 = vpop.f32.mrf.mxu3 }
 0x16b   :  { %v602_v15 = vrot.slane %v580_v13, 6  ;;  %v603_v16 = vrot.slane %v593_v14, 5  ;;  %v556_v17 = vpop.f32.mrf.mxu0  ;;  %v569_v18 = vpop.f32.mrf.mxu1 }
 0x16d   :  { %v605_v21 = vsel %vm269_vm1, %v602_v15, %v603_v16 }
 0x16e   :  { %v606_v22 = vsel %vm271_vm2, %v604_v20, %v605_v21 }
 0x16f   :  { %v608_v23 = vadd.f32 %v815_v19, %v606_v22 }
 0x171   :  { %v609_v24 = vsub.f32 0.0, %v608_v23  ;;  %v629_v25 = vrot.slane %v608_v23, 1  ;;  %v653_v26 = vrot.slane %v608_v23, 3  ;;  %v650_v43 = vrot.slane %v608_v23, 2 }
 0x172   :  { %v582_v27 = vpop.f32.mrf.mxu2  ;;  %v595_v28 = vpop.f32.mrf.mxu3 }
 0x173   :  { %v610_v29 = vmul.f32 1.442695, %v609_v24  ;;  %v631_v30 = vsub.f32 0.0, %v629_v25  ;;  %v655_v31 = vsub.f32 0.0, %v653_v26 }
 0x175   :  { %1025 = vpow2.f32 %v610_v29  ;;  %v632_v32 = vmul.f32 1.442695, %v631_v30  ;;  %v656_v33 = vmul.f32 1.442695, %v655_v31 }
 0x177   :  { %1027 = vpow2.f32 %v632_v32 }
 0x178   :  { %1029 = vpow2.f32 %v656_v33 }
 0x17b   :  { %v1026_v34 = vpop.eup %1025 }
 0x17c   :  { %v612_v35 = vadd.f32 1.0, %v1026_v34 }
 0x17d   :  { %v1028_v36 = vpop.eup %1027 }
 0x17e   :  { %v1030_v37 = vpop.eup %1029  ;;  %1031 = vrcp.f32 %v612_v35  ;;  %v634_v38 = vadd.f32 1.0, %v1028_v36  ;;  %v624_v47 = vand.u32 2147483648, %v612_v35  ;;  %v622_v49 = vand.u32 2147483647, %v612_v35 }
 0x17f   :  { %v658_v39 = vadd.f32 1.0, %v1030_v37  ;;  %vm618_vm0 = vweird.f32 %v612_v35 }
 0x180   :  { %1033 = vrcp.f32 %v634_v38  ;;  %v646_v52 = vand.u32 2147483648, %v634_v38  ;;  %v644_v54 = vand.u32 2147483647, %v634_v38  ;;  %v625_v56 = vor.u32 1.1754944e-38, %v624_v47 }
 0x181   :  { %1035 = vrcp.f32 %v658_v39  ;;  %vm623_vm3 = vcmp.eq.f32.partialorder %v622_v49, 8.507059e+37  ;;  %vm640_vm4 = vweird.f32 %v634_v38  ;;  %v670_v8 = vand.u32 2147483648, %v658_v39 }
 0x182   :  { %1037 = vtanh.f32 %v650_v43  ;;  %v647_v60 = vor.u32 1.1754944e-38, %v646_v52  ;;  %vm645_vm6 = vcmp.eq.f32.partialorder %v644_v54, 8.507059e+37  ;;  %vm664_vm8 = vweird.f32 %v658_v39 }
 0x183   :  { %v668_v9 = vand.u32 2147483647, %v658_v39  ;;  %v671_v11 = vor.u32 1.1754944e-38, %v670_v8 }
 0x184   :  { %v1032_v7 = vpop.eup %1031 }
 0x185   :  { %v614_v40 = vmul.f32 %v1032_v7, %v612_v35  ;;  %vm619_vm15 = vweird.f32 %v1032_v7  ;;  %vm669_vm10 = vcmp.eq.f32.partialorder %v668_v9, 8.507059e+37 }
 0x186   :  { %v1034_v41 = vpop.eup %1033  ;;  %vm620_vm1 = vmor %vm618_vm0, %vm619_vm15 }
 0x187   :  { %v615_v42 = vsub.f32 1.0, %v614_v40  ;;  %v1036_v44 = vpop.eup %1035  ;;  %v636_v45 = vmul.f32 %v1034_v41, %v634_v38  ;;  %vm641_vm2 = vweird.f32 %v1034_v41 }
 0x188   :  { %v660_v48 = vmul.f32 %v1036_v44, %v658_v39  ;;  %vm642_vm5 = vmor %vm640_vm4, %vm641_vm2  ;;  %v1038_v62 = vpop.eup %1037  ;;  %vm665_vm7 = vweird.f32 %v1036_v44 }
 0x189   :  { %v616_v46 = vmul.f32 %v1032_v7, %v615_v42  ;;  %v637_v50 = vsub.f32 1.0, %v636_v45  ;;  %vm666_vm9 = vmor %vm664_vm8, %vm665_vm7 }
 0x18a   :  { %v661_v57 = vsub.f32 1.0, %v660_v48 }
 0x18b   :  { %v617_v51 = vadd.f32 %v1032_v7, %v616_v46  ;;  %v638_v53 = vmul.f32 %v1034_v41, %v637_v50 }
 0x18c   :  { %v662_v0 = vmul.f32 %v1036_v44, %v661_v57 }
 0x18d   :  { %v621_v55 = vsel %vm620_vm1, %v1032_v7, %v617_v51  ;;  %v639_v58 = vadd.f32 %v1034_v41, %v638_v53 }
 0x18e   :  { %v626_v59 = vsel %vm623_vm3, %v625_v56, %v621_v55  ;;  %v663_v6 = vadd.f32 %v1036_v44, %v662_v0 }
 0x18f   :  { %v643_v61 = vsel %vm642_vm5, %v1034_v41, %v639_v58  ;;  %v676_v4 = vmul.f32 %v1038_v62, %v626_v59 }
 0x190   :  { %v648_v63 = vsel %vm645_vm6, %v647_v60, %v643_v61  ;;  %v667_v10 = vsel %vm666_vm9, %v1036_v44, %v663_v6 }
 0x191   :  { %v675_v2 = vmul.f32 %v674_v1, %v648_v63  ;;  %v672_v12 = vsel %vm669_vm10, %v671_v11, %v667_v10 }
 0x193   :  { %v677_v5 = vadd.f32 %v676_v4, %v675_v2 }
 0x195   :  { %1039 = vtanh.f32 %v677_v5  ;;  %680 = vst [vmem:[#allocation3] sm:$0x1] %v677_v5 }
 0x19b   :  { %v1040_v3 = vpop.eup %1039 }
 0x19c   :  { %v679_v13 = vmul.f32 %v1040_v3, %v672_v12 }
 0x19e   :  { %681 = vst [vmem:[#allocation2] sm:$0x1] %v679_v13 }
 0x19f   :  { %682 = vst [vmem:[%s1488_s2 + $0x1] sm:$0x1] %v679_v13 }

// kernel: forward.49
= control target key start
LH: loop header
LB: loop body
LE: loop exit
PB: predicated region body
PF: predicated region fallthrough
CT: control target
= control target key end

     0   :  { %8 = vsyncpa [#allocation3], 0  ;;  %s184_s15 = smov [#allocation2]   ;;  %s238_s0 = inlined_call_operand.vmem [shape: bf16[8,128], index: 0, kind: input, shape index: {}]   ;;  %s239_s1 = inlined_call_operand.vmem [shape: bf16[128,128], index: 1, kind: input, shape index: {}]   ;;  %s240_s2 = inlined_call_operand.hbm [shape: f32[1,128], index: 2, kind: input, shape index: {}]   ;;  %s241_s3 = inlined_call_operand.vmem [shape: f32[8,128], index: 3, kind: output, shape index: {}]  }
   0x1   :  { %s18_s14 = sshll.u32 %s240_s2, 4  ;;  %s20_s16 = sshll.u32 %s184_s15, 4  ;;  %s19_s14 = int_to_ptr.hbm [resolvable:$true] %s18_s14  ;;  %s21_s16 = int_to_ptr.vmem [resolvable:$true] %s20_s16 }
   0x2   :  { %23 = dma.hbm_to_vmem [thread:$0]  %s19_s14, 16, %s21_s16, [#allocation3]  }
   0x3   :  { %182 = dma.done.wait [#allocation3], 16  }
   0x4   :  { %183 = vsyncadd [#allocation3], 4294967280  ;;  %v155_v0 = vld [vmem:[%s239_s1 + $0x38] sm:$0xff]  ;;  %v154_v1 = vld [vmem:[%s239_s1 + $0x30] sm:$0xff] }
   0x5   :  { %97 = vmatpush.bf16.msra.mxu0 %v155_v0  ;;  %v153_v2 = vld [vmem:[%s239_s1 + $0x28] sm:$0xff]  ;;  %v152_v3 = vld [vmem:[%s239_s1 + $0x20] sm:$0xff]  ;;  %v151_v4 = vld [vmem:[%s239_s1 + $0x18] sm:$0xff] }
   0x6   :  { %v150_v5 = vld [vmem:[%s239_s1 + $0x10] sm:$0xff]  ;;  %v149_v6 = vld [vmem:[%s239_s1 + $0x8] sm:$0xff]  ;;  %v148_v7 = vld [vmem:[%s239_s1] sm:$0xff] }
   0x7   :  { %v28_v8 = vld [vmem:[%s238_s0] sm:$0xf] }
   0x8   :  { %v157_v9 = vld [vmem:[#allocation2] ss:$0 sm:$0xff] }
   0x9   :  { %98 = vmatpush.bf16.msra.mxu0 %v154_v1 }
   0xd   :  { %99 = vmatpush.bf16.msra.mxu0 %v153_v2 }
  0x11   :  { %100 = vmatpush.bf16.msra.mxu0 %v152_v3 }
  0x15   :  { %101 = vmatpush.bf16.msra.mxu0 %v151_v4 }
  0x19   :  { %102 = vmatpush.bf16.msra.mxu0 %v150_v5 }
  0x1d   :  { %103 = vmatpush.bf16.msra.mxu0 %v149_v6 }
  0x21   :  { %104 = vmatpush.bf16.msra.mxu0 %v148_v7 }
  0x24   :  { %105 = vmatmul.bf16.vlgmr.msra.gmra.mxu0 %v28_v8 }
  0xa1   :  { %v106_v10 = vpop.f32.mrf.mxu0 }
  0xa2   :  { %v107_v11 = vadd.f32 %v157_v9, %v106_v10 }
  0xa4   :  { %110 = vst [vmem:[%s241_s3] sm:$0xff] %v107_v11 }
  0xa9   :  { %v108_v12 = vpop.f32.mrf.mxu0 }
  0xaa   :  { %115 = vsyncpa [#allocation3], 1 }

</bundles_post_ra>
